<compile_context>
chip_gen: v7x
topology: tpu7x:2x2x1
jax: 0.10.0
libtpu: 0.0.40
codegen_flags: <defaults>
</compile_context>

<pallas_src>
import functools

import jax
import jax.numpy as jnp
from jax import lax
from jax.experimental import pallas as pl
from jax.experimental.pallas import tpu as pltpu


def _round_up(v, m):
    return (v + m - 1) // m * m


def _point_detector_kernel(x_ref, w1_ref, s1_ref, b1_ref, w2_ref, b2_ref,
                           o_ref, hbuf_ref, acc_ref, *, Wp, W):
    HWo, Cpad = o_ref.shape          # flattened (H, Wp) output frame, padded C
    Lh = hbuf_ref.shape[0]

    # ---- conv1: 3x3/pad=1 as 9 MXU matmuls on contiguous row-slices, -------
    # accumulated in-place in the f32 VMEM scratch (MRB-friendly on v7x).
    # TODO(synk): if the bundle dump shows per-tap sublane-realign copies for
    # the unaligned kx=1,2 offsets, pad Wp up to a multiple of 16 (costs
    # ~(16 - (W+2)%16)/Wp extra rows of FLOPs/VMEM).
    acc_ref[...] = jnp.dot(x_ref[0:HWo, :], w1_ref[0],
                           preferred_element_type=jnp.float32)
    for t in range(1, 9):
        ky, kx = divmod(t, 3)
        s = ky * Wp + kx
        acc_ref[...] += jnp.dot(x_ref[s:s + HWo, :], w1_ref[t],
                                preferred_element_type=jnp.float32)

    # ---- folded eval-mode BatchNorm + ReLU; zero the 2 garbage cols per row
    # (they become conv2's zero padding).  Mask is built in-kernel from iota.
    col = lax.broadcasted_iota(jnp.int32, (HWo, 1), 0) % Wp
    h = jnp.maximum(acc_ref[...] * s1_ref[...] + b1_ref[...], 0.0)
    h16 = jnp.where(col < W, h, 0.0).astype(jnp.bfloat16)

    # ---- stage hidden activation into a zero-bordered padded frame with 3
    # kx-shifted copies along lanes: slot kx (lanes [kx*Cpad,(kx+1)*Cpad))
    # holds h_frame[row + kx].  Border zeroing happens EVERY grid step (not
    # under program_id==0) because the "parallel" batch axis may be sharded
    # across TensorCores on v7x and each core has its own scratch instance.
    hbuf_ref[0:Wp + 1, :] = jnp.zeros((Wp + 1, 3 * Cpad), jnp.bfloat16)
    hbuf_ref[Wp - 1 + HWo:Lh, :] = jnp.zeros((Lh - (Wp - 1 + HWo), 3 * Cpad),
                                             jnp.bfloat16)
    hbuf_ref[Wp + 1:Wp + 1 + HWo, 0:Cpad] = h16
    hbuf_ref[Wp:Wp + HWo, Cpad:2 * Cpad] = h16
    hbuf_ref[Wp - 1:Wp - 1 + HWo, 2 * Cpad:3 * Cpad] = h16

    # ---- conv2: 3 K-packed taps (one per ky), K = 3*Cpad = 384 -------------
    acc_ref[...] = jnp.dot(hbuf_ref[0:HWo, :], w2_ref[0],
                           preferred_element_type=jnp.float32) + b2_ref[...]
    acc_ref[...] += jnp.dot(hbuf_ref[Wp:Wp + HWo, :], w2_ref[1],
                            preferred_element_type=jnp.float32)
    acc_ref[...] += jnp.dot(hbuf_ref[2 * Wp:2 * Wp + HWo, :], w2_ref[2],
                            preferred_element_type=jnp.float32)

    # ---- softmax over channels (padded channels have -1e9 bias -> prob 0) --
    # NOTE: pl.reciprocal(approx=True) has ~2^-12 relative error, so per-pixel
    # probabilities are not bit-exact vs the PyTorch reference (fine for
    # keypoint detection).
    logits = acc_ref[...]
    m = jnp.max(logits, axis=-1, keepdims=True)
    e = jnp.exp(logits - m)
    p = e * pl.reciprocal(jnp.sum(e, axis=-1, keepdims=True), approx=True)
    o_ref[...] = p.astype(o_ref.dtype)


def point_detector_forward(x_nchw, params, out_dtype=jnp.bfloat16):
    """x_nchw: (N, Cin, H, W) float32. Returns (N, Cout, H, W) out_dtype."""
    w1, b1, gamma, beta, run_mean, run_var, w2, b2 = params
    N, Cin, H, W = x_nchw.shape
    Cout = w1.shape[0]
    eps = 1e-5

    Hp, Wp = H + 2, W + 2              # zero-padded spatial extent
    HWo = H * Wp                       # rows of the flattened output frame
    Cpad = _round_up(Cout, 128)        # lane-dense channel dim
    Lx = _round_up(Hp * Wp + 2, 16)    # flattened padded-input rows (+ tail)
    Lh = Lx                            # conv2-input scratch rows

    # ---- wrapper-side layout/dtype prep ------------------------------------
    # TODO(synk): with a channels-last producer the NCHW->NHWC transpose (a
    # full HBM round trip of the Cin activation) disappears; the zero-pad
    # could then be folded into the kernel as a strided DMA into a
    # zero-bordered VMEM scratch (same flattened-frame trick as hbuf).
    x = jnp.transpose(x_nchw, (0, 2, 3, 1))               # NCHW -> NHWC
    x = jnp.pad(x, ((0, 0), (1, 1), (1, 1), (0, 0)))      # conv padding=1
    x = x.reshape(N, Hp * Wp, Cin)
    x = jnp.pad(x, ((0, 0), (0, Lx - Hp * Wp), (0, 0))).astype(jnp.bfloat16)

    # conv1 weights: OIHW (Cout, Cin, 3, 3) -> (9, Cin, Cpad), tap t = ky*3+kx.
    # TODO(synk): co-compute the descriptor head's first conv by concatenating
    # its weights along N (128 + 256 output lanes) to fill the 256-wide MXU.
    w1_t = jnp.transpose(w1.reshape(Cout, Cin, 9), (2, 1, 0))
    w1_t = jnp.pad(w1_t, ((0, 0), (0, 0), (0, Cpad - Cout))).astype(jnp.bfloat16)

    # conv2 weights K-packed per ky: (Cout, Cout, 3, 3) -> (3, 3*Cpad, Cpad),
    # row index within a ky group = kx*Cpad + ci  (matches the hbuf lane slots).
    w2_k = jnp.transpose(w2, (2, 3, 1, 0))                 # (ky, kx, Cin, Cout)
    w2_k = jnp.pad(w2_k, ((0, 0), (0, 0), (0, Cpad - Cout), (0, Cpad - Cout)))
    w2_k = w2_k.reshape(3, 3 * Cpad, Cpad).astype(jnp.bfloat16)

    # Eval-mode BatchNorm folded with the conv1 bias:  h = relu(acc*s + b).
    # TODO(synk): training-mode BatchNorm (per-batch statistics) not implemented.
    scale = gamma / jnp.sqrt(run_var + eps)
    bias1 = (b1 - run_mean) * scale + beta
    scale_p = jnp.pad(scale, (0, Cpad - Cout))[None, :].astype(jnp.float32)
    bias1_p = jnp.pad(bias1, (0, Cpad - Cout))[None, :].astype(jnp.float32)
    # Conv2 bias; padded channels get -1e9 so exp() underflows to exactly 0.
    b2_p = jnp.pad(b2, (0, Cpad - Cout),
                   constant_values=-1e9)[None, :].astype(jnp.float32)

    kernel = functools.partial(_point_detector_kernel, Wp=Wp, W=W)

    # Generation-aware VMEM limit: 3/4 of physical capacity (leaves headroom
    # on v7x's 64 MiB), capped at 100 MiB on v5e/v6e.
    try:
        vmem_limit = min((int(pltpu.get_tpu_info().vmem_capacity_bytes) * 3) // 4,
                         100 * 1024 * 1024)
    except Exception:  # pragma: no cover - conservative fallback
        vmem_limit = 48 * 1024 * 1024

    out_flat = pl.pallas_call(
        kernel,
        out_shape=jax.ShapeDtypeStruct((N, HWo, Cpad), out_dtype),
        grid_spec=pltpu.PrefetchScalarGridSpec(
            num_scalar_prefetch=0,
            # TODO(synk): for very large frames on v7x add an H-tile grid axis
            # (spatial tiles of the flattened frame with a 1-row halo fetched
            # via manual make_async_copy), marked "parallel" so the 2 TCs get
            # work even at N==1.  With bf16 output + the in-kernel mask the
            # whole-frame footprint at SuperPoint's real sizes (~30 MB) still
            # fits v7x's 64 MiB, so whole-frame blocks are kept here.
            grid=(N,),
            in_specs=[
                pl.BlockSpec((None, Lx, Cin), lambda n: (n, 0, 0)),
                pl.BlockSpec((9, Cin, Cpad), lambda n: (0, 0, 0)),
                pl.BlockSpec((1, Cpad), lambda n: (0, 0)),
                pl.BlockSpec((1, Cpad), lambda n: (0, 0)),
                pl.BlockSpec((3, 3 * Cpad, Cpad), lambda n: (0, 0, 0)),
                pl.BlockSpec((1, Cpad), lambda n: (0, 0)),
            ],
            out_specs=pl.BlockSpec((None, HWo, Cpad), lambda n: (n, 0, 0)),
            scratch_shapes=[pltpu.VMEM((Lh, 3 * Cpad), jnp.bfloat16),
                            pltpu.VMEM((HWo, Cpad), jnp.float32)],
        ),
        compiler_params=pltpu.CompilerParams(
            dimension_semantics=("parallel",),
            vmem_limit_bytes=vmem_limit,
        ),
    )(x, w1_t, scale_p, bias1_p, w2_k, b2_p)

    # (N, H*Wp, Cpad) -> (N, H, Wp, Cpad); crop garbage cols / padded channels.
    out = out_flat.reshape(N, H, Wp, Cpad)[:, :, :W, :Cout]
    return jnp.transpose(out, (0, 3, 1, 2))                # back to NCHW


def point_detector_reference(x, params, compute_dtype=jnp.float32):
    """Pure-JAX reference (NCHW). compute_dtype=bf16 matches kernel precision."""
    w1, b1, gamma, beta, run_mean, run_var, w2, b2 = params
    eps = 1e-5

    def q(a):
        return a.astype(compute_dtype).astype(jnp.float32)

    y = lax.conv_general_dilated(
        q(x), q(w1), (1, 1), 'SAME',
        dimension_numbers=('NCHW', 'OIHW', 'NCHW')) + b1[None, :, None, None]
    s = gamma / jnp.sqrt(run_var + eps)
    t = beta - run_mean * s
    y = jnp.maximum(y * s[None, :, None, None] + t[None, :, None, None], 0.0)
    y = lax.conv_general_dilated(
        q(y), q(w2), (1, 1), 'SAME',
        dimension_numbers=('NCHW', 'OIHW', 'NCHW')) + b2[None, :, None, None]
    return jax.nn.softmax(y, axis=1)


def init_params(key, in_channels, out_channels):
    ks = jax.random.split(key, 8)
    w1 = 0.1 * jax.random.normal(ks[0], (out_channels, in_channels, 3, 3),
                                 jnp.float32)
    b1 = 0.1 * jax.random.normal(ks[1], (out_channels,), jnp.float32)
    gamma = 1.0 + 0.1 * jax.random.normal(ks[2], (out_channels,), jnp.float32)
    beta = 0.1 * jax.random.normal(ks[3], (out_channels,), jnp.float32)
    run_mean = 0.1 * jax.random.normal(ks[4], (out_channels,), jnp.float32)
    run_var = 0.5 + jnp.abs(jax.random.normal(ks[5], (out_channels,),
                                              jnp.float32))
    w2 = 0.1 * jax.random.normal(ks[6], (out_channels, out_channels, 3, 3),
                                 jnp.float32)
    b2 = 0.1 * jax.random.normal(ks[7], (out_channels,), jnp.float32)
    return (w1, b1, gamma, beta, run_mean, run_var, w2, b2)


if __name__ == "__main__":
    key = jax.random.PRNGKey(0)
    k_x, k_p = jax.random.split(key)

    # Small shapes consistent with the module (real: Cin=512, Cout=65, H=W/8).
    N, Cin, Cout, H, W = 2, 8, 65, 16, 16

    x = jax.random.normal(k_x, (N, Cin, H, W), jnp.float32)
    params = init_params(k_p, Cin, Cout)

    fwd = jax.jit(point_detector_forward)          # default out_dtype=bf16
    out = jax.block_until_ready(fwd(x, params))

    # bf16-matched reference (kernel uses bf16 MXU inputs, f32 accumulation).
    ref = jax.block_until_ready(
        point_detector_reference(x, params, compute_dtype=jnp.bfloat16))

    out_f32 = out.astype(jnp.float32)
    assert out.shape == (N, Cout, H, W)
    assert out.dtype == jnp.bfloat16
    assert bool(jnp.all(jnp.isfinite(out_f32)))
    # Softmax over the 65 real channels sums to 1 (padded channels get 0);
    # tolerance covers bf16 output quantization + approx reciprocal.
    assert jnp.allclose(jnp.sum(out_f32, axis=1), 1.0, atol=1e-2)
    assert jnp.allclose(out_f32, ref, atol=1e-2, rtol=5e-2)

    print("KERNEL_OK")
</pallas_src>

<mosaic_0001>
module attributes {stable_mosaic.version = 11 : i64} {
  func.func @_point_detector_kernel(%arg0: i32, %arg1: memref<1x336x8xbf16, #tpu.memory_space<vmem>>, %arg2: memref<9x8x128xbf16, #tpu.memory_space<vmem>>, %arg3: memref<1x128xf32, #tpu.memory_space<vmem>>, %arg4: memref<1x128xf32, #tpu.memory_space<vmem>>, %arg5: memref<3x384x128xbf16, #tpu.memory_space<vmem>>, %arg6: memref<1x128xf32, #tpu.memory_space<vmem>>, %arg7: memref<1x288x128xbf16, #tpu.memory_space<vmem>>, %arg8: memref<336x384xbf16, #tpu.memory_space<vmem>>, %arg9: memref<288x128xf32, #tpu.memory_space<vmem>>) attributes {dimension_semantics = [#tpu.dimension_semantics<parallel>], iteration_bounds = array<i64: 2>, scalar_prefetch = 0 : i64, scratch_operands = 2 : i64, tpu.core_type = #tpu.core_type<tc>, window_params = [{transform_indices = @transform_0, window_bounds = array<i64: 1, 336, 8>}, {pipeline_mode = #tpu.pipeline_mode<synchronous>, transform_indices = @transform_1, window_bounds = array<i64: 9, 8, 128>}, {pipeline_mode = #tpu.pipeline_mode<synchronous>, transform_indices = @transform_2, window_bounds = array<i64: 1, 128>}, {pipeline_mode = #tpu.pipeline_mode<synchronous>, transform_indices = @transform_3, window_bounds = array<i64: 1, 128>}, {pipeline_mode = #tpu.pipeline_mode<synchronous>, transform_indices = @transform_4, window_bounds = array<i64: 3, 384, 128>}, {pipeline_mode = #tpu.pipeline_mode<synchronous>, transform_indices = @transform_5, window_bounds = array<i64: 1, 128>}, {transform_indices = @transform_6, window_bounds = array<i64: 1, 288, 128>}]} {
    %c0 = arith.constant 0 : index
    %c0_0 = arith.constant 0 : index
    %c0_1 = arith.constant 0 : index
    %0 = vector.load %arg1[%c0, %c0_0, %c0_1] : memref<1x336x8xbf16, #tpu.memory_space<vmem>>, vector<1x288x8xbf16>
    %1 = vector.shape_cast %0 : vector<1x288x8xbf16> to vector<288x8xbf16>
    %c0_2 = arith.constant 0 : index
    %c0_3 = arith.constant 0 : index
    %c0_4 = arith.constant 0 : index
    %2 = vector.load %arg2[%c0_2, %c0_3, %c0_4] : memref<9x8x128xbf16, #tpu.memory_space<vmem>>, vector<1x8x128xbf16>
    %3 = vector.shape_cast %2 : vector<1x8x128xbf16> to vector<8x128xbf16>
    %cst = arith.constant dense<0.000000e+00> : vector<288x128xf32>
    %4 = tpu.matmul %1, %3, %cst {dimension_numbers = #tpu.dot_dimension_numbers<[1], [0], [0], [1], [0, 0, 1, 1], [], []>} : vector<288x8xbf16>, vector<8x128xbf16>, vector<288x128xf32> -> vector<288x128xf32>
    %c0_5 = arith.constant 0 : index
    %c0_6 = arith.constant 0 : index
    %5 = vector.load %arg9[%c0_5, %c0_6] : memref<288x128xf32, #tpu.memory_space<vmem>>, vector<288x128xf32>
    tpu.vector_store %arg9[%c0_5, %c0_6], %4 {strides = array<i32>} : memref<288x128xf32, #tpu.memory_space<vmem>>, vector<288x128xf32>,
    %c0_7 = arith.constant 0 : index
    %c0_8 = arith.constant 0 : index
    %6 = vector.load %arg9[%c0_7, %c0_8] : memref<288x128xf32, #tpu.memory_space<vmem>>, vector<288x128xf32>
    %c0_9 = arith.constant 0 : index
    %c1 = arith.constant 1 : index
    %c0_10 = arith.constant 0 : index
    %7 = vector.load %arg1[%c0_9, %c1, %c0_10] : memref<1x336x8xbf16, #tpu.memory_space<vmem>>, vector<1x288x8xbf16>
    %8 = vector.shape_cast %7 : vector<1x288x8xbf16> to vector<288x8xbf16>
    %c1_11 = arith.constant 1 : index
    %c0_12 = arith.constant 0 : index
    %c0_13 = arith.constant 0 : index
    %9 = vector.load %arg2[%c1_11, %c0_12, %c0_13] : memref<9x8x128xbf16, #tpu.memory_space<vmem>>, vector<1x8x128xbf16>
    %10 = vector.shape_cast %9 : vector<1x8x128xbf16> to vector<8x128xbf16>
    %cst_14 = arith.constant dense<0.000000e+00> : vector<288x128xf32>
    %11 = tpu.matmul %8, %10, %cst_14 {dimension_numbers = #tpu.dot_dimension_numbers<[1], [0], [0], [1], [0, 0, 1, 1], [], []>} : vector<288x8xbf16>, vector<8x128xbf16>, vector<288x128xf32> -> vector<288x128xf32>
    %12 = arith.addf %6, %11 : vector<288x128xf32>
    %c0_15 = arith.constant 0 : index
    %c0_16 = arith.constant 0 : index
    %13 = vector.load %arg9[%c0_15, %c0_16] : memref<288x128xf32, #tpu.memory_space<vmem>>, vector<288x128xf32>
    tpu.vector_store %arg9[%c0_15, %c0_16], %12 {strides = array<i32>} : memref<288x128xf32, #tpu.memory_space<vmem>>, vector<288x128xf32>,
    %c0_17 = arith.constant 0 : index
    %c0_18 = arith.constant 0 : index
    %14 = vector.load %arg9[%c0_17, %c0_18] : memref<288x128xf32, #tpu.memory_space<vmem>>, vector<288x128xf32>
    %c0_19 = arith.constant 0 : index
    %c2 = arith.constant 2 : index
    %c0_20 = arith.constant 0 : index
    %15 = vector.load %arg1[%c0_19, %c2, %c0_20] : memref<1x336x8xbf16, #tpu.memory_space<vmem>>, vector<1x288x8xbf16>
    %16 = vector.shape_cast %15 : vector<1x288x8xbf16> to vector<288x8xbf16>
    %c2_21 = arith.constant 2 : index
    %c0_22 = arith.constant 0 : index
    %c0_23 = arith.constant 0 : index
    %17 = vector.load %arg2[%c2_21, %c0_22, %c0_23] : memref<9x8x128xbf16, #tpu.memory_space<vmem>>, vector<1x8x128xbf16>
    %18 = vector.shape_cast %17 : vector<1x8x128xbf16> to vector<8x128xbf16>
    %cst_24 = arith.constant dense<0.000000e+00> : vector<288x128xf32>
    %19 = tpu.matmul %16, %18, %cst_24 {dimension_numbers = #tpu.dot_dimension_numbers<[1], [0], [0], [1], [0, 0, 1, 1], [], []>} : vector<288x8xbf16>, vector<8x128xbf16>, vector<288x128xf32> -> vector<288x128xf32>
    %20 = arith.addf %14, %19 : vector<288x128xf32>
    %c0_25 = arith.constant 0 : index
    %c0_26 = arith.constant 0 : index
    %21 = vector.load %arg9[%c0_25, %c0_26] : memref<288x128xf32, #tpu.memory_space<vmem>>, vector<288x128xf32>
    tpu.vector_store %arg9[%c0_25, %c0_26], %20 {strides = array<i32>} : memref<288x128xf32, #tpu.memory_space<vmem>>, vector<288x128xf32>,
    %c0_27 = arith.constant 0 : index
    %c0_28 = arith.constant 0 : index
    %22 = vector.load %arg9[%c0_27, %c0_28] : memref<288x128xf32, #tpu.memory_space<vmem>>, vector<288x128xf32>
    %c0_29 = arith.constant 0 : index
    %c18 = arith.constant 18 : index
    %c0_30 = arith.constant 0 : index
    %23 = vector.load %arg1[%c0_29, %c18, %c0_30] : memref<1x336x8xbf16, #tpu.memory_space<vmem>>, vector<1x288x8xbf16>
    %24 = vector.shape_cast %23 : vector<1x288x8xbf16> to vector<288x8xbf16>
    %c3 = arith.constant 3 : index
    %c0_31 = arith.constant 0 : index
    %c0_32 = arith.constant 0 : index
    %25 = vector.load %arg2[%c3, %c0_31, %c0_32] : memref<9x8x128xbf16, #tpu.memory_space<vmem>>, vector<1x8x128xbf16>
    %26 = vector.shape_cast %25 : vector<1x8x128xbf16> to vector<8x128xbf16>
    %cst_33 = arith.constant dense<0.000000e+00> : vector<288x128xf32>
    %27 = tpu.matmul %24, %26, %cst_33 {dimension_numbers = #tpu.dot_dimension_numbers<[1], [0], [0], [1], [0, 0, 1, 1], [], []>} : vector<288x8xbf16>, vector<8x128xbf16>, vector<288x128xf32> -> vector<288x128xf32>
    %28 = arith.addf %22, %27 : vector<288x128xf32>
    %c0_34 = arith.constant 0 : index
    %c0_35 = arith.constant 0 : index
    %29 = vector.load %arg9[%c0_34, %c0_35] : memref<288x128xf32, #tpu.memory_space<vmem>>, vector<288x128xf32>
    tpu.vector_store %arg9[%c0_34, %c0_35], %28 {strides = array<i32>} : memref<288x128xf32, #tpu.memory_space<vmem>>, vector<288x128xf32>,
    %c0_36 = arith.constant 0 : index
    %c0_37 = arith.constant 0 : index
    %30 = vector.load %arg9[%c0_36, %c0_37] : memref<288x128xf32, #tpu.memory_space<vmem>>, vector<288x128xf32>
    %c0_38 = arith.constant 0 : index
    %c19 = arith.constant 19 : index
    %c0_39 = arith.constant 0 : index
    %31 = vector.load %arg1[%c0_38, %c19, %c0_39] : memref<1x336x8xbf16, #tpu.memory_space<vmem>>, vector<1x288x8xbf16>
    %32 = vector.shape_cast %31 : vector<1x288x8xbf16> to vector<288x8xbf16>
    %c4 = arith.constant 4 : index
    %c0_40 = arith.constant 0 : index
    %c0_41 = arith.constant 0 : index
    %33 = vector.load %arg2[%c4, %c0_40, %c0_41] : memref<9x8x128xbf16, #tpu.memory_space<vmem>>, vector<1x8x128xbf16>
    %34 = vector.shape_cast %33 : vector<1x8x128xbf16> to vector<8x128xbf16>
    %cst_42 = arith.constant dense<0.000000e+00> : vector<288x128xf32>
    %35 = tpu.matmul %32, %34, %cst_42 {dimension_numbers = #tpu.dot_dimension_numbers<[1], [0], [0], [1], [0, 0, 1, 1], [], []>} : vector<288x8xbf16>, vector<8x128xbf16>, vector<288x128xf32> -> vector<288x128xf32>
    %36 = arith.addf %30, %35 : vector<288x128xf32>
    %c0_43 = arith.constant 0 : index
    %c0_44 = arith.constant 0 : index
    %37 = vector.load %arg9[%c0_43, %c0_44] : memref<288x128xf32, #tpu.memory_space<vmem>>, vector<288x128xf32>
    tpu.vector_store %arg9[%c0_43, %c0_44], %36 {strides = array<i32>} : memref<288x128xf32, #tpu.memory_space<vmem>>, vector<288x128xf32>,
    %c0_45 = arith.constant 0 : index
    %c0_46 = arith.constant 0 : index
    %38 = vector.load %arg9[%c0_45, %c0_46] : memref<288x128xf32, #tpu.memory_space<vmem>>, vector<288x128xf32>
    %c0_47 = arith.constant 0 : index
    %c20 = arith.constant 20 : index
    %c0_48 = arith.constant 0 : index
    %39 = vector.load %arg1[%c0_47, %c20, %c0_48] : memref<1x336x8xbf16, #tpu.memory_space<vmem>>, vector<1x288x8xbf16>
    %40 = vector.shape_cast %39 : vector<1x288x8xbf16> to vector<288x8xbf16>
    %c5 = arith.constant 5 : index
    %c0_49 = arith.constant 0 : index
    %c0_50 = arith.constant 0 : index
    %41 = vector.load %arg2[%c5, %c0_49, %c0_50] : memref<9x8x128xbf16, #tpu.memory_space<vmem>>, vector<1x8x128xbf16>
    %42 = vector.shape_cast %41 : vector<1x8x128xbf16> to vector<8x128xbf16>
    %cst_51 = arith.constant dense<0.000000e+00> : vector<288x128xf32>
    %43 = tpu.matmul %40, %42, %cst_51 {dimension_numbers = #tpu.dot_dimension_numbers<[1], [0], [0], [1], [0, 0, 1, 1], [], []>} : vector<288x8xbf16>, vector<8x128xbf16>, vector<288x128xf32> -> vector<288x128xf32>
    %44 = arith.addf %38, %43 : vector<288x128xf32>
    %c0_52 = arith.constant 0 : index
    %c0_53 = arith.constant 0 : index
    %45 = vector.load %arg9[%c0_52, %c0_53] : memref<288x128xf32, #tpu.memory_space<vmem>>, vector<288x128xf32>
    tpu.vector_store %arg9[%c0_52, %c0_53], %44 {strides = array<i32>} : memref<288x128xf32, #tpu.memory_space<vmem>>, vector<288x128xf32>,
    %c0_54 = arith.constant 0 : index
    %c0_55 = arith.constant 0 : index
    %46 = vector.load %arg9[%c0_54, %c0_55] : memref<288x128xf32, #tpu.memory_space<vmem>>, vector<288x128xf32>
    %c0_56 = arith.constant 0 : index
    %c36 = arith.constant 36 : index
    %c0_57 = arith.constant 0 : index
    %47 = vector.load %arg1[%c0_56, %c36, %c0_57] : memref<1x336x8xbf16, #tpu.memory_space<vmem>>, vector<1x288x8xbf16>
    %48 = vector.shape_cast %47 : vector<1x288x8xbf16> to vector<288x8xbf16>
    %c6 = arith.constant 6 : index
    %c0_58 = arith.constant 0 : index
    %c0_59 = arith.constant 0 : index
    %49 = vector.load %arg2[%c6, %c0_58, %c0_59] : memref<9x8x128xbf16, #tpu.memory_space<vmem>>, vector<1x8x128xbf16>
    %50 = vector.shape_cast %49 : vector<1x8x128xbf16> to vector<8x128xbf16>
    %cst_60 = arith.constant dense<0.000000e+00> : vector<288x128xf32>
    %51 = tpu.matmul %48, %50, %cst_60 {dimension_numbers = #tpu.dot_dimension_numbers<[1], [0], [0], [1], [0, 0, 1, 1], [], []>} : vector<288x8xbf16>, vector<8x128xbf16>, vector<288x128xf32> -> vector<288x128xf32>
    %52 = arith.addf %46, %51 : vector<288x128xf32>
    %c0_61 = arith.constant 0 : index
    %c0_62 = arith.constant 0 : index
    %53 = vector.load %arg9[%c0_61, %c0_62] : memref<288x128xf32, #tpu.memory_space<vmem>>, vector<288x128xf32>
    tpu.vector_store %arg9[%c0_61, %c0_62], %52 {strides = array<i32>} : memref<288x128xf32, #tpu.memory_space<vmem>>, vector<288x128xf32>,
    %c0_63 = arith.constant 0 : index
    %c0_64 = arith.constant 0 : index
    %54 = vector.load %arg9[%c0_63, %c0_64] : memref<288x128xf32, #tpu.memory_space<vmem>>, vector<288x128xf32>
    %c0_65 = arith.constant 0 : index
    %c37 = arith.constant 37 : index
    %c0_66 = arith.constant 0 : index
    %55 = vector.load %arg1[%c0_65, %c37, %c0_66] : memref<1x336x8xbf16, #tpu.memory_space<vmem>>, vector<1x288x8xbf16>
    %56 = vector.shape_cast %55 : vector<1x288x8xbf16> to vector<288x8xbf16>
    %c7 = arith.constant 7 : index
    %c0_67 = arith.constant 0 : index
    %c0_68 = arith.constant 0 : index
    %57 = vector.load %arg2[%c7, %c0_67, %c0_68] : memref<9x8x128xbf16, #tpu.memory_space<vmem>>, vector<1x8x128xbf16>
    %58 = vector.shape_cast %57 : vector<1x8x128xbf16> to vector<8x128xbf16>
    %cst_69 = arith.constant dense<0.000000e+00> : vector<288x128xf32>
    %59 = tpu.matmul %56, %58, %cst_69 {dimension_numbers = #tpu.dot_dimension_numbers<[1], [0], [0], [1], [0, 0, 1, 1], [], []>} : vector<288x8xbf16>, vector<8x128xbf16>, vector<288x128xf32> -> vector<288x128xf32>
    %60 = arith.addf %54, %59 : vector<288x128xf32>
    %c0_70 = arith.constant 0 : index
    %c0_71 = arith.constant 0 : index
    %61 = vector.load %arg9[%c0_70, %c0_71] : memref<288x128xf32, #tpu.memory_space<vmem>>, vector<288x128xf32>
    tpu.vector_store %arg9[%c0_70, %c0_71], %60 {strides = array<i32>} : memref<288x128xf32, #tpu.memory_space<vmem>>, vector<288x128xf32>,
    %c0_72 = arith.constant 0 : index
    %c0_73 = arith.constant 0 : index
    %62 = vector.load %arg9[%c0_72, %c0_73] : memref<288x128xf32, #tpu.memory_space<vmem>>, vector<288x128xf32>
    %c0_74 = arith.constant 0 : index
    %c38 = arith.constant 38 : index
    %c0_75 = arith.constant 0 : index
    %63 = vector.load %arg1[%c0_74, %c38, %c0_75] : memref<1x336x8xbf16, #tpu.memory_space<vmem>>, vector<1x288x8xbf16>
    %64 = vector.shape_cast %63 : vector<1x288x8xbf16> to vector<288x8xbf16>
    %c8 = arith.constant 8 : index
    %c0_76 = arith.constant 0 : index
    %c0_77 = arith.constant 0 : index
    %65 = vector.load %arg2[%c8, %c0_76, %c0_77] : memref<9x8x128xbf16, #tpu.memory_space<vmem>>, vector<1x8x128xbf16>
    %66 = vector.shape_cast %65 : vector<1x8x128xbf16> to vector<8x128xbf16>
    %cst_78 = arith.constant dense<0.000000e+00> : vector<288x128xf32>
    %67 = tpu.matmul %64, %66, %cst_78 {dimension_numbers = #tpu.dot_dimension_numbers<[1], [0], [0], [1], [0, 0, 1, 1], [], []>} : vector<288x8xbf16>, vector<8x128xbf16>, vector<288x128xf32> -> vector<288x128xf32>
    %68 = arith.addf %62, %67 : vector<288x128xf32>
    %c0_79 = arith.constant 0 : index
    %c0_80 = arith.constant 0 : index
    %69 = vector.load %arg9[%c0_79, %c0_80] : memref<288x128xf32, #tpu.memory_space<vmem>>, vector<288x128xf32>
    tpu.vector_store %arg9[%c0_79, %c0_80], %68 {strides = array<i32>} : memref<288x128xf32, #tpu.memory_space<vmem>>, vector<288x128xf32>,
    %70 = tpu.iota {dimensions = array<i32: 0>} : vector<288x1xi32>
    %c18_i32 = arith.constant 18 : i32
    %c0_i32 = arith.constant 0 : i32
    %71 = arith.cmpi eq, %c18_i32, %c0_i32 : i32
    %c1_i32 = arith.constant 1 : i32
    %72 = arith.select %71, %c1_i32, %c18_i32 : i32
    %73 = vector.broadcast %72 : i32 to vector<288x1xi32>
    %74 = arith.remsi %70, %73 : vector<288x1xi32>
    %c0_i32_81 = arith.constant 0 : i32
    %75 = vector.broadcast %c0_i32_81 : i32 to vector<288x1xi32>
    %76 = arith.cmpi ne, %74, %75 : vector<288x1xi32>
    %c0_i32_82 = arith.constant 0 : i32
    %77 = vector.broadcast %c0_i32_82 : i32 to vector<288x1xi32>
    %78 = arith.cmpi slt, %74, %77 : vector<288x1xi32>
    %c0_i32_83 = arith.constant 0 : i32
    %79 = arith.cmpi slt, %72, %c0_i32_83 : i32
    %80 = vector.broadcast %79 : i1 to vector<288x1xi1>
    %81 = vector.broadcast %80 : vector<288x1xi1> to vector<288x1xi1>
    %82 = arith.xori %78, %81 : vector<288x1xi1>
    %83 = arith.andi %82, %76 : vector<288x1xi1>
    %84 = vector.broadcast %72 : i32 to vector<288x1xi32>
    %85 = arith.addi %74, %84 : vector<288x1xi32>
    %86 = arith.select %83, %85, %74 : vector<288x1xi1>, vector<288x1xi32>
    %c0_84 = arith.constant 0 : index
    %c0_85 = arith.constant 0 : index
    %87 = vector.load %arg9[%c0_84, %c0_85] : memref<288x128xf32, #tpu.memory_space<vmem>>, vector<288x128xf32>
    %c0_86 = arith.constant 0 : index
    %c0_87 = arith.constant 0 : index
    %88 = vector.load %arg3[%c0_86, %c0_87] : memref<1x128xf32, #tpu.memory_space<vmem>>, vector<1x128xf32>
    %89 = vector.broadcast %88 : vector<1x128xf32> to vector<288x128xf32>
    %90 = arith.mulf %87, %89 : vector<288x128xf32>
    %c0_88 = arith.constant 0 : index
    %c0_89 = arith.constant 0 : index
    %91 = vector.load %arg4[%c0_88, %c0_89] : memref<1x128xf32, #tpu.memory_space<vmem>>, vector<1x128xf32>
    %92 = vector.broadcast %91 : vector<1x128xf32> to vector<288x128xf32>
    %93 = arith.addf %90, %92 : vector<288x128xf32>
    %cst_90 = arith.constant 0.000000e+00 : f32
    %94 = vector.broadcast %cst_90 : f32 to vector<288x128xf32>
    %95 = arith.maximumf %93, %94 : vector<288x128xf32>
    %c16_i32 = arith.constant 16 : i32
    %96 = vector.broadcast %c16_i32 : i32 to vector<288x1xi32>
    %97 = arith.cmpi slt, %86, %96 : vector<288x1xi32>
    %cst_91 = arith.constant 0.000000e+00 : f32
    %98 = vector.shape_cast %97 : vector<288x1xi1> to vector<288x1xi1>
    %99 = vector.broadcast %98 : vector<288x1xi1> to vector<288x128xi1>
    %100 = vector.broadcast %cst_91 : f32 to vector<288x128xf32>
    %101 = arith.select %99, %95, %100 : vector<288x128xi1>, vector<288x128xf32>
    %102 = arith.truncf %101 : vector<288x128xf32> to vector<288x128xbf16>
    %cst_92 = arith.constant 0.000000e+00 : bf16
    %103 = vector.broadcast %cst_92 : bf16 to vector<19x384xbf16>
    %c0_93 = arith.constant 0 : index
    %c0_94 = arith.constant 0 : index
    %104 = vector.load %arg8[%c0_93, %c0_94] : memref<336x384xbf16, #tpu.memory_space<vmem>>, vector<19x384xbf16>
    tpu.vector_store %arg8[%c0_93, %c0_94], %103 {strides = array<i32>} : memref<336x384xbf16, #tpu.memory_space<vmem>>, vector<19x384xbf16>,
    %cst_95 = arith.constant 0.000000e+00 : bf16
    %105 = vector.broadcast %cst_95 : bf16 to vector<31x384xbf16>
    %c305 = arith.constant 305 : index
    %c0_96 = arith.constant 0 : index
    %106 = vector.load %arg8[%c305, %c0_96] : memref<336x384xbf16, #tpu.memory_space<vmem>>, vector<31x384xbf16>
    tpu.vector_store %arg8[%c305, %c0_96], %105 {strides = array<i32>} : memref<336x384xbf16, #tpu.memory_space<vmem>>, vector<31x384xbf16>,
    %c19_97 = arith.constant 19 : index
    %c0_98 = arith.constant 0 : index
    %107 = vector.load %arg8[%c19_97, %c0_98] : memref<336x384xbf16, #tpu.memory_space<vmem>>, vector<288x128xbf16>
    tpu.vector_store %arg8[%c19_97, %c0_98], %102 {strides = array<i32>} : memref<336x384xbf16, #tpu.memory_space<vmem>>, vector<288x128xbf16>,
    %c18_99 = arith.constant 18 : index
    %c128 = arith.constant 128 : index
    %108 = vector.load %arg8[%c18_99, %c128] : memref<336x384xbf16, #tpu.memory_space<vmem>>, vector<288x128xbf16>
    tpu.vector_store %arg8[%c18_99, %c128], %102 {strides = array<i32>} : memref<336x384xbf16, #tpu.memory_space<vmem>>, vector<288x128xbf16>,
    %c17 = arith.constant 17 : index
    %c256 = arith.constant 256 : index
    %109 = vector.load %arg8[%c17, %c256] : memref<336x384xbf16, #tpu.memory_space<vmem>>, vector<288x128xbf16>
    tpu.vector_store %arg8[%c17, %c256], %102 {strides = array<i32>} : memref<336x384xbf16, #tpu.memory_space<vmem>>, vector<288x128xbf16>,
    %c0_100 = arith.constant 0 : index
    %c0_101 = arith.constant 0 : index
    %110 = vector.load %arg8[%c0_100, %c0_101] : memref<336x384xbf16, #tpu.memory_space<vmem>>, vector<288x384xbf16>
    %c0_102 = arith.constant 0 : index
    %c0_103 = arith.constant 0 : index
    %c0_104 = arith.constant 0 : index
    %111 = vector.load %arg5[%c0_102, %c0_103, %c0_104] : memref<3x384x128xbf16, #tpu.memory_space<vmem>>, vector<1x384x128xbf16>
    %112 = vector.shape_cast %111 : vector<1x384x128xbf16> to vector<384x128xbf16>
    %cst_105 = arith.constant dense<0.000000e+00> : vector<288x128xf32>
    %113 = tpu.matmul %110, %112, %cst_105 {dimension_numbers = #tpu.dot_dimension_numbers<[1], [0], [0], [1], [0, 0, 1, 1], [], []>} : vector<288x384xbf16>, vector<384x128xbf16>, vector<288x128xf32> -> vector<288x128xf32>
    %c0_106 = arith.constant 0 : index
    %c0_107 = arith.constant 0 : index
    %114 = vector.load %arg6[%c0_106, %c0_107] : memref<1x128xf32, #tpu.memory_space<vmem>>, vector<1x128xf32>
    %115 = vector.broadcast %114 : vector<1x128xf32> to vector<288x128xf32>
    %116 = arith.addf %113, %115 : vector<288x128xf32>
    %c0_108 = arith.constant 0 : index
    %c0_109 = arith.constant 0 : index
    %117 = vector.load %arg9[%c0_108, %c0_109] : memref<288x128xf32, #tpu.memory_space<vmem>>, vector<288x128xf32>
    tpu.vector_store %arg9[%c0_108, %c0_109], %116 {strides = array<i32>} : memref<288x128xf32, #tpu.memory_space<vmem>>, vector<288x128xf32>,
    %c0_110 = arith.constant 0 : index
    %c0_111 = arith.constant 0 : index
    %118 = vector.load %arg9[%c0_110, %c0_111] : memref<288x128xf32, #tpu.memory_space<vmem>>, vector<288x128xf32>
    %c18_112 = arith.constant 18 : index
    %c0_113 = arith.constant 0 : index
    %119 = vector.load %arg8[%c18_112, %c0_113] : memref<336x384xbf16, #tpu.memory_space<vmem>>, vector<288x384xbf16>
    %c1_114 = arith.constant 1 : index
    %c0_115 = arith.constant 0 : index
    %c0_116 = arith.constant 0 : index
    %120 = vector.load %arg5[%c1_114, %c0_115, %c0_116] : memref<3x384x128xbf16, #tpu.memory_space<vmem>>, vector<1x384x128xbf16>
    %121 = vector.shape_cast %120 : vector<1x384x128xbf16> to vector<384x128xbf16>
    %cst_117 = arith.constant dense<0.000000e+00> : vector<288x128xf32>
    %122 = tpu.matmul %119, %121, %cst_117 {dimension_numbers = #tpu.dot_dimension_numbers<[1], [0], [0], [1], [0, 0, 1, 1], [], []>} : vector<288x384xbf16>, vector<384x128xbf16>, vector<288x128xf32> -> vector<288x128xf32>
    %123 = arith.addf %118, %122 : vector<288x128xf32>
    %c0_118 = arith.constant 0 : index
    %c0_119 = arith.constant 0 : index
    %124 = vector.load %arg9[%c0_118, %c0_119] : memref<288x128xf32, #tpu.memory_space<vmem>>, vector<288x128xf32>
    tpu.vector_store %arg9[%c0_118, %c0_119], %123 {strides = array<i32>} : memref<288x128xf32, #tpu.memory_space<vmem>>, vector<288x128xf32>,
    %c0_120 = arith.constant 0 : index
    %c0_121 = arith.constant 0 : index
    %125 = vector.load %arg9[%c0_120, %c0_121] : memref<288x128xf32, #tpu.memory_space<vmem>>, vector<288x128xf32>
    %c36_122 = arith.constant 36 : index
    %c0_123 = arith.constant 0 : index
    %126 = vector.load %arg8[%c36_122, %c0_123] : memref<336x384xbf16, #tpu.memory_space<vmem>>, vector<288x384xbf16>
    %c2_124 = arith.constant 2 : index
    %c0_125 = arith.constant 0 : index
    %c0_126 = arith.constant 0 : index
    %127 = vector.load %arg5[%c2_124, %c0_125, %c0_126] : memref<3x384x128xbf16, #tpu.memory_space<vmem>>, vector<1x384x128xbf16>
    %128 = vector.shape_cast %127 : vector<1x384x128xbf16> to vector<384x128xbf16>
    %cst_127 = arith.constant dense<0.000000e+00> : vector<288x128xf32>
    %129 = tpu.matmul %126, %128, %cst_127 {dimension_numbers = #tpu.dot_dimension_numbers<[1], [0], [0], [1], [0, 0, 1, 1], [], []>} : vector<288x384xbf16>, vector<384x128xbf16>, vector<288x128xf32> -> vector<288x128xf32>
    %130 = arith.addf %125, %129 : vector<288x128xf32>
    %c0_128 = arith.constant 0 : index
    %c0_129 = arith.constant 0 : index
    %131 = vector.load %arg9[%c0_128, %c0_129] : memref<288x128xf32, #tpu.memory_space<vmem>>, vector<288x128xf32>
    tpu.vector_store %arg9[%c0_128, %c0_129], %130 {strides = array<i32>} : memref<288x128xf32, #tpu.memory_space<vmem>>, vector<288x128xf32>,
    %c0_130 = arith.constant 0 : index
    %c0_131 = arith.constant 0 : index
    %132 = vector.load %arg9[%c0_130, %c0_131] : memref<288x128xf32, #tpu.memory_space<vmem>>, vector<288x128xf32>
    %cst_132 = arith.constant dense<0xFF800000> : vector<288xf32>
    %133 = vector.multi_reduction <maximumf>, %132, %cst_132 [1] : vector<288x128xf32> to vector<288xf32>
    %134 = vector.shape_cast %133 : vector<288xf32> to vector<288x1xf32>
    %135 = vector.broadcast %134 : vector<288x1xf32> to vector<288x128xf32>
    %136 = arith.subf %132, %135 : vector<288x128xf32>
    %137 = math.exp %136 : vector<288x128xf32>
    %cst_133 = arith.constant dense<0.000000e+00> : vector<288xf32>
    %138 = vector.multi_reduction <add>, %137, %cst_133 [1] : vector<288x128xf32> to vector<288xf32>
    %139 = vector.shape_cast %138 : vector<288xf32> to vector<288x1xf32>
    %140 = tpu.reciprocal %139 {approx = true} : vector<288x1xf32> -> vector<288x1xf32>
    %141 = vector.broadcast %140 : vector<288x1xf32> to vector<288x128xf32>
    %142 = arith.mulf %137, %141 : vector<288x128xf32>
    %143 = arith.truncf %142 : vector<288x128xf32> to vector<288x128xbf16>
    %c0_134 = arith.constant 0 : index
    %c0_135 = arith.constant 0 : index
    %c0_136 = arith.constant 0 : index
    %144 = vector.load %arg7[%c0_134, %c0_135, %c0_136] : memref<1x288x128xbf16, #tpu.memory_space<vmem>>, vector<1x288x128xbf16>
    %145 = vector.shape_cast %144 : vector<1x288x128xbf16> to vector<288x128xbf16>
    %146 = vector.shape_cast %143 : vector<288x128xbf16> to vector<1x288x128xbf16>
    tpu.vector_store %arg7[%c0_134, %c0_135, %c0_136], %146 {strides = array<i32>} : memref<1x288x128xbf16, #tpu.memory_space<vmem>>, vector<1x288x128xbf16>,
    return
  }
  func.func @transform_0(%arg0: i32) -> (i32, i32, i32) {
    %c0_i32 = arith.constant 0 : i32
    %c0_i32_0 = arith.constant 0 : i32
    %c0_i32_1 = arith.constant 0 : i32
    return %arg0, %c0_i32, %c0_i32_0 : i32, i32, i32
  }
  func.func @transform_1(%arg0: i32) -> (i32, i32, i32) {
    %c0_i32 = arith.constant 0 : i32
    %c0_i32_0 = arith.constant 0 : i32
    %c0_i32_1 = arith.constant 0 : i32
    %c0_i32_2 = arith.constant 0 : i32
    return %c0_i32, %c0_i32_0, %c0_i32_1 : i32, i32, i32
  }
  func.func @transform_2(%arg0: i32) -> (i32, i32) {
    %c0_i32 = arith.constant 0 : i32
    %c0_i32_0 = arith.constant 0 : i32
    %c0_i32_1 = arith.constant 0 : i32
    return %c0_i32, %c0_i32_0 : i32, i32
  }
  func.func @transform_3(%arg0: i32) -> (i32, i32) {
    %c0_i32 = arith.constant 0 : i32
    %c0_i32_0 = arith.constant 0 : i32
    %c0_i32_1 = arith.constant 0 : i32
    return %c0_i32, %c0_i32_0 : i32, i32
  }
  func.func @transform_4(%arg0: i32) -> (i32, i32, i32) {
    %c0_i32 = arith.constant 0 : i32
    %c0_i32_0 = arith.constant 0 : i32
    %c0_i32_1 = arith.constant 0 : i32
    %c0_i32_2 = arith.constant 0 : i32
    return %c0_i32, %c0_i32_0, %c0_i32_1 : i32, i32, i32
  }
  func.func @transform_5(%arg0: i32) -> (i32, i32) {
    %c0_i32 = arith.constant 0 : i32
    %c0_i32_0 = arith.constant 0 : i32
    %c0_i32_1 = arith.constant 0 : i32
    return %c0_i32, %c0_i32_0 : i32, i32
  }
  func.func @transform_6(%arg0: i32) -> (i32, i32, i32) {
    %c0_i32 = arith.constant 0 : i32
    %c0_i32_0 = arith.constant 0 : i32
    %c0_i32_1 = arith.constant 0 : i32
    return %arg0, %c0_i32, %c0_i32_0 : i32, i32, i32
  }
}

</mosaic_0001>

<bundles_post_ra>
// kernel: point_detector_forward.1
= control target key start
LH: loop header
LB: loop body
LE: loop exit
PB: predicated region body
PF: predicated region fallthrough
CT: control target
= control target key end

     0   :  { %s11879_s21 = smov 0   ;;  %s15951_s0 = inlined_call_operand.vmem [shape: bf16[2,336,8], index: 0, kind: input, shape index: {}]   ;;  %s15952_s1 = inlined_call_operand.vmem [shape: bf16[9,8,128], index: 1, kind: input, shape index: {}]   ;;  %s15953_s2 = inlined_call_operand.vmem [shape: f32[1,128], index: 2, kind: input, shape index: {}]   ;;  %s15954_s3 = inlined_call_operand.vmem [shape: f32[1,128], index: 3, kind: input, shape index: {}]   ;;  %s15955_s4 = inlined_call_operand.vmem [shape: bf16[3,384,128], index: 4, kind: input, shape index: {}]   ;;  %s15956_s5 = inlined_call_operand.vmem [shape: f32[1,128], index: 5, kind: input, shape index: {}]   ;;  %s15957_s6 = inlined_call_operand.vmem [shape: bf16[2,288,128], index: 6, kind: output, shape index: {}]  }
   0x1 LB: > { %s9587_s22 = sadd.s32 4294967295, %s11841_s21   ;;  %p9591_p0 = scmp.ge.s32.totalorder %s11841_s21, 1  ;;  %s11841_s21 = sphi %s11879_s21, %s16_s21  }
   0x2   : > { %p212_p1 = scmp.lt.s32.totalorder %s11841_s21, 3 }
   0x4   : > { %p213_p2 = pnand %p9591_p0, %p212_p1 }
   0x6   : > { %216 = sbr.rel (%p213_p2) target bundleno = 2020 (0x7e4), region = 44 }
   0xd   : > { %v289_v0 = vld [vmem:[%s15952_s1] sm:$0xf]  ;;  %vm435_vm0 = vcmask 1043456   ;;  %p242_p3 = scmp.lt.s32.totalorder %s9587_s22, 1  ;;  %v9630_v2 = vld [vmem:[%s15952_s1 + $0x4] sm:$0xf] }
   0xe   : > { %11353 = vmatprep.subr.msk.bf16.mxu0 %vm435_vm0, %v289_v0  ;;  %v437_v1 = vsel %vm435_vm0, %v289_v0, 0  ;;  %vm380_vm1 = vcmask 64512   ;;  %v9668_v4 = vld [vmem:[%s15952_s1 + $0x8] sm:$0xf]  ;;  %v1024_v6 = vsel %vm435_vm0, %v9630_v2, 0  ;;  %vm15959_vm3 = vcmask 1046528  }
   0xf   : > { %10536 = vmatpush3.bf16.msra.mxu0 %v437_v1  ;;  %s16811_s22 = smov (!%p242_p3, %s9587_s22), 1  ;;  %vm820_vm2 = vsmask.f32 7424  ;;  %v1536_v42 = vsel %vm435_vm0, %v9668_v4, 0  ;;  %v11960_v52 = vld [vmem:[%s15952_s1 + $0xc] sm:$0xf] }
  0x10   : > { %11354 = vmatprep.subr.msk.bf16.mxu0 %vm435_vm0, %v9630_v2  ;;  %s11362_s27 = smul.u32 168, %s16811_s22  ;;  %vm2466_vm4 = vsmask.f32 6400  ;;  %vm15958_vm5 = vcmask 1045504   ;;  %vm4134_vm6 = vsmask.f32 5376 }
  0x11   : > { %vm4779_vm7 = vcmask 1044480   ;;  %vm6059_vm8 = vcmask 1041408   ;;  %vm15960_vm9 = vsmask.f32 1280  ;;  %s11363_s24 = smul.u32 144, %s16811_s22 }
  0x12   : > { %s11902_s30 = scalar_lea.vmem %s15951_s0, %s11362_s27  ;;  %vm12560_vm10 = vmand %vm6059_vm8, %vm15960_vm9 }
  0x13   : > { %v11445_v3 = vld [vmem:[%s11902_s30] sm:$0xff]   ;;  %v11446_v5 = vld [vmem:[%s11902_s30 + $0x8] sm:$0xff]   ;;  %v11447_v7 = vld [vmem:[%s11902_s30 + $0x10] sm:$0xff]   ;;  %s15894_s26 = scalar_lea.vmem %s15957_s6, %s11363_s24 }
  0x14   : > { %10537 = vmatprep.mubr.msk.bf16.mxu0 %vm380_vm1, %v11445_v3  ;;  %v11448_v8 = vld [vmem:[%s11902_s30 + $0x18] sm:$0xff]   ;;  %v11449_v9 = vld [vmem:[%s11902_s30 + $0x20] sm:$0xff]   ;;  %v11450_v10 = vld [vmem:[%s11902_s30 + $0x28] sm:$0xff]  }
  0x15   : > { %10538 = vmatmul.mubr.msk.bf16.vlgmr.msra.gmra.mrb[0].mxu0 %vm380_vm1, %v11446_v5  ;;  %v11451_v11 = vld [vmem:[%s11902_s30 + $0x30] sm:$0xff]   ;;  %v11452_v12 = vld [vmem:[%s11902_s30 + $0x38] sm:$0xff]   ;;  %v11453_v13 = vld [vmem:[%s11902_s30 + $0x40] sm:$0xff]  }
  0x16   : > { %10574 = vmatpush3.bf16.msra.mxu0 %v1024_v6  ;;  %10541 = vmatprep.mubr.msk.bf16.mxu0 %vm380_vm1, %v11447_v7  ;;  %v11454_v14 = vld [vmem:[%s11902_s30 + $0x48] sm:$0xff]   ;;  %v11455_v15 = vld [vmem:[%s11902_s30 + $0x50] sm:$0xff]   ;;  %v11456_v16 = vld [vmem:[%s11902_s30 + $0x58] sm:$0xff]  }
  0x17   : > { %11355 = vmatprep.subr.msk.bf16.mxu0 %vm435_vm0, %v9668_v4  ;;  %v11457_v17 = vld [vmem:[%s11902_s30 + $0x60] sm:$0xff]   ;;  %v11458_v18 = vld [vmem:[%s11902_s30 + $0x68] sm:$0xff]   ;;  %v11459_v19 = vld [vmem:[%s11902_s30 + $0x70] sm:$0xff]  }
  0x18   : > { %v11463_v20 = vld [vmem:[%s11902_s30] sm:$0xff]   ;;  %v11464_v21 = vld [vmem:[%s11902_s30 + $0x8] sm:$0xff]   ;;  %v11460_v23 = vld [vmem:[%s11902_s30 + $0x78] sm:$0xff]  }
  0x19   : > { %v824_v22 = vshll.u32 %v11463_v20, 16  ;;  %v11461_v24 = vld [vmem:[%s11902_s30 + $0x80] sm:$0xff]   ;;  %v822_v25 = vshrl.u32 %v11463_v20, 16  ;;  %v11465_v26 = vld [vmem:[%s11902_s30 + $0x10] sm:$0xff]   ;;  %v829_v28 = vshll.u32 %v11464_v21, 16  ;;  %v11466_v29 = vld [vmem:[%s11902_s30 + $0x18] sm:$0xff]  }
  0x1a   : > { %v833_v30 = vshrl.u32 %v11464_v21, 16  ;;  %v11462_v31 = vld [vmem:[%s11902_s30 + $0x88] sm:$0xff]   ;;  %v837_v34 = vshll.u32 %v11465_v26, 16  ;;  %v841_v35 = vshrl.u32 %v11465_v26, 16  ;;  %v845_v36 = vshll.u32 %v11466_v29, 16  ;;  %v11467_v37 = vld [vmem:[%s11902_s30 + $0x20] sm:$0xff]  }
  0x1b   : > { %v826_v27 = vrot.slane %v824_v22, 1  ;;  %v831_v33 = vrot.slane %v829_v28, 1  ;;  %v11468_v38 = vld [vmem:[%s11902_s30 + $0x28] sm:$0xff]   ;;  %v849_v43 = vshrl.u32 %v11466_v29, 16  ;;  %v853_v46 = vshll.u32 %v11467_v37, 16  ;;  %v11469_v49 = vld [vmem:[%s11902_s30 + $0x30] sm:$0xff]  }
  0x1c   : > { %v839_v40 = vrot.slane %v837_v34, 1  ;;  %v847_v45 = vrot.slane %v845_v36, 1  ;;  %v857_v47 = vshrl.u32 %v11467_v37, 16  ;;  %v861_v48 = vshll.u32 %v11468_v38, 16  ;;  %v11470_v51 = vld [vmem:[%s11902_s30 + $0x38] sm:$0xff]   ;;  %v11471_v62 = vld [vmem:[%s11902_s30 + $0x40] sm:$0xff]  }
  0x1d   : > { %10542 = vmatmul.mubr.msk.bf16.gmra.mrb[4].mxu0 %vm380_vm1, %v11448_v8  ;;  %v827_v32 = vor.u32 %v826_v27, %v822_v25  ;;  %v835_v41 = vor.u32 %v833_v30, %v831_v33  ;;  %v855_v54 = vrot.slane %v853_v46, 1  ;;  %v865_v56 = vshrl.u32 %v11468_v38, 16  ;;  %v11472_v0 = vld [vmem:[%s11902_s30 + $0x48] sm:$0xff]   ;;  %v11475_v22 = vld [vmem:[%s11902_s30 + $0x60] sm:$0xff]   ;;  %v11477_v34 = vld [vmem:[%s11902_s30 + $0x70] sm:$0xff]  }
  0x1e   : > { %10545 = vmatprep.mubr.msk.bf16.mxu0 %vm380_vm1, %v11449_v9  ;;  %v843_v44 = vor.u32 %v841_v35, %v839_v40  ;;  %v851_v55 = vor.u32 %v849_v43, %v847_v45  ;;  %v863_v58 = vrot.slane %v861_v48, 1  ;;  %v869_v59 = vshll.u32 %v11469_v49, 16  ;;  %v11478_v36 = vld [vmem:[%s11902_s30 + $0x78] sm:$0xff]   ;;  %v11479_v46 = vld [vmem:[%s11902_s30 + $0x80] sm:$0xff]   ;;  %v11480_v48 = vld [vmem:[%s11902_s30 + $0x88] sm:$0xff]  }
  0x1f   : > { %v832_v39 = vsel %vm820_vm2, %v827_v32, %v831_v33  ;;  %v840_v50 = vsel %vm820_vm2, %v835_v41, %v839_v40  ;;  %v859_v57 = vor.u32 %v857_v47, %v855_v54  ;;  %v873_v60 = vshrl.u32 %v11469_v49, 16 }
  0x20   : > { %v848_v53 = vsel %vm820_vm2, %v843_v44, %v847_v45  ;;  %v877_v61 = vshll.u32 %v11470_v51, 16  ;;  %v856_v63 = vsel %vm820_vm2, %v851_v55, %v855_v54  ;;  %v871_v2 = vrot.slane %v869_v59, 1 }
  0x21   : > { %v864_v1 = vsel %vm820_vm2, %v859_v57, %v863_v58  ;;  %v867_v3 = vor.u32 %v865_v56, %v863_v58  ;;  %v881_v4 = vshrl.u32 %v11470_v51, 16  ;;  %v885_v5 = vshll.u32 %v11471_v62, 16 }
  0x22   : > { %v875_v6 = vor.u32 %v873_v60, %v871_v2  ;;  %v879_v7 = vrot.slane %v877_v61, 1  ;;  %v889_v8 = vshrl.u32 %v11471_v62, 16  ;;  %v893_v9 = vshll.u32 %v11472_v0, 16  ;;  %v11481_v60 = vld [vmem:[%s11902_s30 + $0x90] ss:$0 sps:$4 sm:$0x11]  }
  0x23   : > { %v921_v32 = vshrl.u32 %v11475_v22, 16  ;;  %v933_v43 = vshll.u32 %v11477_v34, 16  ;;  %v937_v44 = vshrl.u32 %v11477_v34, 16  ;;  %v941_v45 = vshll.u32 %v11478_v36, 16  ;;  %v11491_v34 = vld [vmem:[%s11902_s30 + $0x48] sm:$0xff]  }
  0x24   : > { %v949_v56 = vshll.u32 %v11479_v46, 16  ;;  %v953_v57 = vshrl.u32 %v11479_v46, 16  ;;  %v957_v58 = vshll.u32 %v11480_v48, 16  ;;  %v11495_v46 = vld [vmem:[%s11902_s30 + $0x68] sm:$0xff]  }
  0x25   : > { %10546 = vmatmul.mubr.msk.bf16.gmra.mrb[8].mxu0 %vm380_vm1, %v11450_v10  ;;  %v11473_v10 = vld [vmem:[%s11902_s30 + $0x50] sm:$0xff]   ;;  %v943_v55 = vrot.slane %v941_v45, 1 }
  0x26   : > { %10549 = vmatprep.mubr.msk.bf16.mxu0 %vm380_vm1, %v11451_v11  ;;  %v872_v11 = vsel %vm820_vm2, %v867_v3, %v871_v2  ;;  %v905_v20 = vshrl.u32 %v11473_v10, 16  ;;  %v951_v62 = vrot.slane %v949_v56, 1  ;;  %v961_v2 = vshrl.u32 %v11480_v48, 16  ;;  %v11498_v56 = vld [vmem:[%s11902_s30 + $0x80] sm:$0xff]  }
  0x27   : > { %v965_v3 = vshll.u32 %v11481_v60, 16  ;;  %v1469_v48 = vrot.slane %v11495_v46, 1  ;;  %v1475_v60 = vrot.slane %v11498_v56, 1  ;;  %v11516_v46 = vld [vmem:[%s11902_s30 + $0x80] sm:$0xff]  }
  0x2d   : > { %10550 = vmatmul.mubr.msk.bf16.gmra.mrb[12].mxu0 %vm380_vm1, %v11452_v12  ;;  %v11474_v12 = vld [vmem:[%s11902_s30 + $0x58] sm:$0xff]  }
  0x2e   : > { %10553 = vmatprep.mubr.msk.bf16.mxu0 %vm380_vm1, %v11453_v13  ;;  %v880_v13 = vsel %vm820_vm2, %v875_v6, %v879_v7  ;;  %v909_v21 = vshll.u32 %v11474_v12, 16  ;;  %v913_v28 = vshrl.u32 %v11474_v12, 16  ;;  %v11484_v12 = vld [vmem:[%s11902_s30 + $0x10] sm:$0xff]  }
  0x30   : > { %v911_v30 = vrot.slane %v909_v21, 1 }
  0x35   : > { %10554 = vmatmul.mubr.msk.bf16.gmra.mrb[16].mxu0 %vm380_vm1, %v11454_v14  ;;  %v887_v14 = vrot.slane %v885_v5, 1  ;;  %v11483_v5 = vld [vmem:[%s11902_s30 + $0x8] sm:$0xff]  }
  0x36   : > { %10557 = vmatprep.mubr.msk.bf16.mxu0 %vm380_vm1, %v11455_v15  ;;  %v883_v15 = vor.u32 %v881_v4, %v879_v7  ;;  %v11482_v4 = vld [vmem:[%s11902_s30] sm:$0xfe]  }
  0x3d   : > { %10558 = vmatmul.mubr.msk.bf16.gmra.mrb[20].mxu0 %vm380_vm1, %v11456_v16  ;;  %v895_v16 = vrot.slane %v893_v9, 1  ;;  %v967_v9 = vrot.slane %v965_v3, 1 }
  0x3e   : > { %10561 = vmatprep.mubr.msk.bf16.mxu0 %vm380_vm1, %v11457_v17  ;;  %v897_v17 = vshrl.u32 %v11472_v0, 16  ;;  %v955_v0 = vor.u32 %v953_v57, %v951_v62 }
  0x40   : > { %v899_v27 = vor.u32 %v897_v17, %v895_v16 }
  0x45   : > { %10562 = vmatmul.mubr.msk.bf16.gmra.mrb[24].mxu0 %vm380_vm1, %v11458_v18  ;;  %v901_v18 = vshll.u32 %v11473_v10, 16  ;;  %v1444_v10 = vrot.slane %v11482_v4, 1 }
  0x46   : > { %10565 = vmatprep.mubr.msk.bf16.mxu0 %vm380_vm1, %v11459_v19  ;;  %v891_v19 = vor.u32 %v889_v8, %v887_v14 }
  0x47   : > { %v903_v26 = vrot.slane %v901_v18, 1  ;;  %v2047_v18 = vsel %vm435_vm0, %v11960_v52, 0 }
  0x48   : > { %v896_v25 = vsel %vm820_vm2, %v891_v19, %v895_v16  ;;  %v1447_v16 = vrot.slane %v11484_v12, 1  ;;  %v11486_v19 = vld [vmem:[%s11902_s30 + $0x20] sm:$0xff]  }
  0x49   : > { %v907_v29 = vor.u32 %v905_v20, %v903_v26  ;;  %v904_v35 = vsel %vm820_vm2, %v899_v27, %v903_v26  ;;  %v11487_v20 = vld [vmem:[%s11902_s30 + $0x28] sm:$0xff]  }
  0x4b   : > { %v912_v37 = vsel %vm820_vm2, %v907_v29, %v911_v30 }
  0x4d   : > { %10566 = vmatmul.mubr.msk.bf16.gmra.mrb[28].mxu0 %vm380_vm1, %v11460_v23  ;;  %v888_v23 = vsel %vm820_vm2, %v883_v15, %v887_v14 }
  0x4e   : > { %10569 = vmatprep.mubr.msk.bf16.mxu0 %vm380_vm1, %v11461_v24  ;;  %v11476_v24 = vld [vmem:[%s11902_s30 + $0x68] sm:$0xff]  }
  0x4f   : > { %v925_v33 = vshll.u32 %v11476_v24, 16  ;;  %v929_v40 = vshrl.u32 %v11476_v24, 16  ;;  %v1451_v24 = vrot.slane %v11486_v19, 1 }
  0x55   : > { %10570 = vmatmul.mubr.msk.bf16.gmra.mrb[32].mxu0 %vm380_vm1, %v11462_v31  ;;  %v917_v31 = vshll.u32 %v11475_v22, 16  ;;  %v12022_v22 = vld [vmem:[%s15952_s1 + $0x10] sm:$0xf] }
  0x56   : > { %10575 = vmatprep.mubr.msk.bf16.mxu0 %vm380_vm1, %v832_v39  ;;  %v915_v39 = vor.u32 %v913_v28, %v911_v30  ;;  %v11489_v28 = vld [vmem:[%s11902_s30 + $0x38] sm:$0xff]  }
  0x57   : > { %v919_v38 = vrot.slane %v917_v31, 1  ;;  %v1457_v30 = vrot.slane %v11489_v28, 1  ;;  %v11490_v31 = vld [vmem:[%s11902_s30 + $0x40] sm:$0xff]   ;;  %v11510_v28 = vld [vmem:[%s11902_s30 + $0x50] sm:$0xff]  }
  0x59   : > { %v923_v41 = vor.u32 %v921_v32, %v919_v38  ;;  %v920_v47 = vsel %vm820_vm2, %v915_v39, %v919_v38 }
  0x5d   : > { %10576 = vmatmul.mubr.msk.bf16.vlgmr.msra.gmra.mrb[0].mxu0 %vm380_vm1, %v840_v50  ;;  %v935_v50 = vrot.slane %v933_v43, 1  ;;  %v11494_v43 = vld [vmem:[%s11902_s30 + $0x60] sm:$0xff]  }
  0x5e   : > { %10612 = vmatpush3.bf16.msra.mxu0 %v1536_v42  ;;  %10579 = vmatprep.mubr.msk.bf16.mxu0 %vm380_vm1, %v848_v53  ;;  %v927_v42 = vrot.slane %v925_v33, 1  ;;  %v945_v53 = vshrl.u32 %v11478_v36, 16  ;;  %v1461_v36 = vrot.slane %v11491_v34, 1  ;;  %v11512_v34 = vld [vmem:[%s11902_s30 + $0x60] sm:$0xff]  }
  0x5f   : > { %11356 = vmatprep.subr.msk.bf16.mxu0 %vm435_vm0, %v11960_v52  ;;  %v939_v54 = vor.u32 %v937_v44, %v935_v50  ;;  %v1453_v52 = vrot.slane %v11487_v20, 1 }
  0x60   : > { %v928_v49 = vsel %vm820_vm2, %v923_v41, %v927_v42  ;;  %v931_v51 = vor.u32 %v929_v40, %v927_v42  ;;  %v11493_v40 = vld [vmem:[%s11902_s30 + $0x58] sm:$0xff]  }
  0x61   : > { %v944_v61 = vsel %vm820_vm2, %v939_v54, %v943_v55  ;;  %v1454_v27 = vsel %vm15959_vm3, %v1451_v24, %v1453_v52  ;;  %v1465_v42 = vrot.slane %v11493_v40, 1  ;;  %v11514_v40 = vld [vmem:[%s11902_s30 + $0x70] sm:$0xff]  }
  0x62   : > { %v936_v59 = vsel %vm820_vm2, %v931_v51, %v935_v50 }
  0x65   : > { %10580 = vmatmul.mubr.msk.bf16.gmra.mrb[4].mxu0 %vm380_vm1, %v856_v63  ;;  %v947_v63 = vor.u32 %v945_v53, %v943_v55  ;;  %v11497_v53 = vld [vmem:[%s11902_s30 + $0x78] sm:$0xff]  }
  0x66   : > { %10583 = vmatprep.mubr.msk.bf16.mxu0 %vm380_vm1, %v864_v1  ;;  %v959_v1 = vrot.slane %v957_v58, 1  ;;  %v1473_v55 = vrot.slane %v11497_v53, 1 }
  0x67   : > { %v952_v6 = vsel %vm820_vm2, %v947_v63, %v951_v62  ;;  %v11500_v62 = vld [vmem:[%s11902_s30 + $0x90] ss:$0 sps:$4 sm:$0x11]   ;;  %v11501_v63 = vld [vmem:[%s11902_s30 + $0x8] sm:$0xfe]  }
  0x68   : > { %v960_v7 = vsel %vm820_vm2, %v955_v0, %v959_v1  ;;  %v963_v8 = vor.u32 %v961_v2, %v959_v1  ;;  %v1476_v0 = vsel %vm15959_vm3, %v1473_v55, %v1475_v60  ;;  %v11502_v2 = vld [vmem:[%s11902_s30 + $0x10] sm:$0xff]   ;;  %v1479_v3 = vrot.slane %v11500_v62, 1 }
  0x69   : > { %v1955_v4 = vrot.slane %v11501_v63, 1 }
  0x6a   : > { %v968_v14 = vsel %vm820_vm2, %v963_v8, %v967_v9  ;;  %v11504_v9 = vld [vmem:[%s11902_s30 + $0x20] sm:$0xff]  }
  0x6d   : > { %10584 = vmatmul.mubr.msk.bf16.gmra.mrb[8].mxu0 %vm380_vm1, %v872_v11  ;;  %v1445_v11 = vrot.slane %v11483_v5, 1  ;;  %v1956_v5 = vrot.slane %v11502_v2, 1 }
  0x6e   : > { %10587 = vmatprep.mubr.msk.bf16.mxu0 %vm380_vm1, %v880_v13  ;;  %v11485_v13 = vld [vmem:[%s11902_s30 + $0x18] sm:$0xff]  }
  0x6f   : > { %v1446_v15 = vsel %vm15959_vm3, %v1444_v10, %v1445_v11  ;;  %v1449_v17 = vrot.slane %v11485_v13, 1  ;;  %v1448_v21 = vsel %vm15959_vm3, %v1445_v11, %v1447_v16  ;;  %v1957_v8 = vsel %vm15959_vm3, %v1955_v4, %v1956_v5  ;;  %v11505_v13 = vld [vmem:[%s11902_s30 + $0x28] sm:$0xff]  }
  0x70   : > { %v1960_v11 = vrot.slane %v11504_v9, 1 }
  0x71   : > { %v1452_v26 = vsel %vm15959_vm3, %v1449_v17, %v1451_v24 }
  0x75   : > { %10588 = vmatmul.mubr.msk.bf16.gmra.mrb[12].mxu0 %vm380_vm1, %v888_v23  ;;  %v1450_v23 = vsel %vm15959_vm3, %v1447_v16, %v1449_v17  ;;  %v11506_v16 = vld [vmem:[%s11902_s30 + $0x30] sm:$0xff]  }
  0x76   : > { %10591 = vmatprep.mubr.msk.bf16.mxu0 %vm380_vm1, %v896_v25  ;;  %v11488_v25 = vld [vmem:[%s11902_s30 + $0x30] sm:$0xff]   ;;  %v1964_v19 = vrot.slane %v11506_v16, 1 }
  0x77   : > { %v1455_v29 = vrot.slane %v11488_v25, 1  ;;  %v12087_v17 = vld [vmem:[%s15952_s1 + $0x14] sm:$0xf] }
  0x79   : > { %v1456_v32 = vsel %vm15959_vm3, %v1453_v52, %v1455_v29  ;;  %v1458_v33 = vsel %vm15959_vm3, %v1455_v29, %v1457_v30 }
  0x7d   : > { %10592 = vmatmul.mubr.msk.bf16.gmra.mrb[16].mxu0 %vm380_vm1, %v904_v35  ;;  %v1459_v35 = vrot.slane %v11490_v31, 1 }
  0x7e   : > { %10595 = vmatprep.mubr.msk.bf16.mxu0 %vm380_vm1, %v912_v37  ;;  %v11492_v37 = vld [vmem:[%s11902_s30 + $0x50] sm:$0xff]  }
  0x7f   : > { %v1460_v38 = vsel %vm15959_vm3, %v1457_v30, %v1459_v35  ;;  %v1462_v39 = vsel %vm15959_vm3, %v1459_v35, %v1461_v36  ;;  %v1463_v41 = vrot.slane %v11492_v37, 1  ;;  %v1972_v30 = vrot.slane %v11510_v28, 1 }
  0x81   : > { %v1464_v44 = vsel %vm15959_vm3, %v1461_v36, %v1463_v41  ;;  %v1466_v45 = vsel %vm15959_vm3, %v1463_v41, %v1465_v42  ;;  %v1976_v36 = vrot.slane %v11512_v34, 1 }
  0x85   : > { %10596 = vmatmul.mubr.msk.bf16.gmra.mrb[20].mxu0 %vm380_vm1, %v920_v47  ;;  %v1467_v47 = vrot.slane %v11494_v43, 1 }
  0x86   : > { %10599 = vmatprep.mubr.msk.bf16.mxu0 %vm380_vm1, %v928_v49  ;;  %v11496_v49 = vld [vmem:[%s11902_s30 + $0x70] sm:$0xff]  }
  0x87   : > { %v1468_v50 = vsel %vm15959_vm3, %v1465_v42, %v1467_v47  ;;  %v1470_v51 = vsel %vm15959_vm3, %v1467_v47, %v1469_v48  ;;  %v1471_v54 = vrot.slane %v11496_v49, 1  ;;  %v1980_v42 = vrot.slane %v11514_v40, 1 }
  0x89   : > { %v1472_v57 = vsel %vm15959_vm3, %v1469_v48, %v1471_v54  ;;  %v1474_v58 = vsel %vm15959_vm3, %v1471_v54, %v1473_v55  ;;  %v1984_v48 = vrot.slane %v11516_v46, 1  ;;  %v11520_v54 = vld [vmem:[%s11902_s30 + $0x8] sm:$0xfe]   ;;  %v11521_v55 = vld [vmem:[%s11902_s30 + $0x10] sm:$0xff]  }
  0x8a   : > { %v11528_v46 = vld [vmem:[%s11902_s30 + $0x48] sm:$0xff]  }
  0x8d   : > { %10600 = vmatmul.mubr.msk.bf16.gmra.mrb[24].mxu0 %vm380_vm1, %v936_v59  ;;  %v11499_v59 = vld [vmem:[%s11902_s30 + $0x88] sm:$0xff]  }
  0x8e   : > { %10603 = vmatprep.mubr.msk.bf16.mxu0 %vm380_vm1, %v944_v61  ;;  %v1477_v61 = vrot.slane %v11499_v59, 1  ;;  %v2471_v59 = vshll.u32 %v11520_v54, 16 }
  0x90   : > { %v1478_v1 = vsel %vm15959_vm3, %v1475_v60, %v1477_v61  ;;  %v2476_v60 = vshrl.u32 %v11521_v55, 16 }
  0x92   : > { %v2478_v4 = vrot.slane %v2476_v60, 1 }
  0x95   : > { %10604 = vmatmul.mubr.msk.bf16.gmra.mrb[28].mxu0 %vm380_vm1, %v952_v6  ;;  %v11503_v6 = vld [vmem:[%s11902_s30 + $0x18] sm:$0xff]  }
  0x96   : > { %10607 = vmatprep.mubr.msk.bf16.mxu0 %vm380_vm1, %v960_v7  ;;  %v1480_v7 = vsel %vm15959_vm3, %v1477_v61, %v1479_v3  ;;  %v1958_v10 = vrot.slane %v11503_v6, 1  ;;  %v2479_v61 = vshll.u32 %v11521_v55, 16  ;;  %v2473_v3 = vrot.slane %v2471_v59, 2  ;;  %v11523_v6 = vld [vmem:[%s11902_s30 + $0x20] sm:$0xff]  }
  0x98   : > { %v1959_v12 = vsel %vm15959_vm3, %v1956_v5, %v1958_v10  ;;  %v2481_v5 = vrot.slane %v2479_v61, 2  ;;  %v11530_v61 = vld [vmem:[%s11902_s30 + $0x58] sm:$0xff]  }
  0x9d   : > { %10608 = vmatmul.mubr.msk.bf16.gmra.mrb[32].mxu0 %vm380_vm1, %v968_v14  ;;  %v2692_v14 = vsel %vm435_vm0, %v12022_v22, 0 }
  0x9e   : > { %10613 = vmatprep.mubr.msk.bf16.mxu0 %vm380_vm1, %v1446_v15  ;;  %v1961_v15 = vsel %vm15959_vm3, %v1958_v10, %v1960_v11 }
  0xa5   : > { %10614 = vmatmul.mubr.msk.bf16.vlgmr.msra.gmra.mrb[0].mxu0 %vm380_vm1, %v1448_v21  ;;  %v11507_v21 = vld [vmem:[%s11902_s30 + $0x38] sm:$0xff]  }
  0xa6   : > { %10650 = vmatpush3.bf16.msra.mxu0 %v2047_v18  ;;  %10617 = vmatprep.mubr.msk.bf16.mxu0 %vm380_vm1, %v1450_v23  ;;  %v1962_v18 = vrot.slane %v11505_v13, 1  ;;  %v11508_v23 = vld [vmem:[%s11902_s30 + $0x40] sm:$0xff]   ;;  %v1966_v24 = vrot.slane %v11507_v21, 1  ;;  %v2497_v13 = vshll.u32 %v11523_v6, 16 }
  0xa7   : > { %11357 = vmatprep.subr.msk.bf16.mxu0 %vm435_vm0, %v12022_v22  ;;  %v1968_v52 = vrot.slane %v11508_v23, 1 }
  0xa8   : > { %v1963_v20 = vsel %vm15959_vm3, %v1960_v11, %v1962_v18  ;;  %v1965_v22 = vsel %vm15959_vm3, %v1962_v18, %v1964_v19  ;;  %v1967_v25 = vsel %vm15959_vm3, %v1964_v19, %v1966_v24  ;;  %v2482_v11 = vor.u32 %v2481_v5, %v2478_v4  ;;  %v11524_v18 = vld [vmem:[%s11902_s30 + $0x28] sm:$0xff]  }
  0xa9   : > { %v2499_v21 = vrot.slane %v2497_v13, 2  ;;  %v2560_v4 = vshll.u32 %v11530_v61, 16 }
  0xad   : > { %10618 = vmatmul.mubr.msk.bf16.gmra.mrb[4].mxu0 %vm380_vm1, %v1452_v26  ;;  %v11509_v26 = vld [vmem:[%s11902_s30 + $0x48] sm:$0xff]  }
  0xae   : > { %10621 = vmatprep.mubr.msk.bf16.mxu0 %vm380_vm1, %v1454_v27  ;;  %v1969_v27 = vsel %vm15959_vm3, %v1966_v24, %v1968_v52  ;;  %v1970_v29 = vrot.slane %v11509_v26, 1  ;;  %v2503_v24 = vshrl.u32 %v11524_v18, 16 }
  0xb0   : > { %v1971_v31 = vsel %vm15959_vm3, %v1968_v52, %v1970_v29  ;;  %v2506_v52 = vshll.u32 %v11524_v18, 16 }
  0xb5   : > { %10622 = vmatmul.mubr.msk.bf16.gmra.mrb[8].mxu0 %vm380_vm1, %v1456_v32  ;;  %v11511_v32 = vld [vmem:[%s11902_s30 + $0x58] sm:$0xff]  }
  0xb6   : > { %10625 = vmatprep.mubr.msk.bf16.mxu0 %vm380_vm1, %v1458_v33  ;;  %v1973_v33 = vsel %vm15959_vm3, %v1970_v29, %v1972_v30  ;;  %v1974_v35 = vrot.slane %v11511_v32, 1  ;;  %v2505_v29 = vrot.slane %v2503_v24, 1  ;;  %v3204_v32 = vsel %vm435_vm0, %v12087_v17, 0 }
  0xb8   : > { %v1975_v37 = vsel %vm15959_vm3, %v1972_v30, %v1974_v35  ;;  %v2508_v30 = vrot.slane %v2506_v52, 2 }
  0xbd   : > { %10626 = vmatmul.mubr.msk.bf16.gmra.mrb[12].mxu0 %vm380_vm1, %v1460_v38  ;;  %v11513_v38 = vld [vmem:[%s11902_s30 + $0x68] sm:$0xff]  }
  0xbe   : > { %10629 = vmatprep.mubr.msk.bf16.mxu0 %vm380_vm1, %v1462_v39  ;;  %v1977_v39 = vsel %vm15959_vm3, %v1974_v35, %v1976_v36  ;;  %v1978_v41 = vrot.slane %v11513_v38, 1  ;;  %v2509_v38 = vor.u32 %v2508_v30, %v2505_v29  ;;  %v11535_v29 = vld [vmem:[%s11902_s30 + $0x80] sm:$0xff]  }
  0xc0   : > { %v1979_v43 = vsel %vm15959_vm3, %v1976_v36, %v1978_v41  ;;  %v11527_v36 = vld [vmem:[%s11902_s30 + $0x40] sm:$0xff]  }
  0xc5   : > { %10630 = vmatmul.mubr.msk.bf16.gmra.mrb[16].mxu0 %vm380_vm1, %v1464_v44  ;;  %v11515_v44 = vld [vmem:[%s11902_s30 + $0x78] sm:$0xff]  }
  0xc6   : > { %10633 = vmatprep.mubr.msk.bf16.mxu0 %vm380_vm1, %v1466_v45  ;;  %v1981_v45 = vsel %vm15959_vm3, %v1978_v41, %v1980_v42  ;;  %v1982_v47 = vrot.slane %v11515_v44, 1  ;;  %v2530_v41 = vshrl.u32 %v11527_v36, 16 }
  0xc8   : > { %v1983_v49 = vsel %vm15959_vm3, %v1980_v42, %v1982_v47  ;;  %v1985_v53 = vsel %vm15959_vm3, %v1982_v47, %v1984_v48  ;;  %v2533_v42 = vshll.u32 %v11527_v36, 16 }
  0xcd   : > { %10634 = vmatmul.mubr.msk.bf16.gmra.mrb[20].mxu0 %vm380_vm1, %v1468_v50  ;;  %v11517_v50 = vld [vmem:[%s11902_s30 + $0x88] sm:$0xff]  }
  0xce   : > { %10637 = vmatprep.mubr.msk.bf16.mxu0 %vm380_vm1, %v1470_v51  ;;  %v11518_v51 = vld [vmem:[%s11902_s30 + $0x90] sm:$0xff]   ;;  %v1986_v56 = vrot.slane %v11517_v50, 1 }
  0xcf   : > { %v11529_v50 = vld [vmem:[%s11902_s30 + $0x50] sm:$0xff]  }
  0xd0   : > { %v1987_v62 = vsel %vm15959_vm3, %v1984_v48, %v1986_v56  ;;  %v2532_v48 = vrot.slane %v2530_v41, 1 }
  0xd5   : > { %10638 = vmatmul.mubr.msk.bf16.gmra.mrb[24].mxu0 %vm380_vm1, %v1472_v57  ;;  %v1988_v57 = vrot.slane %v11518_v51, 1 }
  0xd6   : > { %10641 = vmatprep.mubr.msk.bf16.mxu0 %vm380_vm1, %v1474_v58  ;;  %v2468_v58 = vshrl.u32 %v11520_v54, 16  ;;  %v2542_v54 = vshll.u32 %v11528_v46, 16 }
  0xd7   : > { %v1989_v63 = vsel %vm15959_vm3, %v1986_v56, %v1988_v57  ;;  %v2548_v56 = vshrl.u32 %v11529_v50, 16 }
  0xd8   : > { %v2470_v2 = vrot.slane %v2468_v58, 1  ;;  %v2544_v60 = vrot.slane %v2542_v54, 2  ;;  %v11538_v54 = vld [vmem:[%s11902_s30 + $0x98] ss:$0 sps:$4 sm:$0x33]  }
  0xda   : > { %v2474_v10 = vor.u32 %v2473_v3, %v2470_v2  ;;  %v2557_v3 = vshrl.u32 %v11530_v61, 16 }
  0xdc   : > { %v2483_v19 = vsel %vm2466_vm4, %v2474_v10, %v2482_v11  ;;  %v2562_v10 = vrot.slane %v2560_v4, 2 }
  0xdd   : > { %10642 = vmatmul.mubr.msk.bf16.gmra.mrb[28].mxu0 %vm380_vm1, %v1476_v0  ;;  %v11519_v0 = vld [vmem:[%s11902_s30 + $0x98] ss:$0 sps:$4 sm:$0x11]  }
  0xde   : > { %10645 = vmatprep.mubr.msk.bf16.mxu0 %vm380_vm1, %v1478_v1  ;;  %v11522_v1 = vld [vmem:[%s11902_s30 + $0x18] sm:$0xff]  }
  0xdf   : > { %v2488_v9 = vshll.u32 %v11522_v1, 16 }
  0xe1   : > { %v2490_v16 = vrot.slane %v2488_v9, 2  ;;  %v2559_v9 = vrot.slane %v2557_v3, 1  ;;  %v11540_v3 = vld [vmem:[%s11902_s30 + $0x10] sm:$0xff]  }
  0xe5   : > { %10646 = vmatmul.mubr.msk.bf16.gmra.mrb[32].mxu0 %vm380_vm1, %v1480_v7  ;;  %v1990_v7 = vrot.slane %v11519_v0, 1 }
  0xe6   : > { %10651 = vmatprep.mubr.msk.bf16.mxu0 %vm380_vm1, %v1957_v8  ;;  %v2485_v8 = vshrl.u32 %v11522_v1, 16  ;;  %v11531_v1 = vld [vmem:[%s11902_s30 + $0x60] sm:$0xff]  }
  0xed   : > { %10652 = vmatmul.mubr.msk.bf16.vlgmr.msra.gmra.mrb[0].mxu0 %vm380_vm1, %v1959_v12  ;;  %v2494_v12 = vshrl.u32 %v11523_v6, 16  ;;  %v2566_v6 = vshrl.u32 %v11531_v1, 16 }
  0xee   : > { %10688 = vmatpush3.bf16.msra.mxu0 %v2692_v14  ;;  %10655 = vmatprep.mubr.msk.bf16.mxu0 %vm380_vm1, %v1961_v15  ;;  %v1991_v14 = vsel %vm15959_vm3, %v1988_v57, %v1990_v7  ;;  %v2487_v15 = vrot.slane %v2485_v8, 1  ;;  %v2551_v57 = vshll.u32 %v11529_v50, 16  ;;  %v2569_v7 = vshll.u32 %v11531_v1, 16 }
  0xef   : > { %11358 = vmatprep.subr.msk.bf16.mxu0 %vm435_vm0, %v12087_v17  ;;  %v2568_v13 = vrot.slane %v2566_v6, 1  ;;  %v3113_v6 = vrot.slane %v11540_v3, 2 }
  0xf0   : > { %v2491_v23 = vor.u32 %v2490_v16, %v2487_v15  ;;  %v2553_v0 = vrot.slane %v2551_v57, 2  ;;  %v11533_v15 = vld [vmem:[%s11902_s30 + $0x70] sm:$0xff]   ;;  %v2563_v16 = vor.u32 %v2562_v10, %v2559_v9  ;;  %v11542_v10 = vld [vmem:[%s11902_s30 + $0x20] sm:$0xff]  }
  0xf2   : > { %v2492_v28 = vsel %vm2466_vm4, %v2482_v11, %v2491_v23  ;;  %v11532_v11 = vld [vmem:[%s11902_s30 + $0x68] sm:$0xff]  }
  0xf3   : > { %v2575_v18 = vshrl.u32 %v11532_v11, 16 }
  0xf5   : > { %10656 = vmatmul.mubr.msk.bf16.gmra.mrb[4].mxu0 %vm380_vm1, %v1963_v20  ;;  %v2496_v20 = vrot.slane %v2494_v12, 1  ;;  %v2577_v24 = vrot.slane %v2575_v18, 1  ;;  %v11544_v18 = vld [vmem:[%s11902_s30 + $0x30] sm:$0xff]  }
  0xf6   : > { %10659 = vmatprep.mubr.msk.bf16.mxu0 %vm380_vm1, %v1965_v22  ;;  %v11525_v22 = vld [vmem:[%s11902_s30 + $0x30] sm:$0xff]  }
  0xf7   : > { %v2512_v26 = vshrl.u32 %v11525_v22, 16 }
  0xf9   : > { %v2514_v34 = vrot.slane %v2512_v26, 1 }
  0xfd   : > { %10660 = vmatmul.mubr.msk.bf16.gmra.mrb[8].mxu0 %vm380_vm1, %v1967_v25  ;;  %v2500_v25 = vor.u32 %v2499_v21, %v2496_v20  ;;  %v2584_v21 = vshrl.u32 %v11533_v15, 16 }
  0xfe   : > { %10663 = vmatprep.mubr.msk.bf16.mxu0 %vm380_vm1, %v1969_v27  ;;  %v2515_v27 = vshll.u32 %v11525_v22, 16  ;;  %v2587_v22 = vshll.u32 %v11533_v15, 16 }
 0x100   : > { %v2517_v35 = vrot.slane %v2515_v27, 2  ;;  %v2586_v27 = vrot.slane %v2584_v21, 1  ;;  %v3121_v21 = vrot.slane %v11544_v18, 2 }
 0x102   : > { %v2518_v40 = vor.u32 %v2517_v35, %v2514_v34  ;;  %v2602_v34 = vshrl.u32 %v11535_v29, 16  ;;  %v2605_v35 = vshll.u32 %v11535_v29, 16  ;;  %v11548_v29 = vld [vmem:[%s11902_s30 + $0x50] sm:$0xff]  }
 0x104   : > { %v2519_v47 = vsel %vm2466_vm4, %v2509_v38, %v2518_v40  ;;  %v2604_v41 = vrot.slane %v2602_v34, 1 }
 0x105   : > { %10664 = vmatmul.mubr.msk.bf16.gmra.mrb[12].mxu0 %vm380_vm1, %v1971_v31  ;;  %v11526_v31 = vld [vmem:[%s11902_s30 + $0x38] sm:$0xff]  }
 0x106   : > { %10667 = vmatprep.mubr.msk.bf16.mxu0 %vm380_vm1, %v1973_v33  ;;  %v2501_v33 = vsel %vm2466_vm4, %v2491_v23, %v2500_v25  ;;  %v2524_v17 = vshll.u32 %v11526_v31, 16 }
 0x10d   : > { %10668 = vmatmul.mubr.msk.bf16.gmra.mrb[16].mxu0 %vm380_vm1, %v1975_v37  ;;  %v12153_v37 = vld [vmem:[%s15952_s1 + $0x18] sm:$0xf] }
 0x10e   : > { %10671 = vmatprep.mubr.msk.bf16.mxu0 %vm380_vm1, %v1977_v39  ;;  %v2521_v39 = vshrl.u32 %v11526_v31, 16  ;;  %v3715_v15 = vsel %vm435_vm0, %v12153_v37, 0 }
 0x110   : > { %v2523_v44 = vrot.slane %v2521_v39, 1 }
 0x115   : > { %10672 = vmatmul.mubr.msk.bf16.gmra.mrb[20].mxu0 %vm380_vm1, %v1979_v43  ;;  %v2510_v43 = vsel %vm2466_vm4, %v2500_v25, %v2509_v38  ;;  %v11534_v25 = vld [vmem:[%s11902_s30 + $0x78] sm:$0xff]  }
 0x116   : > { %10675 = vmatprep.mubr.msk.bf16.mxu0 %vm380_vm1, %v1981_v45  ;;  %v2526_v45 = vrot.slane %v2524_v17, 2  ;;  %v2593_v31 = vshrl.u32 %v11534_v25, 16  ;;  %v11536_v17 = vld [vmem:[%s11902_s30 + $0x88] sm:$0xff]  }
 0x118   : > { %v2527_v51 = vor.u32 %v2526_v45, %v2523_v44  ;;  %v2595_v38 = vrot.slane %v2593_v31, 1  ;;  %v2611_v45 = vshrl.u32 %v11536_v17, 16  ;;  %v3129_v31 = vrot.slane %v11548_v29, 2  ;;  %v11569_v29 = vld [vmem:[%s11902_s30 + $0x68] sm:$0xff]  }
 0x11a   : > { %v2528_v58 = vsel %vm2466_vm4, %v2518_v40, %v2527_v51 }
 0x11d   : > { %10676 = vmatmul.mubr.msk.bf16.gmra.mrb[24].mxu0 %vm380_vm1, %v1983_v49  ;;  %v2535_v49 = vrot.slane %v2533_v42, 2  ;;  %v2607_v42 = vrot.slane %v2605_v35, 2  ;;  %v11550_v35 = vld [vmem:[%s11902_s30 + $0x60] sm:$0xff]  }
 0x11e   : > { %10679 = vmatprep.mubr.msk.bf16.mxu0 %vm380_vm1, %v1985_v53  ;;  %v2539_v53 = vshrl.u32 %v11528_v46, 16  ;;  %v2614_v46 = vshll.u32 %v11536_v17, 16  ;;  %v11551_v17 = vld [vmem:[%s11902_s30 + $0x68] sm:$0xff]  }
 0x11f   : > { %v2536_v55 = vor.u32 %v2535_v49, %v2532_v48 }
 0x120   : > { %v2541_v59 = vrot.slane %v2539_v53, 1  ;;  %v2616_v53 = vrot.slane %v2614_v46, 2 }
 0x122   : > { %v2545_v2 = vor.u32 %v2544_v60, %v2541_v59  ;;  %v2629_v59 = vshrl.u32 %v11538_v54, 16  ;;  %v2632_v60 = vshll.u32 %v11538_v54, 16  ;;  %v11556_v54 = vld [vmem:[%s11902_s30 + $0x90] sm:$0xff]  }
 0x124   : > { %v2546_v8 = vsel %vm2466_vm4, %v2536_v55, %v2545_v2 }
 0x125   : > { %10680 = vmatmul.mubr.msk.bf16.gmra.mrb[28].mxu0 %vm380_vm1, %v1987_v62  ;;  %v2537_v62 = vsel %vm2466_vm4, %v2527_v51, %v2536_v55  ;;  %v2613_v51 = vrot.slane %v2611_v45, 1  ;;  %v11553_v45 = vld [vmem:[%s11902_s30 + $0x78] sm:$0xff]  }
 0x126   : > { %10683 = vmatprep.mubr.msk.bf16.mxu0 %vm380_vm1, %v1989_v63  ;;  %v2550_v63 = vrot.slane %v2548_v56, 1 }
 0x128   : > { %v2554_v5 = vor.u32 %v2553_v0, %v2550_v63  ;;  %v2631_v63 = vrot.slane %v2629_v59, 1  ;;  %v2634_v0 = vrot.slane %v2632_v60, 2  ;;  %v11558_v60 = vld [vmem:[%s11902_s30 + $0x10] sm:$0xfc]  }
 0x12a   : > { %v2555_v12 = vsel %vm2466_vm4, %v2545_v2, %v2554_v5  ;;  %v2564_v23 = vsel %vm2466_vm4, %v2554_v5, %v2563_v16  ;;  %v11539_v2 = vld [vmem:[%s11902_s30 + $0x8] sm:$0xfc]   ;;  %v2635_v4 = vor.u32 %v2634_v0, %v2631_v63  ;;  %v3623_v63 = vrot.slane %v11558_v60, 2  ;;  %v11579_v60 = vld [vmem:[%s11902_s30 + $0x20] sm:$0xff]  }
 0x12b   : > { %v3112_v5 = vrot.slane %v11539_v2, 2  ;;  %v11560_v2 = vld [vmem:[%s11902_s30 + $0x20] sm:$0xff]  }
 0x12d   : > { %10684 = vmatmul.mubr.msk.bf16.gmra.mrb[32].mxu0 %vm380_vm1, %v1991_v14  ;;  %v2571_v14 = vrot.slane %v2569_v7, 2  ;;  %v3114_v9 = vsel %vm15958_vm5, %v3112_v5, %v3113_v6  ;;  %v3626_v5 = vrot.slane %v11560_v2, 2 }
 0x12e   : > { %10689 = vmatprep.mubr.msk.bf16.mxu0 %vm380_vm1, %v2483_v19  ;;  %v2578_v19 = vshll.u32 %v11532_v11, 16 }
 0x12f   : > { %v2572_v20 = vor.u32 %v2571_v14, %v2568_v13  ;;  %v11543_v14 = vld [vmem:[%s11902_s30 + $0x28] sm:$0xff]  }
 0x130   : > { %v2580_v52 = vrot.slane %v2578_v19, 2  ;;  %v12215_v19 = vld [vmem:[%s15952_s1 + $0x1c] sm:$0xf] }
 0x131   : > { %v2573_v26 = vsel %vm2466_vm4, %v2563_v16, %v2572_v20 }
 0x132   : > { %v2581_v30 = vor.u32 %v2580_v52, %v2577_v24  ;;  %v11546_v24 = vld [vmem:[%s11902_s30 + $0x40] sm:$0xff]  }
 0x134   : > { %v2582_v36 = vsel %vm2466_vm4, %v2572_v20, %v2581_v30  ;;  %v3119_v20 = vrot.slane %v11543_v14, 2 }
 0x135   : > { %10690 = vmatmul.mubr.msk.bf16.vlgmr.msra.gmra.mrb[0].mxu0 %vm380_vm1, %v2492_v28  ;;  %v2589_v28 = vrot.slane %v2587_v22, 2  ;;  %v11545_v22 = vld [vmem:[%s11902_s30 + $0x38] sm:$0xff]  }
 0x136   : > { %10726 = vmatpush3.bf16.msra.mxu0 %v3204_v32  ;;  %10693 = vmatprep.mubr.msk.bf16.mxu0 %vm380_vm1, %v2501_v33  ;;  %v2596_v32 = vshll.u32 %v11534_v25, 16  ;;  %v3123_v52 = vrot.slane %v11545_v22, 2  ;;  %v3125_v25 = vrot.slane %v11546_v24, 2  ;;  %v11566_v22 = vld [vmem:[%s11902_s30 + $0x50] sm:$0xff]   ;;  %v11567_v24 = vld [vmem:[%s11902_s30 + $0x58] sm:$0xff]  }
 0x137   : > { %11359 = vmatprep.subr.msk.bf16.mxu0 %vm435_vm0, %v12153_v37  ;;  %v2590_v33 = vor.u32 %v2589_v28, %v2586_v27  ;;  %v11547_v27 = vld [vmem:[%s11902_s30 + $0x48] sm:$0xff]  }
 0x138   : > { %v2598_v39 = vrot.slane %v2596_v32, 2  ;;  %v3126_v28 = vsel %vm15958_vm5, %v3123_v52, %v3125_v25 }
 0x139   : > { %v2591_v40 = vsel %vm2466_vm4, %v2581_v30, %v2590_v33  ;;  %v3127_v30 = vrot.slane %v11547_v27, 2  ;;  %v11568_v27 = vld [vmem:[%s11902_s30 + $0x60] sm:$0xff]  }
 0x13a   : > { %v2599_v44 = vor.u32 %v2598_v39, %v2595_v38  ;;  %v3133_v38 = vrot.slane %v11550_v35, 2  ;;  %v11571_v35 = vld [vmem:[%s11902_s30 + $0x78] sm:$0xff]  }
 0x13b   : > { %v3128_v32 = vsel %vm15958_vm5, %v3125_v25, %v3127_v30  ;;  %v3130_v34 = vsel %vm15958_vm5, %v3127_v30, %v3129_v31  ;;  %v3640_v25 = vrot.slane %v11567_v24, 2  ;;  %v3642_v30 = vrot.slane %v11568_v27, 2 }
 0x13c   : > { %v2600_v50 = vsel %vm2466_vm4, %v2590_v33, %v2599_v44  ;;  %v11549_v33 = vld [vmem:[%s11902_s30 + $0x58] sm:$0xff]  }
 0x13d   : > { %10694 = vmatmul.mubr.msk.bf16.gmra.mrb[4].mxu0 %vm380_vm1, %v2510_v43  ;;  %v11537_v43 = vld [vmem:[%s11902_s30 + $0x90] sm:$0xff]  }
 0x13e   : > { %10697 = vmatprep.mubr.msk.bf16.mxu0 %vm380_vm1, %v2519_v47  ;;  %v2608_v47 = vor.u32 %v2607_v42, %v2604_v41  ;;  %v2620_v48 = vshrl.u32 %v11537_v43, 16  ;;  %v2623_v49 = vshll.u32 %v11537_v43, 16  ;;  %v11552_v41 = vld [vmem:[%s11902_s30 + $0x70] sm:$0xff]   ;;  %v3135_v42 = vrot.slane %v11551_v17, 2  ;;  %v11572_v17 = vld [vmem:[%s11902_s30 + $0x80] sm:$0xff]  }
 0x13f   : > { %v3137_v43 = vrot.slane %v11552_v41, 2  ;;  %v11573_v41 = vld [vmem:[%s11902_s30 + $0x88] sm:$0xff]  }
 0x140   : > { %v2609_v55 = vsel %vm2466_vm4, %v2599_v44, %v2608_v47  ;;  %v2622_v56 = vrot.slane %v2620_v48, 1  ;;  %v2625_v57 = vrot.slane %v2623_v49, 2  ;;  %v3136_v44 = vsel %vm15958_vm5, %v3133_v38, %v3135_v42 }
 0x141   : > { %v3138_v46 = vsel %vm15958_vm5, %v3135_v42, %v3137_v43  ;;  %v3139_v48 = vrot.slane %v11553_v45, 2  ;;  %v3650_v42 = vrot.slane %v11572_v17, 2  ;;  %v11574_v45 = vld [vmem:[%s11902_s30 + $0x90] sm:$0xff]  }
 0x142   : > { %v2626_v61 = vor.u32 %v2625_v57, %v2622_v56  ;;  %v3145_v56 = vrot.slane %v11556_v54, 2 }
 0x144   : > { %v2636_v7 = vsel %vm2466_vm4, %v2626_v61, %v2635_v4  ;;  %v11561_v4 = vld [vmem:[%s11902_s30 + $0x28] sm:$0xff]  }
 0x145   : > { %10698 = vmatmul.mubr.msk.bf16.gmra.mrb[8].mxu0 %vm380_vm1, %v2528_v58  ;;  %v2617_v58 = vor.u32 %v2616_v53, %v2613_v51  ;;  %v11555_v51 = vld [vmem:[%s11902_s30 + $0x88] sm:$0xff]  }
 0x146   : > { %10701 = vmatprep.mubr.msk.bf16.mxu0 %vm380_vm1, %v2537_v62 }
 0x147   : > { %v2618_v62 = vsel %vm2466_vm4, %v2608_v47, %v2617_v58  ;;  %v2627_v1 = vsel %vm2466_vm4, %v2617_v58, %v2626_v61  ;;  %v11554_v47 = vld [vmem:[%s11902_s30 + $0x80] sm:$0xff]   ;;  %v11557_v58 = vld [vmem:[%s11902_s30 + $0x98] ss:$0 sps:$4 sm:$0x33]  }
 0x148   : > { %v3141_v49 = vrot.slane %v11554_v47, 2  ;;  %v11559_v61 = vld [vmem:[%s11902_s30 + $0x18] sm:$0xff]  }
 0x149   : > { %v3624_v0 = vrot.slane %v11559_v61, 2 }
 0x14a   : > { %v3142_v53 = vsel %vm15958_vm5, %v3139_v48, %v3141_v49 }
 0x14b   : > { %v3625_v3 = vsel %vm15958_vm5, %v3623_v63, %v3624_v0 }
 0x14d   : > { %10702 = vmatmul.mubr.msk.bf16.gmra.mrb[12].mxu0 %vm380_vm1, %v2546_v8  ;;  %v11541_v8 = vld [vmem:[%s11902_s30 + $0x18] sm:$0xff]  }
 0x14e   : > { %10705 = vmatprep.mubr.msk.bf16.mxu0 %vm380_vm1, %v2555_v12  ;;  %v3115_v11 = vrot.slane %v11541_v8, 2  ;;  %v3117_v12 = vrot.slane %v11542_v10, 2  ;;  %v11562_v8 = vld [vmem:[%s11902_s30 + $0x30] sm:$0xff]  }
 0x150   : > { %v3116_v13 = vsel %vm15958_vm5, %v3113_v6, %v3115_v11  ;;  %v3118_v16 = vsel %vm15958_vm5, %v3115_v11, %v3117_v12  ;;  %v3120_v37 = vsel %vm15958_vm5, %v3117_v12, %v3119_v20  ;;  %v3628_v6 = vrot.slane %v11561_v4, 2  ;;  %v11563_v11 = vld [vmem:[%s11902_s30 + $0x38] sm:$0xff]   ;;  %v12279_v12 = vld [vmem:[%s15952_s1 + $0x20] sm:$0xf] }
 0x151   : > { %v3632_v14 = vrot.slane %v11563_v11, 2  ;;  %v4156_v4 = vshll.u32 %v11579_v60, 16  ;;  %v4872_v27 = vsel %vm435_vm0, %v12279_v12, 0 }
 0x152   : > { %v3629_v10 = vsel %vm15958_vm5, %v3626_v5, %v3628_v6 }
 0x153   : > { %v4158_v11 = vrot.slane %v4156_v4, 3 }
 0x155   : > { %10706 = vmatmul.mubr.msk.bf16.gmra.mrb[16].mxu0 %vm380_vm1, %v2564_v23  ;;  %v3122_v23 = vsel %vm15958_vm5, %v3119_v20, %v3121_v21 }
 0x156   : > { %10709 = vmatprep.mubr.msk.bf16.mxu0 %vm380_vm1, %v2573_v26  ;;  %v3124_v26 = vsel %vm15958_vm5, %v3121_v21, %v3123_v52  ;;  %v3638_v52 = vrot.slane %v11566_v22, 2 }
 0x15d   : > { %10710 = vmatmul.mubr.msk.bf16.gmra.mrb[20].mxu0 %vm380_vm1, %v2582_v36  ;;  %v3131_v36 = vrot.slane %v11549_v33, 2  ;;  %v11570_v33 = vld [vmem:[%s11902_s30 + $0x70] sm:$0xff]  }
 0x15e   : > { %10713 = vmatprep.mubr.msk.bf16.mxu0 %vm380_vm1, %v2591_v40 }
 0x15f   : > { %v3132_v39 = vsel %vm15958_vm5, %v3129_v31, %v3131_v36  ;;  %v3134_v40 = vsel %vm15958_vm5, %v3131_v36, %v3133_v38  ;;  %v3644_v31 = vrot.slane %v11569_v29, 2  ;;  %v3646_v36 = vrot.slane %v11570_v33, 2 }
 0x160   : > { %v3648_v38 = vrot.slane %v11571_v35, 2 }
 0x165   : > { %10714 = vmatmul.mubr.msk.bf16.gmra.mrb[24].mxu0 %vm380_vm1, %v2600_v50  ;;  %v3140_v50 = vsel %vm15958_vm5, %v3137_v43, %v3139_v48  ;;  %v3652_v43 = vrot.slane %v11573_v41, 2  ;;  %v11577_v48 = vld [vmem:[%s11902_s30 + $0x10] sm:$0xfc]  }
 0x166   : > { %10717 = vmatprep.mubr.msk.bf16.mxu0 %vm380_vm1, %v2609_v55  ;;  %v3143_v55 = vrot.slane %v11555_v51, 2  ;;  %v4139_v54 = vshll.u32 %v11577_v48, 16 }
 0x167   : > { %v3653_v47 = vsel %vm15958_vm5, %v3650_v42, %v3652_v43 }
 0x168   : > { %v3144_v57 = vsel %vm15958_vm5, %v3141_v49, %v3143_v55  ;;  %v3146_v59 = vsel %vm15958_vm5, %v3143_v55, %v3145_v56  ;;  %v11578_v49 = vld [vmem:[%s11902_s30 + $0x18] sm:$0xff]  }
 0x169   : > { %v4144_v55 = vshrl.u32 %v11578_v49, 16 }
 0x16b   : > { %v4146_v63 = vrot.slane %v4144_v55, 2 }
 0x16d   : > { %10718 = vmatmul.mubr.msk.bf16.gmra.mrb[28].mxu0 %vm380_vm1, %v2618_v62  ;;  %v3147_v62 = vrot.slane %v11557_v58, 2 }
 0x16e   : > { %10721 = vmatprep.mubr.msk.bf16.mxu0 %vm380_vm1, %v2627_v1 }
 0x16f   : > { %v3148_v1 = vsel %vm15958_vm5, %v3145_v56, %v3147_v62  ;;  %v4147_v56 = vshll.u32 %v11578_v49, 16  ;;  %v4141_v62 = vrot.slane %v4139_v54, 3  ;;  %v12358_v49 = vld [vmem:[%s15955_s4] sm:$0xff]  }
 0x175   : > { %10722 = vmatmul.mubr.msk.bf16.gmra.mrb[32].mxu0 %vm380_vm1, %v2636_v7  ;;  %v3627_v7 = vsel %vm15958_vm5, %v3624_v0, %v3626_v5  ;;  %v4149_v0 = vrot.slane %v4147_v56, 3 }
 0x176   : > { %10727 = vmatprep.mubr.msk.bf16.mxu0 %vm380_vm1, %v3114_v9  ;;  %v4360_v9 = vsel %vm435_vm0, %v12215_v19, 0 }
 0x17d   : > { %10728 = vmatmul.mubr.msk.bf16.vlgmr.msra.gmra.mrb[0].mxu0 %vm380_vm1, %v3116_v13  ;;  %v3630_v13 = vrot.slane %v11562_v8, 2 }
 0x17e   : > { %10764 = vmatpush3.bf16.msra.mxu0 %v3715_v15  ;;  %10731 = vmatprep.mubr.msk.bf16.mxu0 %vm380_vm1, %v3118_v16  ;;  %v11564_v16 = vld [vmem:[%s11902_s30 + $0x40] sm:$0xff]  }
 0x17f   : > { %11360 = vmatprep.subr.msk.bf16.mxu0 %vm435_vm0, %v12215_v19  ;;  %v3631_v15 = vsel %vm15958_vm5, %v3628_v6, %v3630_v13  ;;  %v3633_v18 = vsel %vm15958_vm5, %v3630_v13, %v3632_v14  ;;  %v11565_v19 = vld [vmem:[%s11902_s30 + $0x48] sm:$0xff]   ;;  %v3634_v20 = vrot.slane %v11564_v16, 2  ;;  %v4150_v6 = vor.u32 %v4149_v0, %v4146_v63  ;;  %v11581_v13 = vld [vmem:[%s11902_s30 + $0x30] sm:$0xff]  }
 0x180   : > { %v3636_v21 = vrot.slane %v11565_v19, 2 }
 0x185   : > { %10732 = vmatmul.mubr.msk.bf16.gmra.mrb[4].mxu0 %vm380_vm1, %v3120_v37  ;;  %v3635_v37 = vsel %vm15958_vm5, %v3632_v14, %v3634_v20 }
 0x186   : > { %10735 = vmatprep.mubr.msk.bf16.mxu0 %vm380_vm1, %v3122_v23  ;;  %v3637_v23 = vsel %vm15958_vm5, %v3634_v20, %v3636_v21  ;;  %v4171_v20 = vshrl.u32 %v11581_v13, 16 }
 0x18d   : > { %10736 = vmatmul.mubr.msk.bf16.gmra.mrb[8].mxu0 %vm380_vm1, %v3124_v26  ;;  %v3639_v26 = vsel %vm15958_vm5, %v3636_v21, %v3638_v52  ;;  %v4174_v21 = vshll.u32 %v11581_v13, 16 }
 0x18e   : > { %10739 = vmatprep.mubr.msk.bf16.mxu0 %vm380_vm1, %v3126_v28  ;;  %v3641_v28 = vsel %vm15958_vm5, %v3638_v52, %v3640_v25  ;;  %v4173_v52 = vrot.slane %v4171_v20, 2  ;;  %v12399_v20 = vld [vmem:[%s15955_s4 + $0x20] sm:$0xff]  }
 0x195   : > { %10740 = vmatmul.mubr.msk.bf16.gmra.mrb[12].mxu0 %vm380_vm1, %v3128_v32  ;;  %v3643_v32 = vsel %vm15958_vm5, %v3640_v25, %v3642_v30  ;;  %v4176_v25 = vrot.slane %v4174_v21, 3 }
 0x196   : > { %10743 = vmatprep.mubr.msk.bf16.mxu0 %vm380_vm1, %v3130_v34  ;;  %v3645_v34 = vsel %vm15958_vm5, %v3642_v30, %v3644_v31 }
 0x19d   : > { %10744 = vmatmul.mubr.msk.bf16.gmra.mrb[16].mxu0 %vm380_vm1, %v3132_v39  ;;  %v3647_v39 = vsel %vm15958_vm5, %v3644_v31, %v3646_v36  ;;  %v11584_v31 = vld [vmem:[%s11902_s30 + $0x48] sm:$0xff]  }
 0x19e   : > { %10747 = vmatprep.mubr.msk.bf16.mxu0 %vm380_vm1, %v3134_v40  ;;  %v3649_v40 = vsel %vm15958_vm5, %v3646_v36, %v3648_v38  ;;  %v4198_v36 = vshrl.u32 %v11584_v31, 16 }
 0x1a5   : > { %10748 = vmatmul.mubr.msk.bf16.gmra.mrb[20].mxu0 %vm380_vm1, %v3136_v44  ;;  %v3651_v44 = vsel %vm15958_vm5, %v3648_v38, %v3650_v42  ;;  %v4201_v38 = vshll.u32 %v11584_v31, 16  ;;  %v4200_v42 = vrot.slane %v4198_v36, 2 }
 0x1a6   : > { %10751 = vmatprep.mubr.msk.bf16.mxu0 %vm380_vm1, %v3138_v46  ;;  %v11575_v46 = vld [vmem:[%s11902_s30 + $0x98] sm:$0xff]  }
 0x1a7   : > { %v3656_v51 = vrot.slane %v11575_v46, 2 }
 0x1ad   : > { %10752 = vmatmul.mubr.msk.bf16.gmra.mrb[24].mxu0 %vm380_vm1, %v3140_v50  ;;  %v3654_v50 = vrot.slane %v11574_v45, 2 }
 0x1ae   : > { %10755 = vmatprep.mubr.msk.bf16.mxu0 %vm380_vm1, %v3142_v53  ;;  %v4136_v53 = vshrl.u32 %v11577_v48, 16  ;;  %v11843_v48 = vmov 0  }
 0x1af   : > { %v3657_v58 = vsel %vm15958_vm5, %v3654_v50, %v3656_v51  ;;  %6056 = vst [vmem:[#allocation2] sm:$0xff] %v11843_v48  ;;  %6083 = vst [vmem:[#allocation2 + $0x1e0] sm:$0xff] %v11843_v48  ;;  %11033 = vmatprep.subr.bf16.mxu1 %v11843_v48 }
 0x1b0   : > { %v4138_v61 = vrot.slane %v4136_v53, 2  ;;  %6084 = vst [vmem:[#allocation2 + $0x1e8] sm:$0xff] %v11843_v48  ;;  %6085 = vst [vmem:[#allocation2 + $0x1f0] sm:$0xff] %v11843_v48  ;;  %11049 = vmatpush1.bf16.msra.mxu1 %v12358_v49 }
 0x1b1   : > { %11034 = vmatprep.subr.bf16.mxu1 %v11843_v48 }
 0x1b2   : > { %v4142_v5 = vor.u32 %v4141_v62, %v4138_v61  ;;  %v11588_v62 = vld [vmem:[%s11902_s30 + $0x68] sm:$0xff]  }
 0x1b3   : > { %v4234_v4 = vshrl.u32 %v11588_v62, 16 }
 0x1b4   : > { %v4151_v14 = vsel %vm4134_vm6, %v4142_v5, %v4150_v6  ;;  %v4237_v5 = vshll.u32 %v11588_v62, 16 }
 0x1b5   : > { %10756 = vmatmul.mubr.msk.bf16.gmra.mrb[28].mxu0 %vm380_vm1, %v3144_v57  ;;  %v3655_v57 = vsel %vm15958_vm5, %v3652_v43, %v3654_v50  ;;  %v4203_v43 = vrot.slane %v4201_v38, 3  ;;  %v4236_v13 = vrot.slane %v4234_v4, 2 }
 0x1b6   : > { %10759 = vmatprep.mubr.msk.bf16.mxu0 %vm380_vm1, %v3146_v59  ;;  %v11576_v59 = vld [vmem:[%s11902_s30 + $0xa0] ss:$0 sps:$4 sm:$0x33]  }
 0x1b7   : > { %v3658_v2 = vrot.slane %v11576_v59, 2  ;;  %v4204_v50 = vor.u32 %v4203_v43, %v4200_v42 }
 0x1bd   : > { %10760 = vmatmul.mubr.msk.bf16.gmra.mrb[32].mxu0 %vm380_vm1, %v3148_v1  ;;  %v11580_v1 = vld [vmem:[%s11902_s30 + $0x28] sm:$0xff]  }
 0x1be   : > { %10765 = vmatprep.mubr.msk.bf16.mxu0 %vm380_vm1, %v3625_v3  ;;  %v4153_v3 = vshrl.u32 %v11579_v60, 16  ;;  %v4165_v8 = vshll.u32 %v11580_v1, 16 }
 0x1c0   : > { %v4167_v16 = vrot.slane %v4165_v8, 3 }
 0x1c5   : > { %10766 = vmatmul.mubr.msk.bf16.vlgmr.msra.gmra.mrb[0].mxu0 %vm380_vm1, %v3627_v7  ;;  %v4162_v7 = vshrl.u32 %v11580_v1, 16 }
 0x1c6   : > { %10802 = vmatpush3.bf16.msra.mxu0 %v4360_v9  ;;  %10769 = vmatprep.mubr.msk.bf16.mxu0 %vm380_vm1, %v3629_v10  ;;  %v3659_v9 = vsel %vm15958_vm5, %v3656_v51, %v3658_v2  ;;  %v4155_v10 = vrot.slane %v4153_v3, 2  ;;  %v12379_v2 = vld [vmem:[%s15955_s4 + $0x10] sm:$0xff]  }
 0x1c7   : > { %11361 = vmatprep.subr.msk.bf16.mxu0 %vm435_vm0, %v12279_v12 }
 0x1c8   : > { %v4159_v19 = vor.u32 %v4158_v11, %v4155_v10  ;;  %v12388_v10 = vld [vmem:[%s15955_s4 + $0x18] sm:$0xff]  }
 0x1ca   : > { %v4160_v24 = vsel %vm4134_vm6, %v4150_v6, %v4159_v19 }
 0x1cd   : > { %10770 = vmatmul.mubr.msk.bf16.gmra.mrb[4].mxu0 %vm380_vm1, %v3631_v15  ;;  %v4164_v15 = vrot.slane %v4162_v7, 2 }
 0x1ce   : > { %10773 = vmatprep.mubr.msk.bf16.mxu0 %vm380_vm1, %v3633_v18  ;;  %v11582_v18 = vld [vmem:[%s11902_s30 + $0x38] sm:$0xff]  }
 0x1cf   : > { %v4180_v22 = vshrl.u32 %v11582_v18, 16 }
 0x1d1   : > { %v4182_v29 = vrot.slane %v4180_v22, 2 }
 0x1d5   : > { %10774 = vmatmul.mubr.msk.bf16.gmra.mrb[8].mxu0 %vm380_vm1, %v3635_v37  ;;  %v4168_v37 = vor.u32 %v4167_v16, %v4164_v15  ;;  %v11590_v15 = vld [vmem:[%s11902_s30 + $0x78] sm:$0xff]  }
 0x1d6   : > { %10777 = vmatprep.mubr.msk.bf16.mxu0 %vm380_vm1, %v3637_v23  ;;  %v4183_v23 = vshll.u32 %v11582_v18, 16  ;;  %v4255_v22 = vshll.u32 %v11590_v15, 16 }
 0x1d8   : > { %v4185_v30 = vrot.slane %v4183_v23, 3 }
 0x1da   : > { %v4186_v35 = vor.u32 %v4185_v30, %v4182_v29  ;;  %v4257_v29 = vrot.slane %v4255_v22, 3  ;;  %v11592_v30 = vld [vmem:[%s11902_s30 + $0x88] sm:$0xff]  }
 0x1db   : > { %v4270_v36 = vshrl.u32 %v11592_v30, 16  ;;  %v4273_v38 = vshll.u32 %v11592_v30, 16  ;;  %v11599_v22 = vld [vmem:[%s11902_s30 + $0x28] sm:$0xff]  }
 0x1dd   : > { %10778 = vmatmul.mubr.msk.bf16.gmra.mrb[12].mxu0 %vm380_vm1, %v3639_v26  ;;  %v11583_v26 = vld [vmem:[%s11902_s30 + $0x40] sm:$0xff]   ;;  %v4272_v43 = vrot.slane %v4270_v36, 2 }
 0x1de   : > { %10781 = vmatprep.mubr.msk.bf16.mxu0 %vm380_vm1, %v3641_v28  ;;  %v4169_v28 = vsel %vm4134_vm6, %v4159_v19, %v4168_v37  ;;  %v4189_v33 = vshrl.u32 %v11583_v26, 16 }
 0x1e5   : > { %10782 = vmatmul.mubr.msk.bf16.gmra.mrb[16].mxu0 %vm380_vm1, %v3643_v32  ;;  %v4177_v32 = vor.u32 %v4176_v25, %v4173_v52  ;;  %v11591_v25 = vld [vmem:[%s11902_s30 + $0x80] sm:$0xff]  }
 0x1e6   : > { %10785 = vmatprep.mubr.msk.bf16.mxu0 %vm380_vm1, %v3645_v34  ;;  %v4192_v34 = vshll.u32 %v11583_v26, 16  ;;  %v12408_v26 = vld [vmem:[%s15955_s4 + $0x28] sm:$0xff]  }
 0x1e7   : > { %v4178_v12 = vsel %vm4134_vm6, %v4168_v37, %v4177_v32  ;;  %v4187_v41 = vsel %vm4134_vm6, %v4177_v32, %v4186_v35  ;;  %v4252_v37 = vshrl.u32 %v11590_v15, 16  ;;  %v4261_v32 = vshrl.u32 %v11591_v25, 16 }
 0x1e8   : > { %v4194_v17 = vrot.slane %v4192_v34, 3  ;;  %v12419_v34 = vld [vmem:[%s15955_s4 + $0x30] sm:$0xff]  }
 0x1ed   : > { %10786 = vmatmul.mubr.msk.bf16.gmra.mrb[20].mxu0 %vm380_vm1, %v3647_v39  ;;  %v4191_v39 = vrot.slane %v4189_v33, 2  ;;  %v4264_v33 = vshll.u32 %v11591_v25, 16  ;;  %v11600_v25 = vld [vmem:[%s11902_s30 + $0x30] sm:$0xff]  }
 0x1ee   : > { %10789 = vmatprep.mubr.msk.bf16.mxu0 %vm380_vm1, %v3649_v40  ;;  %v11585_v40 = vld [vmem:[%s11902_s30 + $0x50] sm:$0xff]  }
 0x1ef   : > { %v4195_v45 = vor.u32 %v4194_v17, %v4191_v39  ;;  %v4207_v46 = vshrl.u32 %v11585_v40, 16  ;;  %v4263_v39 = vrot.slane %v4261_v32, 2  ;;  %v4266_v17 = vrot.slane %v4264_v33, 3  ;;  %v11602_v32 = vld [vmem:[%s11902_s30 + $0x40] sm:$0xff]  }
 0x1f1   : > { %v4196_v54 = vsel %vm4134_vm6, %v4186_v35, %v4195_v45  ;;  %v4209_v55 = vrot.slane %v4207_v46, 2  ;;  %v4205_v59 = vsel %vm4134_vm6, %v4195_v45, %v4204_v50  ;;  %v11594_v45 = vld [vmem:[%s11902_s30 + $0x98] sm:$0xff]   ;;  %v4267_v46 = vor.u32 %v4266_v17, %v4263_v39 }
 0x1f2   : > { %v11605_v39 = vld [vmem:[%s11902_s30 + $0x58] sm:$0xff]  }
 0x1f3   : > { %v4797_v17 = vrot.slane %v11605_v39, 3 }
 0x1f5   : > { %10790 = vmatmul.mubr.msk.bf16.gmra.mrb[24].mxu0 %vm380_vm1, %v3651_v44  ;;  %v11586_v44 = vld [vmem:[%s11902_s30 + $0x58] sm:$0xff]  }
 0x1f6   : > { %10793 = vmatprep.mubr.msk.bf16.mxu0 %vm380_vm1, %v3653_v47  ;;  %v4210_v47 = vshll.u32 %v11585_v40, 16  ;;  %v4216_v51 = vshrl.u32 %v11586_v44, 16  ;;  %v4219_v53 = vshll.u32 %v11586_v44, 16  ;;  %v11593_v40 = vld [vmem:[%s11902_s30 + $0x90] sm:$0xff]   ;;  %v4275_v44 = vrot.slane %v4273_v38, 3 }
 0x1f8   : > { %v4212_v56 = vrot.slane %v4210_v47, 3  ;;  %v4218_v60 = vrot.slane %v4216_v51, 2  ;;  %v4221_v61 = vrot.slane %v4219_v53, 3  ;;  %v4279_v47 = vshrl.u32 %v11593_v40, 16  ;;  %v12439_v51 = vld [vmem:[%s15955_s4 + $0x40] sm:$0xff]  }
 0x1f9   : > { %v4276_v53 = vor.u32 %v4275_v44, %v4272_v43  ;;  %v11607_v43 = vld [vmem:[%s11902_s30 + $0x68] sm:$0xff]  }
 0x1fa   : > { %v4213_v63 = vor.u32 %v4212_v56, %v4209_v55  ;;  %v4222_v3 = vor.u32 %v4221_v61, %v4218_v60  ;;  %v4291_v55 = vshll.u32 %v11594_v45, 16  ;;  %v11595_v60 = vld [vmem:[%s11902_s30 + $0xa0] ss:$0 sps:$4 sm:$0x77]   ;;  %v12448_v61 = vld [vmem:[%s15955_s4 + $0x48] sm:$0xff]   ;;  %v4801_v44 = vrot.slane %v11607_v43, 3 }
 0x1fb   : > { %v4277_v62 = vsel %vm4134_vm6, %v4267_v46, %v4276_v53  ;;  %v4300_v4 = vshll.u32 %v11595_v60, 16 }
 0x1fc   : > { %v4214_v6 = vsel %vm4134_vm6, %v4204_v50, %v4213_v63  ;;  %v4223_v11 = vsel %vm4134_vm6, %v4213_v63, %v4222_v3  ;;  %v4282_v50 = vshll.u32 %v11593_v40, 16 }
 0x1fd   : > { %10794 = vmatmul.mubr.msk.bf16.gmra.mrb[28].mxu0 %vm380_vm1, %v3655_v57  ;;  %v11587_v57 = vld [vmem:[%s11902_s30 + $0x60] sm:$0xff]  }
 0x1fe   : > { %10797 = vmatprep.mubr.msk.bf16.mxu0 %vm380_vm1, %v3657_v58  ;;  %v12368_v58 = vld [vmem:[%s15955_s4 + $0x8] sm:$0xff]   ;;  %v4225_v0 = vshrl.u32 %v11587_v57, 16  ;;  %v4228_v1 = vshll.u32 %v11587_v57, 16  ;;  %v4281_v57 = vrot.slane %v4279_v47, 2  ;;  %v11609_v47 = vld [vmem:[%s11902_s30 + $0x78] sm:$0xff]  }
 0x1ff   : > { %11050 = vmatpush1.bf16.msra.mxu1 %v12368_v58 }
 0x200   : > { %11035 = vmatprep.subr.bf16.mxu1 %v11843_v48  ;;  %v4227_v7 = vrot.slane %v4225_v0, 2  ;;  %v4230_v8 = vrot.slane %v4228_v1, 3  ;;  %v4293_v0 = vrot.slane %v4291_v55, 3  ;;  %v11611_v55 = vld [vmem:[%s11902_s30 + $0x88] sm:$0xff]  }
 0x202   : > { %v4231_v16 = vor.u32 %v4230_v8, %v4227_v7 }
 0x203   : > { %11051 = vmatpush1.bf16.msra.mxu1 %v12379_v2 }
 0x204   : > { %11036 = vmatprep.subr.bf16.mxu1 %v11843_v48  ;;  %v4232_v23 = vsel %vm4134_vm6, %v4222_v3, %v4231_v16  ;;  %v4297_v3 = vshrl.u32 %v11595_v60, 16 }
 0x205   : > { %10798 = vmatmul.mubr.msk.bf16.gmra.mrb[32].mxu0 %vm380_vm1, %v3659_v9  ;;  %v11589_v9 = vld [vmem:[%s11902_s30 + $0x70] sm:$0xff]  }
 0x206   : > { %10803 = vmatprep.mubr.msk.bf16.mxu0 %vm380_vm1, %v4151_v14  ;;  %v4239_v14 = vrot.slane %v4237_v5, 3  ;;  %v4243_v18 = vshrl.u32 %v11589_v9, 16  ;;  %v4246_v19 = vshll.u32 %v11589_v9, 16  ;;  %v12458_v5 = vld [vmem:[%s15955_s4 + $0x50] sm:$0xff]   ;;  %v4299_v8 = vrot.slane %v4297_v3, 2 }
 0x207   : > { %11052 = vmatpush1.bf16.msra.mxu1 %v12388_v10  ;;  %v4302_v9 = vrot.slane %v4300_v4, 3 }
 0x208   : > { %11037 = vmatprep.subr.bf16.mxu1 %v11843_v48  ;;  %v4240_v21 = vor.u32 %v4239_v14, %v4236_v13  ;;  %v4248_v52 = vrot.slane %v4246_v19, 3  ;;  %v11596_v13 = vld [vmem:[%s11902_s30 + $0x10] sm:$0xf8]   ;;  %v11597_v14 = vld [vmem:[%s11902_s30 + $0x18] sm:$0xff]  }
 0x209   : > { %v4303_v15 = vor.u32 %v4302_v9, %v4299_v8  ;;  %v11628_v8 = vld [vmem:[%s15955_s4 + $0x68] sm:$0xff]   ;;  %v16082_v9 = vmov 0 }
 0x20a   : > { %v16083_v9 = vsel %vm12560_vm10, 4294967295, %v16082_v9 }
 0x20b   : > { %11053 = vmatpush1.bf16.msra.mxu1 %v12399_v20  ;;  %16084 = vst [vmem:[#allocation4_spill] sm:$0xff] %v16083_v9 }
 0x20c   : > { %11038 = vmatprep.subr.bf16.mxu1 %v11843_v48 }
 0x20d   : > { %10804 = vmatmul.mubr.msk.bf16.vlgmr.msra.gmra.mrb[0].mxu0 %vm380_vm1, %v4160_v24  ;;  %v4245_v24 = vrot.slane %v4243_v18, 2  ;;  %v4781_v18 = vrot.slane %v11597_v14, 3 }
 0x20e   : > { %10840 = vmatpush3.bf16.msra.mxu0 %v4872_v27  ;;  %10807 = vmatprep.mubr.msk.bf16.mxu0 %vm380_vm1, %v4169_v28  ;;  %v4241_v27 = vsel %vm4134_vm6, %v4231_v16, %v4240_v21  ;;  %v4254_v28 = vrot.slane %v4252_v37, 2  ;;  %v4780_v16 = vrot.slane %v11596_v13, 3  ;;  %v6068_v13 = vld [vmem:[#allocation2 + $0x28] sm:$0x3] }
 0x20f   : > { %6734 = vmatprep.subr.bf16.mxu0 %v11843_v48  ;;  %11054 = vmatpush1.bf16.msra.mxu1 %v12408_v26  ;;  %v4249_v31 = vor.u32 %v4248_v52, %v4245_v24  ;;  %v4785_v24 = vrot.slane %v11599_v22, 3 }
 0x210   : > { %11039 = vmatprep.subr.bf16.mxu1 %v11843_v48  ;;  %v4258_v35 = vor.u32 %v4257_v29, %v4254_v28  ;;  %v4782_v37 = vsel %vm4779_vm7, %v4780_v16, %v4781_v18  ;;  %v11601_v28 = vld [vmem:[%s11902_s30 + $0x38] sm:$0xff]   ;;  %v4787_v29 = vrot.slane %v11600_v25, 3  ;;  %v6065_v16 = vld [vmem:[#allocation2 + $0x20] sm:$0x3] }
 0x211   : > { %v4789_v30 = vrot.slane %v11601_v28, 3 }
 0x212   : > { %v4259_v42 = vsel %vm4134_vm6, %v4249_v31, %v4258_v35  ;;  %v4268_v56 = vsel %vm4134_vm6, %v4258_v35, %v4267_v46  ;;  %v11603_v35 = vld [vmem:[%s11902_s30 + $0x48] sm:$0xff]  }
 0x213   : > { %11055 = vmatpush1.bf16.msra.mxu1 %v12419_v34  ;;  %v4790_v33 = vsel %vm4779_vm7, %v4787_v29, %v4789_v30  ;;  %v4793_v36 = vrot.slane %v11603_v35, 3 }
 0x214   : > { %11040 = vmatprep.subr.bf16.mxu1 %v11843_v48 }
 0x215   : > { %10808 = vmatmul.mubr.msk.bf16.gmra.mrb[4].mxu0 %vm380_vm1, %v4178_v12  ;;  %v4250_v12 = vsel %vm4134_vm6, %v4240_v21, %v4249_v31  ;;  %v11598_v21 = vld [vmem:[%s11902_s30 + $0x20] sm:$0xff]   ;;  %v4788_v31 = vsel %vm4779_vm7, %v4785_v24, %v4787_v29 }
 0x216   : > { %10811 = vmatprep.mubr.msk.bf16.mxu0 %vm380_vm1, %v4187_v41  ;;  %v12428_v41 = vld [vmem:[%s15955_s4 + $0x38] sm:$0xff]  }
 0x217   : > { %11056 = vmatpush1.bf16.msra.mxu1 %v12428_v41 }
 0x218   : > { %11041 = vmatprep.subr.bf16.mxu1 %v11843_v48 }
 0x21b   : > { %11057 = vmatpush1.bf16.msra.mxu1 %v12439_v51 }
 0x21c   : > { %11042 = vmatprep.subr.bf16.mxu1 %v11843_v48 }
 0x21d   : > { %10812 = vmatmul.mubr.msk.bf16.gmra.mrb[8].mxu0 %vm380_vm1, %v4196_v54  ;;  %v4288_v54 = vshrl.u32 %v11594_v45, 16 }
 0x21e   : > { %10815 = vmatprep.mubr.msk.bf16.mxu0 %vm380_vm1, %v4205_v59  ;;  %v4284_v59 = vrot.slane %v4282_v50, 3  ;;  %v4805_v50 = vrot.slane %v11609_v47, 3 }
 0x21f   : > { %v4290_v63 = vrot.slane %v4288_v54, 2  ;;  %11058 = vmatpush1.bf16.msra.mxu1 %v12448_v61 }
 0x220   : > { %11043 = vmatprep.subr.bf16.mxu1 %v11843_v48  ;;  %v4285_v1 = vor.u32 %v4284_v59, %v4281_v57  ;;  %v11612_v59 = vld [vmem:[%s11902_s30 + $0x90] sm:$0xff]  }
 0x222   : > { %v4286_v7 = vsel %vm4134_vm6, %v4276_v53, %v4285_v1 }
 0x223   : > { %11059 = vmatpush1.bf16.msra.mxu1 %v12458_v5 }
 0x224   : > { %11044 = vmatprep.subr.bf16.mxu1 %v11843_v48 }
 0x225   : > { %10816 = vmatmul.mubr.msk.bf16.gmra.mrb[12].mxu0 %vm380_vm1, %v4214_v6  ;;  %v4294_v6 = vor.u32 %v4293_v0, %v4290_v63 }
 0x226   : > { %10819 = vmatprep.mubr.msk.bf16.mxu0 %vm380_vm1, %v4223_v11 }
 0x227   : > { %v4295_v11 = vsel %vm4134_vm6, %v4285_v1, %v4294_v6  ;;  %v4304_v19 = vsel %vm4134_vm6, %v4294_v6, %v4303_v15  ;;  %v11614_v1 = vld [vmem:[%s11902_s30 + $0xa0] ss:$0 sps:$4 sm:$0x77]   ;;  %v11626_v6 = vld [vmem:[%s15955_s4 + $0x58] sm:$0xff]   ;;  %v6069_v15 = vsel %vm12560_vm10, 0, %v6068_v13 }
 0x228   : > { %v4815_v4 = vrot.slane %v11614_v1, 3  ;;  %11060 = vmatpush1.bf16.msra.mxu1 %v11626_v6  ;;  %6070 = vst [vmem:[#allocation2 + $0x28] sm:$0x3] %v6069_v15 }
 0x229   : > { %11045 = vmatprep.subr.bf16.mxu1 %v11843_v48 }
 0x22d   : > { %10820 = vmatmul.mubr.msk.bf16.gmra.mrb[16].mxu0 %vm380_vm1, %v4232_v23  ;;  %v4783_v23 = vrot.slane %v11598_v21, 3  ;;  %v5123_v21 = vlaneseq }
 0x22e   : > { %10823 = vmatprep.mubr.msk.bf16.mxu0 %vm380_vm1, %v4241_v27 }
 0x22f   : > { %v4784_v52 = vsel %vm4779_vm7, %v4781_v18, %v4783_v23  ;;  %v4786_v27 = vsel %vm4779_vm7, %v4783_v23, %v4785_v24  ;;  %v6066_v18 = vsel %vm12560_vm10, 0, %v6065_v16  ;;  %v12580_v22 = vshrl.u32 %v5123_v21, 7 }
 0x230   : > { %6067 = vst [vmem:[#allocation2 + $0x20] sm:$0x3] %v6066_v18 }
 0x231   : > { %v5126_v23 = vadd.s32 16, %v12580_v22  ;;  %v5127_v25 = vadd.s32 24, %v12580_v22  ;;  %v5125_v29 = vadd.s32 8, %v12580_v22  ;;  %v5130_v35 = vadd.s32 48, %v12580_v22 }
 0x232   : > { %v12680_v13 = vadd.s32 72, %v12580_v22  ;;  %v12699_v21 = vadd.s32 112, %v12580_v22  ;;  %v12977_v16 = vadd.s32 184, %v12580_v22 }
 0x235   : > { %10824 = vmatmul.mubr.msk.bf16.gmra.mrb[20].mxu0 %vm380_vm1, %v4250_v12 }
 0x236   : > { %10827 = vmatprep.mubr.msk.bf16.mxu0 %vm380_vm1, %v4259_v42 }
 0x23d   : > { %10828 = vmatmul.mubr.msk.bf16.gmra.mrb[24].mxu0 %vm380_vm1, %v4268_v56  ;;  %v4809_v56 = vrot.slane %v11611_v55, 3 }
 0x23e   : > { %10831 = vmatprep.mubr.msk.bf16.mxu0 %vm380_vm1, %v4277_v62  ;;  %v4811_v62 = vrot.slane %v11612_v59, 3 }
 0x240   : > { %v4812_v0 = vsel %vm4779_vm7, %v4809_v56, %v4811_v62 }
 0x245   : > { %10832 = vmatmul.mubr.msk.bf16.gmra.mrb[28].mxu0 %vm380_vm1, %v4286_v7  ;;  %v11627_v7 = vld [vmem:[%s15955_s4 + $0x60] sm:$0xff]  }
 0x246   : > { %10835 = vmatprep.mubr.msk.bf16.mxu0 %vm380_vm1, %v4295_v11  ;;  %11061 = vmatpush1.bf16.msra.mxu1 %v11627_v7  ;;  %v6062_v11 = vld [vmem:[#allocation2 + $0x18] sm:$0x3] }
 0x247   : > { %11046 = vmatprep.subr.bf16.mxu1 %v11843_v48  ;;  %v6063_v14 = vsel %vm12560_vm10, 0, %v6062_v11 }
 0x248   : > { %6064 = vst [vmem:[#allocation2 + $0x18] sm:$0x3] %v6063_v14 }
 0x24a   : > { %11062 = vmatpush1.bf16.msra.mxu1 %v11628_v8 }
 0x24b   : > { %11047 = vmatprep.subr.bf16.mxu1 %v11843_v48 }
 0x24d   : > { %10836 = vmatmul.mubr.msk.bf16.gmra.mrb[32].mxu0 %vm380_vm1, %v4304_v19  ;;  %v11629_v19 = vld [vmem:[%s15955_s4 + $0x70] sm:$0xff]  }
 0x24e   : > { %10841 = vmatprep.mubr.msk.bf16.mxu0 %vm380_vm1, %v4782_v37  ;;  %11063 = vmatpush1.bf16.msra.mxu1 %v11629_v19  ;;  %v11630_v37 = vld [vmem:[%s15955_s4 + $0x78] sm:$0xff]  }
 0x24f   : > { %11048 = vmatprep.subr.bf16.mxu1 %v11843_v48 }
 0x252   : > { %11064 = vmatpush1.bf16.msra.mxu1 %v11630_v37 }
 0x255   : > { %10842 = vmatmul.mubr.msk.bf16.vlgmr.msra.gmra.mrb[0].mxu0 %vm380_vm1, %v4784_v52  ;;  %v12584_v24 = vmul.u32.u64.low 3817748708, %v5126_v23  ;;  %v12585_v52 = vmul.u32.u64.high 3817748708, %v5126_v23, %v12584_v24 }
 0x256   : > { %10845 = vmatprep.mubr.msk.bf16.mxu0 %vm380_vm1, %v4786_v27  ;;  %6735 = vmatpush1.bf16.msra.mxu0 %v12358_v49  ;;  %v4791_v49 = vrot.slane %v11602_v32, 3  ;;  %v12589_v27 = vmul.u32.u64.low 3817748708, %v12580_v22  ;;  %v12590_v28 = vmul.u32.u64.high 3817748708, %v12580_v22, %v12589_v27  ;;  %v12706_v24 = vadd.s32 96, %v12580_v22 }
 0x257   : > { %6736 = vmatprep.subr.bf16.mxu0 %v11843_v48  ;;  %v5188_v32 = vshrl.u32 %v12585_v52, 4 }
 0x258   : > { %v4792_v38 = vsel %vm4779_vm7, %v4789_v30, %v4791_v49  ;;  %v4794_v12 = vsel %vm4779_vm7, %v4791_v49, %v4793_v36  ;;  %v5166_v49 = vshrl.u32 %v12590_v28, 4 }
 0x259   : > { %v12711_v27 = vmul.u32.u64.low 3817748708, %v12680_v13  ;;  %v12712_v28 = vmul.u32.u64.high 3817748708, %v12680_v13, %v12711_v27 }
 0x25a   : > { %6737 = vmatpush1.bf16.msra.mxu0 %v12368_v58  ;;  %v11604_v58 = vld [vmem:[%s11902_s30 + $0x50] sm:$0xff]   ;;  %v16106_v27 = vmov 0 }
 0x25b   : > { %6738 = vmatprep.subr.bf16.mxu0 %v11843_v48 }
 0x25d   : > { %10846 = vmatmul.mubr.msk.bf16.gmra.mrb[4].mxu0 %vm380_vm1, %v4788_v31  ;;  %v12593_v30 = vmul.u32.u64.low 3817748708, %v5127_v25  ;;  %v12594_v31 = vmul.u32.u64.high 3817748708, %v5127_v25, %v12593_v30 }
 0x25e   : > { %10849 = vmatprep.mubr.msk.bf16.mxu0 %vm380_vm1, %v4790_v33  ;;  %6739 = vmatpush1.bf16.msra.mxu0 %v12379_v2  ;;  %v4795_v2 = vrot.slane %v11604_v58, 3  ;;  %v6074_v30 = vld [vmem:[#allocation2 + $0x1c8] sm:$0xff] }
 0x25f   : > { %6740 = vmatprep.subr.bf16.mxu0 %v11843_v48  ;;  %v5199_v58 = vshrl.u32 %v12594_v31, 4 }
 0x260   : > { %v4796_v40 = vsel %vm4779_vm7, %v4793_v36, %v4795_v2  ;;  %v4798_v42 = vsel %vm4779_vm7, %v4795_v2, %v4797_v17  ;;  %v5128_v36 = vadd.s32 32, %v12580_v22  ;;  %v12608_v2 = vadd.s32 56, %v12580_v22 }
 0x262   : > { %6741 = vmatpush1.bf16.msra.mxu0 %v12388_v10  ;;  %v11606_v10 = vld [vmem:[%s11902_s30 + $0x60] sm:$0xff]  }
 0x263   : > { %6742 = vmatprep.subr.bf16.mxu0 %v11843_v48 }
 0x265   : > { %10850 = vmatmul.mubr.msk.bf16.gmra.mrb[8].mxu0 %vm380_vm1, %v4792_v38  ;;  %v5189_v38 = vmul.u32 18, %v5188_v32 }
 0x266   : > { %10853 = vmatprep.mubr.msk.bf16.mxu0 %vm380_vm1, %v4794_v12  ;;  %6743 = vmatpush1.bf16.msra.mxu0 %v12399_v20  ;;  %v4799_v20 = vrot.slane %v11606_v10, 3  ;;  %v12604_v12 = vmul.u32.u64.low 3817748708, %v5130_v35  ;;  %v12605_v39 = vmul.u32.u64.high 3817748708, %v5130_v35, %v12604_v12 }
 0x267   : > { %6744 = vmatprep.subr.bf16.mxu0 %v11843_v48 }
 0x268   : > { %v4800_v45 = vsel %vm4779_vm7, %v4797_v17, %v4799_v20  ;;  %v4802_v46 = vsel %vm4779_vm7, %v4799_v20, %v4801_v44  ;;  %v5167_v17 = vmul.u32 18, %v5166_v49  ;;  %v12618_v20 = vadd.s32 80, %v12580_v22 }
 0x26a   : > { %6745 = vmatpush1.bf16.msra.mxu0 %v12408_v26  ;;  %v11608_v26 = vld [vmem:[%s11902_s30 + $0x70] sm:$0xff]   ;;  %v12627_v47 = vsub.s32 %v12580_v22, %v5167_v17 }
 0x26b   : > { %6746 = vmatprep.subr.bf16.mxu0 %v11843_v48 }
 0x26c   : > { %vm5556_vm13 = vcmp.ne.s32.totalorder %v12627_v47, 0  ;;  %vm5592_vm14 = vcmp.lt.s32.totalorder %v12627_v47, 0 }
 0x26d   : > { %10854 = vmatmul.mubr.msk.bf16.gmra.mrb[12].mxu0 %vm380_vm1, %v4796_v40  ;;  %v12610_v40 = vmul.u32.u64.low 3817748708, %v5128_v36  ;;  %v12611_v10 = vmul.u32.u64.high 3817748708, %v5128_v36, %v12610_v40  ;;  %vm12671_vm0 = vmand %vm5592_vm14, %vm5556_vm13 }
 0x26e   : > { %10857 = vmatprep.mubr.msk.bf16.mxu0 %vm380_vm1, %v4798_v42  ;;  %6747 = vmatpush1.bf16.msra.mxu0 %v12419_v34  ;;  %v4803_v34 = vrot.slane %v11608_v26, 3  ;;  %v12614_v42 = vadd.s32 40, %v12580_v22 }
 0x26f   : > { %6748 = vmatprep.subr.bf16.mxu0 %v11843_v48  ;;  %v5210_v59 = vshrl.u32 %v12611_v10, 4 }
 0x270   : > { %v4804_v53 = vsel %vm4779_vm7, %v4801_v44, %v4803_v34  ;;  %v4806_v54 = vsel %vm4779_vm7, %v4803_v34, %v4805_v50  ;;  %v12620_v44 = vsub.s32 %v5126_v23, %v5189_v38 }
 0x272   : > { %6749 = vmatpush1.bf16.msra.mxu0 %v12428_v41  ;;  %v11610_v41 = vld [vmem:[%s11902_s30 + $0x80] sm:$0xff]   ;;  %vm5558_vm11 = vcmp.ne.s32.totalorder %v12620_v44, 0  ;;  %vm5594_vm12 = vcmp.lt.s32.totalorder %v12620_v44, 0  ;;  %v12664_v1 = vadd.s32 18, %v12620_v44 }
 0x273   : > { %6750 = vmatprep.subr.bf16.mxu0 %v11843_v48  ;;  %vm12659_vm15 = vmand %vm5594_vm12, %vm5558_vm11 }
 0x275   : > { %10858 = vmatmul.mubr.msk.bf16.gmra.mrb[16].mxu0 %vm380_vm1, %v4800_v45  ;;  %v5200_v45 = vmul.u32 18, %v5199_v58  ;;  %v12741_v58 = vmul.u32.u64.low 3817748708, %v12706_v24  ;;  %v12742_v12 = vmul.u32.u64.high 3817748708, %v12706_v24, %v12741_v58 }
 0x276   : > { %10861 = vmatprep.mubr.msk.bf16.mxu0 %vm380_vm1, %v4802_v46  ;;  %6751 = vmatpush1.bf16.msra.mxu0 %v12439_v51  ;;  %v4807_v51 = vrot.slane %v11610_v41, 3  ;;  %v12623_v26 = vmul.u32.u64.low 3817748708, %v12608_v2  ;;  %v12624_v46 = vmul.u32.u64.high 3817748708, %v12608_v2, %v12623_v26  ;;  %v12637_v41 = vadd.s32 88, %v12580_v22 }
 0x277   : > { %6752 = vmatprep.subr.bf16.mxu0 %v11843_v48 }
 0x278   : > { %v4808_v57 = vsel %vm4779_vm7, %v4805_v50, %v4807_v51  ;;  %v4810_v60 = vsel %vm4779_vm7, %v4807_v51, %v4809_v56  ;;  %v12630_v34 = vmul.u32.u64.low 3817748708, %v12614_v42  ;;  %v12631_v50 = vmul.u32.u64.high 3817748708, %v12614_v42, %v12630_v34 }
 0x279   : > { %v12640_v55 = vmul.u32.u64.low 3817748708, %v12618_v20  ;;  %v12641_v51 = vmul.u32.u64.high 3817748708, %v12618_v20, %v12640_v55  ;;  %v12645_v56 = vsub.s32 %v5127_v25, %v5200_v45  ;;  %v12772_v34 = vadd.s32 144, %v12580_v22 }
 0x27a   : > { %6753 = vmatpush1.bf16.msra.mxu0 %v12448_v61  ;;  %v11613_v61 = vld [vmem:[%s11902_s30 + $0x98] sm:$0xff]   ;;  %v5221_v11 = vshrl.u32 %v12631_v50, 4  ;;  %v12778_v50 = vadd.s32 128, %v12580_v22 }
 0x27b   : > { %6754 = vmatprep.subr.bf16.mxu0 %v11843_v48  ;;  %v4813_v63 = vrot.slane %v11613_v61, 3  ;;  %vm5595_vm2 = vcmp.lt.s32.totalorder %v12645_v56, 0  ;;  %v12683_v14 = vadd.s32 18, %v12645_v56 }
 0x27c   : > { %v5222_v25 = vmul.u32 18, %v5221_v11 }
 0x27d   : > { %10862 = vmatmul.mubr.msk.bf16.gmra.mrb[20].mxu0 %vm380_vm1, %v4804_v53  ;;  %v4814_v3 = vsel %vm4779_vm7, %v4811_v62, %v4813_v63  ;;  %v12634_v53 = vadd.s32 64, %v12580_v22 }
 0x27e   : > { %10865 = vmatprep.mubr.msk.bf16.mxu0 %vm380_vm1, %v4806_v54  ;;  %6755 = vmatpush1.bf16.msra.mxu0 %v12458_v5  ;;  %v4816_v5 = vsel %vm4779_vm7, %v4813_v63, %v4815_v4  ;;  %v12656_v62 = vmul.u32.u64.low 3817748708, %v12637_v41  ;;  %v12657_v63 = vmul.u32.u64.high 3817748708, %v12637_v41, %v12656_v62  ;;  %v12750_v17 = vsub.s32 %v12614_v42, %v5222_v25 }
 0x27f   : > { %6756 = vmatprep.subr.bf16.mxu0 %v11843_v48  ;;  %v5298_v62 = vshrl.u32 %v12742_v12, 4  ;;  %v16103_v25 = vmov 0 }
 0x280   : > { %16092 = vst [vmem:[#allocation6_spill] sm:$0xff] %v12750_v17  ;;  %vm16105_vm10 = vcmp.lt.s32.totalorder %v12750_v17, 0 }
 0x281   : > { %v5299_v58 = vmul.u32 18, %v5298_v62  ;;  %v16119_v62 = vmov 0 }
 0x282   : > { %6757 = vmatpush1.bf16.msra.mxu0 %v11626_v6 }
 0x283   : > { %6758 = vmatprep.subr.bf16.mxu0 %v11843_v48 }
 0x285   : > { %10866 = vmatmul.mubr.msk.bf16.gmra.mrb[24].mxu0 %vm380_vm1, %v4808_v57  ;;  %v5232_v57 = vshrl.u32 %v12605_v39, 4 }
 0x286   : > { %10869 = vmatprep.mubr.msk.bf16.mxu0 %vm380_vm1, %v4810_v60  ;;  %6759 = vmatpush1.bf16.msra.mxu0 %v11627_v7  ;;  %v12652_v60 = vmul.u32.u64.low 3817748708, %v12634_v53  ;;  %v12653_v61 = vmul.u32.u64.high 3817748708, %v12634_v53, %v12652_v60  ;;  %v5243_v7 = vshrl.u32 %v12624_v46, 4 }
 0x287   : > { %6760 = vmatprep.subr.bf16.mxu0 %v11843_v48  ;;  %v5233_v6 = vmul.u32 18, %v5232_v57  ;;  %v12799_v60 = vadd.s32 18, %v12750_v17 }
 0x288   : > { %v5244_v23 = vmul.u32 18, %v5243_v7  ;;  %v5254_v32 = vshrl.u32 %v12653_v61, 4  ;;  %v16099_v61 = vmov 0  ;;  %v12820_v7 = vadd.s32 136, %v12580_v22 }
 0x289   : > { %16098 = vst [vmem:[#allocation10_spill] sm:$0xff] %v12799_v60 }
 0x28a   : > { %6761 = vmatpush1.bf16.msra.mxu0 %v11628_v8  ;;  %v5211_v8 = vmul.u32 18, %v5210_v59  ;;  %v12738_v38 = vsub.s32 %v12608_v2, %v5244_v23  ;;  %v5255_v40 = vmul.u32 18, %v5254_v32  ;;  %v12754_v2 = vadd.s32 104, %v12580_v22 }
 0x28b   : > { %6762 = vmatprep.subr.bf16.mxu0 %v11843_v48 }
 0x28c   : > { %v12708_v52 = vsub.s32 %v5128_v36, %v5211_v8  ;;  %v12733_v36 = vadd.s32 120, %v12580_v22  ;;  %vm5563_vm14 = vcmp.ne.s32.totalorder %v12738_v38, 0  ;;  %v12769_v42 = vadd.s32 18, %v12738_v38 }
 0x28d   : > { %10870 = vmatmul.mubr.msk.bf16.gmra.mrb[28].mxu0 %vm380_vm1, %v4812_v0  ;;  %v16101_v8 = vmov 0 }
 0x28e   : > { %10873 = vmatprep.mubr.msk.bf16.mxu0 %vm380_vm1, %v4814_v3  ;;  %6763 = vmatpush1.bf16.msra.mxu0 %v11629_v19  ;;  %v12667_v3 = vadd.s32 18, %v12627_v47  ;;  %v5276_v19 = vshrl.u32 %v12641_v51, 4  ;;  %vm5560_vm12 = vcmp.ne.s32.totalorder %v12708_v52, 0  ;;  %vm5596_vm13 = vcmp.lt.s32.totalorder %v12708_v52, 0 }
 0x28f   : > { %6764 = vmatprep.subr.bf16.mxu0 %v11843_v48  ;;  %v12763_v26 = vmul.u32.u64.low 3817748708, %v12733_v36  ;;  %v12764_v46 = vmul.u32.u64.high 3817748708, %v12733_v36, %v12763_v26  ;;  %v12787_v51 = vmul.u32.u64.low 3817748708, %v12754_v2  ;;  %v12788_v57 = vmul.u32.u64.high 3817748708, %v12754_v2, %v12787_v51 }
 0x290   : > { %v16113_v26 = vmov 0 }
 0x291   : > { %v5331_v32 = vshrl.u32 %v12764_v46, 4 }
 0x292   : > { %6765 = vmatpush1.bf16.msra.mxu0 %v11630_v37  ;;  %v12703_v37 = vsub.s32 %v5130_v35, %v5233_v6  ;;  %v12729_v35 = vmul.u32.u64.low 3817748708, %v12699_v21  ;;  %v12730_v49 = vmul.u32.u64.high 3817748708, %v12699_v21, %v12729_v35 }
 0x293   : > { %v16109_v35 = vmov 0 }
 0x294   : > { %vm5562_vm8 = vcmp.ne.s32.totalorder %v12703_v37, 0  ;;  %vm5598_vm11 = vcmp.lt.s32.totalorder %v12703_v37, 0  ;;  %v12746_v39 = vadd.s32 18, %v12703_v37 }
 0x295   : > { %10874 = vmatmul.mubr.msk.bf16.gmra.mrb[32].mxu0 %vm380_vm1, %v4816_v5  ;;  %v16087_v5 = vmov 0  ;;  %vm5559_vm1 = vcmp.ne.s32.totalorder %v12645_v56, 0  ;;  %vm12810_vm5 = vmand %vm5598_vm11, %vm5562_vm8 }
 0x296   : > { %6766 = vmatprep.mubr.bf16.mxu0 %v11843_v48  ;;  %v16088_v5 = vsel %vm12671_vm0, 4294967295, %v16087_v5  ;;  %vm12693_vm4 = vmand %vm5595_vm2, %vm5559_vm1  ;;  %vm5599_vm1 = vcmp.lt.s32.totalorder %v12738_v38, 0  ;;  %vm5561_vm2 = vcmp.ne.s32.totalorder %v12750_v17, 0  ;;  %v16100_v61 = vsel %vm12810_vm5, 4294967295, %v16099_v61 }
 0x297   : > { %vm12839_vm8 = vmand %vm5599_vm1, %vm5563_vm14 }
 0x298   : > { %v16104_v25 = vsel %vm12839_vm8, 4294967295, %v16103_v25  ;;  %vm12851_vm0 = vmand %vm16105_vm10, %vm5561_vm2  ;;  %vm6071_vm2 = vcmask 1047552  }
 0x299   : > { %v16107_v27 = vsel %vm12851_vm0, 4294967295, %v16106_v27 }
 0x29d   : > { %6767 = vmatmul.mubr.bf16.vlgmr.msra.gmra.mrb[36].mxu0 %v11843_v48  ;;  %v12597_v33 = vmul.u32.u64.low 3817748708, %v5125_v29  ;;  %v12598_v48 = vmul.u32.u64.high 3817748708, %v5125_v29, %v12597_v33 }
 0x29e   : > { %v5287_v33 = vshrl.u32 %v12657_v63, 4  ;;  %v12816_v63 = vmul.u32.u64.low 3817748708, %v12772_v34  ;;  %v12817_v6 = vmul.u32.u64.high 3817748708, %v12772_v34, %v12816_v63 }
 0x29f   : > { %v5177_v43 = vshrl.u32 %v12598_v48, 4  ;;  %v5277_v48 = vmul.u32 18, %v5276_v19  ;;  %v12832_v19 = vmul.u32.u64.low 3817748708, %v12778_v50  ;;  %v12833_v23 = vmul.u32.u64.high 3817748708, %v12778_v50, %v12832_v19 }
 0x2a0   : > { %v5288_v10 = vmul.u32 18, %v5287_v33  ;;  %v5309_v63 = vshrl.u32 %v12788_v57, 4 }
 0x2a1   : > { %v5178_v54 = vmul.u32 18, %v5177_v43  ;;  %v12757_v43 = vadd.s32 18, %v12708_v52  ;;  %v12760_v45 = vsub.s32 %v12618_v20, %v5277_v48  ;;  %v5265_v20 = vshrl.u32 %v12712_v28, 4 }
 0x2a2   : > { %v12784_v55 = vsub.s32 %v12637_v41, %v5288_v10  ;;  %v12804_v41 = vadd.s32 152, %v12580_v22  ;;  %v12961_v10 = vadd.s32 160, %v12580_v22 }
 0x2a3   : > { %v12669_v4 = vsub.s32 %v5125_v29, %v5178_v54  ;;  %v12717_v29 = vld [vmem:[%s15955_s4 + $0x80] sm:$0xff]   ;;  %16093 = vst [vmem:[#allocation7_spill] sm:$0xff] %v12760_v45  ;;  %v12781_v54 = vsub.s32 %v12634_v53, %v5255_v40  ;;  %v5320_v53 = vshrl.u32 %v12730_v49, 4  ;;  %v5266_v11 = vmul.u32 18, %v5265_v20 }
 0x2a4   : > { %16091 = vst [vmem:[#allocation5_spill] sm:$0xff] %v12717_v29  ;;  %10877 = vmatprep.subr.bf16.mxu1 %v12717_v29  ;;  %16095 = vst [vmem:[#allocation9_spill] sm:$0xff] %v12784_v55  ;;  %vm5603_vm9 = vcmp.lt.s32.totalorder %v12784_v55, 0  ;;  %v12857_v33 = vmul.u32.u64.low 3817748708, %v12804_v41  ;;  %v12858_v48 = vmul.u32.u64.high 3817748708, %v12804_v41, %v12857_v33  ;;  %vm16108_vm14 = vcmp.ne.s32.totalorder %v12760_v45, 0 }
 0x2a5   : > { %vm5557_vm6 = vcmp.ne.s32.totalorder %v12669_v4, 0  ;;  %vm5593_vm7 = vcmp.lt.s32.totalorder %v12669_v4, 0  ;;  %v12724_v31 = vadd.s32 18, %v12669_v4  ;;  %16094 = vst [vmem:[#allocation8_spill] sm:$0xff] %v12781_v54  ;;  %vm5564_vm11 = vcmp.ne.s32.totalorder %v12781_v54, 0 }
 0x2a6   : > { %vm12794_vm3 = vmand %vm5593_vm7, %vm5557_vm6  ;;  %vm5602_vm7 = vcmp.lt.s32.totalorder %v12760_v45, 0  ;;  %v5321_v28 = vmul.u32 18, %v5320_v53  ;;  %v12867_v49 = vadd.s32 18, %v12760_v45  ;;  %v12884_v46 = vadd.s32 18, %v12781_v54 }
 0x2a7   : > { %vm12826_vm6 = vmand %vm5596_vm13, %vm5560_vm12  ;;  %vm5600_vm12 = vcmp.lt.s32.totalorder %v12781_v54, 0  ;;  %vm5567_vm13 = vcmp.ne.s32.totalorder %v12784_v55, 0  ;;  %v12870_v12 = vmul.u32.u64.low 3817748708, %v12820_v7  ;;  %v12871_v40 = vmul.u32.u64.high 3817748708, %v12820_v7, %v12870_v12 }
 0x2a8   : > { %v16102_v8 = vsel %vm12826_vm6, 4294967295, %v16101_v8  ;;  %vm12862_vm1 = vmand %vm5602_vm7, %vm16108_vm14  ;;  %16112 = vst [vmem:[#allocation12_spill] sm:$0xff] %v12867_v49  ;;  %v12887_v20 = vadd.s32 18, %v12784_v55  ;;  %v12890_v51 = vsub.s32 %v12680_v13, %v5266_v11  ;;  %vm6072_vm7 = vsmask.f32 7938 }
 0x2a9   : > { %v16110_v35 = vsel %vm12862_vm1, 4294967295, %v16109_v35  ;;  %vm12879_vm10 = vmand %vm5600_vm12, %vm5564_vm11  ;;  %16116 = vst [vmem:[#allocation14_spill] sm:$0xff] %v12884_v46  ;;  %v12914_v19 = vsub.s32 %v12699_v21, %v5321_v28  ;;  %v5332_v33 = vmul.u32 18, %v5331_v32  ;;  %v12925_v13 = vsub.s32 %v12706_v24, %v5299_v58 }
 0x2aa   : > { %16111 = vst [vmem:[#allocation11_spill] sm:$0xff] %v16110_v35  ;;  %v16114_v26 = vsel %vm12879_vm10, 4294967295, %v16113_v26  ;;  %16117 = vst [vmem:[#allocation15_spill] sm:$0xff] %v12887_v20  ;;  %v5364_v53 = vshrl.u32 %v12817_v6, 4  ;;  %v5342_v32 = vshrl.u32 %v12833_v23, 4  ;;  %v12940_v24 = vadd.s32 18, %v12890_v51 }
 0x2ab   : > { %16115 = vst [vmem:[#allocation13_spill] sm:$0xff] %v16114_v26  ;;  %16118 = vst [vmem:[#allocation16_spill] sm:$0xff] %v12890_v51  ;;  %v5310_v6 = vmul.u32 18, %v5309_v63  ;;  %v12943_v58 = vadd.s32 176, %v12580_v22  ;;  %v12948_v21 = vsub.s32 %v12733_v36, %v5332_v33  ;;  %v5375_v28 = vshrl.u32 %v12858_v48, 4  ;;  %v6080_v36 = vld [vmem:[#allocation2 + $0x1d8] sm:$0xff] }
 0x2ac   : > { %vm12900_vm11 = vmand %vm5603_vm9, %vm5567_vm13  ;;  %16122 = vst [vmem:[#allocation18_spill] sm:$0xff] %v12914_v19  ;;  %v12952_v23 = vadd.s32 18, %v12914_v19  ;;  %v5365_v57 = vmul.u32 18, %v5364_v53  ;;  %v5353_v63 = vshrl.u32 %v12871_v40, 4  ;;  %v12958_v12 = vadd.s32 18, %v12925_v13 }
 0x2ad   : > { %v16120_v62 = vsel %vm12900_vm11, 4294967295, %v16119_v62  ;;  %16123 = vst [vmem:[#allocation19_spill] sm:$0xff] %v12925_v13  ;;  %16124 = vst [vmem:[#allocation20_spill] sm:$0xff] %v12940_v24  ;;  %v5343_v11 = vmul.u32 18, %v5342_v32  ;;  %v16128_v48 = vmov 0  ;;  %v12970_v53 = vsub.s32 %v12754_v2, %v5310_v6 }
 0x2ae   : > { %16121 = vst [vmem:[#allocation17_spill] sm:$0xff] %v16120_v62  ;;  %16125 = vst [vmem:[#allocation21_spill] sm:$0xff] %v12948_v21  ;;  %v12973_v40 = vmul.u32.u64.low 3817748708, %v12943_v58  ;;  %v12974_v33 = vmul.u32.u64.high 3817748708, %v12943_v58, %v12973_v40  ;;  %v5376_v32 = vmul.u32 18, %v5375_v28  ;;  %v12984_v9 = vadd.s32 18, %v12948_v21 }
 0x2af   : > { %16126 = vst [vmem:[#allocation22_spill] sm:$0xff] %v12952_v23  ;;  %16127 = vst [vmem:[#allocation23_spill] sm:$0xff] %v12958_v12  ;;  %v12987_v2 = vsub.s32 %v12772_v34, %v5365_v57  ;;  %v5354_v6 = vmul.u32 18, %v5353_v63  ;;  %v12992_v29 = vsub.s32 %v12778_v50, %v5343_v11  ;;  %v13004_v34 = vadd.s32 18, %v12970_v53 }
 0x2b0   : > { %vm12965_vm14 = vmand %vm6071_vm2, %vm6072_vm7  ;;  %16131 = vst [vmem:[#allocation25_spill] sm:$0xff] %v12970_v53  ;;  %v12995_v28 = vmul.u32.u64.low 3817748708, %v12961_v10  ;;  %v12996_v55 = vmul.u32.u64.high 3817748708, %v12961_v10, %v12995_v28  ;;  %vm16136_vm12 = vcmp.ne.s32.totalorder %v12890_v51, 0  ;;  %vm16137_vm9 = vcmp.lt.s32.totalorder %v12890_v51, 0 }
 0x2b1   : > { %v16129_v48 = vsel %vm12965_vm14, 4294967295, %v16128_v48  ;;  %v6081_v15 = vsel %vm12965_vm14, 0, %v6080_v36  ;;  %16132 = vst [vmem:[#allocation26_spill] sm:$0xff] %v12984_v9  ;;  %16133 = vst [vmem:[#allocation27_spill] sm:$0xff] %v12987_v2  ;;  %v6075_v40 = vsel %vm12965_vm14, 0, %v6074_v30  ;;  %v12999_v36 = vadd.s32 168, %v12580_v22 }
 0x2b2   : > { %16130 = vst [vmem:[#allocation24_spill] sm:$0xff] %v16129_v48  ;;  %6082 = vst [vmem:[#allocation2 + $0x1d8] sm:$0xff] %v6081_v15  ;;  %v13007_v15 = vadd.s32 208, %v12580_v22  ;;  %v6077_v30 = vld [vmem:[#allocation2 + $0x1d0] sm:$0xff]  ;;  %v16138_v50 = vmov 0  ;;  %v13018_v11 = vsub.s32 %v12804_v41, %v5376_v32  ;;  %vm16142_vm7 = vcmp.ne.s32.totalorder %v12914_v19, 0 }
 0x2b3   : > { %16134 = vst [vmem:[#allocation28_spill] sm:$0xff] %v12992_v29  ;;  %6076 = vst [vmem:[#allocation2 + $0x1c8] sm:$0xff] %v6075_v40  ;;  %v13021_v57 = vmul.u32.u64.low 3817748708, %v12977_v16  ;;  %v13022_v63 = vmul.u32.u64.high 3817748708, %v12977_v16, %v13021_v57  ;;  %v6078_v40 = vsel %vm12965_vm14, 0, %v6077_v30  ;;  %vm16143_vm2 = vcmp.lt.s32.totalorder %v12914_v19, 0 }
 0x2b4   : > { %16135 = vst [vmem:[#allocation29_spill] sm:$0xff] %v13004_v34  ;;  %vm13013_vm13 = vmand %vm16137_vm9, %vm16136_vm12  ;;  %v16144_v28 = vmov 0  ;;  %v13037_v41 = vsub.s32 %v12820_v7, %v5354_v6  ;;  %v13040_v32 = vadd.s32 192, %v12580_v22  ;;  %vm16148_vm14 = vcmp.ne.s32.totalorder %v12925_v13, 0 }
 0x2b5   : > { %v16139_v50 = vsel %vm13013_vm13, 4294967295, %v16138_v50  ;;  %16141 = vst [vmem:[#allocation31_spill] sm:$0xff] %v13018_v11  ;;  %vm13030_vm11 = vmand %vm16143_vm2, %vm16142_vm7  ;;  %vm16149_vm10 = vcmp.lt.s32.totalorder %v12925_v13, 0  ;;  %v16150_v30 = vmov 0  ;;  %vm16153_vm12 = vcmp.ne.s32.totalorder %v12948_v21, 0 }
 0x2b6   : > { %16140 = vst [vmem:[#allocation30_spill] sm:$0xff] %v16139_v50  ;;  %v16145_v28 = vsel %vm13030_vm11, 4294967295, %v16144_v28  ;;  %16147 = vst [vmem:[#allocation33_spill] sm:$0xff] %v13037_v41  ;;  %v13053_v57 = vmul.u32.u64.low 3817748708, %v12999_v36  ;;  %v13054_v7 = vmul.u32.u64.high 3817748708, %v12999_v36, %v13053_v57  ;;  %vm16154_vm9 = vcmp.lt.s32.totalorder %v12948_v21, 0 }
 0x2b7   : > { %16146 = vst [vmem:[#allocation32_spill] sm:$0xff] %v16145_v28  ;;  %6079 = vst [vmem:[#allocation2 + $0x1d0] sm:$0xff] %v6078_v40  ;;  %v16155_v6 = vmov 0  ;;  %v5408_v40 = vshrl.u32 %v12974_v33, 4  ;;  %v13066_v48 = vmul.u32.u64.low 3817748708, %v13007_v15  ;;  %v13067_v20 = vmul.u32.u64.high 3817748708, %v13007_v15, %v13066_v48 }
 0x2b8   : > { %vm13046_vm1 = vmand %vm16149_vm10, %vm16148_vm14  ;;  %v13070_v62 = vadd.s32 216, %v12580_v22  ;;  %vm16158_vm10 = vcmp.ne.s32.totalorder %v12970_v53, 0  ;;  %vm16159_vm14 = vcmp.lt.s32.totalorder %v12970_v53, 0  ;;  %v16160_v57 = vmov 0 }
 0x2b9   : > { %v16151_v30 = vsel %vm13046_vm1, 4294967295, %v16150_v30  ;;  %vm13060_vm0 = vmand %vm16154_vm9, %vm16153_vm12  ;;  %v13081_v54 = vadd.s32 18, %v12987_v2  ;;  %v13084_v33 = vadd.s32 18, %v12992_v29  ;;  %vm5575_vm9 = vcmp.ne.s32.totalorder %v13018_v11, 0 }
 0x2ba   : > { %16152 = vst [vmem:[#allocation34_spill] sm:$0xff] %v16151_v30  ;;  %v16156_v6 = vsel %vm13060_vm0, 4294967295, %v16155_v6  ;;  %vm13076_vm7 = vmand %vm16159_vm14, %vm16158_vm10  ;;  %vm5611_vm12 = vcmp.lt.s32.totalorder %v13018_v11, 0  ;;  %vm16165_vm2 = vcmp.ne.s32.totalorder %v12987_v2, 0  ;;  %vm16166_vm6 = vcmp.lt.s32.totalorder %v12987_v2, 0 }
 0x2bb   : > { %16157 = vst [vmem:[#allocation35_spill] sm:$0xff] %v16156_v6  ;;  %v16161_v57 = vsel %vm13076_vm7, 4294967295, %v16160_v57  ;;  %16163 = vst [vmem:[#allocation37_spill] sm:$0xff] %v13081_v54  ;;  %v16167_v48 = vmov 0  ;;  %v13099_v46 = vmul.u32.u64.low 3817748708, %v13040_v32  ;;  %v13100_v26 = vmul.u32.u64.high 3817748708, %v13040_v32, %v13099_v46 }
 0x2bc   : > { %16162 = vst [vmem:[#allocation36_spill] sm:$0xff] %v16161_v57  ;;  %16164 = vst [vmem:[#allocation38_spill] sm:$0xff] %v13084_v33  ;;  %v16172_v35 = vmov 0  ;;  %v13119_v46 = vadd.s32 18, %v13018_v11  ;;  %v5386_v17 = vshrl.u32 %v12996_v55, 4  ;;  %v16176_v45 = vmov 0 }
 0x2bd   : > { %vm13092_vm8 = vmand %vm16166_vm6, %vm16165_vm2  ;;  %vm16170_vm6 = vcmp.ne.s32.totalorder %v12992_v29, 0  ;;  %vm16171_vm2 = vcmp.lt.s32.totalorder %v12992_v29, 0  ;;  %v13127_v28 = vadd.s32 18, %v13037_v41  ;;  %v5409_v49 = vmul.u32 18, %v5408_v40 }
 0x2be   : > { %v16168_v48 = vsel %vm13092_vm8, 4294967295, %v16167_v48  ;;  %vm13114_vm10 = vmand %vm16171_vm2, %vm16170_vm6  ;;  %16175 = vst [vmem:[#allocation41_spill] sm:$0xff] %v13119_v46  ;;  %v13130_v19 = vmul.u32.u64.low 3817748708, %v13070_v62  ;;  %v13131_v23 = vmul.u32.u64.high 3817748708, %v13070_v62, %v13130_v19  ;;  %v16182_v40 = vmov 0 }
 0x2bf   : > { %16169 = vst [vmem:[#allocation39_spill] sm:$0xff] %v16168_v48  ;;  %v16173_v35 = vsel %vm13114_vm10, 4294967295, %v16172_v35  ;;  %vm13122_vm14 = vmand %vm5611_vm12, %vm5575_vm9  ;;  %vm16180_vm9 = vcmp.ne.s32.totalorder %v13037_v41, 0  ;;  %vm16181_vm12 = vcmp.lt.s32.totalorder %v13037_v41, 0  ;;  %v5419_v19 = vshrl.u32 %v13022_v63, 4 }
 0x2c0   : > { %16174 = vst [vmem:[#allocation40_spill] sm:$0xff] %v16173_v35  ;;  %v16177_v45 = vsel %vm13122_vm14, 4294967295, %v16176_v45  ;;  %16179 = vst [vmem:[#allocation43_spill] sm:$0xff] %v13127_v28  ;;  %v13151_v24 = vadd.s32 200, %v12580_v22  ;;  %v13166_v63 = vadd.s32 240, %v12580_v22  ;;  %v5387_v57 = vmul.u32 18, %v5386_v17 }
 0x2c1   : > { %16178 = vst [vmem:[#allocation42_spill] sm:$0xff] %v16177_v45  ;;  %vm13145_vm6 = vmand %vm16181_vm12, %vm16180_vm9  ;;  %v5397_v51 = vshrl.u32 %v13054_v7, 4  ;;  %v13174_v53 = vadd.s32 224, %v12580_v22  ;;  %v13181_v21 = vsub.s32 %v12943_v58, %v5409_v49  ;;  %v5452_v29 = vshrl.u32 %v13067_v20, 4 }
 0x2c2   : > { %v16183_v40 = vsel %vm13145_vm6, 4294967295, %v16182_v40  ;;  %v13185_v33 = vadd.s32 248, %v12580_v22  ;;  %v5420_v9 = vmul.u32 18, %v5419_v19  ;;  %v13192_v11 = vadd.s32 232, %v12580_v22 }
 0x2c3   : > { %16184 = vst [vmem:[#allocation44_spill] sm:$0xff] %v16183_v40  ;;  %16185 = vst [vmem:[#allocation45_spill] sm:$0xff] %v13181_v21  ;;  %v13188_v17 = vmul.u32.u64.low 3817748708, %v13151_v24  ;;  %v13189_v7 = vmul.u32.u64.high 3817748708, %v13151_v24, %v13188_v17  ;;  %v5430_v46 = vshrl.u32 %v13100_v26, 4  ;;  %v13200_v49 = vadd.s32 272, %v12580_v22 }
 0x2c4   : > { %v13196_v55 = vmul.u32.u64.low 3817748708, %v13166_v63  ;;  %v13197_v41 = vmul.u32.u64.high 3817748708, %v13166_v63, %v13196_v55  ;;  %v13203_v20 = vsub.s32 %v12961_v10, %v5387_v57  ;;  %v5398_v58 = vmul.u32 18, %v5397_v51 }
 0x2c5   : > { %v13206_v19 = vmul.u32.u64.low 3817748708, %v13174_v53  ;;  %v13207_v28 = vmul.u32.u64.high 3817748708, %v13174_v53, %v13206_v19  ;;  %v5453_v17 = vmul.u32 18, %v5452_v29  ;;  %v5463_v40 = vshrl.u32 %v13131_v23, 4 }
 0x2c6   : > { %v13211_v26 = vmul.u32.u64.low 3817748708, %v13185_v33  ;;  %v13212_v45 = vmul.u32.u64.high 3817748708, %v13185_v33, %v13211_v26  ;;  %v13215_v55 = vsub.s32 %v12977_v16, %v5420_v9  ;;  %v13222_v10 = vadd.s32 256, %v12580_v22 }
 0x2c7   : > { %v13218_v35 = vmul.u32.u64.low 3817748708, %v13192_v11  ;;  %v13219_v2 = vmul.u32.u64.high 3817748708, %v13192_v11, %v13218_v35  ;;  %v5431_v51 = vmul.u32 18, %v5430_v46  ;;  %v13231_v57 = vadd.s32 18, %v13181_v21 }
 0x2c8   : > { %v13226_v29 = vmul.u32.u64.low 3817748708, %v13200_v49  ;;  %v13227_v23 = vmul.u32.u64.high 3817748708, %v13200_v49, %v13226_v29  ;;  %v13235_v9 = vsub.s32 %v12999_v36, %v5398_v58  ;;  %v13239_v16 = vadd.s32 18, %v13203_v20 }
 0x2c9   : > { %v13242_v35 = vsub.s32 %v13007_v15, %v5453_v17  ;;  %v5464_v46 = vmul.u32 18, %v5463_v40  ;;  %v5441_v19 = vshrl.u32 %v13189_v7, 4  ;;  %v13252_v36 = vadd.s32 18, %v13215_v55 }
 0x2ca   : > { %v13247_v26 = vmul.u32.u64.low 3817748708, %v13222_v10  ;;  %v13248_v29 = vmul.u32.u64.high 3817748708, %v13222_v10, %v13247_v26  ;;  %v13255_v58 = vsub.s32 %v13040_v32, %v5431_v51  ;;  %v5496_v15 = vshrl.u32 %v13197_v41, 4 }
 0x2cb   : > { %v5474_v40 = vshrl.u32 %v13207_v28, 4  ;;  %v13262_v7 = vadd.s32 280, %v12580_v22  ;;  %vm16187_vm9 = vcmp.ne.s32.totalorder %v13181_v21, 0  ;;  %vm16188_vm12 = vcmp.lt.s32.totalorder %v13181_v21, 0 }
 0x2cc   : > { %16186 = vst [vmem:[#allocation46_spill] sm:$0xff] %v13255_v58  ;;  %vm13268_vm14 = vmand %vm16188_vm12, %vm16187_vm9  ;;  %v16189_v17 = vmov 0  ;;  %v13273_v32 = vadd.s32 18, %v13235_v9  ;;  %v13277_v41 = vsub.s32 %v13070_v62, %v5464_v46  ;;  %v5507_v28 = vshrl.u32 %v13212_v45, 4 }
 0x2cd   : > { %v16190_v17 = vsel %vm13268_vm14, 4294967295, %v16189_v17  ;;  %vm16192_vm2 = vcmp.ne.s32.totalorder %v13203_v20, 0  ;;  %vm16193_vm10 = vcmp.lt.s32.totalorder %v13203_v20, 0  ;;  %v16194_v51 = vmov 0 }
 0x2ce   : > { %16191 = vst [vmem:[#allocation47_spill] sm:$0xff] %v13277_v41  ;;  %vm13284_vm8 = vmand %vm16193_vm10, %vm16192_vm2  ;;  %vm5618_vm9 = vcmp.lt.s32.totalorder %v13242_v35, 0  ;;  %v13290_v26 = vadd.s32 18, %v13242_v35  ;;  %v5442_v54 = vmul.u32 18, %v5441_v19  ;;  %v5485_v48 = vshrl.u32 %v13219_v2, 4 }
 0x2cf   : > { %v16195_v51 = vsel %vm13284_vm8, 4294967295, %v16194_v51  ;;  %vm16196_vm12 = vcmp.ne.s32.totalorder %v13215_v55, 0  ;;  %vm16197_vm6 = vcmp.lt.s32.totalorder %v13215_v55, 0  ;;  %v16198_v45 = vmov 0 }
 0x2d0   : > { %vm13297_vm7 = vmand %vm16197_vm6, %vm16196_vm12  ;;  %vm5580_vm10 = vcmp.ne.s32.totalorder %v13255_v58, 0  ;;  %vm5616_vm2 = vcmp.lt.s32.totalorder %v13255_v58, 0  ;;  %v5497_v62 = vmul.u32 18, %v5496_v15  ;;  %v5540_v46 = vshrl.u32 %v13227_v23, 4 }
 0x2d1   : > { %v16199_v45 = vsel %vm13297_vm7, 4294967295, %v16198_v45  ;;  %vm16200_vm0 = vcmp.ne.s32.totalorder %v13235_v9, 0  ;;  %vm16201_vm1 = vcmp.lt.s32.totalorder %v13235_v9, 0  ;;  %v16202_v2 = vmov 0  ;;  %vm13334_vm13 = vmand %vm5616_vm2, %vm5580_vm10 }
 0x2d2   : > { %vm13308_vm11 = vmand %vm16201_vm1, %vm16200_vm0  ;;  %v5475_v19 = vmul.u32 18, %v5474_v40  ;;  %v13313_v34 = vmul.u32.u64.low 3817748708, %v13262_v7  ;;  %v13314_v6 = vmul.u32.u64.high 3817748708, %v13262_v7, %v13313_v34  ;;  %v13317_v13 = vadd.s32 264, %v12580_v22 }
 0x2d3   : > { %v16203_v2 = vsel %vm13308_vm11, 4294967295, %v16202_v2  ;;  %vm16204_vm6 = vcmp.ne.s32.totalorder %v13242_v35, 0  ;;  %v16205_v23 = vmov 0  ;;  %v13326_v15 = vadd.s32 18, %v13255_v58 }
 0x2d4   : > { %vm13321_vm12 = vmand %vm5618_vm9, %vm16204_vm6  ;;  %vm5583_vm0 = vcmp.ne.s32.totalorder %v13277_v41, 0  ;;  %vm5619_vm1 = vcmp.lt.s32.totalorder %v13277_v41, 0  ;;  %v5508_v40 = vmul.u32 18, %v5507_v28  ;;  %v16208_v34 = vmov 0 }
 0x2d5   : > { %v16206_v23 = vsel %vm13321_vm12, 4294967295, %v16205_v23  ;;  %16207 = vst [vmem:[#allocation48_spill] sm:$0xff] %v13326_v15  ;;  %v16209_v34 = vsel %vm13334_vm13, 4294967295, %v16208_v34  ;;  %v13339_v12 = vsub.s32 %v13151_v24, %v5442_v54  ;;  %v5486_v30 = vmul.u32 18, %v5485_v48  ;;  %vm13366_vm9 = vmand %vm5619_vm1, %vm5583_vm0 }
 0x2d6   : > { %v5518_v50 = vshrl.u32 %v13248_v29, 4  ;;  %v13347_v60 = vadd.s32 18, %v13277_v41  ;;  %v13350_v22 = vsub.s32 %v13166_v63, %v5497_v62  ;;  %v5541_v21 = vmul.u32 18, %v5540_v46 }
 0x2d7   : > { %v16211_v63 = vmov 0  ;;  %v13371_v29 = vsub.s32 %v13174_v53, %v5475_v19  ;;  %v13378_v46 = vsub.s32 %v13185_v33, %v5508_v40  ;;  %vm5581_vm10 = vcmp.ne.s32.totalorder %v13339_v12, 0  ;;  %v13392_v19 = vld [vmem:[%s15953_s2] ss:$0 sm:$0xff] }
 0x2d8   : > { %16210 = vst [vmem:[#allocation49_spill] sm:$0xff] %v13347_v60  ;;  %v16212_v63 = vsel %vm13366_vm9, 4294967295, %v16211_v63  ;;  %v13381_v24 = vmul.u32.u64.low 3817748708, %v13317_v13  ;;  %v13382_v48 = vmul.u32.u64.high 3817748708, %v13317_v13, %v13381_v24  ;;  %v13387_v54 = vsub.s32 %v13192_v11, %v5486_v30 }
 0x2d9   : > { %16213 = vst [vmem:[#allocation50_spill] sm:$0xff] %v16212_v63  ;;  %16214 = vst [vmem:[#allocation51_spill] sm:$0xff] %v13371_v29  ;;  %v5519_v53 = vmul.u32 18, %v5518_v50  ;;  %v16217_v33 = vsel %vm12659_vm15, %v12664_v1, %v12620_v44  ;;  %v16220_v11 = vsel %vm12693_vm4, %v12683_v14, %v12645_v56  ;;  %v13419_v44 = vsub.s32 %v13200_v49, %v5541_v21  ;;  %v13424_v56 = vld [vmem:[%s15954_s3] ss:$0 sm:$0xff] }
 0x2da   : > { %16215 = vst [vmem:[#allocation52_spill] sm:$0xff] %v13378_v46  ;;  %16216 = vst [vmem:[#allocation53_spill] sm:$0xff] %v13387_v54  ;;  %vm13399_vm6 = vcmp.lt.s32.totalorder %v16217_v33, 16  ;;  %vm13408_vm0 = vcmp.lt.s32.totalorder %v16220_v11, 16  ;;  %vm16224_vm4 = vnez %v16088_v5  ;;  %v16228_v18 = vsel %vm12794_vm3, %v12724_v31, %v12669_v4 }
 0x2db   : > { %16223 = vst [vmem:[#allocation54_spill] sm:$0xff] %v13419_v44  ;;  %v16225_v1 = vsel %vm16224_vm4, %v12667_v3, %v12627_v47  ;;  %vm13440_vm1 = vcmp.lt.s32.totalorder %v16228_v18, 16  ;;  %v13445_v30 = vadd.s32 18, %v13339_v12  ;;  %v5551_v47 = vshrl.u32 %v13314_v6, 4 }
 0x2dc   : > { %vm13431_vm2 = vcmp.lt.s32.totalorder %v16225_v1, 16  ;;  %vm16231_vm9 = vcmp.lt.s32.totalorder %v13339_v12, 0  ;;  %v16232_v4 = vmov 0  ;;  %v13459_v5 = vadd.s32 18, %v13350_v22 }
 0x2dd   : > { %vm13454_vm13 = vmand %vm16231_vm9, %vm5581_vm10  ;;  %v13462_v31 = vadd.s32 18, %v13371_v29  ;;  %vm16235_vm15 = vcmp.ne.s32.totalorder %v13350_v22, 0  ;;  %vm16236_vm9 = vcmp.lt.s32.totalorder %v13350_v22, 0  ;;  %v13478_v24 = vsub.s32 %v13222_v10, %v5519_v53 }
 0x2de   : > { %v16233_v4 = vsel %vm13454_vm13, 4294967295, %v16232_v4  ;;  %vm13471_vm10 = vmand %vm16236_vm9, %vm16235_vm15  ;;  %vm16240_vm4 = vcmp.ne.s32.totalorder %v13371_v29, 0  ;;  %vm16241_vm3 = vcmp.lt.s32.totalorder %v13371_v29, 0  ;;  %v13490_v18 = vadd.s32 18, %v13378_v46 }
 0x2df   : > { %16234 = vst [vmem:[#allocation55_spill] sm:$0xff] %v16233_v4  ;;  %16239 = vst [vmem:[#allocation56_spill] sm:$0xff] %v13478_v24  ;;  %vm16245_vm11 = vcmp.ne.s32.totalorder %v13378_v46, 0  ;;  %vm16246_vm12 = vcmp.lt.s32.totalorder %v13378_v46, 0  ;;  %v13505_v0 = vadd.s32 18, %v13387_v54  ;;  %v5552_v62 = vmul.u32 18, %v5551_v47 }
 0x2e0   : > { %vm13485_vm7 = vmand %vm16241_vm3, %vm16240_vm4  ;;  %16244 = vst [vmem:[#allocation57_spill] sm:$0xff] %v13490_v18  ;;  %vm16251_vm9 = vcmp.ne.s32.totalorder %v13387_v54, 0  ;;  %vm16252_vm15 = vcmp.lt.s32.totalorder %v13387_v54, 0  ;;  %v5529_v60 = vshrl.u32 %v13382_v48, 4  ;;  %vm16257_vm3 = vcmp.ne.s32.totalorder %v13419_v44, 0  ;;  %v16313_v18 = vld [vmem:[#allocation30_spill] sm:$0xff] }
 0x2e1   : > { %vm13500_vm4 = vmand %vm16246_vm12, %vm16245_vm11  ;;  %16250 = vst [vmem:[#allocation59_spill] sm:$0xff] %v13505_v0  ;;  %vm16258_vm14 = vcmp.lt.s32.totalorder %v13419_v44, 0  ;;  %vm16300_vm12 = vcmask 1040384  }
 0x2e2   : > { %vm13513_vm8 = vmand %vm16252_vm15, %vm16251_vm9  ;;  %vm5588_vm15 = vcmp.ne.s32.totalorder %v13478_v24, 0  ;;  %vm5624_vm9 = vcmp.lt.s32.totalorder %v13478_v24, 0  ;;  %v13576_v54 = vmul.u32 18, %v5529_v60 }
 0x2e3   : > { %vm13526_vm5 = vmand %vm16258_vm14, %vm16257_vm3 }
 0x2e4   : > { %vm13567_vm3 = vmand %vm5624_vm9, %vm5588_vm15  ;;  %vm16267_vm15 = vnez %v16100_v61  ;;  %vm16279_vm9 = vnez %v16107_v27 }
 0x328   : > { %v10843_v3 = vpop.f32.mrb[0].mxu0 }
 0x329   : > { %v5781_v59 = vmul.f32 %v10843_v3, %v13392_v19  ;;  %v4908_v6 = vpop.f32.mrb[1].mxu0 }
 0x32a   : > { %v5779_v33 = vmul.f32 %v13392_v19, %v4908_v6  ;;  %v10844_v11 = vpop.f32.mrb[2].mxu0  ;;  %v16247_v6 = vmov 0 }
 0x32b   : > { %v5824_v10 = vadd.f32 %v13424_v56, %v5781_v59  ;;  %v5782_v53 = vmul.f32 %v10844_v11, %v13392_v19  ;;  %v4911_v3 = vpop.f32.mrb[3].mxu0  ;;  %v16248_v6 = vsel %vm13500_vm4, 4294967295, %v16247_v6  ;;  %v16253_v59 = vmov 0 }
 0x32c   : > { %16249 = vst [vmem:[#allocation58_spill] sm:$0xff] %v16248_v6  ;;  %v5822_v28 = vadd.f32 %v13424_v56, %v5779_v33  ;;  %v5780_v41 = vmul.f32 %v13392_v19, %v4911_v3  ;;  %v16254_v59 = vsel %vm13513_vm8, 4294967295, %v16253_v59  ;;  %v13518_v11 = vadd.s32 18, %v13419_v44  ;;  %v16316_v6 = vld [vmem:[#allocation16_spill] sm:$0xff] }
 0x32d   : > { %16255 = vst [vmem:[#allocation60_spill] sm:$0xff] %v16254_v59  ;;  %v5860_v63 = vmax.f32 %v5824_v10, 0.0  ;;  %v5825_v47 = vadd.f32 %v13424_v56, %v5782_v53  ;;  %v16259_v33 = vmov 0  ;;  %vm16321_vm8 = vsmask.f32 1280 }
 0x32e   : > { %16256 = vst [vmem:[#allocation61_spill] sm:$0xff] %v13518_v11  ;;  %v16260_v33 = vsel %vm13526_vm5, 4294967295, %v16259_v33  ;;  %v5858_v3 = vmax.f32 %v5822_v28, 0.0  ;;  %v5823_v48 = vadd.f32 %v13424_v56, %v5780_v41  ;;  %v13546_v28 = vadd.s32 18, %v13478_v24 }
 0x32f   : > { %16261 = vst [vmem:[#allocation62_spill] sm:$0xff] %v16260_v33  ;;  %v5861_v58 = vmax.f32 %v5825_v47, 0.0  ;;  %v13549_v41 = vsub.s32 %v13262_v7, %v5552_v62  ;;  %v16264_v7 = vmov 0  ;;  %v6004_v62 = vsel %vm13399_vm6, %v5860_v63, 0.0 }
 0x330   : > { %16262 = vst [vmem:[#allocation63_spill] sm:$0xff] %v13546_v28  ;;  %v5859_v4 = vmax.f32 %v5823_v48, 0.0  ;;  %v10847_v10 = vpop.f32.mrb[4].mxu0  ;;  %v16265_v7 = vsel %vm13567_vm3, 4294967295, %v16264_v7  ;;  %v6002_v15 = vsel %vm13431_vm2, %v5858_v3, 0.0  ;;  %v16268_v63 = vsel %vm16267_vm15, %v12746_v39, %v12703_v37  ;;  %v16288_v37 = vld [vmem:[#allocation7_spill] sm:$0xff] }
 0x331   : > { %16263 = vst [vmem:[#allocation64_spill] sm:$0xff] %v13549_v41  ;;  %16266 = vst [vmem:[#allocation65_spill] sm:$0xff] %v16265_v7  ;;  %v6005_v48 = vsel %vm13408_vm0, %v5861_v58, 0.0  ;;  %v5785_v47 = vmul.f32 %v10847_v10, %v13392_v19  ;;  %v4924_v53 = vpop.f32.mrb[5].mxu0  ;;  %vm13589_vm6 = vcmp.lt.s32.totalorder %v16268_v63, 16  ;;  %vm16271_vm0 = vnez %v16104_v25 }
 0x332   : > { %v13580_v44 = vpack.c.bf16 %v6005_v48, %v6004_v62  ;;  %v6003_v11 = vsel %vm13440_vm1, %v5859_v4, 0.0  ;;  %v5783_v60 = vmul.f32 %v13392_v19, %v4924_v53  ;;  %v10848_v40 = vpop.f32.mrb[6].mxu0  ;;  %v16272_v50 = vsel %vm16271_vm0, %v12769_v42, %v12738_v38  ;;  %v16280_v62 = vld [vmem:[#allocation10_spill] sm:$0xff] }
 0x333   : > { %vm13599_vm2 = vcmp.lt.s32.totalorder %v16272_v50, 16  ;;  %v6038_v61 = vpack.c.bf16 %v6003_v11, %v6002_v15  ;;  %v4927_v21 = vpop.f32.mrb[7].mxu0  ;;  %v5828_v42 = vadd.f32 %v13424_v56, %v5785_v47  ;;  %vm16275_vm15 = vnez %v16102_v8  ;;  %v16281_v48 = vld [vmem:[#allocation6_spill] sm:$0xff] }
 0x334   : > { %v6095_v39 = vshrl.u32 %v13580_v44, 16  ;;  %v6098_v25 = vshll.u32 %v13580_v44, 16  ;;  %v16276_v15 = vsel %vm16275_vm15, %v12757_v43, %v12708_v52  ;;  %v5786_v53 = vmul.f32 %v10848_v40, %v13392_v19 }
 0x335   : > { %vm13618_vm0 = vcmp.lt.s32.totalorder %v16276_v15, 16  ;;  %v6087_v11 = vshrl.u32 %v6038_v61, 16  ;;  %v6090_v3 = vshll.u32 %v6038_v61, 16  ;;  %v6311_v10 = vrot.slane %v6038_v61, 7  ;;  %v16285_v15 = vld [vmem:[#allocation11_spill] sm:$0xff]  ;;  %v16287_v61 = vld [vmem:[#allocation12_spill] sm:$0xff] }
 0x336   : > { %v16282_v63 = vsel %vm16279_vm9, %v16280_v62, %v16281_v48  ;;  %v6097_v8 = vrot.slane %v6095_v39, 6  ;;  %v6100_v52 = vrot.slane %v6098_v25, 7  ;;  %v13632_v43 = vrot.slane %v6095_v39, 7  ;;  %v16292_v62 = vld [vmem:[#allocation13_spill] sm:$0xff]  ;;  %v16294_v48 = vld [vmem:[#allocation14_spill] sm:$0xff] }
 0x337   : > { %vm13628_vm1 = vcmp.lt.s32.totalorder %v16282_v63, 16  ;;  %v5826_v50 = vadd.f32 %v13424_v56, %v5783_v60  ;;  %vm16286_vm15 = vnez %v16285_v15  ;;  %vm16293_vm9 = vnez %v16292_v62  ;;  %v16295_v63 = vld [vmem:[#allocation8_spill] sm:$0xff]  ;;  %6365 = vst [vmem:[#allocation2 + $0x20] sm:$0xfe] %v6311_v10 }
 0x338   : > { %v16289_v40 = vsel %vm16286_vm15, %v16287_v61, %v16288_v37  ;;  %v16296_v38 = vsel %vm16293_vm9, %v16294_v48, %v16295_v63  ;;  %v6089_v39 = vrot.slane %v6087_v11, 6  ;;  %v6092_v60 = vrot.slane %v6090_v3, 7  ;;  %v6269_v62 = vld [vmem:[#allocation2 + $0x18] sm:$0xfe]  ;;  %v6457_v48 = vld [vmem:[#allocation2 + $0x28] sm:$0xff]  ;;  %v10851_v7 = vpop.f32.mrb[8].mxu0 }
 0x339   : > { %vm13640_vm14 = vcmp.lt.s32.totalorder %v16289_v40, 16  ;;  %vm13649_vm11 = vcmp.lt.s32.totalorder %v16296_v38, 16  ;;  %v16299_v15 = vrot.slane %v13580_v44, 7  ;;  %v6385_v37 = vrot.slane %v6087_v11, 7  ;;  %v16308_v11 = vld [vmem:[#allocation9_spill] sm:$0xff] }
 0x33a   : > { %v13658_v61 = vor.u32 %v6100_v52, %v6097_v8  ;;  %v6388_v40 = vor.u32 %v13632_v43, %v6098_v25  ;;  %vm16301_vm15 = vsmask.f32 7942  ;;  %vm16302_vm3 = vcmask 1047553   ;;  %v16395_v52 = vld [vmem:[#allocation44_spill] sm:$0xff] }
 0x33b   : > { %v13656_v28 = vsel %vm16300_vm12, %v6311_v10, %v16299_v15  ;;  %vm13663_vm9 = vmand %vm16302_vm3, %vm16301_vm15  ;;  %v5864_v63 = vmax.f32 %v5828_v42, 0.0  ;;  %v16305_v15 = vld [vmem:[#allocation17_spill] sm:$0xff]  ;;  %v16307_v10 = vld [vmem:[#allocation15_spill] sm:$0xff]  ;;  %v13678_v25 = vadd.s32 18, %v13549_v41  ;;  %v6093_v33 = vor.u32 %v6092_v60, %v6089_v39  ;;  %v4940_v42 = vpop.f32.mrb[9].mxu0 }
 0x33c   : > { %6366 = vst [vmem:[#allocation2 + $0x38] sm:$0xff] %v13656_v28  ;;  %vm16306_vm12 = vnez %v16305_v15  ;;  %v6386_v0 = vor.u32 %v6385_v37, %v6090_v3  ;;  %v5829_v59 = vadd.f32 %v13424_v56, %v5786_v53  ;;  %v5784_v46 = vmul.f32 %v13392_v19, %v4927_v21  ;;  %v16315_v15 = vld [vmem:[#allocation20_spill] sm:$0xff]  ;;  %v10852_v53 = vpop.f32.mrb[10].mxu0 }
 0x33d   : > { %v16309_v8 = vsel %vm16306_vm12, %v16307_v10, %v16308_v11  ;;  %16312 = vst [vmem:[#allocation10_spill] sm:$0xff] %v13678_v25  ;;  %vm16314_vm3 = vnez %v16313_v18  ;;  %vm16320_vm12 = vsmask.f32 256  ;;  %v5789_v39 = vmul.f32 %v10851_v7, %v13392_v19  ;;  %v11635_v25 = vld [vmem:[%s15955_s4 + $0xa0] sm:$0xff]  }
 0x33e   : > { %vm13673_vm5 = vcmp.lt.s32.totalorder %v16309_v8, 16  ;;  %v16317_v29 = vsel %vm16314_vm3, %v16315_v15, %v16316_v6  ;;  %v6389_v11 = vsel %vm16320_vm12, %v6385_v37, %v6388_v40  ;;  %v5862_v8 = vmax.f32 %v5826_v50, 0.0  ;;  %v16322_v6 = vld [vmem:[#allocation24_spill] sm:$0xff]  ;;  %v4943_v15 = vpop.f32.mrb[11].mxu0 }
 0x33f   : > { %vm13687_vm15 = vcmp.lt.s32.totalorder %v16317_v29, 16  ;;  %v5787_v3 = vmul.f32 %v13392_v19, %v4940_v42  ;;  %v13696_v21 = vsel %vm16321_vm8, %v6093_v33, %v13658_v61  ;;  %v6270_v18 = vsel %vm13663_vm9, %v6093_v33, %v6269_v62  ;;  %6460 = vst [vmem:[#allocation2 + $0x40] sm:$0xff] %v6389_v11 }
 0x340   : > { %vm16323_vm3 = vnez %v16322_v6  ;;  %v5865_v60 = vmax.f32 %v5829_v59, 0.0  ;;  %6271 = vst [vmem:[#allocation2 + $0x18] sm:$0xfe] %v6270_v18  ;;  %6272 = vst [vmem:[#allocation2 + $0x30] sm:$0xff] %v13696_v21  ;;  %v5827_v7 = vadd.f32 %v13424_v56, %v5784_v46  ;;  %v5832_v50 = vadd.f32 %v13424_v56, %v5789_v39  ;;  %v6485_v39 = vld [vmem:[#allocation2 + $0x20] sm:$0xff] }
 0x341   : > { %v6458_v29 = vsel %vm16323_vm3, %v6386_v0, %v6457_v48  ;;  %v5830_v37 = vadd.f32 %v13424_v56, %v5787_v3  ;;  %v5790_v40 = vmul.f32 %v10852_v53, %v13392_v19  ;;  %vm16324_vm8 = vcmp.ne.s32.totalorder %v13549_v41, 0  ;;  %6774 = vmatprep.mubr.bf16.mxu0 %v6485_v39 }
 0x342   : > { %6459 = vst [vmem:[#allocation2 + $0x28] sm:$0xff] %v6458_v29  ;;  %vm16325_vm9 = vcmp.lt.s32.totalorder %v13549_v41, 0  ;;  %v16326_v0 = vmov 0  ;;  %v6008_v59 = vsel %vm13589_vm6, %v5864_v63, 0.0  ;;  %v6009_v46 = vsel %vm13599_vm2, %v5865_v60, 0.0 }
 0x343   : > { %vm13711_vm12 = vmand %vm16325_vm9, %vm16324_vm8  ;;  %v5788_v33 = vmul.f32 %v13392_v19, %v4943_v15  ;;  %v13722_v38 = vsub.s32 %v13317_v13, %v13576_v54  ;;  %v13724_v62 = vpack.c.bf16 %v6009_v46, %v6008_v59  ;;  %v5863_v48 = vmax.f32 %v5827_v7, 0.0  ;;  %v16348_v13 = vld [vmem:[#allocation35_spill] sm:$0xff] }
 0x344   : > { %v16327_v0 = vsel %vm13711_vm12, 4294967295, %v16326_v0  ;;  %v5868_v42 = vmax.f32 %v5832_v50, 0.0  ;;  %v5866_v11 = vmax.f32 %v5830_v37, 0.0  ;;  %v6006_v3 = vsel %vm13618_vm0, %v5862_v8, 0.0  ;;  %v10855_v8 = vpop.f32.mrb[12].mxu0 }
 0x345   : > { %16328 = vst [vmem:[#allocation6_spill] sm:$0xff] %v16327_v0  ;;  %16329 = vst [vmem:[#allocation11_spill] sm:$0xff] %v13722_v38  ;;  %v5833_v58 = vadd.f32 %v13424_v56, %v5790_v40  ;;  %v5831_v14 = vadd.f32 %v13424_v56, %v5788_v33  ;;  %v6113_v54 = vshrl.u32 %v13724_v62, 16  ;;  %v6116_v63 = vshll.u32 %v13724_v62, 16  ;;  %v4956_v15 = vpop.f32.mrb[13].mxu0  ;;  %v16375_v0 = vld [vmem:[#allocation28_spill] sm:$0xff] }
 0x346   : > { %v16051_v53 = vrot.slane %v13724_v62, 7  ;;  %v6007_v4 = vsel %vm13628_vm1, %v5863_v48, 0.0  ;;  %v6012_v6 = vsel %vm13640_vm14, %v5868_v42, 0.0  ;;  %v6010_v29 = vsel %vm13649_vm11, %v5866_v11, 0.0  ;;  %v13745_v59 = vpop.f32.mrb[14].mxu0 }
 0x347   : > { %v6040_v18 = vpack.c.bf16 %v6007_v4, %v6006_v3  ;;  %v5869_v60 = vmax.f32 %v5833_v58, 0.0  ;;  %v6115_v7 = vrot.slane %v6113_v54, 6  ;;  %v6118_v50 = vrot.slane %v6116_v63, 7  ;;  %v13749_v27 = vpop.f32.mrb[15].mxu0  ;;  %v6484_v42 = vld [vmem:[#allocation2 + $0x18] sm:$0xff] }
 0x348   : > { %v13743_v37 = vrot.slane %v6113_v54, 7  ;;  %v5867_v40 = vmax.f32 %v5831_v14, 0.0  ;;  %v16330_v58 = vld [vmem:[#allocation32_spill] sm:$0xff]  ;;  %v16332_v14 = vld [vmem:[#allocation22_spill] sm:$0xff]  ;;  %6775 = vmatmul.mubr.bf16.gmra.mrb[40].mxu0 %v6484_v42  ;;  %vm16347_vm0 = vsmask.f32 256 }
 0x349   : > { %v6104_v46 = vshrl.u32 %v6040_v18, 16  ;;  %v6107_v47 = vshll.u32 %v6040_v18, 16  ;;  %v6314_v33 = vrot.slane %v6040_v18, 7  ;;  %v6013_v48 = vsel %vm13673_vm5, %v5869_v60, 0.0  ;;  %v16333_v54 = vld [vmem:[#allocation18_spill] sm:$0xff]  ;;  %6782 = vmatprep.mubr.bf16.mxu0 %v13656_v28 }
 0x34a   : > { %v13751_v24 = vor.u32 %v6118_v50, %v6115_v7  ;;  %v6394_v11 = vor.u32 %v13743_v37, %v6116_v63  ;;  %v13754_v39 = vpack.c.bf16 %v6013_v48, %v6012_v6  ;;  %v6011_v3 = vsel %vm13687_vm15, %v5867_v40, 0.0  ;;  %v16340_v6 = vld [vmem:[#allocation34_spill] sm:$0xff]  ;;  %v16342_v50 = vld [vmem:[#allocation23_spill] sm:$0xff] }
 0x34b   : > { %vm16331_vm11 = vnez %v16330_v58  ;;  %v6106_v18 = vrot.slane %v6104_v46, 6  ;;  %v6109_v60 = vrot.slane %v6107_v47, 7  ;;  %v16337_v7 = vrot.slane %v13580_v44, 7  ;;  %v16343_v40 = vld [vmem:[#allocation19_spill] sm:$0xff] }
 0x34c   : > { %v16334_v4 = vsel %vm16331_vm11, %v16332_v14, %v16333_v54  ;;  %vm16338_vm5 = vcmask 1040384   ;;  %vm16341_vm2 = vnez %v16340_v6  ;;  %v6390_v44 = vrot.slane %v6104_v46, 7  ;;  %v16350_v46 = vld [vmem:[#allocation26_spill] sm:$0xff] }
 0x34d   : > { %vm13763_vm14 = vcmp.lt.s32.totalorder %v16334_v4, 16  ;;  %v6315_v63 = vsel %vm16338_vm5, %v16337_v7, %v6314_v33  ;;  %vm16339_vm6 = vmmov %vm16338_vm5  ;;  %v16344_v48 = vsel %vm16341_vm2, %v16342_v50, %v16343_v40  ;;  %v6131_v42 = vshrl.u32 %v13754_v39, 16 }
 0x34e   : > { %v6317_v10 = vsel %vm16339_vm6, %v6314_v33, %v16051_v53  ;;  %vm13778_vm1 = vcmp.lt.s32.totalorder %v16344_v48, 16  ;;  %6367 = vst [vmem:[#allocation2 + $0x50] sm:$0xff] %v6315_v63  ;;  %v6134_v14 = vshll.u32 %v13754_v39, 16  ;;  %6790 = vmatprep.mubr.bf16.mxu1 %v6315_v63  ;;  %v6110_v54 = vor.u32 %v6109_v60, %v6106_v18  ;;  %v16351_v53 = vld [vmem:[#allocation21_spill] sm:$0xff]  ;;  %v10859_v18 = vpop.f32.mrb[16].mxu0  ;;  %vm16364_vm6 = vmmov %vm16347_vm0  ;;  %v16374_v33 = vld [vmem:[#allocation38_spill] sm:$0xff] }
 0x34f   : > { %6368 = vst [vmem:[#allocation2 + $0x68] sm:$0xff] %v6317_v10  ;;  %v6042_v4 = vpack.c.bf16 %v6011_v3, %v6010_v29  ;;  %v5793_v7 = vmul.f32 %v10855_v8, %v13392_v19  ;;  %v5791_v6 = vmul.f32 %v13392_v19, %v4956_v15  ;;  %v6391_v50 = vor.u32 %v6390_v44, %v6107_v47  ;;  %v11632_v8 = vld [vmem:[%s15955_s4 + $0x88] sm:$0xff]   ;;  %v16359_v47 = vld [vmem:[#allocation29_spill] sm:$0xff]  ;;  %v4972_v63 = vpop.f32.mrb[17].mxu0 }
 0x350   : > { %v6395_v40 = vsel %vm16347_vm0, %v6390_v44, %v6394_v11  ;;  %v6133_v28 = vrot.slane %v6131_v42, 6  ;;  %v6136_v48 = vrot.slane %v6134_v14, 7  ;;  %vm16349_vm15 = vnez %v16348_v13  ;;  %v16360_v11 = vld [vmem:[#allocation25_spill] sm:$0xff]  ;;  %6783 = vmatmul.mubr.bf16.gmra.mrb[44].mxu0 %v13696_v21 }
 0x351   : > { %v16352_v41 = vsel %vm16349_vm15, %v16350_v46, %v16351_v53  ;;  %vm16355_vm8 = vsmask.f32 1280  ;;  %6462 = vst [vmem:[#allocation2 + $0x70] sm:$0xff] %v6395_v40  ;;  %v13807_v13 = vrot.slane %v6131_v42, 7  ;;  %v6122_v53 = vshrl.u32 %v6042_v4, 16  ;;  %v16365_v40 = vld [vmem:[#allocation39_spill] sm:$0xff] }
 0x352   : > { %vm13794_vm3 = vcmp.lt.s32.totalorder %v16352_v41, 16  ;;  %v6111_v29 = vsel %vm16355_vm8, %v13658_v61, %v6110_v54  ;;  %vm16356_vm9 = vmmov %vm16355_vm8  ;;  %v16357_v41 = vld [vmem:[#allocation36_spill] sm:$0xff]  ;;  %v6392_v61 = vsel %vm16364_vm6, %v13632_v43, %v6391_v50  ;;  %v13821_v44 = vor.u32 %v6136_v48, %v6133_v28  ;;  %v16367_v46 = vld [vmem:[#allocation37_spill] sm:$0xff]  ;;  %v10860_v50 = vpop.f32.mrb[18].mxu0 }
 0x353   : > { %v13805_v15 = vsel %vm16356_vm9, %v6110_v54, %v13751_v24  ;;  %vm16358_vm11 = vnez %v16357_v41  ;;  %6273 = vst [vmem:[#allocation2 + $0x48] sm:$0xff] %v6111_v29  ;;  %v6125_v42 = vshll.u32 %v6042_v4, 16  ;;  %v6318_v54 = vrot.slane %v6042_v4, 7  ;;  %v16368_v41 = vld [vmem:[#allocation27_spill] sm:$0xff]  ;;  %6791 = vmatmul.mubr.bf16.vlgmr.msra.gmra.mrb[0].mxu1 %v6111_v29  ;;  %6461 = vst [vmem:[#allocation2 + $0x58] sm:$0xff] %v6392_v61  ;;  %v16384_v61 = vld [vmem:[#allocation42_spill] sm:$0xff] }
 0x354   : > { %v16361_v3 = vsel %vm16358_vm11, %v16359_v47, %v16360_v11  ;;  %6274 = vst [vmem:[#allocation2 + $0x60] sm:$0xff] %v13805_v15  ;;  %vm16366_vm2 = vnez %v16365_v40  ;;  %v6400_v4 = vor.u32 %v13807_v13, %v6134_v14  ;;  %v6124_v28 = vrot.slane %v6122_v53, 6  ;;  %6798 = vmatprep.mubr.bf16.mxu1 %v6317_v10  ;;  %v16403_v60 = vld [vmem:[#allocation45_spill] sm:$0xff] }
 0x355   : > { %vm13814_vm5 = vcmp.lt.s32.totalorder %v16361_v3, 16  ;;  %v16369_v47 = vsel %vm16366_vm2, %v16367_v46, %v16368_v41  ;;  %v16372_v3 = vld [vmem:[#allocation40_spill] sm:$0xff]  ;;  %v6396_v48 = vrot.slane %v6122_v53, 7  ;;  %v5836_v40 = vadd.f32 %v13424_v56, %v5793_v7  ;;  %v4975_v46 = vpop.f32.mrb[19].mxu0  ;;  %v16379_v41 = vld [vmem:[#allocation5_spill] sm:$0xff]  ;;  %v16387_v7 = vld [vmem:[#allocation31_spill] sm:$0xff] }
 0x356   : > { %vm13828_vm0 = vcmp.lt.s32.totalorder %v16369_v47, 16  ;;  %vm16373_vm15 = vnez %v16372_v3  ;;  %10878 = vmatpush3.bf16.msra.mxu1 %v16379_v41  ;;  %v6127_v47 = vrot.slane %v6125_v42, 7  ;;  %vm16381_vm9 = vcmask 1040384   ;;  %v16386_v53 = vld [vmem:[#allocation41_spill] sm:$0xff] }
 0x357   : > { %v16376_v38 = vsel %vm16373_vm15, %v16374_v33, %v16375_v0  ;;  %v16380_v0 = vrot.slane %v13724_v62, 7  ;;  %v16382_v33 = vrot.slane %v13754_v39, 7  ;;  %vm16383_vm11 = vmmov %vm16381_vm9  ;;  %v5834_v14 = vadd.f32 %v13424_v56, %v5791_v6  ;;  %10879 = vmatprep.subr.bf16.mxu1 %v11632_v8  ;;  %v11633_v62 = vld [vmem:[%s15955_s4 + $0x90] sm:$0xff]  }
 0x358   : > { %vm13837_vm8 = vcmp.lt.s32.totalorder %v16376_v38, 16  ;;  %vm16385_vm6 = vnez %v16384_v61  ;;  %v6397_v10 = vor.u32 %v6396_v48, %v6125_v42  ;;  %vm16391_vm15 = vsmask.f32 256 }
 0x359   : > { %v6319_v38 = vsel %vm16381_vm9, %v16380_v0, %v6318_v54  ;;  %v13850_v29 = vsel %vm16383_vm11, %v6318_v54, %v16382_v33  ;;  %v16388_v3 = vsel %vm16385_vm6, %v16386_v53, %v16387_v7  ;;  %v6401_v6 = vsel %vm16391_vm15, %v6396_v48, %v6400_v4  ;;  %vm16392_vm9 = vmmov %vm16391_vm15 }
 0x35a   : > { %vm13858_vm2 = vcmp.lt.s32.totalorder %v16388_v3, 16  ;;  %6369 = vst [vmem:[#allocation2 + $0x80] sm:$0xff] %v6319_v38  ;;  %6370 = vst [vmem:[#allocation2 + $0x98] sm:$0xff] %v13850_v29  ;;  %v5872_v54 = vmax.f32 %v5836_v40, 0.0  ;;  %v5794_v0 = vmul.f32 %v13745_v59, %v13392_v19  ;;  %v6128_v33 = vor.u32 %v6127_v47, %v6124_v28  ;;  %10880 = vmatpush3.bf16.msra.mxu1 %v11632_v8  ;;  %v16397_v28 = vld [vmem:[#allocation43_spill] sm:$0xff]  ;;  %v16398_v40 = vld [vmem:[#allocation33_spill] sm:$0xff] }
 0x35b   : > { %6464 = vst [vmem:[#allocation2 + $0xa0] sm:$0xff] %v6401_v6  ;;  %v5870_v61 = vmax.f32 %v5834_v14, 0.0  ;;  %v5792_v21 = vmul.f32 %v13392_v19, %v13749_v27  ;;  %v5797_v53 = vmul.f32 %v10859_v18, %v13392_v19  ;;  %v6398_v7 = vsel %vm16392_vm9, %v13743_v37, %v6397_v10  ;;  %10881 = vmatprep.subr.bf16.mxu1 %v11633_v62 }
 0x35c   : > { %v6016_v42 = vsel %vm13763_vm14, %v5872_v54, 0.0  ;;  %v5837_v4 = vadd.f32 %v13424_v56, %v5794_v0  ;;  %v5795_v48 = vmul.f32 %v13392_v19, %v4972_v63  ;;  %vm16393_vm11 = vsmask.f32 1280  ;;  %6463 = vst [vmem:[#allocation2 + $0x88] sm:$0xff] %v6398_v7  ;;  %v11634_v63 = vld [vmem:[%s15955_s4 + $0x98] sm:$0xff]   ;;  %6799 = vmatmul.mubr.bf16.gmra.mrb[4].mxu1 %v13805_v15 }
 0x35d   : > { %v13881_v59 = vsel %vm16393_vm11, %v13751_v24, %v6128_v33  ;;  %vm16394_vm6 = vmmov %vm16393_vm11  ;;  %v6014_v18 = vsel %vm13778_vm1, %v5870_v61, 0.0  ;;  %v5835_v37 = vadd.f32 %v13424_v56, %v5792_v21  ;;  %vm16396_vm14 = vnez %v16395_v52  ;;  %v10863_v24 = vpop.f32.mrb[20].mxu0  ;;  %6806 = vmatprep.mubr.bf16.mxu1 %v6319_v38 }
 0x35e   : > { %v6138_v27 = vsel %vm16394_vm6, %v6128_v33, %v13821_v44  ;;  %v16399_v47 = vsel %vm16396_vm14, %v16397_v28, %v16398_v40  ;;  %6275 = vst [vmem:[#allocation2 + $0x78] sm:$0xff] %v13881_v59  ;;  %v5873_v58 = vmax.f32 %v5837_v4, 0.0  ;;  %v5840_v14 = vadd.f32 %v13424_v56, %v5797_v53  ;;  %v4988_v6 = vpop.f32.mrb[21].mxu0  ;;  %10882 = vmatpush3.bf16.msra.mxu1 %v11633_v62 }
 0x35f   : > { %vm13893_vm15 = vcmp.lt.s32.totalorder %v16399_v47, 16  ;;  %6276 = vst [vmem:[#allocation2 + $0x90] sm:$0xff] %v6138_v27  ;;  %v5838_v3 = vadd.f32 %v13424_v56, %v5795_v48  ;;  %v5798_v10 = vmul.f32 %v10860_v50, %v13392_v19  ;;  %v5871_v54 = vmax.f32 %v5835_v37, 0.0  ;;  %v13909_v21 = vpop.f32.mrb[22].mxu0  ;;  %10883 = vmatprep.subr.bf16.mxu1 %v11634_v63 }
 0x360   : > { %v5796_v0 = vmul.f32 %v13392_v19, %v4975_v46  ;;  %v5801_v33 = vmul.f32 %v10863_v24, %v13392_v19  ;;  %v13907_v61 = vmul.f32 %v13392_v19, %v4988_v6  ;;  %v6017_v53 = vsel %vm13794_vm3, %v5873_v58, 0.0  ;;  %v13915_v48 = vpop.f32.mrb[23].mxu0 }
 0x361   : > { %v5876_v7 = vmax.f32 %v5840_v14, 0.0  ;;  %v5874_v4 = vmax.f32 %v5838_v3, 0.0  ;;  %v5841_v50 = vadd.f32 %v13424_v56, %v5798_v10  ;;  %v13917_v46 = vpack.c.bf16 %v6017_v53, %v6016_v42 }
 0x362   : > { %v6015_v27 = vsel %vm13814_vm5, %v5871_v54, 0.0  ;;  %v5839_v37 = vadd.f32 %v13424_v56, %v5796_v0  ;;  %v13923_v15 = vadd.f32 %v13424_v56, %v5801_v33  ;;  %vm16402_vm1 = vnez %v16190_v17  ;;  %10884 = vmatpush3.bf16.msra.mxu1 %v11634_v63  ;;  %v13959_v33 = vpop.f32.mrb[24].mxu0 }
 0x363   : > { %v6044_v52 = vpack.c.bf16 %v6015_v27, %v6014_v18  ;;  %v6020_v38 = vsel %vm13828_vm0, %v5876_v7, 0.0  ;;  %v6018_v62 = vsel %vm13837_vm8, %v5874_v4, 0.0  ;;  %v5877_v42 = vmax.f32 %v5841_v50, 0.0  ;;  %10885 = vmatprep.subr.bf16.mxu1 %v11635_v25  ;;  %v13972_v7 = vpop.f32.mrb[25].mxu0 }
 0x364   : > { %v16404_v28 = vsel %vm16402_vm1, %v13231_v57, %v16403_v60  ;;  %v6149_v47 = vshrl.u32 %v13917_v46, 16  ;;  %v6152_v18 = vshll.u32 %v13917_v46, 16  ;;  %v6324_v11 = vrot.slane %v13917_v46, 7  ;;  %6807 = vmatmul.mubr.bf16.gmra.mrb[8].mxu1 %v13881_v59 }
 0x365   : > { %vm13937_vm3 = vcmp.lt.s32.totalorder %v16404_v28, 16  ;;  %v5875_v24 = vmax.f32 %v5839_v37, 0.0  ;;  %v6140_v58 = vshrl.u32 %v6044_v52, 16  ;;  %v6143_v43 = vshll.u32 %v6044_v52, 16  ;;  %6814 = vmatprep.mubr.bf16.mxu1 %v13850_v29 }
 0x366   : > { %v6322_v14 = vrot.slane %v6044_v52, 7  ;;  %v6021_v17 = vsel %vm13858_vm2, %v5877_v42, 0.0  ;;  %vm16407_vm5 = vnez %v16195_v51  ;;  %v6151_v10 = vrot.slane %v6149_v47, 6  ;;  %v11636_v51 = vld [vmem:[%s15955_s4 + $0xa8] sm:$0xff]   ;;  %10886 = vmatpush3.bf16.msra.mxu1 %v11635_v25 }
 0x367   : > { %v16408_v57 = vsel %vm16407_vm5, %v13239_v16, %v13203_v20  ;;  %v6154_v6 = vrot.slane %v6152_v18, 7  ;;  %v13955_v54 = vrot.slane %v6149_v47, 7  ;;  %v13957_v0 = vpack.c.bf16 %v6021_v17, %v6020_v38  ;;  %10887 = vmatprep.subr.bf16.mxu1 %v11636_v51 }
 0x368   : > { %vm13951_vm0 = vcmp.lt.s32.totalorder %v16408_v57, 16  ;;  %v6142_v41 = vrot.slane %v6140_v58, 6  ;;  %v6145_v20 = vrot.slane %v6143_v43, 7  ;;  %v16411_v16 = vrot.slane %v13754_v39, 7  ;;  %v10868_v39 = vpop.f32.mrb[26].mxu0 }
 0x369   : > { %vm16412_vm8 = vcmask 1040384   ;;  %v13974_v4 = vor.u32 %v6154_v6, %v6151_v10  ;;  %v6406_v50 = vor.u32 %v13955_v54, %v6152_v18  ;;  %v6402_v27 = vrot.slane %v6140_v58, 7  ;;  %v14002_v8 = vpop.f32.mrb[27].mxu0 }
 0x36a   : > { %v13967_v53 = vsel %vm16412_vm8, %v16411_v16, %v6322_v14  ;;  %vm16413_vm2 = vmmov %vm16412_vm8  ;;  %v6167_v37 = vshrl.u32 %v13957_v0, 16  ;;  %v6146_v52 = vor.u32 %v6145_v20, %v6142_v41  ;;  %v6170_v38 = vshll.u32 %v13957_v0, 16  ;;  %v16432_v41 = vld [vmem:[#allocation46_spill] sm:$0xff]  ;;  %10888 = vmatpush3.bf16.msra.mxu1 %v11636_v51 }
 0x36b   : > { %v6325_v63 = vsel %vm16413_vm2, %v6322_v14, %v6324_v11  ;;  %6371 = vst [vmem:[#allocation2 + $0xb0] sm:$0xff] %v13967_v53  ;;  %v6328_v42 = vrot.slane %v13957_v0, 7  ;;  %v6019_v60 = vsel %vm13893_vm15, %v5875_v24, 0.0  ;;  %vm16414_vm9 = vnez %v16199_v45 }
 0x36c   : > { %6372 = vst [vmem:[#allocation2 + $0xc8] sm:$0xff] %v6325_v63  ;;  %v16415_v28 = vsel %vm16414_vm9, %v13252_v36, %v13215_v55  ;;  %vm16418_vm6 = vnez %v16203_v2  ;;  %v6403_v45 = vor.u32 %v6402_v27, %v6143_v43  ;;  %vm16422_vm15 = vsmask.f32 256  ;;  %v10871_v63 = vpop.f32.mrb[28].mxu0 }
 0x36d   : > { %vm13989_vm11 = vcmp.lt.s32.totalorder %v16415_v28, 16  ;;  %v16419_v59 = vsel %vm16418_vm6, %v13273_v32, %v13235_v9  ;;  %v6407_v55 = vsel %vm16422_vm15, %v6402_v27, %v6406_v50  ;;  %v6169_v36 = vrot.slane %v6167_v37, 6  ;;  %v11637_v9 = vld [vmem:[%s15955_s4 + $0xb0] sm:$0xff]   ;;  %vm16425_vm8 = vmmov %vm16422_vm15  ;;  %v5020_v51 = vpop.f32.mrb[29].mxu0 }
 0x36e   : > { %vm13998_vm14 = vcmp.lt.s32.totalorder %v16419_v59, 16  ;;  %v14006_v24 = vrot.slane %v6167_v37, 7  ;;  %vm16423_vm1 = vsmask.f32 1280  ;;  %6466 = vst [vmem:[#allocation2 + $0xd0] sm:$0xff] %v6407_v55  ;;  %v6172_v29 = vrot.slane %v6170_v38, 7  ;;  %10889 = vmatprep.subr.bf16.mxu1 %v11637_v9 }
 0x36f   : > { %v6147_v32 = vsel %vm16423_vm1, %v13821_v44, %v6146_v52  ;;  %vm16424_vm5 = vmmov %vm16423_vm1  ;;  %v6046_v25 = vpack.c.bf16 %v6019_v60, %v6018_v62  ;;  %v6404_v58 = vsel %vm16425_vm8, %v13807_v13, %v6403_v45  ;;  %v5880_v14 = vmax.f32 %v13923_v15, 0.0  ;;  %v16431_v15 = vld [vmem:[#allocation48_spill] sm:$0xff]  ;;  %v14057_v37 = vld [vmem:[#allocation2 + $0x90] sm:$0xff]  ;;  %v14077_v55 = vpop.f32.mrb[30].mxu0  ;;  %10890 = vmatpush3.bf16.msra.mxu1 %v11637_v9 }
 0x370   : > { %v6156_v2 = vsel %vm16424_vm5, %v6146_v52, %v13974_v4  ;;  %6277 = vst [vmem:[#allocation2 + $0xa8] sm:$0xff] %v6147_v32  ;;  %v6412_v43 = vor.u32 %v14006_v24, %v6170_v38  ;;  %v5842_v17 = vadd.f32 %v13424_v56, %v13907_v61  ;;  %6465 = vst [vmem:[#allocation2 + $0xb8] sm:$0xff] %v6404_v58  ;;  %vm16426_vm2 = vnez %v16206_v23  ;;  %v16438_v38 = vld [vmem:[#allocation50_spill] sm:$0xff]  ;;  %v16440_v60 = vld [vmem:[#allocation49_spill] sm:$0xff] }
 0x371   : > { %6278 = vst [vmem:[#allocation2 + $0xc0] sm:$0xff] %v6156_v2  ;;  %v14021_v44 = vor.u32 %v6172_v29, %v6169_v36  ;;  %v6158_v57 = vshrl.u32 %v6046_v25, 16  ;;  %v6161_v10 = vshll.u32 %v6046_v25, 16  ;;  %v6326_v6 = vrot.slane %v6046_v25, 7  ;;  %v16441_v28 = vld [vmem:[#allocation47_spill] sm:$0xff]  ;;  %6815 = vmatmul.mubr.bf16.gmra.mrb[12].mxu1 %v14057_v37  ;;  %v14085_v29 = vpop.f32.mrb[31].mxu0 }
 0x372   : > { %v16427_v62 = vsel %vm16426_vm2, %v13290_v26, %v13242_v35  ;;  %vm16430_vm6 = vnez %v16209_v34  ;;  %v6024_v23 = vsel %vm13937_vm3, %v5880_v14, 0.0  ;;  %v5878_v16 = vmax.f32 %v5842_v17, 0.0  ;;  %6822 = vmatprep.mubr.bf16.mxu1 %v13967_v53 }
 0x373   : > { %vm14028_vm9 = vcmp.lt.s32.totalorder %v16427_v62, 16  ;;  %v16433_v61 = vsel %vm16430_vm6, %v16431_v15, %v16432_v41  ;;  %v5802_v35 = vmul.f32 %v13909_v21, %v13392_v19  ;;  %v5800_v26 = vmul.f32 %v13392_v19, %v13915_v48  ;;  %v11638_v21 = vld [vmem:[%s15955_s4 + $0xb8] sm:$0xff]  }
 0x374   : > { %vm14037_vm15 = vcmp.lt.s32.totalorder %v16433_v61, 16  ;;  %v6160_v34 = vrot.slane %v6158_v57, 6  ;;  %v6163_v50 = vrot.slane %v6161_v10, 7  ;;  %vm16436_vm1 = vcmask 1040384   ;;  %10891 = vmatprep.subr.bf16.mxu1 %v11638_v21 }
 0x375   : > { %v14050_v27 = vsel %vm16436_vm1, %v6324_v11, %v6326_v6  ;;  %vm16437_vm5 = vmmov %vm16436_vm1  ;;  %v6408_v48 = vrot.slane %v6158_v57, 7  ;;  %v6022_v46 = vsel %vm13951_vm0, %v5878_v16, 0.0  ;;  %v5845_v11 = vadd.f32 %v13424_v56, %v5802_v35  ;;  %v14132_v35 = vpop.f32.mrb[32].mxu0  ;;  %10892 = vmatpush3.bf16.msra.mxu1 %v11638_v21 }
 0x376   : > { %v14055_v40 = vsel %vm16437_vm5, %v6326_v6, %v6328_v42  ;;  %6373 = vst [vmem:[#allocation2 + $0xe0] sm:$0xff] %v14050_v27  ;;  %v5843_v52 = vadd.f32 %v13424_v56, %v5800_v26  ;;  %vm16439_vm3 = vnez %v16438_v38  ;;  %v6164_v36 = vor.u32 %v6163_v50, %v6160_v34  ;;  %v14137_v49 = vpop.f32.mrb[33].mxu0 }
 0x377   : > { %6374 = vst [vmem:[#allocation2 + $0xf8] sm:$0xff] %v14055_v40  ;;  %v16442_v59 = vsel %vm16439_vm3, %v16440_v60, %v16441_v28  ;;  %v5805_v3 = vmul.f32 %v13959_v33, %v13392_v19  ;;  %v5803_v32 = vmul.f32 %v13392_v19, %v13972_v7  ;;  %v5806_v2 = vmul.f32 %v10868_v39, %v13392_v19  ;;  %v14139_v50 = vld [vmem:[#allocation2 + $0xa8] sm:$0xff]  ;;  %v14157_v38 = vpop.f32.mrb[34].mxu0 }
 0x378   : > { %vm14073_vm8 = vcmp.lt.s32.totalorder %v16442_v59, 16  ;;  %v6409_v25 = vor.u32 %v6408_v48, %v6161_v10  ;;  %vm16445_vm0 = vsmask.f32 256  ;;  %v5881_v14 = vmax.f32 %v5845_v11, 0.0  ;;  %v14160_v60 = vld [vmem:[#allocation2 + $0xc8] sm:$0xff]  ;;  %v16468_v10 = vld [vmem:[#allocation60_spill] sm:$0xff] }
 0x379   : > { %v6413_v58 = vsel %vm16445_vm0, %v6408_v48, %v6412_v43  ;;  %v5879_v17 = vmax.f32 %v5843_v52, 0.0  ;;  %vm16446_vm2 = vsmask.f32 1280  ;;  %v5848_v7 = vadd.f32 %v13424_v56, %v5805_v3  ;;  %vm16448_vm1 = vmmov %vm16445_vm0  ;;  %6823 = vmatmul.mubr.bf16.gmra.mrb[16].mxu1 %v14139_v50  ;;  %v16484_v52 = vld [vmem:[#allocation54_spill] sm:$0xff] }
 0x37a   : > { %v14091_v57 = vsel %vm16446_vm2, %v13974_v4, %v6164_v36  ;;  %vm16447_vm6 = vmmov %vm16446_vm2  ;;  %6468 = vst [vmem:[#allocation2 + $0x100] sm:$0xff] %v6413_v58  ;;  %v5846_v39 = vadd.f32 %v13424_v56, %v5803_v32  ;;  %v6410_v53 = vsel %vm16448_vm1, %v13955_v54, %v6409_v25  ;;  %v6025_v4 = vsel %vm13989_vm11, %v5881_v14, 0.0  ;;  %6830 = vmatprep.mubr.bf16.mxu1 %v14160_v60  ;;  %v16463_v25 = vld [vmem:[#allocation57_spill] sm:$0xff]  ;;  %v16464_v58 = vld [vmem:[#allocation52_spill] sm:$0xff] }
 0x37b   : > { %v14095_v33 = vsel %vm16447_vm6, %v6164_v36, %v14021_v44  ;;  %6279 = vst [vmem:[#allocation2 + $0xd8] sm:$0xff] %v14091_v57  ;;  %v6023_v9 = vsel %vm13998_vm14, %v5879_v17, 0.0  ;;  %v5849_v43 = vadd.f32 %v13424_v56, %v5806_v2  ;;  %v16450_v6 = vsel %vm13454_vm13, %v13445_v30, %v13339_v12  ;;  %6467 = vst [vmem:[#allocation2 + $0xe8] sm:$0xff] %v6410_v53  ;;  %v14164_v36 = vpop.f32.mrb[35].mxu0 }
 0x37c   : > { %6280 = vst [vmem:[#allocation2 + $0xf0] sm:$0xff] %v14095_v33  ;;  %vm14113_vm5 = vcmp.lt.s32.totalorder %v16450_v6, 16  ;;  %v14117_v15 = vpack.c.bf16 %v6025_v4, %v6024_v23  ;;  %v6048_v54 = vpack.c.bf16 %v6023_v9, %v6022_v46  ;;  %v5884_v47 = vmax.f32 %v5848_v7, 0.0  ;;  %v16456_v46 = vld [vmem:[#allocation51_spill] sm:$0xff]  ;;  %vm16476_vm3 = vmmov %vm16446_vm2 }
 0x37d   : > { %v5882_v41 = vmax.f32 %v5846_v39, 0.0  ;;  %v5885_v61 = vmax.f32 %v5849_v43, 0.0  ;;  %v5804_v18 = vmul.f32 %v13392_v19, %v14002_v8  ;;  %v5809_v16 = vmul.f32 %v10871_v63, %v13392_v19  ;;  %v16470_v6 = vld [vmem:[#allocation59_spill] sm:$0xff] }
 0x37e   : > { %v16453_v12 = vsel %vm13471_vm10, %v13459_v5, %v13350_v22  ;;  %v5807_v23 = vmul.f32 %v13392_v19, %v5020_v51  ;;  %v6185_v26 = vshrl.u32 %v14117_v15, 16  ;;  %v6188_v8 = vshll.u32 %v14117_v15, 16  ;;  %v14141_v22 = vld [vmem:[#allocation2] sm:$0xff] }
 0x37f   : > { %vm14127_vm13 = vcmp.lt.s32.totalorder %v16453_v12, 16  ;;  %v6332_v63 = vrot.slane %v14117_v15, 7  ;;  %v6176_v34 = vshrl.u32 %v6048_v54, 16  ;;  %7632 = vmatprep.subr.bf16.mxu1 %v14141_v22  ;;  %v6179_v5 = vshll.u32 %v6048_v54, 16 }
 0x380   : > { %v6330_v51 = vrot.slane %v6048_v54, 7  ;;  %v6028_v21 = vsel %vm14028_vm9, %v5884_v47, 0.0  ;;  %v6026_v48 = vsel %vm14037_vm15, %v5882_v41, 0.0  ;;  %v16457_v11 = vsel %vm13485_vm7, %v13462_v31, %v16456_v46  ;;  %v16471_v54 = vld [vmem:[#allocation53_spill] sm:$0xff]  ;;  %vm16475_vm15 = vmmov %vm16445_vm0 }
 0x381   : > { %vm14153_vm10 = vcmp.lt.s32.totalorder %v16457_v11, 16  ;;  %v6187_v13 = vrot.slane %v6185_v26, 6  ;;  %v6190_v28 = vrot.slane %v6188_v8, 7  ;;  %v14162_v59 = vrot.slane %v6185_v26, 7 }
 0x382   : > { %v6178_v20 = vrot.slane %v6176_v34, 6  ;;  %v6181_v31 = vrot.slane %v6179_v5, 7  ;;  %vm16460_vm7 = vcmask 1040384   ;;  %v6414_v32 = vrot.slane %v6176_v34, 7 }
 0x383   : > { %v14170_v1 = vsel %vm16460_vm7, %v6328_v42, %v6330_v51  ;;  %vm16461_vm11 = vmmov %vm16460_vm7  ;;  %v16465_v14 = vsel %vm13500_vm4, %v16463_v25, %v16464_v58  ;;  %v14186_v7 = vor.u32 %v6190_v28, %v6187_v13  ;;  %v6418_v0 = vor.u32 %v14162_v59, %v6188_v8  ;;  %v16478_v13 = vld [vmem:[#allocation11_spill] sm:$0xff] }
 0x384   : > { %v14175_v3 = vsel %vm16461_vm11, %v6330_v51, %v6332_v63  ;;  %vm14182_vm14 = vcmp.lt.s32.totalorder %v16465_v14, 16  ;;  %6375 = vst [vmem:[#allocation2 + $0x110] sm:$0xff] %v14170_v1  ;;  %v6029_v42 = vsel %vm14073_vm8, %v5885_v61, 0.0  ;;  %v5847_v39 = vadd.f32 %v13424_v56, %v5804_v18  ;;  %vm16477_vm8 = vmmov %vm16446_vm2 }
 0x385   : > { %6376 = vst [vmem:[#allocation2 + $0x128] sm:$0xff] %v14175_v3  ;;  %v6182_v53 = vor.u32 %v6181_v31, %v6178_v20  ;;  %v6415_v4 = vor.u32 %v6414_v32, %v6179_v5  ;;  %v14194_v9 = vpack.c.bf16 %v6029_v42, %v6028_v21  ;;  %v5852_v43 = vadd.f32 %v13424_v56, %v5809_v16  ;;  %vm16479_vm1 = vmmov %vm16460_vm7 }
 0x386   : > { %vm16469_vm4 = vnez %v16468_v10  ;;  %v14207_v45 = vsel %vm16475_vm15, %v6414_v32, %v6418_v0  ;;  %v5883_v61 = vmax.f32 %v5847_v39, 0.0  ;;  %v5850_v18 = vadd.f32 %v13424_v56, %v5807_v23  ;;  %vm16488_vm7 = vmmov %vm16445_vm0 }
 0x387   : > { %v16472_v47 = vsel %vm16469_vm4, %v16470_v6, %v16471_v54  ;;  %v5810_v12 = vmul.f32 %v14077_v55, %v13392_v19  ;;  %v14214_v16 = vsel %vm16476_vm3, %v14021_v44, %v6182_v53  ;;  %v14218_v26 = vsel %vm16477_vm8, %v6182_v53, %v14186_v7  ;;  %6470 = vst [vmem:[#allocation2 + $0x130] sm:$0xff] %v14207_v45  ;;  %v16481_v53 = vld [vmem:[#allocation62_spill] sm:$0xff]  ;;  %vm16489_vm11 = vmmov %vm16476_vm3 }
 0x388   : > { %vm14202_vm9 = vcmp.lt.s32.totalorder %v16472_v47, 16  ;;  %v14222_v8 = vsel %vm16445_vm0, %v14006_v24, %v6415_v4  ;;  %v6203_v34 = vshrl.u32 %v14194_v9, 16  ;;  %6281 = vst [vmem:[#allocation2 + $0x108] sm:$0xff] %v14214_v16  ;;  %6282 = vst [vmem:[#allocation2 + $0x120] sm:$0xff] %v14218_v26  ;;  %v6206_v44 = vshll.u32 %v14194_v9, 16  ;;  %v14233_v24 = vld [vmem:[#allocation2 + $0xc0] sm:$0xff] }
 0x389   : > { %6469 = vst [vmem:[#allocation2 + $0x118] sm:$0xff] %v14222_v8  ;;  %v6336_v55 = vrot.slane %v14194_v9, 7  ;;  %v6027_v23 = vsel %vm14113_vm5, %v5883_v61, 0.0  ;;  %v5888_v5 = vmax.f32 %v5852_v43, 0.0  ;;  %v5886_v11 = vmax.f32 %v5850_v18, 0.0  ;;  %6831 = vmatmul.mubr.bf16.gmra.mrb[20].mxu1 %v14233_v24  ;;  %vm16480_vm5 = vmmov %vm16479_vm1  ;;  %v16483_v4 = vld [vmem:[#allocation61_spill] sm:$0xff] }
 0x38a   : > { %v6205_v51 = vrot.slane %v6203_v34, 6  ;;  %v14235_v21 = vrot.slane %v6203_v34, 7  ;;  %v6050_v46 = vpack.c.bf16 %v6027_v23, %v6026_v48  ;;  %vm5589_vm2 = vcmp.ne.s32.totalorder %v16478_v13, 0  ;;  %6838 = vmatprep.mubr.bf16.mxu1 %v14050_v27  ;;  %vm16491_vm4 = vmmov %vm16445_vm0  ;;  %v11833_v9 = vld [vmem:[%s15953_s2] ss:$0 sm:$0xff] }
 0x38b   : > { %vm5625_vm6 = vcmp.lt.s32.totalorder %v16478_v13, 0  ;;  %v6208_v28 = vrot.slane %v6206_v44, 7  ;;  %v6032_v20 = vsel %vm14127_vm13, %v5888_v5, 0.0  ;;  %v5853_v62 = vadd.f32 %v13424_v56, %v5810_v12  ;;  %vm16501_vm8 = vmmov %vm16479_vm1 }
 0x38c   : > { %v5808_v31 = vmul.f32 %v13392_v19, %v14085_v29  ;;  %v6424_v48 = vor.u32 %v14235_v21, %v6206_v44  ;;  %v6194_v32 = vshrl.u32 %v6050_v46, 16  ;;  %v6197_v2 = vshll.u32 %v6050_v46, 16 }
 0x38d   : > { %v6334_v25 = vrot.slane %v6050_v46, 7  ;;  %v14247_v58 = vor.u32 %v6208_v28, %v6205_v51  ;;  %v6030_v14 = vsel %vm14153_vm10, %v5886_v11, 0.0  ;;  %v5889_v0 = vmax.f32 %v5853_v62, 0.0 }
 0x38e   : > { %v5851_v30 = vadd.f32 %v13424_v56, %v5808_v31  ;;  %v6196_v42 = vrot.slane %v6194_v32, 6  ;;  %v6199_v39 = vrot.slane %v6197_v2, 7  ;;  %vm16482_vm13 = vnez %v16481_v53 }
 0x38f   : > { %v14255_v29 = vsel %vm16479_vm1, %v6332_v63, %v6334_v25  ;;  %v14260_v27 = vsel %vm16480_vm5, %v6334_v25, %v6336_v55  ;;  %v16485_v43 = vsel %vm16482_vm13, %v16483_v4, %v16484_v52  ;;  %v6420_v15 = vrot.slane %v6194_v32, 7 }
 0x390   : > { %vm14267_vm10 = vcmp.lt.s32.totalorder %v16485_v43, 16  ;;  %6377 = vst [vmem:[#allocation2 + $0x140] sm:$0xff] %v14255_v29  ;;  %6378 = vst [vmem:[#allocation2 + $0x158] sm:$0xff] %v14260_v27  ;;  %v6033_v63 = vsel %vm14182_vm14, %v5889_v0, 0.0  ;;  %v5887_v6 = vmax.f32 %v5851_v30, 0.0  ;;  %v5813_v54 = vmul.f32 %v14132_v35, %v13392_v19  ;;  %v16496_v0 = vld [vmem:[#allocation64_spill] sm:$0xff] }
 0x391   : > { %v6200_v47 = vor.u32 %v6199_v39, %v6196_v42  ;;  %v14277_v61 = vpack.c.bf16 %v6033_v63, %v6032_v20  ;;  %v5811_v18 = vmul.f32 %v13392_v19, %v14137_v49  ;;  %v5814_v12 = vmul.f32 %v14157_v38, %v13392_v19  ;;  %vm16490_vm14 = vmmov %vm16476_vm3  ;;  %6839 = vmatmul.mubr.bf16.gmra.mrb[24].mxu1 %v14091_v57  ;;  %v16515_v42 = vld [vmem:[#allocation4_spill] sm:$0xff] }
 0x392   : > { %v6421_v34 = vor.u32 %v6420_v15, %v6197_v2  ;;  %v14284_v44 = vsel %vm16488_vm7, %v6420_v15, %v6424_v48  ;;  %v6031_v17 = vsel %vm14202_vm9, %v5887_v6, 0.0  ;;  %v5856_v23 = vadd.f32 %v13424_v56, %v5813_v54  ;;  %6846 = vmatprep.mubr.bf16.mxu1 %v14055_v40  ;;  %vm14320_vm9 = vmand %vm5625_vm6, %vm5589_vm2  ;;  %v6289_v40 = vld [vmem:[#allocation2 + $0x1c8] sm:$0x3] }
 0x393   : > { %v14291_v35 = vsel %vm16489_vm11, %v14186_v7, %v6200_v47  ;;  %v14295_v5 = vsel %vm16490_vm14, %v6200_v47, %v14247_v58  ;;  %6472 = vst [vmem:[#allocation2 + $0x160] sm:$0xff] %v14284_v44  ;;  %v6221_v19 = vshrl.u32 %v14277_v61, 16  ;;  %v6224_v49 = vshll.u32 %v14277_v61, 16  ;;  %vm16500_vm3 = vmmov %vm16479_vm1 }
 0x394   : > { %6283 = vst [vmem:[#allocation2 + $0x138] sm:$0xff] %v14291_v35  ;;  %6284 = vst [vmem:[#allocation2 + $0x150] sm:$0xff] %v14295_v5  ;;  %v14305_v56 = vsel %vm16491_vm4, %v14162_v59, %v6421_v34  ;;  %v6340_v38 = vrot.slane %v14277_v61, 7  ;;  %v6052_v7 = vpack.c.bf16 %v6031_v17, %v6030_v14  ;;  %v5697_v41 = vadd.s32 18, %v16478_v13  ;;  %v11832_v59 = vld [vmem:[%s15954_s3] ss:$0 sm:$0xff] }
 0x395   : > { %6471 = vst [vmem:[#allocation2 + $0x148] sm:$0xff] %v14305_v56  ;;  %v6223_v51 = vrot.slane %v6221_v19, 6  ;;  %v6226_v46 = vrot.slane %v6224_v49, 7  ;;  %v14311_v57 = vrot.slane %v6221_v19, 7  ;;  %v5892_v11 = vmax.f32 %v5856_v23, 0.0  ;;  %v16495_v14 = vld [vmem:[#allocation10_spill] sm:$0xff]  ;;  %vm16509_vm2 = vmmov %vm16491_vm4 }
 0x396   : > { %v6212_v28 = vshrl.u32 %v6052_v7, 16  ;;  %v6215_v20 = vshll.u32 %v6052_v7, 16  ;;  %v6338_v62 = vrot.slane %v6052_v7, 7  ;;  %v5854_v31 = vadd.f32 %v11832_v59, %v5811_v18  ;;  %v16502_v18 = vld [vmem:[#allocation65_spill] sm:$0xff]  ;;  %v16505_v34 = vld [vmem:[#allocation56_spill] sm:$0xff]  ;;  %vm16510_vm6 = vmmov %vm16489_vm11 }
 0x397   : > { %v14324_v48 = vor.u32 %v6226_v46, %v6223_v51  ;;  %v6430_v32 = vor.u32 %v14311_v57, %v6224_v49  ;;  %v5857_v2 = vadd.f32 %v11832_v59, %v5814_v12  ;;  %v16497_v30 = vsel %vm13711_vm12, %v16495_v14, %v16496_v0  ;;  %v16504_v12 = vld [vmem:[#allocation63_spill] sm:$0xff]  ;;  %vm16511_vm1 = vmmov %vm16510_vm6  ;;  %v14442_v23 = vld [vmem:[#allocation2 + $0x58] sm:$0xff] }
 0x398   : > { %vm14332_vm15 = vcmp.lt.s32.totalorder %v16497_v30, 16  ;;  %v6214_v39 = vrot.slane %v6212_v28, 6  ;;  %v6217_v53 = vrot.slane %v6215_v20, 7  ;;  %v14339_v4 = vsel %vm16500_vm3, %v6336_v55, %v6338_v62  ;;  %vm16512_vm13 = vmmov %vm16509_vm2 }
 0x399   : > { %v14344_v52 = vsel %vm16501_vm8, %v6338_v62, %v6340_v38  ;;  %6379 = vst [vmem:[#allocation2 + $0x170] sm:$0xff] %v14339_v4  ;;  %v6426_v43 = vrot.slane %v6212_v28, 7  ;;  %v5893_v15 = vmax.f32 %v5857_v2, 0.0  ;;  %v5733_v63 = vsel %vm14320_vm9, %v5697_v41, %v16478_v13  ;;  %6847 = vmatmul.mubr.bf16.gmra.mrb[28].mxu1 %v14095_v33  ;;  %vm16514_vm7 = vmmov %vm16500_vm3 }
 0x39a   : > { %6380 = vst [vmem:[#allocation2 + $0x188] sm:$0xff] %v14344_v52  ;;  %v5812_v55 = vmul.f32 %v11833_v9, %v14164_v36  ;;  %v6218_v6 = vor.u32 %v6217_v53, %v6214_v39  ;;  %v6036_v54 = vsel %vm14267_vm10, %v5892_v11, 0.0  ;;  %v5890_v47 = vmax.f32 %v5854_v31, 0.0  ;;  %6854 = vmatprep.mubr.bf16.mxu1 %v14170_v1  ;;  %vm16513_vm10 = vmmov %vm16509_vm2  ;;  %v6478_v1 = vld [vmem:[#allocation2 + $0x1d8] sm:$0x1] }
 0x39b   : > { %vm16503_vm12 = vnez %v16502_v18  ;;  %v6427_v13 = vor.u32 %v6426_v43, %v6215_v20  ;;  %v14367_v19 = vsel %vm16509_vm2, %v6426_v43, %v6430_v32  ;;  %v6037_v36 = vsel %vm14332_vm15, %v5893_v15, 0.0  ;;  %vm6477_vm11 = vmand %vm16514_vm7, %vm16513_vm10 }
 0x39c   : > { %v16506_v17 = vsel %vm16503_vm12, %v16504_v12, %v16505_v34  ;;  %v5855_v49 = vadd.f32 %v11832_v59, %v5812_v55  ;;  %v14374_v10 = vsel %vm16510_vm6, %v14247_v58, %v6218_v6  ;;  %v14378_v7 = vsel %vm16511_vm1, %v6218_v6, %v14324_v48  ;;  %6474 = vst [vmem:[#allocation2 + $0x190] sm:$0xff] %v14367_v19  ;;  %vm16517_vm4 = vmmov %vm16500_vm3 }
 0x39d   : > { %vm14362_vm0 = vcmp.lt.s32.totalorder %v16506_v17, 16  ;;  %v6055_v41 = vpack.c.bf16 %v6037_v36, %v6036_v54  ;;  %vm5927_vm5 = vcmp.lt.s32.totalorder %v5733_v63, 16  ;;  %6285 = vst [vmem:[#allocation2 + $0x168] sm:$0xff] %v14374_v10  ;;  %6286 = vst [vmem:[#allocation2 + $0x180] sm:$0xff] %v14378_v7  ;;  %v14386_v33 = vsel %vm16512_vm13, %v14235_v21, %v6427_v13  ;;  %v14440_v17 = vld [vmem:[#allocation2 + $0x40] sm:$0xff]  ;;  %v14447_v36 = vld [vmem:[#allocation2 + $0x70] sm:$0xff] }
 0x39e   : > { %v5891_v58 = vmax.f32 %v5855_v49, 0.0  ;;  %6473 = vst [vmem:[#allocation2 + $0x178] sm:$0xff] %v14386_v33  ;;  %v6034_v28 = vsel %vm14362_vm0, %v5890_v47, 0.0  ;;  %vm16516_vm14 = vnez %v16515_v42  ;;  %vm16518_vm9 = vmmov %vm16500_vm3  ;;  %v7356_v54 = vrot.slane %v14139_v50, 1  ;;  %v14508_v42 = vld [vmem:[#allocation2 + $0x80] sm:$0xff] }
 0x39f   : > { %v6239_v51 = vshrl.u32 %v6055_v41, 16  ;;  %v6242_v46 = vshll.u32 %v6055_v41, 16  ;;  %v6344_v11 = vrot.slane %v6055_v41, 7  ;;  %vm16519_vm15 = vmmov %vm16509_vm2  ;;  %vm16523_vm0 = vcmask 1046528  }
 0x3a0   : > { %v6035_v20 = vsel %vm5927_vm5, %v5891_v58, 0.0  ;;  %vm16520_vm3 = vmmov %vm16509_vm2  ;;  %v14453_v58 = vld [vmem:[#allocation2 + $0x88] sm:$0xff] }
 0x3a1   : > { %v6241_v62 = vrot.slane %v6239_v51, 6  ;;  %v6244_v59 = vrot.slane %v6242_v46, 7  ;;  %6383 = vst [vmem:[#allocation2 + $0x1d0] sm:$0x1] %v6344_v11  ;;  %v6435_v31 = vrot.slane %v6239_v51, 7  ;;  %v6054_v21 = vpack.c.bf16 %v6035_v20, %v6034_v28  ;;  %6855 = vmatmul.mubr.bf16.gmra.mrb[32].mxu1 %v14214_v16  ;;  %vm16521_vm8 = vmmov %vm16511_vm1  ;;  %v14455_v51 = vld [vmem:[#allocation2 + $0xa0] sm:$0xff] }
 0x3a2   : > { %6862 = vmatprep.mubr.bf16.mxu1 %v14175_v3  ;;  %v16066_v3 = vrot.slane %v14057_v37, 1  ;;  %vm16522_vm12 = vmmov %vm16511_vm1  ;;  %v16059_v28 = vrot.slane %v14440_v17, 1  ;;  %v7342_v20 = vrot.slane %v14447_v36, 1 }
 0x3a3   : > { %v6245_v32 = vor.u32 %v6244_v59, %v6241_v62  ;;  %v6436_v2 = vor.u32 %v6435_v31, %v6242_v46  ;;  %v6479_v25 = vsel %vm6477_vm11, %v6435_v31, %v6478_v1  ;;  %v6230_v14 = vshrl.u32 %v6054_v21, 16  ;;  %vm16524_vm2 = vmmov %vm16523_vm0  ;;  %v14457_v46 = vld [vmem:[#allocation2 + $0xb8] sm:$0xff] }
 0x3a4   : > { %6480 = vst [vmem:[#allocation2 + $0x1d8] sm:$0x1] %v6479_v25  ;;  %v6233_v0 = vshll.u32 %v6054_v21, 16  ;;  %v6342_v30 = vrot.slane %v6054_v21, 7  ;;  %v14426_v12 = vsel %vm16523_vm0, %v16066_v3, %v7356_v54  ;;  %vm16526_vm6 = vmmov %vm16523_vm0  ;;  %v7336_v1 = vrot.slane %v14442_v23, 1 }
 0x3a5   : > { %v6290_v39 = vsel %vm16516_vm14, %v6245_v32, %v6289_v40  ;;  %v6232_v53 = vrot.slane %v6230_v14, 6  ;;  %v6432_v43 = vrot.slane %v6230_v14, 7  ;;  %vm16527_vm1 = vmmov %vm16523_vm0  ;;  %v7348_v59 = vrot.slane %v14453_v58, 1 }
 0x3a6   : > { %6291 = vst [vmem:[#allocation2 + $0x1c8] sm:$0x3] %v6290_v39  ;;  %v6235_v15 = vrot.slane %v6233_v0, 7  ;;  %v14400_v63 = vsel %vm16517_vm4, %v6340_v38, %v6342_v30  ;;  %v14403_v9 = vsel %vm16518_vm9, %v6342_v30, %v6344_v11  ;;  %v16065_v38 = vrot.slane %v14233_v24, 1  ;;  %v14459_v11 = vld [vmem:[#allocation2 + $0xd0] sm:$0xff]  ;;  %vm16528_vm5 = vmmov %vm16523_vm0  ;;  %v14506_v30 = vld [vmem:[#allocation2 + $0x60] sm:$0xff] }
 0x3a7   : > { %6381 = vst [vmem:[#allocation2 + $0x1a0] sm:$0xff] %v14400_v63  ;;  %6382 = vst [vmem:[#allocation2 + $0x1b8] sm:$0xff] %v14403_v9  ;;  %v6433_v16 = vor.u32 %v6432_v43, %v6233_v0  ;;  %v6437_v55 = vsel %vm16519_vm15, %v6432_v43, %v6436_v2  ;;  %v16064_v34 = vrot.slane %v14400_v63, 1  ;;  %v14481_v62 = vsel %vm16528_vm5, %v16059_v28, %v7336_v1  ;;  %v14510_v39 = vld [vmem:[#allocation2 + $0x78] sm:$0xff]  ;;  %v14514_v43 = vld [vmem:[#allocation2 + $0xb0] sm:$0xff] }
 0x3a8   : > { %v6236_v6 = vor.u32 %v6235_v15, %v6232_v53  ;;  %6476 = vst [vmem:[#allocation2 + $0x1c0] sm:$0xff] %v6437_v55  ;;  %v14433_v50 = vsel %vm16524_vm2, %v7356_v54, %v16065_v38  ;;  %16529 = vst [vmem:[#allocation7_spill] sm:$0xff] %v14481_v62  ;;  %v7354_v31 = vrot.slane %v14455_v51, 1  ;;  %v7360_v21 = vrot.slane %v14457_v46, 1  ;;  %v14512_v53 = vld [vmem:[#allocation2 + $0x98] sm:$0xff]  ;;  %v14553_v28 = vld [vmem:[#allocation2 + $0x140] sm:$0xff] }
 0x3a9   : > { %v14412_v61 = vsel %vm16520_vm3, %v14311_v57, %v6433_v16  ;;  %6863 = vmatmul.mubr.bf16.gmra.mrb[36].mxu1 %v14218_v26  ;;  %v14437_v57 = vpop.f32.mrb[36].mxu0  ;;  %vm16530_vm13 = vmmov %vm16523_vm0  ;;  %v16058_v15 = vrot.slane %v14506_v30, 2  ;;  %v16060_v16 = vrot.slane %v14508_v42, 2  ;;  %v16057_v55 = vrot.slane %v14510_v39, 2 }
 0x3aa   : > { %v14417_v47 = vsel %vm16521_vm8, %v14324_v48, %v6236_v6  ;;  %v14420_v18 = vsel %vm16522_vm12, %v6236_v6, %v6245_v32  ;;  %6475 = vst [vmem:[#allocation2 + $0x1a8] sm:$0xff] %v14412_v61  ;;  %6870 = vmatprep.mubr.bf16.mxu1 %v14255_v29  ;;  %v6770_v48 = vpop.f32.mrb[37].mxu0  ;;  %v16062_v29 = vrot.slane %v14403_v9, 1  ;;  %v14487_v40 = vsel %vm16530_vm13, %v7336_v1, %v7342_v20  ;;  %vm16532_vm10 = vmmov %vm16523_vm0  ;;  %v14519_v6 = vld [vmem:[#allocation2 + $0xe0] sm:$0xff] }
 0x3ab   : > { %6287 = vst [vmem:[#allocation2 + $0x198] sm:$0xff] %v14417_v47  ;;  %6288 = vst [vmem:[#allocation2 + $0x1b0] sm:$0xff] %v14420_v18  ;;  %v14444_v13 = vpop.f32.mrb[38].mxu0  ;;  %v16063_v26 = vrot.slane %v14417_v47, 1  ;;  %v16061_v41 = vrot.slane %v14420_v18, 1  ;;  %v16056_v32 = vrot.slane %v14459_v11, 1  ;;  %v14491_v2 = vsel %vm16532_vm10, %v7342_v20, %v7348_v59 }
 0x3ac   : > { %16525 = vst [vmem:[#allocation12_spill] sm:$0xff] %v14444_v13  ;;  %v6773_v49 = vpop.f32.mrb[39].mxu0  ;;  %16531 = vst [vmem:[#allocation13_spill] sm:$0xff] %v14487_v40  ;;  %v8280_v54 = vrot.slane %v14512_v53, 2  ;;  %v14524_v48 = vld [vmem:[#allocation2 + $0xf8] sm:$0xff]  ;;  %vm16540_vm4 = vcmask 1045504  }
 0x3ad   : > { %16533 = vst [vmem:[#allocation14_spill] sm:$0xff] %v14491_v2  ;;  %vm16534_vm7 = vmmov %vm16523_vm0  ;;  %v14526_v49 = vld [vmem:[#allocation2 + $0xf0] sm:$0xff]  ;;  %v14533_v1 = vsel %vm16540_vm4, %v16058_v15, %v16057_v55  ;;  %v16068_v55 = vrot.slane %v14519_v6, 2 }
 0x3ae   : > { %v14494_v25 = vsel %vm16534_vm7, %v7348_v59, %v7354_v31  ;;  %vm16536_vm11 = vmmov %vm16523_vm0  ;;  %16541 = vst [vmem:[#allocation9_spill] sm:$0xff] %v14533_v1  ;;  %v16067_v59 = vrot.slane %v14514_v43, 2 }
 0x3af   : > { %16535 = vst [vmem:[#allocation8_spill] sm:$0xff] %v14494_v25  ;;  %v14497_v14 = vsel %vm16536_vm11, %v7354_v31, %v7360_v21  ;;  %vm16538_vm14 = vmmov %vm16523_vm0  ;;  %v14543_v31 = vld [vmem:[#allocation2 + $0x110] sm:$0xff] }
 0x3b0   : > { %16537 = vst [vmem:[#allocation17_spill] sm:$0xff] %v14497_v14  ;;  %v14502_v0 = vsel %vm16538_vm14, %v7360_v21, %v16056_v32  ;;  %vm16542_vm9 = vmmov %vm16540_vm4  ;;  %v14545_v21 = vld [vmem:[#allocation2 + $0x108] sm:$0xff] }
 0x3b1   : > { %6871 = vmatmul.mubr.bf16.gmra.mrb[40].mxu1 %v14291_v35  ;;  %v14466_v35 = vsel %vm16526_vm6, %v16064_v34, %v16062_v29  ;;  %16539 = vst [vmem:[#allocation15_spill] sm:$0xff] %v14502_v0  ;;  %v14539_v20 = vsel %vm16542_vm9, %v16060_v16, %v8280_v54  ;;  %v14547_v32 = vld [vmem:[#allocation2 + $0x128] sm:$0xff]  ;;  %v14555_v16 = vld [vmem:[#allocation2 + $0x138] sm:$0xff]  ;;  %vm16544_vm15 = vmmov %vm16540_vm4  ;;  %v8302_v29 = vrot.slane %v14526_v49, 2  ;;  %v8322_v0 = vrot.slane %v14553_v28, 2 }
 0x3b2   : > { %6878 = vmatprep.mubr.bf16.mxu1 %v14260_v27  ;;  %v14473_v27 = vsel %vm16527_vm1, %v16063_v26, %v16061_v41  ;;  %16543 = vst [vmem:[#allocation30_spill] sm:$0xff] %v14539_v20  ;;  %v8304_v41 = vrot.slane %v14524_v48, 2  ;;  %v14564_v26 = vld [vmem:[#allocation2 + $0x158] sm:$0xff]  ;;  %v14566_v34 = vld [vmem:[#allocation2 + $0x150] sm:$0xff]  ;;  %vm16547_vm3 = vmmov %vm16540_vm4  ;;  %v8316_v20 = vrot.slane %v14547_v32, 2 }
 0x3b3   : > { %16546 = vst [vmem:[#allocation16_spill] sm:$0xff] %v14564_v26  ;;  %vm16549_vm8 = vmmov %vm16547_vm3  ;;  %v8326_v25 = vrot.slane %v14566_v34, 2 }
 0x3b4   : > { %v14571_v38 = vsel %vm16547_vm3, %v16068_v55, %v8304_v41  ;;  %v8320_v55 = vrot.slane %v14555_v16, 2  ;;  %vm16552_vm12 = vmmov %vm16547_vm3 }
 0x3b5   : > { %16548 = vst [vmem:[#allocation24_spill] sm:$0xff] %v14571_v38  ;;  %v14586_v38 = vld [vmem:[#allocation2 + $0x180] sm:$0xff]  ;;  %vm16554_vm0 = vmmov %vm16547_vm3 }
 0x3b6   : > { %16551 = vst [vmem:[#allocation22_spill] sm:$0xff] %v14586_v38  ;;  %vm16556_vm2 = vmmov %vm16554_vm0 }
 0x3b7   : > { %vm16558_vm6 = vmmov %vm16554_vm0 }
 0x3b8   : > { %vm16560_vm1 = vmmov %vm16554_vm0 }
 0x3b9   : > { %6879 = vmatmul.mubr.bf16.gmra.mrb[44].mxu1 %v14295_v5  ;;  %v14521_v5 = vld [vmem:[#allocation2 + $0xd8] sm:$0xff]  ;;  %v14603_v62 = vsel %vm16560_vm1, %v8316_v20, %v8322_v0  ;;  %vm16562_vm5 = vmmov %vm16554_vm0 }
 0x3ba   : > { %6886 = vmatprep.mubr.bf16.mxu1 %v14339_v4  ;;  %v16069_v15 = vrot.slane %v14521_v5, 2  ;;  %16561 = vst [vmem:[#allocation35_spill] sm:$0xff] %v14603_v62  ;;  %vm16564_vm13 = vmmov %vm16554_vm0 }
 0x3bb   : > { %vm16566_vm10 = vmmov %vm16554_vm0 }
 0x3bc   : > { %v14576_v3 = vsel %vm16549_vm8, %v16069_v15, %v8302_v29  ;;  %vm16568_vm7 = vmmov %vm16554_vm0 }
 0x3bd   : > { %16550 = vst [vmem:[#allocation32_spill] sm:$0xff] %v14576_v3  ;;  %v16070_v3 = vrot.slane %v14564_v26, 2  ;;  %vm16570_vm11 = vmmov %vm16554_vm0 }
 0x3be   : > { %vm16577_vm14 = vmmov %vm16554_vm0 }
 0x3bf   : > { %vm16579_vm4 = vmmov %vm16554_vm0 }
 0x3c0   : > { %vm16581_vm9 = vmmov %vm16554_vm0 }
 0x3c1   : > { %6887 = vmatmul.mubr.bf16.gmra.mrb[48].mxu1 %v14374_v10  ;;  %v14551_v10 = vld [vmem:[#allocation2 + $0x120] sm:$0xff]  ;;  %vm16585_vm3 = vmmov %vm16554_vm0 }
 0x3c2   : > { %6894 = vmatprep.mubr.bf16.mxu1 %v14344_v52  ;;  %v14560_v52 = vsel %vm16544_vm15, %v8280_v54, %v16067_v59  ;;  %v8310_v54 = vrot.slane %v14543_v31, 2  ;;  %v8308_v59 = vrot.slane %v14545_v21, 2  ;;  %v8314_v1 = vrot.slane %v14551_v10, 2  ;;  %vm16583_vm15 = vmmov %vm16554_vm0 }
 0x3c3   : > { %16545 = vst [vmem:[#allocation20_spill] sm:$0xff] %v14560_v52  ;;  %v14580_v52 = vld [vmem:[#allocation2 + $0x168] sm:$0xff]  ;;  %vm16587_vm8 = vmmov %vm16554_vm0 }
 0x3c4   : > { %v14589_v14 = vsel %vm16552_vm12, %v8304_v41, %v8310_v54  ;;  %v14592_v15 = vsel %vm16554_vm0, %v8302_v29, %v8308_v59  ;;  %v14597_v2 = vsel %vm16556_vm2, %v8310_v54, %v8316_v20  ;;  %v14600_v40 = vsel %vm16558_vm6, %v8308_v59, %v8314_v1  ;;  %vm16589_vm12 = vmmov %vm16554_vm0 }
 0x3c5   : > { %16553 = vst [vmem:[#allocation18_spill] sm:$0xff] %v14589_v14  ;;  %16555 = vst [vmem:[#allocation34_spill] sm:$0xff] %v14592_v15  ;;  %v14606_v13 = vsel %vm16562_vm5, %v8314_v1, %v8320_v55  ;;  %v14612_v29 = vsel %vm16564_vm13, %v8322_v0, %v16070_v3  ;;  %v14615_v41 = vsel %vm16566_vm10, %v8320_v55, %v8326_v25  ;;  %v8332_v54 = vrot.slane %v14580_v52, 2  ;;  %v14628_v1 = vld [vmem:[#allocation2 + $0x118] sm:$0xff]  ;;  %v14630_v0 = vld [vmem:[#allocation2 + $0x130] sm:$0xff] }
 0x3c6   : > { %16557 = vst [vmem:[#allocation23_spill] sm:$0xff] %v14597_v2  ;;  %16559 = vst [vmem:[#allocation19_spill] sm:$0xff] %v14600_v40  ;;  %v16071_v20 = vrot.slane %v14586_v38, 2  ;;  %v14632_v55 = vld [vmem:[#allocation2 + $0x148] sm:$0xff]  ;;  %v14635_v3 = vld [vmem:[#allocation2 + $0x160] sm:$0xff]  ;;  %vm16591_vm0 = vcmask 1046528  }
 0x3c7   : > { %16563 = vst [vmem:[#allocation26_spill] sm:$0xff] %v14606_v13  ;;  %16565 = vst [vmem:[#allocation21_spill] sm:$0xff] %v14612_v29  ;;  %v14621_v59 = vsel %vm16568_vm7, %v8326_v25, %v8332_v54  ;;  %v14640_v25 = vld [vmem:[#allocation2 + $0x190] sm:$0xff]  ;;  %v8324_v29 = vrot.slane %v14632_v55, 2  ;;  %v8330_v13 = vrot.slane %v14635_v3, 2  ;;  %v11639_v14 = vld [vmem:[%s15955_s4 + $0xc0] sm:$0xff]  }
 0x3c8   : > { %16567 = vst [vmem:[#allocation36_spill] sm:$0xff] %v14615_v41  ;;  %16569 = vst [vmem:[#allocation29_spill] sm:$0xff] %v14621_v59  ;;  %v14638_v41 = vld [vmem:[#allocation2 + $0x178] sm:$0xff]  ;;  %v16075_v59 = vrot.slane %v14628_v1, 2  ;;  %v8342_v15 = vrot.slane %v14640_v25, 2 }
 0x3c9   : > { %6895 = vmatmul.mubr.bf16.gmra.mrb[52].mxu1 %v14378_v7  ;;  %v14626_v7 = vsel %vm16570_vm11, %v8332_v54, %v16071_v20  ;;  %16572 = vst [vmem:[#allocation39_spill] sm:$0xff] %v14630_v0  ;;  %16573 = vst [vmem:[#allocation37_spill] sm:$0xff] %v14632_v55  ;;  %v14643_v54 = vld [vmem:[#allocation2 + $0x1a8] sm:$0xff]  ;;  %v14645_v20 = vld [vmem:[#allocation2 + $0x1c0] sm:$0xff]  ;;  %v8336_v2 = vrot.slane %v14638_v41, 2  ;;  %v14664_v55 = vsel %vm16581_vm9, %v8324_v29, %v8330_v13 }
 0x3ca   : > { %6902 = vmatprep.mubr.bf16.mxu1 %v14400_v63  ;;  %16571 = vst [vmem:[#allocation25_spill] sm:$0xff] %v14626_v7  ;;  %16574 = vst [vmem:[#allocation27_spill] sm:$0xff] %v14635_v3  ;;  %v8318_v7 = vrot.slane %v14630_v0, 2  ;;  %v8348_v3 = vrot.slane %v14643_v54, 2  ;;  %v16077_v0 = vrot.slane %v14645_v20, 2 }
 0x3cb   : > { %16575 = vst [vmem:[#allocation40_spill] sm:$0xff] %v14640_v25  ;;  %16576 = vst [vmem:[#allocation38_spill] sm:$0xff] %v14645_v20 }
 0x3cc   : > { %v14653_v62 = vsel %vm16577_vm14, %v16075_v59, %v8318_v7  ;;  %v14656_v40 = vsel %vm16579_vm4, %v8318_v7, %v8324_v29  ;;  %16582 = vst [vmem:[#allocation42_spill] sm:$0xff] %v14664_v55  ;;  %v14669_v59 = vsel %vm16583_vm15, %v8330_v13, %v8336_v2  ;;  %v14672_v7 = vsel %vm16585_vm3, %v8336_v2, %v8342_v15  ;;  %v11640_v13 = vld [vmem:[%s15955_s4 + $0xc8] sm:$0xff]   ;;  %v11641_v2 = vld [vmem:[%s15955_s4 + $0xd0] sm:$0xff]   ;;  %vm16592_vm2 = vmmov %vm16591_vm0 }
 0x3cd   : > { %16578 = vst [vmem:[#allocation28_spill] sm:$0xff] %v14653_v62  ;;  %16580 = vst [vmem:[#allocation5_spill] sm:$0xff] %v14656_v40  ;;  %v6486_v40 = vld [vmem:[#allocation2 + $0x28] sm:$0xff]  ;;  %v14675_v62 = vsel %vm16587_vm8, %v8342_v15, %v8348_v3  ;;  %v14680_v25 = vsel %vm16589_vm12, %v8348_v3, %v16077_v0  ;;  %v11642_v3 = vld [vmem:[%s15955_s4 + $0xd8] sm:$0xff]  }
 0x3ce   : > { %16584 = vst [vmem:[#allocation41_spill] sm:$0xff] %v14669_v59  ;;  %16586 = vst [vmem:[#allocation31_spill] sm:$0xff] %v14672_v7  ;;  %v11648_v15 = vld [vmem:[%s15955_s4 + $0x108] sm:$0xff]   ;;  %v11649_v29 = vld [vmem:[%s15955_s4 + $0x110] sm:$0xff]  }
 0x3cf   : > { %16588 = vst [vmem:[#allocation44_spill] sm:$0xff] %v14675_v62  ;;  %16590 = vst [vmem:[#allocation43_spill] sm:$0xff] %v14680_v25 }
 0x3d0   : > { %vm16593_vm6 = vmmov %vm16591_vm0 }
 0x3d1   : > { %6903 = vmatmul.mubr.bf16.gmra.mrb[56].mxu1 %v14417_v47  ;;  %vm16594_vm1 = vmmov %vm16591_vm0 }
 0x3d2   : > { %10893 = vmatprep.mubr.bf16.mxu1 %v14141_v22  ;;  %vm16595_vm5 = vmmov %vm16591_vm0 }
 0x3d3   : > { %vm16596_vm13 = vmmov %vm16591_vm0 }
 0x3d4   : > { %vm16597_vm10 = vmmov %vm16591_vm0 }
 0x3d5   : > { %vm16598_vm7 = vmmov %vm16591_vm0 }
 0x3d6   : > { %vm16599_vm11 = vmmov %vm16591_vm0 }
 0x3d7   : > { %vm16601_vm14 = vmmov %vm16591_vm0 }
 0x3d8   : > { %vm16602_vm4 = vmmov %vm16591_vm0 }
 0x3d9   : > { %10894 = vmatmul.mubr.bf16.vlgmr.msra.gmra.mrb[60].mxu1 %v6486_v40  ;;  %v11643_v40 = vld [vmem:[%s15955_s4 + $0xe0] sm:$0xff]   ;;  %vm16603_vm9 = vmmov %vm16591_vm0 }
 0x3da   : > { %7633 = vmatpush1.bf16.msra.mxu1 %v11639_v14  ;;  %10897 = vmatprep.mubr.bf16.mxu1 %v14440_v17  ;;  %v14721_v14 = vld [vmem:[#allocation2 + $0xe8] sm:$0xff]  ;;  %vm16604_vm15 = vmmov %vm16591_vm0 }
 0x3db   : > { %7634 = vmatprep.subr.bf16.mxu1 %v14141_v22  ;;  %vm16606_vm3 = vmmov %vm16591_vm0 }
 0x3dc   : > { %vm16607_vm8 = vmmov %vm16591_vm0 }
 0x3dd   : > { %vm16608_vm12 = vmmov %vm16591_vm0 }
 0x3de   : > { %7635 = vmatpush1.bf16.msra.mxu1 %v11640_v13  ;;  %v11650_v13 = vld [vmem:[%s15955_s4 + $0x118] sm:$0xff]  }
 0x3df   : > { %7636 = vmatprep.subr.bf16.mxu1 %v14141_v22 }
 0x3e1   : > { %10898 = vmatmul.mubr.bf16.gmra.mrb[64].mxu1 %v14442_v23  ;;  %v11644_v23 = vld [vmem:[%s15955_s4 + $0xe8] sm:$0xff]  }
 0x3e2   : > { %10901 = vmatprep.mubr.bf16.mxu1 %v14447_v36  ;;  %7637 = vmatpush1.bf16.msra.mxu1 %v11641_v2  ;;  %v11645_v36 = vld [vmem:[%s15955_s4 + $0xf0] sm:$0xff]   ;;  %v11651_v2 = vld [vmem:[%s15955_s4 + $0x120] sm:$0xff]  }
 0x3e3   : > { %7638 = vmatprep.subr.bf16.mxu1 %v14141_v22 }
 0x3e6   : > { %7639 = vmatpush1.bf16.msra.mxu1 %v11642_v3  ;;  %v11654_v3 = vld [vmem:[%s15955_s4 + $0x138] sm:$0xff]  }
 0x3e7   : > { %7640 = vmatprep.subr.bf16.mxu1 %v14141_v22 }
 0x3e9   : > { %10902 = vmatmul.mubr.bf16.gmra.mrb[68].mxu1 %v14453_v58  ;;  %v11646_v58 = vld [vmem:[%s15955_s4 + $0xf8] sm:$0xff]  }
 0x3ea   : > { %10905 = vmatprep.mubr.bf16.mxu1 %v14455_v51  ;;  %7641 = vmatpush1.bf16.msra.mxu1 %v11643_v40  ;;  %v11647_v51 = vld [vmem:[%s15955_s4 + $0x100] sm:$0xff]  }
 0x3eb   : > { %7642 = vmatprep.subr.bf16.mxu1 %v14141_v22  ;;  %v11655_v40 = vld [vmem:[%s15955_s4 + $0x140] sm:$0xff]  }
 0x3ee   : > { %7643 = vmatpush1.bf16.msra.mxu1 %v11644_v23 }
 0x3ef   : > { %7644 = vmatprep.subr.bf16.mxu1 %v14141_v22 }
 0x3f1   : > { %10906 = vmatmul.mubr.bf16.gmra.mrb[72].mxu1 %v14457_v46  ;;  %v14724_v46 = vld [vmem:[#allocation2 + $0x100] sm:$0xff] }
 0x3f2   : > { %10909 = vmatprep.mubr.bf16.mxu1 %v14459_v11  ;;  %7645 = vmatpush1.bf16.msra.mxu1 %v11645_v36 }
 0x3f3   : > { %7646 = vmatprep.subr.bf16.mxu1 %v14141_v22 }
 0x3f6   : > { %7647 = vmatpush1.bf16.msra.mxu1 %v11646_v58  ;;  %v7163_v58 = vld [vmem:[#allocation2 + $0x30] sm:$0xff] }
 0x3f7   : > { %7648 = vmatprep.subr.bf16.mxu1 %v14141_v22 }
 0x3f9   : > { %10910 = vmatmul.mubr.bf16.gmra.mrb[76].mxu1 %v14721_v14 }
 0x3fa   : > { %10913 = vmatprep.mubr.bf16.mxu1 %v14724_v46  ;;  %7649 = vmatpush1.bf16.msra.mxu1 %v11647_v51  ;;  %v14766_v51 = vld [vmem:[#allocation2 + $0x50] sm:$0xff] }
 0x3fb   : > { %7650 = vmatprep.subr.bf16.mxu1 %v14141_v22 }
 0x3fe   : > { %7651 = vmatpush1.bf16.msra.mxu1 %v11648_v15 }
 0x3ff   : > { %7652 = vmatprep.subr.bf16.mxu1 %v14141_v22 }
 0x401   : > { %10914 = vmatmul.mubr.bf16.gmra.mrb[80].mxu1 %v14222_v8  ;;  %v11653_v8 = vld [vmem:[%s15955_s4 + $0x130] sm:$0xff]  }
 0x402   : > { %10917 = vmatprep.mubr.bf16.mxu1 %v14207_v45  ;;  %7653 = vmatpush1.bf16.msra.mxu1 %v11649_v29  ;;  %v11652_v45 = vld [vmem:[%s15955_s4 + $0x128] sm:$0xff]   ;;  %v7324_v29 = vrot.slane %v7163_v58, 1  ;;  %v7338_v58 = vrot.slane %v14506_v30, 1 }
 0x403   : > { %7654 = vmatprep.subr.bf16.mxu1 %v14141_v22 }
 0x406   : > { %7655 = vmatpush1.bf16.msra.mxu1 %v11650_v13  ;;  %v7334_v13 = vrot.slane %v14766_v51, 1 }
 0x407   : > { %7656 = vmatprep.subr.bf16.mxu1 %v14141_v22 }
 0x409   : > { %10918 = vmatmul.mubr.bf16.gmra.mrb[84].mxu1 %v14305_v56  ;;  %v7164_v56 = vld [vmem:[#allocation2 + $0x38] sm:$0xff] }
 0x40a   : > { %10921 = vmatprep.mubr.bf16.mxu1 %v14284_v44  ;;  %7657 = vmatpush1.bf16.msra.mxu1 %v11651_v2  ;;  %v7161_v44 = vld [vmem:[#allocation2 + $0x20] sm:$0xfe]  ;;  %v7327_v36 = vrot.slane %v7164_v56, 1  ;;  %v11656_v2 = vld [vmem:[%s15955_s4 + $0x148] sm:$0xff]   ;;  %v11657_v56 = vld [vmem:[%s15955_s4 + $0x150] sm:$0xff]  }
 0x40b   : > { %7658 = vmatprep.subr.bf16.mxu1 %v14141_v22  ;;  %v7326_v23 = vrot.slane %v7161_v44, 1  ;;  %v7170_v44 = vld [vmem:[#allocation2 + $0x68] sm:$0xff] }
 0x40e   : > { %7659 = vmatpush1.bf16.msra.mxu1 %v11652_v45 }
 0x40f   : > { %7660 = vmatprep.subr.bf16.mxu1 %v14141_v22 }
 0x411   : > { %10922 = vmatmul.mubr.bf16.gmra.mrb[88].mxu1 %v14386_v33  ;;  %v7160_v33 = vld [vmem:[#allocation2 + $0x18] sm:$0xfe] }
 0x412   : > { %10925 = vmatprep.mubr.bf16.mxu1 %v14367_v19  ;;  %7661 = vmatpush1.bf16.msra.mxu1 %v11653_v8  ;;  %v7328_v19 = vsel %vm16591_vm0, %v7326_v23, %v7327_v36  ;;  %v7323_v15 = vrot.slane %v7160_v33, 1  ;;  %v7166_v8 = vld [vmem:[#allocation2 + $0x48] sm:$0xff]  ;;  %v7340_v23 = vrot.slane %v7170_v44, 1 }
 0x413   : > { %7662 = vmatprep.subr.bf16.mxu1 %v14141_v22 }
 0x414   : > { %v7325_v45 = vsel %vm16592_vm2, %v7323_v15, %v7324_v29  ;;  %v7346_v15 = vrot.slane %v14508_v42, 1  ;;  %vm16609_vm2 = vmmov %vm16591_vm0 }
 0x416   : > { %7663 = vmatpush1.bf16.msra.mxu1 %v11654_v3  ;;  %v7332_v3 = vrot.slane %v7166_v8, 1  ;;  %v7347_v44 = vsel %vm16597_vm10, %v7340_v23, %v7346_v15  ;;  %vm16614_vm10 = vmmov %vm16591_vm0 }
 0x417   : > { %10929 = vmatprep.subr.bf16.mxu1 %v11655_v40 }
 0x418   : > { %v7333_v33 = vsel %vm16594_vm1, %v7324_v29, %v7332_v3  ;;  %v11660_v29 = vld [vmem:[%s15955_s4 + $0x168] sm:$0xff]   ;;  %vm16611_vm1 = vmmov %vm16591_vm0 }
 0x419   : > { %10926 = vmatmul.mubr.bf16.gmra.mrb[92].mxu1 %v14412_v61  ;;  %v7335_v61 = vsel %vm16593_vm6, %v7327_v36, %v7334_v13  ;;  %v11659_v36 = vld [vmem:[%s15955_s4 + $0x160] sm:$0xff]   ;;  %vm16610_vm6 = vmmov %vm16591_vm0 }
 0x41a   : > { %7664 = vmatprep.mubr.bf16.mxu1 %v7328_v19  ;;  %v11658_v19 = vld [vmem:[%s15955_s4 + $0x158] sm:$0xff]  }
 0x421   : > { %7665 = vmatmul.mubr.bf16.vlgmr.msra.gmra.mrb[96].mxu1 %v7325_v45 }
 0x422   : > { %10930 = vmatpush3.bf16.msra.mxu1 %v11655_v40  ;;  %7672 = vmatprep.mubr.bf16.mxu1 %v7335_v61  ;;  %v7341_v40 = vsel %vm16595_vm5, %v7334_v13, %v7340_v23  ;;  %v7339_v61 = vsel %vm16596_vm13, %v7332_v3, %v7338_v58  ;;  %vm16612_vm5 = vmmov %vm16591_vm0 }
 0x423   : > { %10931 = vmatprep.subr.bf16.mxu1 %v11656_v2  ;;  %vm16613_vm13 = vmmov %vm16591_vm0 }
 0x426   : > { %10932 = vmatpush3.bf16.msra.mxu1 %v11656_v2  ;;  %v14787_v2 = vpop.f32.mrb[40].mxu0 }
 0x427   : > { %10933 = vmatprep.subr.bf16.mxu1 %v11657_v56  ;;  %v6778_v45 = vpop.f32.mrb[41].mxu0 }
 0x428   : > { %v14792_v13 = vpop.f32.mrb[42].mxu0  ;;  %v7352_v45 = vrot.slane %v14512_v53, 1 }
 0x429   : > { %7673 = vmatmul.mubr.bf16.gmra.mrb[100].mxu1 %v7333_v33  ;;  %v6781_v8 = vpop.f32.mrb[43].mxu0  ;;  %v7344_v33 = vrot.slane %v14510_v39, 1 }
 0x42a   : > { %7680 = vmatprep.mubr.bf16.mxu1 %v7341_v40  ;;  %10934 = vmatpush3.bf16.msra.mxu1 %v11657_v56  ;;  %v11661_v56 = vld [vmem:[%s15955_s4 + $0x170] sm:$0xff]   ;;  %v14803_v0 = vpop.f32.mrb[44].mxu0  ;;  %v7353_v53 = vsel %vm16599_vm11, %v7346_v15, %v7352_v45  ;;  %vm16616_vm11 = vmmov %vm16591_vm0 }
 0x42b   : > { %10935 = vmatprep.subr.bf16.mxu1 %v11658_v19  ;;  %v6786_v23 = vpop.f32.mrb[45].mxu0 }
 0x42c   : > { %v14810_v8 = vpop.f32.mrb[46].mxu0  ;;  %v7358_v23 = vrot.slane %v14514_v43, 1 }
 0x42d   : > { %v6789_v25 = vpop.f32.mrb[47].mxu0 }
 0x42e   : > { %10936 = vmatpush3.bf16.msra.mxu1 %v11658_v19  ;;  %v14799_v19 = vpop.f32.mrb[0].mxu1  ;;  %v7359_v15 = vsel %vm16602_vm4, %v7352_v45, %v7358_v23  ;;  %vm16619_vm4 = vmmov %vm16591_vm0 }
 0x42f   : > { %10937 = vmatprep.subr.bf16.mxu1 %v11659_v36  ;;  %v6794_v40 = vpop.f32.mrb[1].mxu1 }
 0x430   : > { %v14805_v3 = vpop.f32.mrb[2].mxu1 }
 0x431   : > { %7681 = vmatmul.mubr.bf16.gmra.mrb[104].mxu1 %v7339_v61  ;;  %v6797_v61 = vpop.f32.mrb[3].mxu1 }
 0x432   : > { %7688 = vmatprep.mubr.bf16.mxu1 %v7347_v44  ;;  %10938 = vmatpush3.bf16.msra.mxu1 %v11659_v36  ;;  %v11662_v36 = vld [vmem:[%s15955_s4 + $0x178] sm:$0xff]   ;;  %v7345_v44 = vsel %vm16598_vm7, %v7338_v58, %v7344_v33  ;;  %v14814_v40 = vpop.f32.mrb[4].mxu1  ;;  %v16600_v58 = vrot.slane %v14057_v37, 1  ;;  %vm16615_vm7 = vmmov %vm16591_vm0 }
 0x433   : > { %10939 = vmatprep.subr.bf16.mxu1 %v11660_v29 }
 0x434   : > { %v7351_v25 = vsel %vm16601_vm14, %v7344_v33, %v16600_v58  ;;  %v7370_v33 = vrot.slane %v14519_v6, 1  ;;  %vm16618_vm14 = vmmov %vm16591_vm0 }
 0x436   : > { %10940 = vmatpush3.bf16.msra.mxu1 %v11660_v29  ;;  %v6802_v29 = vpop.f32.mrb[5].mxu1 }
 0x437   : > { %10941 = vmatprep.subr.bf16.mxu1 %v11661_v56  ;;  %v14817_v61 = vpop.f32.mrb[6].mxu1 }
 0x438   : > { %v6805_v62 = vpop.f32.mrb[7].mxu1 }
 0x439   : > { %7689 = vmatmul.mubr.bf16.gmra.mrb[108].mxu1 %v7345_v44 }
 0x43a   : > { %7696 = vmatprep.mubr.bf16.mxu1 %v7353_v53  ;;  %10942 = vmatpush3.bf16.msra.mxu1 %v11661_v56  ;;  %v14824_v56 = vpop.f32.mrb[8].mxu1  ;;  %v7364_v53 = vrot.slane %v14160_v60, 1 }
 0x43b   : > { %10943 = vmatprep.subr.bf16.mxu1 %v11662_v36  ;;  %v6810_v44 = vpop.f32.mrb[9].mxu1 }
 0x43c   : > { %v14827_v29 = vpop.f32.mrb[10].mxu1  ;;  %v7371_v60 = vsel %vm16604_vm15, %v7364_v53, %v7370_v33  ;;  %v16605_v44 = vrot.slane %v14233_v24, 1  ;;  %vm16622_vm15 = vmmov %vm16591_vm0 }
 0x43d   : > { %v6813_v7 = vpop.f32.mrb[11].mxu1 }
 0x43e   : > { %10944 = vmatpush3.bf16.msra.mxu1 %v11662_v36 }
 0x43f   : > { %8566 = vmatprep.subr.bf16.mxu1 %v14141_v22  ;;  %v7365_v22 = vsel %vm16603_vm9, %v7358_v23, %v7364_v53  ;;  %v7376_v23 = vrot.slane %v14524_v48, 1  ;;  %vm16620_vm9 = vmmov %vm16591_vm0 }
 0x441   : > { %7697 = vmatmul.mubr.bf16.gmra.mrb[112].mxu1 %v7351_v25 }
 0x442   : > { %7704 = vmatprep.mubr.bf16.mxu1 %v7359_v15 }
 0x444   : > { %v14831_v37 = vpop.f32.mrb[12].mxu1 }
 0x445   : > { %v6818_v62 = vpop.f32.mrb[13].mxu1 }
 0x446   : > { %v14834_v45 = vpop.f32.mrb[14].mxu1  ;;  %v7374_v62 = vrot.slane %v14526_v49, 1 }
 0x447   : > { %v6821_v36 = vpop.f32.mrb[15].mxu1 }
 0x449   : > { %7705 = vmatmul.mubr.bf16.gmra.mrb[116].mxu1 %v14426_v12  ;;  %v7368_v12 = vrot.slane %v14521_v5, 1 }
 0x44a   : > { %7712 = vmatprep.mubr.bf16.mxu1 %v7365_v22 }
 0x44b   : > { %v7369_v22 = vsel %vm16606_vm3, %v16605_v44, %v7368_v12  ;;  %vm16624_vm3 = vmmov %vm16591_vm0 }
 0x44c   : > { %v14838_v58 = vpop.f32.mrb[16].mxu1 }
 0x44d   : > { %v6826_v7 = vpop.f32.mrb[17].mxu1 }
 0x44e   : > { %v14842_v25 = vpop.f32.mrb[18].mxu1 }
 0x44f   : > { %v6829_v15 = vpop.f32.mrb[19].mxu1 }
 0x450   : > { %v7375_v15 = vsel %vm16608_vm12, %v7368_v12, %v7374_v62  ;;  %vm16628_vm12 = vmmov %vm16591_vm0 }
 0x451   : > { %7713 = vmatmul.mubr.bf16.gmra.mrb[120].mxu1 %v14433_v50  ;;  %v7377_v50 = vsel %vm16607_vm8, %v7370_v33, %v7376_v23  ;;  %v7380_v33 = vrot.slane %v14545_v21, 1  ;;  %vm16626_vm8 = vmmov %vm16591_vm0 }
 0x452   : > { %7720 = vmatprep.mubr.bf16.mxu1 %v7371_v60  ;;  %v7382_v60 = vrot.slane %v14543_v31, 1 }
 0x453   : > { %v7381_v31 = vsel %vm16609_vm2, %v7374_v62, %v7380_v33  ;;  %vm16638_vm2 = vmmov %vm16591_vm0 }
 0x454   : > { %v7383_v24 = vsel %vm16591_vm0, %v7376_v23, %v7382_v60  ;;  %v7386_v23 = vrot.slane %v14551_v10, 1 }
 0x459   : > { %7721 = vmatmul.mubr.bf16.gmra.mrb[124].mxu1 %v7369_v22 }
 0x45a   : > { %7728 = vmatprep.mubr.bf16.mxu1 %v7377_v50  ;;  %v7388_v50 = vrot.slane %v14547_v32, 1  ;;  %v7387_v32 = vsel %vm16611_vm1, %v7380_v33, %v7386_v23  ;;  %vm16641_vm1 = vmmov %vm16591_vm0 }
 0x45c   : > { %v14848_v53 = vpop.f32.mrb[20].mxu1 }
 0x45d   : > { %v6834_v36 = vpop.f32.mrb[21].mxu1 }
 0x45e   : > { %v14852_v7 = vpop.f32.mrb[22].mxu1 }
 0x45f   : > { %v6837_v48 = vpop.f32.mrb[23].mxu1 }
 0x460   : > { %v7389_v48 = vsel %vm16610_vm6, %v7382_v60, %v7388_v50  ;;  %v7392_v60 = vrot.slane %v14555_v16, 1  ;;  %vm16639_vm6 = vmmov %vm16591_vm0 }
 0x461   : > { %7729 = vmatmul.mubr.bf16.gmra.mrb[128].mxu1 %v7375_v15 }
 0x462   : > { %7736 = vmatprep.mubr.bf16.mxu1 %v7383_v24  ;;  %v7394_v24 = vrot.slane %v14553_v28, 1  ;;  %v7393_v28 = vsel %vm16613_vm13, %v7386_v23, %v7392_v60  ;;  %v14888_v23 = vld [vmem:[#allocation2 + $0x188] sm:$0xff]  ;;  %vm16647_vm13 = vmmov %vm16591_vm0 }
 0x463   : > { %16617 = vst [vmem:[#allocation33_spill] sm:$0xff] %v14888_v23 }
 0x464   : > { %v14856_v44 = vpop.f32.mrb[24].mxu1 }
 0x465   : > { %v6842_v22 = vpop.f32.mrb[25].mxu1 }
 0x466   : > { %v14860_v49 = vpop.f32.mrb[26].mxu1 }
 0x467   : > { %v6845_v36 = vpop.f32.mrb[27].mxu1 }
 0x468   : > { %v7395_v36 = vsel %vm16612_vm5, %v7388_v50, %v7394_v24  ;;  %v7398_v50 = vrot.slane %v14566_v34, 1  ;;  %v7412_v34 = vrot.slane %v14888_v23, 1  ;;  %v16621_v23 = vrot.slane %v14400_v63, 1  ;;  %vm16642_vm5 = vmmov %vm16591_vm0 }
 0x469   : > { %7737 = vmatmul.mubr.bf16.gmra.mrb[132].mxu1 %v7381_v31 }
 0x46a   : > { %7744 = vmatprep.mubr.bf16.mxu1 %v7389_v48  ;;  %v7400_v48 = vrot.slane %v14564_v26, 1  ;;  %v7399_v59 = vsel %vm16615_vm7, %v7392_v60, %v7398_v50  ;;  %vm16654_vm7 = vmmov %vm16591_vm0 }
 0x46c   : > { %v14864_v12 = vpop.f32.mrb[28].mxu1 }
 0x46d   : > { %v6850_v15 = vpop.f32.mrb[29].mxu1 }
 0x46e   : > { %v14868_v21 = vpop.f32.mrb[30].mxu1 }
 0x46f   : > { %v6853_v22 = vpop.f32.mrb[31].mxu1 }
 0x470   : > { %v7401_v22 = vsel %vm16614_vm10, %v7394_v24, %v7400_v48  ;;  %vm16648_vm10 = vmmov %vm16591_vm0 }
 0x471   : > { %7745 = vmatmul.mubr.bf16.gmra.mrb[136].mxu1 %v7387_v32 }
 0x472   : > { %7752 = vmatprep.mubr.bf16.mxu1 %v7395_v36  ;;  %v7406_v36 = vrot.slane %v14339_v4, 1 }
 0x474   : > { %v14872_v62 = vpop.f32.mrb[32].mxu1 }
 0x475   : > { %v6858_v31 = vpop.f32.mrb[33].mxu1 }
 0x476   : > { %v14876_v10 = vpop.f32.mrb[34].mxu1 }
 0x477   : > { %v6861_v15 = vpop.f32.mrb[35].mxu1 }
 0x478   : > { %v7407_v15 = vsel %vm16616_vm11, %v7400_v48, %v7406_v36  ;;  %v7410_v48 = vrot.slane %v14586_v38, 1  ;;  %v16623_v38 = vrot.slane %v14417_v47, 1  ;;  %v7214_v47 = vld [vmem:[#allocation2 + $0x1c8] sm:$0x1]  ;;  %vm16655_vm11 = vmmov %vm16591_vm0 }
 0x479   : > { %7753 = vmatmul.mubr.bf16.gmra.mrb[140].mxu1 %v7393_v28  ;;  %v7404_v28 = vrot.slane %v14580_v52, 1 }
 0x47a   : > { %7760 = vmatprep.mubr.bf16.mxu1 %v7401_v22 }
 0x47c   : > { %v14880_v33 = vpop.f32.mrb[36].mxu1 }
 0x47d   : > { %v6866_v32 = vpop.f32.mrb[37].mxu1 }
 0x47e   : > { %v14884_v16 = vpop.f32.mrb[38].mxu1 }
 0x47f   : > { %v6869_v31 = vpop.f32.mrb[39].mxu1 }
 0x480   : > { %v7405_v31 = vsel %vm16618_vm14, %v7398_v50, %v7404_v28  ;;  %vm16660_vm14 = vmmov %vm16591_vm0 }
 0x481   : > { %7761 = vmatmul.mubr.bf16.gmra.mrb[144].mxu1 %v7399_v59  ;;  %v7413_v59 = vsel %vm16619_vm4, %v7406_v36, %v7412_v34  ;;  %vm16661_vm4 = vmmov %vm16591_vm0 }
 0x482   : > { %7768 = vmatprep.mubr.bf16.mxu1 %v7407_v15 }
 0x484   : > { %v14890_v24 = vpop.f32.mrb[40].mxu1 }
 0x485   : > { %v6874_v22 = vpop.f32.mrb[41].mxu1 }
 0x486   : > { %v14894_v32 = vpop.f32.mrb[42].mxu1  ;;  %v7411_v22 = vsel %vm16620_vm9, %v7404_v28, %v7410_v48  ;;  %v7215_v28 = vld [vmem:[#allocation2 + $0x1d0] sm:$0x1]  ;;  %vm16666_vm9 = vmmov %vm16591_vm0 }
 0x487   : > { %v6877_v4 = vpop.f32.mrb[43].mxu1 }
 0x488   : > { %v7419_v4 = vsel %vm16622_vm15, %v7412_v34, %v16621_v23  ;;  %vm16667_vm15 = vcmask 1045504  }
 0x489   : > { %7769 = vmatmul.mubr.bf16.gmra.mrb[148].mxu1 %v7405_v31 }
 0x48a   : > { %7776 = vmatprep.mubr.bf16.mxu1 %v7413_v59 }
 0x48c   : > { %v14898_v60 = vpop.f32.mrb[44].mxu1 }
 0x48d   : > { %v6882_v15 = vpop.f32.mrb[45].mxu1 }
 0x48e   : > { %v14901_v55 = vpop.f32.mrb[46].mxu1  ;;  %v7417_v15 = vsel %vm16624_vm3, %v7410_v48, %v16623_v38  ;;  %v7162_v38 = vld [vmem:[#allocation2 + $0x28] sm:$0xfe]  ;;  %vm16668_vm3 = vmmov %vm16667_vm15 }
 0x48f   : > { %v6885_v52 = vpop.f32.mrb[47].mxu1 }
 0x491   : > { %7777 = vmatmul.mubr.bf16.gmra.mrb[152].mxu1 %v7411_v22  ;;  %v7430_v22 = vrot.slane %v7215_v28, 1 }
 0x492   : > { %7784 = vmatprep.mubr.bf16.mxu1 %v7419_v4  ;;  %v16625_v4 = vrot.slane %v14403_v9, 1  ;;  %v16627_v9 = vrot.slane %v14420_v18, 1 }
 0x494   : > { %v14907_v50 = vpop.f32.mrb[48].mxu1 }
 0x495   : > { %v6890_v36 = vpop.f32.mrb[49].mxu1 }
 0x496   : > { %v14909_v31 = vpop.f32.mrb[50].mxu1  ;;  %v7431_v36 = vsel %vm16626_vm8, %v16625_v4, %v7430_v22  ;;  %v16629_v22 = vrot.slane %v14440_v17, 1  ;;  %vm16669_vm8 = vmmov %vm16668_vm3 }
 0x497   : > { %v6893_v59 = vpop.f32.mrb[51].mxu1 }
 0x499   : > { %7785 = vmatmul.mubr.bf16.gmra.mrb[156].mxu1 %v7417_v15  ;;  %v7329_v15 = vrot.slane %v7162_v38, 1 }
 0x49a   : > { %7792 = vmatprep.mubr.bf16.mxu1 %v14466_v35  ;;  %v7428_v35 = vrot.slane %v7214_v47, 1  ;;  %v16630_v47 = vld [vmem:[#allocation12_spill] sm:$0xff] }
 0x49c   : > { %v14915_v52 = vpop.f32.mrb[52].mxu1 }
 0x49d   : > { %v6898_v63 = vpop.f32.mrb[53].mxu1 }
 0x49e   : > { %v14917_v23 = vpop.f32.mrb[54].mxu1  ;;  %v14930_v63 = vld [vmem:[%s15956_s5] ss:$0 sm:$0xff] }
 0x49f   : > { %v6901_v34 = vpop.f32.mrb[55].mxu1  ;;  %v6769_v4 = vadd.f32 %v14930_v63, %v14437_v57  ;;  %v6772_v38 = vadd.f32 %v14930_v63, %v16630_v47  ;;  %v6780_v18 = vadd.f32 %v14930_v63, %v14792_v13  ;;  %v11663_v57 = vld [vmem:[%s15955_s4 + $0x180] sm:$0xff]   ;;  %v11664_v13 = vld [vmem:[%s15955_s4 + $0x188] sm:$0xff]   ;;  %v6785_v47 = vadd.f32 %v14930_v63, %v14803_v0 }
 0x4a0   : > { %v7331_v34 = vsel %vm16591_vm0, %v7329_v15, %v16629_v22  ;;  %v16631_v22 = vld [vmem:[#allocation7_spill] sm:$0xff]  ;;  %vm16673_vm0 = vmmov %vm16668_vm3 }
 0x4a1   : > { %7793 = vmatmul.mubr.bf16.gmra.mrb[160].mxu1 %v14473_v27  ;;  %v7429_v27 = vsel %vm16628_vm12, %v16627_v9, %v7428_v35  ;;  %vm16671_vm12 = vmmov %vm16668_vm3 }
 0x4a2   : > { %7800 = vmatprep.mubr.bf16.mxu1 %v7431_v36  ;;  %v6777_v36 = vadd.f32 %v14930_v63, %v14787_v2 }
 0x4a4   : > { %v14923_v48 = vpop.f32.mrb[56].mxu1 }
 0x4a5   : > { %v6906_v59 = vpop.f32.mrb[57].mxu1 }
 0x4a6   : > { %v14925_v26 = vpop.f32.mrb[58].mxu1 }
 0x4a7   : > { %v6909_v28 = vpop.f32.mrb[59].mxu1 }
 0x4a9   : > { %7801 = vmatmul.mubr.bf16.gmra.mrb[164].mxu1 %v7429_v27 }
 0x4aa   : > { %10945 = vmatprep.mubr.bf16.mxu1 %v7331_v34  ;;  %v16632_v34 = vld [vmem:[#allocation13_spill] sm:$0xff] }
 0x4ac   : > { %v10895_v59 = vpop.f32.mrb[60].mxu1 }
 0x4ad   : > { %v14946_v35 = vadd.f32 %v10895_v59, %v6777_v36  ;;  %v6945_v28 = vpop.f32.mrb[61].mxu1  ;;  %v14964_v36 = vld [vmem:[#allocation2] sm:$0xff] }
 0x4ae   : > { %v14948_v17 = vadd.f32 %v6945_v28, %v6769_v4  ;;  %v10896_v15 = vpop.f32.mrb[62].mxu1  ;;  %v6793_v4 = vadd.f32 %v14930_v63, %v14799_v19  ;;  %v6796_v28 = vadd.f32 %v14930_v63, %v14805_v3  ;;  %v16634_v3 = vld [vmem:[#allocation8_spill] sm:$0xff] }
 0x4af   : > { %v14953_v9 = vadd.f32 %v10896_v15, %v6780_v18  ;;  %v6948_v2 = vpop.f32.mrb[63].mxu1  ;;  %v6788_v15 = vadd.f32 %v14930_v63, %v14810_v8  ;;  %v11666_v8 = vld [vmem:[%s15955_s4 + $0x198] sm:$0xff]  }
 0x4b0   : > { %v14955_v27 = vadd.f32 %v6948_v2, %v6772_v38  ;;  %v11665_v2 = vld [vmem:[%s15955_s4 + $0x190] sm:$0xff]  }
 0x4b1   : > { %10946 = vmatmul.mubr.bf16.vlgmr.msra.gmra.mrb[168].mxu1 %v16631_v22 }
 0x4b2   : > { %8567 = vmatpush1.bf16.msra.mxu1 %v11663_v57  ;;  %10949 = vmatprep.mubr.bf16.mxu1 %v16632_v34 }
 0x4b3   : > { %8568 = vmatprep.subr.bf16.mxu1 %v14964_v36 }
 0x4b4   : > { %v10899_v38 = vpop.f32.mrb[64].mxu1 }
 0x4b5   : > { %v14969_v59 = vadd.f32 %v10899_v38, %v6793_v4  ;;  %v6961_v18 = vpop.f32.mrb[65].mxu1  ;;  %v16633_v4 = vld [vmem:[#allocation14_spill] sm:$0xff]  ;;  %v6801_v38 = vadd.f32 %v14930_v63, %v14814_v40 }
 0x4b6   : > { %v14975_v57 = vadd.f32 %v6961_v18, %v6785_v47  ;;  %v10900_v19 = vpop.f32.mrb[66].mxu1  ;;  %8569 = vmatpush1.bf16.msra.mxu1 %v11664_v13  ;;  %v6809_v13 = vadd.f32 %v14930_v63, %v14824_v56  ;;  %v11667_v56 = vld [vmem:[%s15955_s4 + $0x1a0] sm:$0xff]  }
 0x4b7   : > { %v14980_v22 = vadd.f32 %v10900_v19, %v6796_v28  ;;  %v6964_v0 = vpop.f32.mrb[67].mxu1  ;;  %8570 = vmatprep.subr.bf16.mxu1 %v14964_v36 }
 0x4b8   : > { %v14983_v34 = vadd.f32 %v6964_v0, %v6788_v15  ;;  %v6812_v15 = vadd.f32 %v14930_v63, %v14827_v29  ;;  %v6804_v0 = vadd.f32 %v14930_v63, %v14817_v61  ;;  %v16636_v29 = vld [vmem:[#allocation15_spill] sm:$0xff]  ;;  %v11668_v61 = vld [vmem:[%s15955_s4 + $0x1a8] sm:$0xff]  }
 0x4b9   : > { %10950 = vmatmul.mubr.bf16.gmra.mrb[172].mxu1 %v16633_v4 }
 0x4ba   : > { %10953 = vmatprep.mubr.bf16.mxu1 %v16634_v3  ;;  %8571 = vmatpush1.bf16.msra.mxu1 %v11665_v2 }
 0x4bb   : > { %8572 = vmatprep.subr.bf16.mxu1 %v14964_v36 }
 0x4bc   : > { %v10903_v47 = vpop.f32.mrb[68].mxu1 }
 0x4bd   : > { %v14995_v18 = vadd.f32 %v10903_v47, %v6809_v13  ;;  %v6977_v28 = vpop.f32.mrb[69].mxu1  ;;  %v16635_v13 = vld [vmem:[#allocation17_spill] sm:$0xff] }
 0x4be   : > { %v14999_v19 = vadd.f32 %v6977_v28, %v6801_v38  ;;  %v10904_v2 = vpop.f32.mrb[70].mxu1  ;;  %8573 = vmatpush1.bf16.msra.mxu1 %v11666_v8  ;;  %v6825_v8 = vadd.f32 %v14930_v63, %v14838_v58  ;;  %v6817_v38 = vadd.f32 %v14930_v63, %v14831_v37  ;;  %v7372_v28 = vrot.slane %v14721_v14, 1  ;;  %v11669_v37 = vld [vmem:[%s15955_s4 + $0x1b0] sm:$0xff]  }
 0x4bf   : > { %v15006_v4 = vadd.f32 %v10904_v2, %v6812_v15  ;;  %v6980_v40 = vpop.f32.mrb[71].mxu1  ;;  %8574 = vmatprep.subr.bf16.mxu1 %v14964_v36  ;;  %v6820_v58 = vadd.f32 %v14930_v63, %v14834_v45  ;;  %v11670_v45 = vld [vmem:[%s15955_s4 + $0x1b8] sm:$0xff]  }
 0x4c0   : > { %v15009_v3 = vadd.f32 %v6980_v40, %v6804_v0  ;;  %v6828_v0 = vadd.f32 %v14930_v63, %v14842_v25 }
 0x4c1   : > { %10954 = vmatmul.mubr.bf16.gmra.mrb[176].mxu1 %v16635_v13 }
 0x4c2   : > { %10957 = vmatprep.mubr.bf16.mxu1 %v16636_v29  ;;  %8575 = vmatpush1.bf16.msra.mxu1 %v11667_v56  ;;  %v7378_v56 = vrot.slane %v14724_v46, 1  ;;  %v16637_v46 = vrot.slane %v14459_v11, 1  ;;  %v6833_v11 = vadd.f32 %v14930_v63, %v14848_v53  ;;  %v11671_v53 = vld [vmem:[%s15955_s4 + $0x1c0] sm:$0xff]  }
 0x4c3   : > { %8576 = vmatprep.subr.bf16.mxu1 %v14964_v36 }
 0x4c4   : > { %v10907_v47 = vpop.f32.mrb[72].mxu1  ;;  %v7373_v25 = vsel %vm16638_vm2, %v16637_v46, %v7372_v28  ;;  %vm16677_vm2 = vmmov %vm16673_vm0 }
 0x4c5   : > { %v15022_v15 = vadd.f32 %v10907_v47, %v6825_v8  ;;  %v6993_v2 = vpop.f32.mrb[73].mxu1  ;;  %v7379_v47 = vsel %vm16639_vm6, %v7372_v28, %v7378_v56  ;;  %vm16679_vm6 = vmmov %vm16673_vm0 }
 0x4c6   : > { %v15027_v40 = vadd.f32 %v6993_v2, %v6817_v38  ;;  %v10908_v13 = vpop.f32.mrb[74].mxu1  ;;  %8577 = vmatpush1.bf16.msra.mxu1 %v11668_v61  ;;  %v6841_v61 = vadd.f32 %v14930_v63, %v14856_v44  ;;  %v7384_v2 = vrot.slane %v14628_v1, 1  ;;  %v6836_v44 = vadd.f32 %v14930_v63, %v14852_v7  ;;  %v11672_v7 = vld [vmem:[%s15955_s4 + $0x1c8] sm:$0xff]  }
 0x4c7   : > { %v15034_v14 = vadd.f32 %v10908_v13, %v6828_v0  ;;  %v6996_v29 = vpop.f32.mrb[75].mxu1  ;;  %8578 = vmatprep.subr.bf16.mxu1 %v14964_v36  ;;  %v6844_v13 = vadd.f32 %v14930_v63, %v14860_v49 }
 0x4c8   : > { %v15037_v8 = vadd.f32 %v6996_v29, %v6820_v58  ;;  %v16640_v58 = vld [vmem:[#allocation39_spill] sm:$0xff]  ;;  %v7385_v49 = vsel %vm16641_vm1, %v7378_v56, %v7384_v2  ;;  %vm16681_vm1 = vmmov %vm16673_vm0 }
 0x4c9   : > { %10958 = vmatmul.mubr.bf16.gmra.mrb[180].mxu1 %v7373_v25 }
 0x4ca   : > { %10961 = vmatprep.mubr.bf16.mxu1 %v7379_v47  ;;  %8579 = vmatpush1.bf16.msra.mxu1 %v11669_v37  ;;  %v7390_v37 = vrot.slane %v16640_v58, 1 }
 0x4cb   : > { %8580 = vmatprep.subr.bf16.mxu1 %v14964_v36 }
 0x4cc   : > { %v10911_v38 = vpop.f32.mrb[76].mxu1 }
 0x4cd   : > { %v15052_v0 = vadd.f32 %v10911_v38, %v6841_v61  ;;  %v7009_v28 = vpop.f32.mrb[77].mxu1  ;;  %v7391_v38 = vsel %vm16642_vm5, %v7384_v2, %v7390_v37  ;;  %vm16682_vm5 = vmmov %vm16673_vm0 }
 0x4ce   : > { %v15057_v29 = vadd.f32 %v7009_v28, %v6833_v11  ;;  %v10912_v46 = vpop.f32.mrb[78].mxu1  ;;  %8581 = vmatpush1.bf16.msra.mxu1 %v11670_v45  ;;  %v6857_v45 = vadd.f32 %v14930_v63, %v14872_v62  ;;  %v6849_v28 = vadd.f32 %v14930_v63, %v14864_v12  ;;  %v6852_v62 = vadd.f32 %v14930_v63, %v14868_v21  ;;  %v11673_v12 = vld [vmem:[%s15955_s4 + $0x1d0] sm:$0xff]   ;;  %v11674_v21 = vld [vmem:[%s15955_s4 + $0x1d8] sm:$0xff]  }
 0x4cf   : > { %v15064_v25 = vadd.f32 %v10912_v46, %v6844_v13  ;;  %v7012_v47 = vpop.f32.mrb[79].mxu1  ;;  %8582 = vmatprep.subr.bf16.mxu1 %v14964_v36  ;;  %v16643_v13 = vld [vmem:[#allocation37_spill] sm:$0xff]  ;;  %v6860_v46 = vadd.f32 %v14930_v63, %v14876_v10 }
 0x4d0   : > { %v15067_v61 = vadd.f32 %v7012_v47, %v6836_v44  ;;  %v7396_v56 = vrot.slane %v16643_v13, 1  ;;  %v16644_v44 = vld [vmem:[#allocation27_spill] sm:$0xff] }
 0x4d1   : > { %10962 = vmatmul.mubr.bf16.gmra.mrb[184].mxu1 %v7385_v49 }
 0x4d2   : > { %10965 = vmatprep.mubr.bf16.mxu1 %v7391_v38  ;;  %8583 = vmatpush1.bf16.msra.mxu1 %v11671_v53  ;;  %v7402_v53 = vrot.slane %v16644_v44, 1  ;;  %v7397_v10 = vsel %vm16647_vm13, %v7390_v37, %v7396_v56  ;;  %v7408_v37 = vrot.slane %v14638_v41, 1  ;;  %v6876_v44 = vadd.f32 %v14930_v63, %v14894_v32  ;;  %vm16684_vm13 = vmmov %vm16673_vm0 }
 0x4d3   : > { %8584 = vmatprep.subr.bf16.mxu1 %v14964_v36 }
 0x4d4   : > { %v10915_v11 = vpop.f32.mrb[80].mxu1  ;;  %v7409_v32 = vsel %vm16654_vm7, %v7402_v53, %v7408_v37  ;;  %vm16700_vm7 = vmmov %vm16673_vm0 }
 0x4d5   : > { %v15080_v58 = vadd.f32 %v10915_v11, %v6857_v45  ;;  %v7025_v2 = vpop.f32.mrb[81].mxu1 }
 0x4d6   : > { %v15085_v47 = vadd.f32 %v7025_v2, %v6849_v28  ;;  %v10916_v49 = vpop.f32.mrb[82].mxu1  ;;  %8585 = vmatpush1.bf16.msra.mxu1 %v11672_v7  ;;  %v7403_v28 = vsel %vm16648_vm10, %v7396_v56, %v7402_v53  ;;  %v6873_v7 = vadd.f32 %v14930_v63, %v14890_v24  ;;  %v6865_v2 = vadd.f32 %v14930_v63, %v14880_v33  ;;  %v11675_v33 = vld [vmem:[%s15955_s4 + $0x1e0] sm:$0xff]   ;;  %vm16686_vm10 = vmmov %vm16673_vm0 }
 0x4d7   : > { %v15092_v38 = vadd.f32 %v10916_v49, %v6860_v46  ;;  %v7028_v45 = vpop.f32.mrb[83].mxu1  ;;  %8586 = vmatprep.subr.bf16.mxu1 %v14964_v36  ;;  %v16650_v49 = vld [vmem:[#allocation40_spill] sm:$0xff]  ;;  %v6868_v24 = vadd.f32 %v14930_v63, %v14884_v16  ;;  %v11676_v16 = vld [vmem:[%s15955_s4 + $0x1e8] sm:$0xff]   ;;  %v7420_v53 = vrot.slane %v14643_v54, 1 }
 0x4d8   : > { %v15095_v11 = vadd.f32 %v7028_v45, %v6852_v62  ;;  %v7414_v62 = vrot.slane %v16650_v49, 1  ;;  %v7426_v49 = vrot.slane %v14645_v20, 1 }
 0x4d9   : > { %16645 = vst [vmem:[#allocation45_spill] sm:$0xff] %v15092_v38  ;;  %10966 = vmatmul.mubr.bf16.gmra.mrb[188].mxu1 %v7397_v10  ;;  %v8146_v38 = vld [vmem:[#allocation2 + $0x1d0] sm:$0xff] }
 0x4da   : > { %16646 = vst [vmem:[#allocation48_spill] sm:$0xff] %v15095_v11  ;;  %10969 = vmatprep.mubr.bf16.mxu1 %v7403_v28  ;;  %8587 = vmatpush1.bf16.msra.mxu1 %v11673_v12 }
 0x4db   : > { %8588 = vmatprep.subr.bf16.mxu1 %v14964_v36 }
 0x4dc   : > { %v10919_v13 = vpop.f32.mrb[84].mxu1 }
 0x4dd   : > { %v15108_v46 = vadd.f32 %v10919_v13, %v6873_v7  ;;  %v7041_v56 = vpop.f32.mrb[85].mxu1  ;;  %v7415_v7 = vsel %vm16655_vm11, %v7408_v37, %v7414_v62  ;;  %vm16705_vm11 = vmmov %vm16673_vm0 }
 0x4de   : > { %v15113_v12 = vadd.f32 %v7041_v56, %v6865_v2  ;;  %v10920_v45 = vpop.f32.mrb[86].mxu1  ;;  %8589 = vmatpush1.bf16.msra.mxu1 %v11674_v21  ;;  %v6889_v21 = vadd.f32 %v14930_v63, %v14907_v50  ;;  %v6881_v2 = vadd.f32 %v14930_v63, %v14898_v60  ;;  %v6884_v50 = vadd.f32 %v14930_v63, %v14901_v55  ;;  %v11677_v60 = vld [vmem:[%s15955_s4 + $0x1f0] sm:$0xff]   ;;  %v11678_v55 = vld [vmem:[%s15955_s4 + $0x1f8] sm:$0xff]  }
 0x4df   : > { %16649 = vst [vmem:[#allocation46_spill] sm:$0xff] %v15108_v46  ;;  %v15120_v41 = vadd.f32 %v10920_v45, %v6876_v44  ;;  %v7044_v10 = vpop.f32.mrb[87].mxu1  ;;  %8590 = vmatprep.subr.bf16.mxu1 %v14964_v36  ;;  %v6892_v44 = vadd.f32 %v14930_v63, %v14909_v31  ;;  %v7421_v31 = vsel %vm16660_vm14, %v7414_v62, %v7420_v53  ;;  %vm16709_vm14 = vmmov %vm16673_vm0 }
 0x4e0   : > { %16651 = vst [vmem:[#allocation50_spill] sm:$0xff] %v15113_v12  ;;  %v15123_v28 = vadd.f32 %v7044_v10, %v6868_v24 }
 0x4e1   : > { %16652 = vst [vmem:[#allocation49_spill] sm:$0xff] %v15120_v41  ;;  %10970 = vmatmul.mubr.bf16.gmra.mrb[192].mxu1 %v7409_v32  ;;  %v7427_v32 = vsel %vm16661_vm4, %v7420_v53, %v7426_v49  ;;  %v6908_v53 = vadd.f32 %v14930_v63, %v14925_v26  ;;  %vm16714_vm4 = vmmov %vm16673_vm0 }
 0x4e2   : > { %16653 = vst [vmem:[#allocation47_spill] sm:$0xff] %v15123_v28  ;;  %10973 = vmatprep.mubr.bf16.mxu1 %v7415_v7  ;;  %8591 = vmatpush1.bf16.msra.mxu1 %v11675_v33  ;;  %v6905_v7 = vadd.f32 %v14930_v63, %v14923_v48  ;;  %v8261_v48 = vrot.slane %v14766_v51, 2  ;;  %v16702_v28 = vld [vmem:[#allocation33_spill] sm:$0xff] }
 0x4e3   : > { %8592 = vmatprep.subr.bf16.mxu1 %v14964_v36 }
 0x4e4   : > { %v10923_v13 = vpop.f32.mrb[88].mxu1 }
 0x4e5   : > { %v15136_v56 = vadd.f32 %v10923_v13, %v6889_v21  ;;  %v7057_v37 = vpop.f32.mrb[89].mxu1  ;;  %v11679_v21 = vld [vmem:[%s15955_s4 + $0x200] sm:$0xff]   ;;  %v6897_v13 = vadd.f32 %v14930_v63, %v14915_v52 }
 0x4e6   : > { %v15141_v45 = vadd.f32 %v7057_v37, %v6881_v2  ;;  %v10924_v24 = vpop.f32.mrb[90].mxu1  ;;  %8593 = vmatpush1.bf16.msra.mxu1 %v11676_v16  ;;  %v7216_v16 = vld [vmem:[#allocation2 + $0x1d8] sm:$0x1]  ;;  %v8095_v2 = vld [vmem:[#allocation2 + $0x38] sm:$0xfc] }
 0x4e7   : > { %16656 = vst [vmem:[#allocation55_spill] sm:$0xff] %v15136_v56  ;;  %v15148_v54 = vadd.f32 %v10924_v24, %v6892_v44  ;;  %v7060_v33 = vpop.f32.mrb[91].mxu1  ;;  %8594 = vmatprep.subr.bf16.mxu1 %v14964_v36 }
 0x4e8   : > { %16657 = vst [vmem:[#allocation51_spill] sm:$0xff] %v15141_v45  ;;  %v15151_v10 = vadd.f32 %v7060_v33, %v6884_v50  ;;  %v6900_v50 = vadd.f32 %v14930_v63, %v14917_v23  ;;  %v16697_v45 = vld [vmem:[#allocation36_spill] sm:$0xff] }
 0x4e9   : > { %16658 = vst [vmem:[#allocation58_spill] sm:$0xff] %v15148_v54  ;;  %10974 = vmatmul.mubr.bf16.gmra.mrb[196].mxu1 %v7421_v31  ;;  %v8260_v31 = vrot.slane %v8095_v2, 2 }
 0x4ea   : > { %16659 = vst [vmem:[#allocation57_spill] sm:$0xff] %v15151_v10  ;;  %10977 = vmatprep.mubr.bf16.mxu1 %v7427_v32  ;;  %8595 = vmatpush1.bf16.msra.mxu1 %v11677_v60  ;;  %v7432_v60 = vrot.slane %v7216_v16, 1  ;;  %v16695_v10 = vld [vmem:[#allocation26_spill] sm:$0xff] }
 0x4eb   : > { %8596 = vmatprep.subr.bf16.mxu1 %v14964_v36  ;;  %v8262_v51 = vsel %vm16667_vm15, %v8260_v31, %v8261_v48  ;;  %vm16718_vm15 = vmmov %vm16673_vm0 }
 0x4ec   : > { %v10927_v62 = vpop.f32.mrb[92].mxu1  ;;  %v7433_v26 = vsel %vm16666_vm9, %v7426_v49, %v7432_v60  ;;  %v11680_v49 = vld [vmem:[%s15955_s4 + $0x208] sm:$0xff]   ;;  %v11681_v60 = vld [vmem:[%s15955_s4 + $0x210] sm:$0xff]   ;;  %vm16715_vm9 = vmmov %vm16673_vm0 }
 0x4ed   : > { %v15168_v37 = vadd.f32 %v10927_v62, %v6905_v7  ;;  %v7073_v44 = vpop.f32.mrb[93].mxu1  ;;  %v8097_v7 = vld [vmem:[#allocation2 + $0x48] sm:$0xff] }
 0x4ee   : > { %v15171_v24 = vadd.f32 %v7073_v44, %v6897_v13  ;;  %v10928_v36 = vpop.f32.mrb[94].mxu1  ;;  %8597 = vmatpush1.bf16.msra.mxu1 %v11678_v55  ;;  %v8101_v62 = vld [vmem:[#allocation2 + $0x68] sm:$0xff]  ;;  %v8094_v13 = vld [vmem:[#allocation2 + $0x30] sm:$0xfc]  ;;  %v8258_v23 = vrot.slane %v8097_v7, 2  ;;  %v11682_v7 = vld [vmem:[%s15955_s4 + $0x218] sm:$0xff]  }
 0x4ef   : > { %16662 = vst [vmem:[#allocation52_spill] sm:$0xff] %v15168_v37  ;;  %v15175_v33 = vadd.f32 %v10928_v36, %v6908_v53  ;;  %v7076_v52 = vpop.f32.mrb[95].mxu1  ;;  %10981 = vmatprep.subr.bf16.mxu1 %v11679_v21  ;;  %v8268_v55 = vrot.slane %v8101_v62, 2  ;;  %v8257_v2 = vrot.slane %v8094_v13, 2  ;;  %v16672_v62 = vrot.slane %v14508_v42, 2  ;;  %v11684_v42 = vld [vmem:[%s15955_s4 + $0x228] sm:$0xff]  }
 0x4f0   : > { %16663 = vst [vmem:[#allocation60_spill] sm:$0xff] %v15171_v24  ;;  %v15177_v32 = vadd.f32 %v7076_v52, %v6900_v50  ;;  %v16692_v24 = vld [vmem:[#allocation19_spill] sm:$0xff] }
 0x4f1   : > { %16664 = vst [vmem:[#allocation59_spill] sm:$0xff] %v15175_v33  ;;  %10978 = vmatmul.mubr.bf16.gmra.mrb[200].mxu1 %v7433_v26  ;;  %v8259_v36 = vsel %vm16668_vm3, %v8257_v2, %v8258_v23  ;;  %v8269_v50 = vsel %vm16669_vm8, %v8261_v48, %v8268_v55  ;;  %v8275_v13 = vsel %vm16673_vm0, %v8268_v55, %v16672_v62  ;;  %v8106_v55 = vld [vmem:[#allocation2 + $0x90] sm:$0xff]  ;;  %v16676_v62 = vrot.slane %v14510_v39, 2  ;;  %vm16719_vm3 = vmmov %vm16673_vm0 }
 0x4f2   : > { %16665 = vst [vmem:[#allocation53_spill] sm:$0xff] %v15177_v32  ;;  %8598 = vmatprep.mubr.bf16.mxu1 %v8262_v51  ;;  %vm16722_vm8 = vmmov %vm16673_vm0 }
 0x4f4   : > { %v15181_v44 = vpop.f32.mrb[96].mxu1 }
 0x4f5   : > { %v7668_v63 = vpop.f32.mrb[97].mxu1 }
 0x4f6   : > { %v15183_v16 = vpop.f32.mrb[98].mxu1  ;;  %v11683_v63 = vld [vmem:[%s15955_s4 + $0x220] sm:$0xff]  }
 0x4f7   : > { %v7671_v53 = vpop.f32.mrb[99].mxu1 }
 0x4f9   : > { %8599 = vmatmul.mubr.bf16.vlgmr.msra.gmra.mrb[204].mxu1 %v8259_v36  ;;  %v16675_v36 = vld [vmem:[#allocation30_spill] sm:$0xff] }
 0x4fa   : > { %10982 = vmatpush3.bf16.msra.mxu1 %v11679_v21  ;;  %8606 = vmatprep.mubr.bf16.mxu1 %v8269_v50  ;;  %v16670_v21 = vrot.slane %v14506_v30, 2  ;;  %v11685_v50 = vld [vmem:[%s15955_s4 + $0x230] sm:$0xff]  }
 0x4fb   : > { %10983 = vmatprep.subr.bf16.mxu1 %v11680_v49 }
 0x4fc   : > { %v15193_v52 = vpop.f32.mrb[100].mxu1  ;;  %v8267_v48 = vsel %vm16671_vm12, %v8258_v23, %v16670_v21  ;;  %v16674_v23 = vld [vmem:[#allocation9_spill] sm:$0xff]  ;;  %vm16723_vm12 = vmmov %vm16673_vm0 }
 0x4fd   : > { %v7676_v31 = vpop.f32.mrb[101].mxu1 }
 0x4fe   : > { %v15195_v26 = vpop.f32.mrb[102].mxu1  ;;  %10984 = vmatpush3.bf16.msra.mxu1 %v11680_v49  ;;  %v8278_v31 = vrot.slane %v8106_v55, 2 }
 0x4ff   : > { %v7679_v51 = vpop.f32.mrb[103].mxu1  ;;  %10985 = vmatprep.subr.bf16.mxu1 %v11681_v60 }
 0x501   : > { %8607 = vmatmul.mubr.bf16.gmra.mrb[208].mxu1 %v8267_v48  ;;  %v11686_v48 = vld [vmem:[%s15955_s4 + $0x238] sm:$0xff]  }
 0x502   : > { %8614 = vmatprep.mubr.bf16.mxu1 %v8275_v13  ;;  %10986 = vmatpush3.bf16.msra.mxu1 %v11681_v60  ;;  %v8279_v13 = vsel %vm16677_vm2, %v16676_v62, %v8278_v31  ;;  %v16680_v62 = vrot.slane %v14514_v43, 2  ;;  %vm16725_vm2 = vmmov %vm16673_vm0 }
 0x503   : > { %10987 = vmatprep.subr.bf16.mxu1 %v11682_v7 }
 0x504   : > { %v15209_v2 = vpop.f32.mrb[104].mxu1 }
 0x505   : > { %v7684_v53 = vpop.f32.mrb[105].mxu1 }
 0x506   : > { %v15211_v49 = vpop.f32.mrb[106].mxu1  ;;  %10988 = vmatpush3.bf16.msra.mxu1 %v11682_v7  ;;  %v16678_v53 = vld [vmem:[#allocation20_spill] sm:$0xff] }
 0x507   : > { %v7687_v30 = vpop.f32.mrb[107].mxu1  ;;  %10989 = vmatprep.subr.bf16.mxu1 %v11683_v63 }
 0x508   : > { %v8113_v30 = vld [vmem:[#allocation2 + $0xc8] sm:$0xff] }
 0x509   : > { %8615 = vmatmul.mubr.bf16.gmra.mrb[212].mxu1 %v16674_v23 }
 0x50a   : > { %8622 = vmatprep.mubr.bf16.mxu1 %v16675_v36  ;;  %10990 = vmatpush3.bf16.msra.mxu1 %v11683_v63  ;;  %v8109_v63 = vld [vmem:[#allocation2 + $0xa8] sm:$0xff]  ;;  %v8292_v36 = vrot.slane %v8113_v30, 2 }
 0x50b   : > { %10991 = vmatprep.subr.bf16.mxu1 %v11684_v42 }
 0x50c   : > { %v15221_v60 = vpop.f32.mrb[108].mxu1 }
 0x50d   : > { %v7692_v51 = vpop.f32.mrb[109].mxu1 }
 0x50e   : > { %v15223_v7 = vpop.f32.mrb[110].mxu1  ;;  %10992 = vmatpush3.bf16.msra.mxu1 %v11684_v42  ;;  %v8284_v42 = vrot.slane %v8109_v63, 2 }
 0x50f   : > { %v7695_v21 = vpop.f32.mrb[111].mxu1  ;;  %10993 = vmatprep.subr.bf16.mxu1 %v11685_v50 }
 0x510   : > { %v8285_v39 = vsel %vm16679_vm6, %v8278_v31, %v8284_v42  ;;  %vm16726_vm6 = vmmov %vm16673_vm0 }
 0x511   : > { %8623 = vmatmul.mubr.bf16.gmra.mrb[216].mxu1 %v8279_v13  ;;  %v8293_v13 = vsel %vm16681_vm1, %v16680_v62, %v8292_v36  ;;  %vm16727_vm1 = vmmov %vm16673_vm0 }
 0x512   : > { %8630 = vmatprep.mubr.bf16.mxu1 %v16678_v53  ;;  %10994 = vmatpush3.bf16.msra.mxu1 %v11685_v50  ;;  %v8112_v53 = vld [vmem:[#allocation2 + $0xc0] sm:$0xff] }
 0x513   : > { %10995 = vmatprep.subr.bf16.mxu1 %v11686_v48  ;;  %v8290_v32 = vrot.slane %v8112_v53, 2  ;;  %v16687_v53 = vld [vmem:[#allocation24_spill] sm:$0xff] }
 0x514   : > { %v15232_v23 = vpop.f32.mrb[112].mxu1 }
 0x515   : > { %v7700_v55 = vpop.f32.mrb[113].mxu1 }
 0x516   : > { %v15234_v51 = vpop.f32.mrb[114].mxu1  ;;  %10996 = vmatpush3.bf16.msra.mxu1 %v11686_v48  ;;  %v8291_v55 = vsel %vm16682_vm5, %v8284_v42, %v8290_v32  ;;  %v16683_v48 = vrot.slane %v14519_v6, 2  ;;  %vm16728_vm5 = vmmov %vm16673_vm0 }
 0x517   : > { %v7703_v21 = vpop.f32.mrb[115].mxu1 }
 0x518   : > { %v8299_v31 = vsel %vm16684_vm13, %v8292_v36, %v16683_v48  ;;  %v16689_v48 = vld [vmem:[#allocation18_spill] sm:$0xff]  ;;  %vm16729_vm13 = vmmov %vm16673_vm0 }
 0x519   : > { %8631 = vmatmul.mubr.bf16.gmra.mrb[220].mxu1 %v8285_v39 }
 0x51a   : > { %8638 = vmatprep.mubr.bf16.mxu1 %v8293_v13  ;;  %v16685_v13 = vrot.slane %v14521_v5, 2 }
 0x51c   : > { %v15240_v50 = vpop.f32.mrb[116].mxu1 }
 0x51d   : > { %v7708_v33 = vpop.f32.mrb[117].mxu1 }
 0x51e   : > { %v15242_v63 = vpop.f32.mrb[118].mxu1  ;;  %v8297_v33 = vsel %vm16686_vm10, %v8290_v32, %v16685_v13  ;;  %v16690_v32 = vld [vmem:[#allocation34_spill] sm:$0xff]  ;;  %v16691_v13 = vld [vmem:[#allocation23_spill] sm:$0xff]  ;;  %vm16730_vm10 = vmmov %vm16673_vm0 }
 0x51f   : > { %v7711_v30 = vpop.f32.mrb[119].mxu1 }
 0x521   : > { %8639 = vmatmul.mubr.bf16.gmra.mrb[224].mxu1 %v8291_v55  ;;  %v16688_v55 = vld [vmem:[#allocation32_spill] sm:$0xff] }
 0x522   : > { %8646 = vmatprep.mubr.bf16.mxu1 %v8299_v31 }
 0x524   : > { %v15248_v43 = vpop.f32.mrb[120].mxu1 }
 0x525   : > { %v7716_v21 = vpop.f32.mrb[121].mxu1 }
 0x526   : > { %v15250_v39 = vpop.f32.mrb[122].mxu1 }
 0x527   : > { %v7719_v62 = vpop.f32.mrb[123].mxu1 }
 0x529   : > { %8647 = vmatmul.mubr.bf16.gmra.mrb[228].mxu1 %v8297_v33 }
 0x52a   : > { %8654 = vmatprep.mubr.bf16.mxu1 %v16687_v53 }
 0x52c   : > { %v15256_v42 = vpop.f32.mrb[124].mxu1 }
 0x52d   : > { %v7724_v30 = vpop.f32.mrb[125].mxu1 }
 0x52e   : > { %v15258_v6 = vpop.f32.mrb[126].mxu1 }
 0x52f   : > { %v7727_v36 = vpop.f32.mrb[127].mxu1 }
 0x531   : > { %8655 = vmatmul.mubr.bf16.gmra.mrb[232].mxu1 %v16688_v55  ;;  %v16693_v55 = vld [vmem:[#allocation35_spill] sm:$0xff] }
 0x532   : > { %8662 = vmatprep.mubr.bf16.mxu1 %v16689_v48 }
 0x534   : > { %v15262_v31 = vpop.f32.mrb[128].mxu1 }
 0x535   : > { %v7732_v21 = vpop.f32.mrb[129].mxu1 }
 0x536   : > { %v15264_v62 = vpop.f32.mrb[130].mxu1 }
 0x537   : > { %v7735_v5 = vpop.f32.mrb[131].mxu1 }
 0x539   : > { %8663 = vmatmul.mubr.bf16.gmra.mrb[236].mxu1 %v16690_v32  ;;  %v16696_v32 = vld [vmem:[#allocation21_spill] sm:$0xff] }
 0x53a   : > { %8670 = vmatprep.mubr.bf16.mxu1 %v16691_v13  ;;  %v8134_v13 = vld [vmem:[#allocation2 + $0x170] sm:$0xff] }
 0x53b   : > { %v8334_v54 = vrot.slane %v8134_v13, 2 }
 0x53c   : > { %v15268_v33 = vpop.f32.mrb[132].mxu1 }
 0x53d   : > { %v7740_v53 = vpop.f32.mrb[133].mxu1 }
 0x53e   : > { %v15270_v30 = vpop.f32.mrb[134].mxu1 }
 0x53f   : > { %v7743_v36 = vpop.f32.mrb[135].mxu1 }
 0x541   : > { %8671 = vmatmul.mubr.bf16.gmra.mrb[240].mxu1 %v16692_v24 }
 0x542   : > { %8678 = vmatprep.mubr.bf16.mxu1 %v16693_v55  ;;  %v16698_v55 = vld [vmem:[#allocation16_spill] sm:$0xff] }
 0x543   : > { %v16699_v56 = vrot.slane %v16698_v55, 2 }
 0x544   : > { %v15274_v48 = vpop.f32.mrb[136].mxu1 }
 0x545   : > { %v7748_v21 = vpop.f32.mrb[137].mxu1 }
 0x546   : > { %v15276_v37 = vpop.f32.mrb[138].mxu1  ;;  %v8335_v21 = vsel %vm16700_vm7, %v16699_v56, %v8334_v54  ;;  %vm16731_vm7 = vmmov %vm16673_vm0 }
 0x547   : > { %16694 = vst [vmem:[#allocation11_spill] sm:$0xff] %v15276_v37  ;;  %v7751_v5 = vpop.f32.mrb[139].mxu1 }
 0x549   : > { %8679 = vmatmul.mubr.bf16.gmra.mrb[244].mxu1 %v16695_v10 }
 0x54a   : > { %8686 = vmatprep.mubr.bf16.mxu1 %v16696_v32  ;;  %v8340_v32 = vrot.slane %v16702_v28, 2 }
 0x54c   : > { %v15280_v20 = vpop.f32.mrb[140].mxu1  ;;  %v8341_v13 = vsel %vm16705_vm11, %v8334_v54, %v8340_v32  ;;  %vm16732_vm11 = vmmov %vm16673_vm0 }
 0x54d   : > { %v7756_v53 = vpop.f32.mrb[141].mxu1 }
 0x54e   : > { %v15282_v36 = vpop.f32.mrb[142].mxu1  ;;  %v16704_v53 = vld [vmem:[#allocation29_spill] sm:$0xff] }
 0x54f   : > { %v7759_v24 = vpop.f32.mrb[143].mxu1 }
 0x550   : > { %v8140_v24 = vld [vmem:[#allocation2 + $0x1a0] sm:$0xff] }
 0x551   : > { %8687 = vmatmul.mubr.bf16.gmra.mrb[248].mxu1 %v16697_v45  ;;  %v8346_v46 = vrot.slane %v8140_v24, 2 }
 0x552   : > { %8694 = vmatprep.mubr.bf16.mxu1 %v8335_v21 }
 0x553   : > { %v8347_v28 = vsel %vm16709_vm14, %v8340_v32, %v8346_v46  ;;  %vm16734_vm14 = vmmov %vm16673_vm0 }
 0x554   : > { %v15288_v5 = vpop.f32.mrb[144].mxu1 }
 0x555   : > { %16701 = vst [vmem:[#allocation62_spill] sm:$0xff] %v15288_v5  ;;  %v7764_v10 = vpop.f32.mrb[145].mxu1  ;;  %v16708_v5 = vld [vmem:[#allocation25_spill] sm:$0xff] }
 0x556   : > { %v15291_v41 = vpop.f32.mrb[146].mxu1  ;;  %v8139_v10 = vld [vmem:[#allocation2 + $0x198] sm:$0xff] }
 0x557   : > { %16703 = vst [vmem:[#allocation61_spill] sm:$0xff] %v15291_v41  ;;  %v7767_v12 = vpop.f32.mrb[147].mxu1 }
 0x558   : > { %v8143_v12 = vld [vmem:[#allocation2 + $0x1b8] sm:$0xff] }
 0x559   : > { %8695 = vmatmul.mubr.bf16.gmra.mrb[252].mxu1 %v16704_v53  ;;  %v8344_v53 = vrot.slane %v8139_v10, 2 }
 0x55a   : > { %8702 = vmatprep.mubr.bf16.mxu1 %v8341_v13  ;;  %v8352_v13 = vrot.slane %v8143_v12, 2 }
 0x55c   : > { %v15295_v45 = vpop.f32.mrb[148].mxu1 }
 0x55d   : > { %16706 = vst [vmem:[#allocation54_spill] sm:$0xff] %v15295_v45  ;;  %v7772_v55 = vpop.f32.mrb[149].mxu1 }
 0x55e   : > { %v15297_v56 = vpop.f32.mrb[150].mxu1  ;;  %v16712_v55 = vld [vmem:[#allocation22_spill] sm:$0xff] }
 0x55f   : > { %16707 = vst [vmem:[#allocation6_spill] sm:$0xff] %v15297_v56  ;;  %v7775_v21 = vpop.f32.mrb[151].mxu1  ;;  %v16713_v24 = vrot.slane %v16712_v55, 2 }
 0x560   : > { %v8142_v21 = vld [vmem:[#allocation2 + $0x1b0] sm:$0xff] }
 0x561   : > { %8703 = vmatmul.mubr.bf16.gmra.mrb[0].mxu1 %v16708_v5  ;;  %v8345_v56 = vsel %vm16714_vm4, %v16713_v24, %v8344_v53  ;;  %v8353_v5 = vsel %vm16715_vm9, %v8346_v46, %v8352_v13  ;;  %v8145_v24 = vld [vmem:[#allocation2 + $0x1c8] sm:$0xff]  ;;  %vm16769_vm4 = vmmov %vm16673_vm0 }
 0x562   : > { %8710 = vmatprep.mubr.bf16.mxu1 %v8347_v28  ;;  %v8350_v28 = vrot.slane %v8142_v21, 2  ;;  %vm16776_vm9 = vmmov %vm16673_vm0 }
 0x564   : > { %v15301_v41 = vpop.f32.mrb[152].mxu1 }
 0x565   : > { %16710 = vst [vmem:[#allocation10_spill] sm:$0xff] %v15301_v41  ;;  %v7780_v54 = vpop.f32.mrb[153].mxu1 }
 0x566   : > { %v15303_v11 = vpop.f32.mrb[154].mxu1  ;;  %v8358_v54 = vrot.slane %v8146_v38, 2 }
 0x567   : > { %16711 = vst [vmem:[#allocation64_spill] sm:$0xff] %v15303_v11  ;;  %v7783_v45 = vpop.f32.mrb[155].mxu1 }
 0x568   : > { %v8351_v45 = vsel %vm16718_vm15, %v8344_v53, %v8350_v28  ;;  %v8359_v55 = vsel %vm16719_vm3, %v8352_v13, %v8358_v54  ;;  %v8148_v53 = vld [vmem:[#allocation2 + $0x1e0] sm:$0x3] }
 0x569   : > { %8711 = vmatmul.mubr.bf16.gmra.mrb[4].mxu1 %v8345_v56  ;;  %v8149_v56 = vld [vmem:[#allocation2 + $0x1e8] sm:$0x3] }
 0x56a   : > { %8718 = vmatprep.mubr.bf16.mxu1 %v8353_v5  ;;  %v8356_v5 = vrot.slane %v8145_v24, 2 }
 0x56c   : > { %v15309_v32 = vpop.f32.mrb[156].mxu1 }
 0x56d   : > { %16716 = vst [vmem:[#allocation65_spill] sm:$0xff] %v15309_v32  ;;  %v7788_v41 = vpop.f32.mrb[157].mxu1  ;;  %v8364_v32 = vrot.slane %v8149_v56, 2 }
 0x56e   : > { %v15311_v10 = vpop.f32.mrb[158].mxu1 }
 0x56f   : > { %16717 = vst [vmem:[#allocation63_spill] sm:$0xff] %v15311_v10  ;;  %v7791_v12 = vpop.f32.mrb[159].mxu1  ;;  %v8357_v10 = vsel %vm16722_vm8, %v8350_v28, %v8356_v5  ;;  %v8365_v38 = vsel %vm16723_vm12, %v8358_v54, %v8364_v32  ;;  %v8102_v28 = vld [vmem:[#allocation2 + $0x70] sm:$0xff]  ;;  %v8105_v32 = vld [vmem:[#allocation2 + $0x88] sm:$0xff] }
 0x570   : > { %v8099_v12 = vld [vmem:[#allocation2 + $0x58] sm:$0xff]  ;;  %v8270_v54 = vrot.slane %v8102_v28, 2  ;;  %v8108_v28 = vld [vmem:[#allocation2 + $0xa0] sm:$0xff] }
 0x571   : > { %8719 = vmatmul.mubr.bf16.gmra.mrb[8].mxu1 %v8351_v45  ;;  %v8362_v45 = vrot.slane %v8148_v53, 2 }
 0x572   : > { %8726 = vmatprep.mubr.bf16.mxu1 %v8359_v55  ;;  %v8096_v55 = vld [vmem:[#allocation2 + $0x40] sm:$0xfc] }
 0x573   : > { %v8263_v56 = vrot.slane %v8096_v55, 2 }
 0x574   : > { %v15315_v46 = vpop.f32.mrb[160].mxu1 }
 0x575   : > { %16720 = vst [vmem:[#allocation56_spill] sm:$0xff] %v15315_v46  ;;  %v7796_v11 = vpop.f32.mrb[161].mxu1  ;;  %v8264_v46 = vrot.slane %v8099_v12, 2 }
 0x576   : > { %v15317_v21 = vpop.f32.mrb[162].mxu1 }
 0x577   : > { %16721 = vst [vmem:[#allocation4_spill] sm:$0xff] %v15317_v21  ;;  %v7799_v41 = vpop.f32.mrb[163].mxu1  ;;  %v8271_v55 = vsel %vm16726_vm6, %v8264_v46, %v8270_v54 }
 0x578   : > { %v8363_v41 = vsel %vm16673_vm0, %v8356_v5, %v8362_v45 }
 0x579   : > { %8727 = vmatmul.mubr.bf16.gmra.mrb[12].mxu1 %v8357_v10  ;;  %v8265_v10 = vsel %vm16725_vm2, %v8263_v56, %v8264_v46 }
 0x57a   : > { %8734 = vmatprep.mubr.bf16.mxu1 %v8365_v38 }
 0x57c   : > { %v15321_v13 = vpop.f32.mrb[164].mxu1 }
 0x57d   : > { %16724 = vst [vmem:[#allocation12_spill] sm:$0xff] %v15321_v13  ;;  %v7804_v37 = vpop.f32.mrb[165].mxu1  ;;  %v8276_v13 = vrot.slane %v8105_v32, 2 }
 0x57e   : > { %v15323_v24 = vpop.f32.mrb[166].mxu1 }
 0x57f   : > { %v7807_v11 = vpop.f32.mrb[167].mxu1 }
 0x581   : > { %8735 = vmatmul.mubr.bf16.gmra.mrb[16].mxu1 %v8363_v41 }
 0x582   : > { %10997 = vmatprep.mubr.bf16.mxu1 %v8265_v10 }
 0x584   : > { %v10947_v38 = vpop.f32.mrb[168].mxu1 }
 0x585   : > { %v7852_v21 = vadd.f32 %v10947_v38, %v15193_v52  ;;  %v7843_v53 = vpop.f32.mrb[169].mxu1 }
 0x586   : > { %v7844_v37 = vadd.f32 %v7843_v53, %v15181_v44  ;;  %v10948_v12 = vpop.f32.mrb[170].mxu1  ;;  %v8277_v44 = vsel %vm16727_vm1, %v8270_v54, %v8276_v13 }
 0x587   : > { %v15330_v11 = vadd.f32 %v7852_v21, %v14946_v35  ;;  %v7855_v5 = vadd.f32 %v10948_v12, %v15195_v26  ;;  %v7846_v45 = vpop.f32.mrb[171].mxu1  ;;  %v8111_v26 = vld [vmem:[#allocation2 + $0xb8] sm:$0xff]  ;;  %v8282_v21 = vrot.slane %v8108_v28, 2 }
 0x588   : > { %v15335_v56 = vadd.f32 %v7844_v37, %v14948_v17  ;;  %v7847_v41 = vadd.f32 %v7846_v45, %v15183_v16  ;;  %v8288_v32 = vrot.slane %v8111_v26, 2 }
 0x589   : > { %v15339_v52 = vadd.f32 %v7855_v5, %v14953_v9  ;;  %10998 = vmatmul.mubr.bf16.vlgmr.msra.gmra.mrb[20].mxu1 %v8271_v55  ;;  %v8114_v5 = vld [vmem:[#allocation2 + $0xd0] sm:$0xff] }
 0x58a   : > { %v15343_v35 = vadd.f32 %v7847_v41, %v14955_v27  ;;  %11001 = vmatprep.mubr.bf16.mxu1 %v8277_v44  ;;  %v8283_v27 = vsel %vm16728_vm5, %v8276_v13, %v8282_v21  ;;  %v8294_v45 = vrot.slane %v8114_v5, 2 }
 0x58c   : > { %v10951_v10 = vpop.f32.mrb[172].mxu1 }
 0x58d   : > { %v7868_v46 = vadd.f32 %v10951_v10, %v15221_v60  ;;  %v7859_v17 = vpop.f32.mrb[173].mxu1 }
 0x58e   : > { %v7860_v16 = vadd.f32 %v7859_v17, %v15209_v2  ;;  %v10952_v38 = vpop.f32.mrb[174].mxu1  ;;  %v8289_v2 = vsel %vm16729_vm13, %v8282_v21, %v8288_v32 }
 0x58f   : > { %v15348_v9 = vadd.f32 %v7868_v46, %v14969_v59  ;;  %v7871_v53 = vadd.f32 %v10952_v38, %v15223_v7  ;;  %v7862_v54 = vpop.f32.mrb[175].mxu1  ;;  %v8117_v7 = vld [vmem:[#allocation2 + $0xe8] sm:$0xff]  ;;  %v8120_v46 = vld [vmem:[#allocation2 + $0x100] sm:$0xff] }
 0x590   : > { %v15353_v37 = vadd.f32 %v7860_v16, %v14975_v57  ;;  %v7863_v12 = vadd.f32 %v7862_v54, %v15211_v49  ;;  %v8300_v41 = vrot.slane %v8117_v7, 2 }
 0x591   : > { %v15357_v60 = vadd.f32 %v7871_v53, %v14980_v22  ;;  %11002 = vmatmul.mubr.bf16.gmra.mrb[24].mxu1 %v8283_v27 }
 0x592   : > { %v15361_v59 = vadd.f32 %v7863_v12, %v14983_v34  ;;  %11005 = vmatprep.mubr.bf16.mxu1 %v8289_v2  ;;  %v8295_v34 = vsel %vm16730_vm10, %v8288_v32, %v8294_v45 }
 0x594   : > { %v10955_v55 = vpop.f32.mrb[176].mxu1 }
 0x595   : > { %v7884_v13 = vadd.f32 %v10955_v55, %v15240_v50  ;;  %v7875_v57 = vpop.f32.mrb[177].mxu1 }
 0x596   : > { %v7876_v49 = vadd.f32 %v7875_v57, %v15232_v23  ;;  %v10956_v28 = vpop.f32.mrb[178].mxu1  ;;  %v8301_v23 = vsel %vm16731_vm7, %v8294_v45, %v8300_v41 }
 0x597   : > { %v15366_v22 = vadd.f32 %v7884_v13, %v14995_v18  ;;  %v7887_v44 = vadd.f32 %v10956_v28, %v15242_v63  ;;  %v7878_v26 = vpop.f32.mrb[179].mxu1  ;;  %v8306_v63 = vrot.slane %v8120_v46, 2  ;;  %v16735_v13 = vld [vmem:[#allocation28_spill] sm:$0xff] }
 0x598   : > { %v15371_v21 = vadd.f32 %v7876_v49, %v14999_v19  ;;  %v7879_v10 = vadd.f32 %v7878_v26, %v15234_v51  ;;  %v16738_v26 = vld [vmem:[#allocation45_spill] sm:$0xff] }
 0x599   : > { %v15375_v50 = vadd.f32 %v7887_v44, %v15006_v4  ;;  %11006 = vmatmul.mubr.bf16.gmra.mrb[28].mxu1 %v8295_v34  ;;  %v8307_v54 = vsel %vm16732_vm11, %v8300_v41, %v8306_v63 }
 0x59a   : > { %v15379_v18 = vadd.f32 %v7879_v10, %v15009_v3  ;;  %11009 = vmatprep.mubr.bf16.mxu1 %v8301_v23  ;;  %v16739_v10 = vld [vmem:[#allocation42_spill] sm:$0xff] }
 0x59b   : > { %v16742_v23 = vld [vmem:[#allocation54_spill] sm:$0xff] }
 0x59c   : > { %v10959_v17 = vpop.f32.mrb[180].mxu1 }
 0x59d   : > { %v7900_v32 = vadd.f32 %v10959_v17, %v15256_v42  ;;  %v7891_v16 = vpop.f32.mrb[181].mxu1  ;;  %v16743_v17 = vld [vmem:[#allocation62_spill] sm:$0xff] }
 0x59e   : > { %v7892_v19 = vadd.f32 %v7891_v16, %v15248_v43  ;;  %v10960_v38 = vpop.f32.mrb[182].mxu1  ;;  %v16733_v43 = vrot.slane %v14628_v1, 2  ;;  %v16744_v16 = vld [vmem:[#allocation46_spill] sm:$0xff] }
 0x59f   : > { %v15384_v51 = vadd.f32 %v7900_v32, %v15022_v15  ;;  %v7903_v4 = vadd.f32 %v10960_v38, %v15258_v6  ;;  %v7894_v53 = vpop.f32.mrb[183].mxu1  ;;  %v16746_v38 = vld [vmem:[#allocation6_spill] sm:$0xff] }
 0x5a0   : > { %v15389_v3 = vadd.f32 %v7892_v19, %v15027_v40  ;;  %v7895_v27 = vadd.f32 %v7894_v53, %v15250_v39  ;;  %v8313_v42 = vsel %vm16734_vm14, %v8306_v63, %v16733_v43  ;;  %v16749_v43 = vld [vmem:[#allocation61_spill] sm:$0xff] }
 0x5a1   : > { %v15393_v12 = vadd.f32 %v7903_v4, %v15034_v14  ;;  %11010 = vmatmul.mubr.bf16.gmra.mrb[32].mxu1 %v8307_v54  ;;  %v16747_v54 = vld [vmem:[#allocation50_spill] sm:$0xff] }
 0x5a2   : > { %v15399_v15 = vadd.f32 %v7895_v27, %v15037_v8  ;;  %11013 = vmatprep.mubr.bf16.mxu1 %v8313_v42 }
 0x5a4   : > { %v10963_v6 = vpop.f32.mrb[184].mxu1 }
 0x5a5   : > { %v7916_v5 = vadd.f32 %v10963_v6, %v15268_v33  ;;  %v7907_v2 = vpop.f32.mrb[185].mxu1  ;;  %v16750_v6 = vld [vmem:[#allocation49_spill] sm:$0xff] }
 0x5a6   : > { %v7908_v40 = vadd.f32 %v7907_v2, %v15262_v31  ;;  %v10964_v7 = vpop.f32.mrb[186].mxu1  ;;  %v16736_v31 = vld [vmem:[#allocation5_spill] sm:$0xff]  ;;  %v16752_v2 = vld [vmem:[#allocation31_spill] sm:$0xff] }
 0x5a7   : > { %v15404_v39 = vadd.f32 %v7916_v5, %v15052_v0  ;;  %v7919_v14 = vadd.f32 %v10964_v7, %v15270_v30  ;;  %v7910_v45 = vpop.f32.mrb[187].mxu1 }
 0x5a8   : > { %v15408_v1 = vadd.f32 %v7908_v40, %v15057_v29  ;;  %v7911_v8 = vadd.f32 %v7910_v45, %v15264_v62  ;;  %v16753_v40 = vld [vmem:[#allocation47_spill] sm:$0xff] }
 0x5a9   : > { %v15412_v55 = vadd.f32 %v7919_v14, %v15064_v25  ;;  %11014 = vmatmul.mubr.bf16.gmra.mrb[36].mxu1 %v16735_v13  ;;  %v16755_v14 = vld [vmem:[#allocation44_spill] sm:$0xff]  ;;  %v16756_v13 = vld [vmem:[#allocation65_spill] sm:$0xff] }
 0x5aa   : > { %v15416_v33 = vadd.f32 %v7911_v8, %v15067_v61  ;;  %11017 = vmatprep.mubr.bf16.mxu1 %v16736_v31  ;;  %v16737_v61 = vld [vmem:[#allocation11_spill] sm:$0xff]  ;;  %v8147_v8 = vld [vmem:[#allocation2 + $0x1d8] sm:$0xff] }
 0x5ac   : > { %v10967_v0 = vpop.f32.mrb[188].mxu1 }
 0x5ad   : > { %v7932_v57 = vadd.f32 %v10967_v0, %v15280_v20  ;;  %v7923_v30 = vpop.f32.mrb[189].mxu1  ;;  %v16740_v20 = vld [vmem:[#allocation48_spill] sm:$0xff] }
 0x5ae   : > { %v7924_v41 = vadd.f32 %v7923_v30, %v15274_v48  ;;  %v10968_v29 = vpop.f32.mrb[190].mxu1  ;;  %v16741_v48 = vld [vmem:[#allocation41_spill] sm:$0xff] }
 0x5af   : > { %v15422_v49 = vadd.f32 %v7932_v57, %v15080_v58  ;;  %v7935_v25 = vadd.f32 %v10968_v29, %v15282_v36  ;;  %v7926_v62 = vpop.f32.mrb[191].mxu1  ;;  %v16757_v57 = vld [vmem:[#allocation10_spill] sm:$0xff]  ;;  %v16758_v29 = vld [vmem:[#allocation55_spill] sm:$0xff] }
 0x5b0   : > { %v15426_v28 = vadd.f32 %v7924_v41, %v15085_v47  ;;  %v7927_v44 = vadd.f32 %v7926_v62, %v16737_v61  ;;  %v16760_v62 = vld [vmem:[#allocation63_spill] sm:$0xff] }
 0x5b1   : > { %v15430_v34 = vadd.f32 %v7935_v25, %v16738_v26  ;;  %11018 = vmatmul.mubr.bf16.gmra.mrb[40].mxu1 %v16739_v10  ;;  %v8360_v26 = vrot.slane %v8147_v8, 2  ;;  %v16761_v10 = vld [vmem:[#allocation51_spill] sm:$0xff] }
 0x5b2   : > { %v15434_v46 = vadd.f32 %v7927_v44, %v16740_v20  ;;  %11021 = vmatprep.mubr.bf16.mxu1 %v16741_v48  ;;  %v16763_v48 = vld [vmem:[#allocation64_spill] sm:$0xff] }
 0x5b4   : > { %v10971_v58 = vpop.f32.mrb[192].mxu1 }
 0x5b5   : > { %v7948_v63 = vadd.f32 %v10971_v58, %v16742_v23  ;;  %v7939_v36 = vpop.f32.mrb[193].mxu1  ;;  %v16764_v23 = vld [vmem:[#allocation58_spill] sm:$0xff] }
 0x5b6   : > { %v7940_v32 = vadd.f32 %v7939_v36, %v16743_v17  ;;  %v10972_v47 = vpop.f32.mrb[194].mxu1  ;;  %v16766_v36 = vld [vmem:[#allocation43_spill] sm:$0xff] }
 0x5b7   : > { %v15440_v19 = vadd.f32 %v7948_v63, %v16744_v16  ;;  %v7951_v4 = vadd.f32 %v10972_v47, %v16746_v38  ;;  %v7942_v53 = vpop.f32.mrb[195].mxu1  ;;  %v8150_v17 = vld [vmem:[#allocation2 + $0x1f0] sm:$0x3]  ;;  %v16770_v38 = vld [vmem:[#allocation57_spill] sm:$0xff] }
 0x5b8   : > { %v15444_v27 = vadd.f32 %v7940_v32, %v16747_v54  ;;  %v7943_v42 = vadd.f32 %v7942_v53, %v16749_v43  ;;  %v16767_v32 = vld [vmem:[#allocation38_spill] sm:$0xff]  ;;  %v8366_v53 = vrot.slane %v8150_v17, 2  ;;  %v16772_v43 = vld [vmem:[#allocation12_spill] sm:$0xff] }
 0x5b9   : > { %16745 = vst [vmem:[#allocation7_spill] sm:$0xff] %v15440_v19  ;;  %v15448_v5 = vadd.f32 %v7951_v4, %v16750_v6  ;;  %11022 = vmatmul.mubr.bf16.gmra.mrb[44].mxu1 %v16752_v2  ;;  %v16768_v47 = vrot.slane %v16767_v32, 2  ;;  %v16773_v2 = vld [vmem:[#allocation56_spill] sm:$0xff] }
 0x5ba   : > { %16748 = vst [vmem:[#allocation13_spill] sm:$0xff] %v15444_v27  ;;  %v15452_v7 = vadd.f32 %v7943_v42, %v16753_v40  ;;  %11025 = vmatprep.mubr.bf16.mxu1 %v16755_v14 }
 0x5bb   : > { %16751 = vst [vmem:[#allocation14_spill] sm:$0xff] %v15448_v5  ;;  %v8361_v16 = vsel %vm16769_vm4, %v16768_v47, %v8360_v26 }
 0x5bc   : > { %16754 = vst [vmem:[#allocation8_spill] sm:$0xff] %v15452_v7  ;;  %v10975_v45 = vpop.f32.mrb[196].mxu1 }
 0x5bd   : > { %v7964_v31 = vadd.f32 %v10975_v45, %v16756_v13  ;;  %v7955_v0 = vpop.f32.mrb[197].mxu1  ;;  %v16774_v45 = vld [vmem:[#allocation52_spill] sm:$0xff] }
 0x5be   : > { %v7956_v30 = vadd.f32 %v7955_v0, %v16757_v57  ;;  %v10976_v41 = vpop.f32.mrb[198].mxu1  ;;  %v8367_v0 = vsel %vm16776_vm9, %v8360_v26, %v8366_v53  ;;  %v16777_v57 = vld [vmem:[#allocation60_spill] sm:$0xff] }
 0x5bf   : > { %v15458_v25 = vadd.f32 %v7964_v31, %v16758_v29  ;;  %v7967_v61 = vadd.f32 %v10976_v41, %v16760_v62  ;;  %v7958_v44 = vpop.f32.mrb[199].mxu1  ;;  %v16779_v41 = vld [vmem:[#allocation4_spill] sm:$0xff]  ;;  %v16780_v62 = vld [vmem:[#allocation59_spill] sm:$0xff] }
 0x5c0   : > { %v15462_v20 = vadd.f32 %v7956_v30, %v16761_v10  ;;  %v7959_v58 = vadd.f32 %v7958_v44, %v16763_v48  ;;  %v16782_v44 = vld [vmem:[#allocation53_spill] sm:$0xff] }
 0x5c1   : > { %16759 = vst [vmem:[#allocation17_spill] sm:$0xff] %v15458_v25  ;;  %v15466_v63 = vadd.f32 %v7967_v61, %v16764_v23  ;;  %11026 = vmatmul.mubr.bf16.gmra.mrb[48].mxu1 %v16766_v36 }
 0x5c2   : > { %16762 = vst [vmem:[#allocation15_spill] sm:$0xff] %v15462_v20  ;;  %v15473_v4 = vadd.f32 %v7959_v58, %v16770_v38  ;;  %11029 = vmatprep.mubr.bf16.mxu1 %v8361_v16 }
 0x5c3   : > { %16765 = vst [vmem:[#allocation39_spill] sm:$0xff] %v15466_v63 }
 0x5c4   : > { %16771 = vst [vmem:[#allocation37_spill] sm:$0xff] %v15473_v4  ;;  %v10979_v54 = vpop.f32.mrb[200].mxu1 }
 0x5c5   : > { %v7980_v42 = vadd.f32 %v10979_v54, %v16772_v43  ;;  %v7971_v6 = vpop.f32.mrb[201].mxu1 }
 0x5c6   : > { %v7972_v40 = vadd.f32 %v7971_v6, %v16773_v2  ;;  %v10980_v14 = vpop.f32.mrb[202].mxu1 }
 0x5c7   : > { %v15478_v8 = vadd.f32 %v7980_v42, %v16774_v45  ;;  %v7983_v13 = vadd.f32 %v10980_v14, %v15323_v24  ;;  %v7974_v31 = vpop.f32.mrb[203].mxu1 }
 0x5c8   : > { %v15483_v30 = vadd.f32 %v7972_v40, %v16777_v57  ;;  %v7975_v29 = vadd.f32 %v7974_v31, %v16779_v41 }
 0x5c9   : > { %16775 = vst [vmem:[#allocation27_spill] sm:$0xff] %v15478_v8  ;;  %v15487_v61 = vadd.f32 %v7983_v13, %v16780_v62  ;;  %11030 = vmatmul.mubr.bf16.gmra.mrb[52].mxu1 %v8367_v0 }
 0x5ca   : > { %16778 = vst [vmem:[#allocation40_spill] sm:$0xff] %v15483_v30  ;;  %v15490_v10 = vadd.f32 %v7975_v29, %v16782_v44 }
 0x5cb   : > { %16781 = vst [vmem:[#allocation9_spill] sm:$0xff] %v15487_v61 }
 0x5cc   : > { %16783 = vst [vmem:[#allocation30_spill] sm:$0xff] %v15490_v10  ;;  %v15492_v48 = vpop.f32.mrb[204].mxu1 }
 0x5cd   : > { %v8602_v58 = vpop.f32.mrb[205].mxu1 }
 0x5ce   : > { %v15494_v23 = vpop.f32.mrb[206].mxu1 }
 0x5cf   : > { %v8605_v24 = vpop.f32.mrb[207].mxu1 }
 0x5d4   : > { %v15496_v36 = vpop.f32.mrb[208].mxu1 }
 0x5d5   : > { %v8610_v26 = vpop.f32.mrb[209].mxu1 }
 0x5d6   : > { %v15498_v17 = vpop.f32.mrb[210].mxu1 }
 0x5d7   : > { %v8613_v32 = vpop.f32.mrb[211].mxu1 }
 0x5dc   : > { %v15500_v47 = vpop.f32.mrb[212].mxu1 }
 0x5dd   : > { %v8618_v16 = vpop.f32.mrb[213].mxu1 }
 0x5de   : > { %v15502_v38 = vpop.f32.mrb[214].mxu1 }
 0x5df   : > { %v8621_v53 = vpop.f32.mrb[215].mxu1 }
 0x5e4   : > { %v15504_v54 = vpop.f32.mrb[216].mxu1 }
 0x5e5   : > { %v8626_v43 = vpop.f32.mrb[217].mxu1 }
 0x5e6   : > { %v15506_v42 = vpop.f32.mrb[218].mxu1 }
 0x5e7   : > { %v8629_v6 = vpop.f32.mrb[219].mxu1 }
 0x5ec   : > { %v15508_v2 = vpop.f32.mrb[220].mxu1 }
 0x5ed   : > { %v8634_v40 = vpop.f32.mrb[221].mxu1 }
 0x5ee   : > { %v15510_v14 = vpop.f32.mrb[222].mxu1 }
 0x5ef   : > { %v8637_v45 = vpop.f32.mrb[223].mxu1 }
 0x5f4   : > { %v15512_v13 = vpop.f32.mrb[224].mxu1 }
 0x5f5   : > { %v8642_v31 = vpop.f32.mrb[225].mxu1 }
 0x5f6   : > { %v15514_v0 = vpop.f32.mrb[226].mxu1 }
 0x5f7   : > { %v8645_v57 = vpop.f32.mrb[227].mxu1 }
 0x5fc   : > { %v15516_v41 = vpop.f32.mrb[228].mxu1 }
 0x5fd   : > { %v8650_v29 = vpop.f32.mrb[229].mxu1 }
 0x5fe   : > { %v15518_v62 = vpop.f32.mrb[230].mxu1 }
 0x5ff   : > { %v8653_v44 = vpop.f32.mrb[231].mxu1 }
 0x604   : > { %v15520_v58 = vpop.f32.mrb[232].mxu1 }
 0x605   : > { %v8658_v24 = vpop.f32.mrb[233].mxu1 }
 0x606   : > { %v15522_v26 = vpop.f32.mrb[234].mxu1 }
 0x607   : > { %v8661_v32 = vpop.f32.mrb[235].mxu1 }
 0x60c   : > { %v15524_v16 = vpop.f32.mrb[236].mxu1 }
 0x60d   : > { %v8666_v53 = vpop.f32.mrb[237].mxu1 }
 0x60e   : > { %v15526_v43 = vpop.f32.mrb[238].mxu1 }
 0x60f   : > { %v8669_v6 = vpop.f32.mrb[239].mxu1 }
 0x614   : > { %v15528_v40 = vpop.f32.mrb[240].mxu1 }
 0x615   : > { %v8674_v45 = vpop.f32.mrb[241].mxu1 }
 0x616   : > { %v15530_v31 = vpop.f32.mrb[242].mxu1 }
 0x617   : > { %v8677_v57 = vpop.f32.mrb[243].mxu1 }
 0x61c   : > { %v15532_v29 = vpop.f32.mrb[244].mxu1 }
 0x61d   : > { %v8682_v44 = vpop.f32.mrb[245].mxu1 }
 0x61e   : > { %v15534_v10 = vpop.f32.mrb[246].mxu1 }
 0x61f   : > { %v8685_v24 = vpop.f32.mrb[247].mxu1 }
 0x624   : > { %v15536_v61 = vpop.f32.mrb[248].mxu1 }
 0x625   : > { %v8690_v32 = vpop.f32.mrb[249].mxu1 }
 0x626   : > { %v15538_v30 = vpop.f32.mrb[250].mxu1 }
 0x627   : > { %v8693_v53 = vpop.f32.mrb[251].mxu1 }
 0x62c   : > { %v15540_v8 = vpop.f32.mrb[252].mxu1 }
 0x62d   : > { %v8698_v6 = vpop.f32.mrb[253].mxu1 }
 0x62e   : > { %v15542_v4 = vpop.f32.mrb[254].mxu1 }
 0x62f   : > { %16784 = vst [vmem:[#allocation20_spill] sm:$0xff] %v15542_v4  ;;  %v8701_v45 = vpop.f32.mrb[255].mxu1 }
 0x634   : > { %v15544_v63 = vpop.f32.mrb[0].mxu1 }
 0x635   : > { %v8706_v57 = vpop.f32.mrb[1].mxu1 }
 0x636   : > { %v15546_v20 = vpop.f32.mrb[2].mxu1 }
 0x637   : > { %16785 = vst [vmem:[#allocation24_spill] sm:$0xff] %v15546_v20  ;;  %v8709_v44 = vpop.f32.mrb[3].mxu1 }
 0x63c   : > { %v15548_v25 = vpop.f32.mrb[4].mxu1 }
 0x63d   : > { %16786 = vst [vmem:[#allocation32_spill] sm:$0xff] %v15548_v25  ;;  %v8714_v24 = vpop.f32.mrb[5].mxu1 }
 0x63e   : > { %v15550_v7 = vpop.f32.mrb[6].mxu1 }
 0x63f   : > { %16787 = vst [vmem:[#allocation18_spill] sm:$0xff] %v15550_v7  ;;  %v8717_v32 = vpop.f32.mrb[7].mxu1 }
 0x644   : > { %v15552_v5 = vpop.f32.mrb[8].mxu1 }
 0x645   : > { %16788 = vst [vmem:[#allocation34_spill] sm:$0xff] %v15552_v5  ;;  %v8722_v53 = vpop.f32.mrb[9].mxu1 }
 0x646   : > { %v15554_v27 = vpop.f32.mrb[10].mxu1 }
 0x647   : > { %16789 = vst [vmem:[#allocation23_spill] sm:$0xff] %v15554_v27  ;;  %v8725_v6 = vpop.f32.mrb[11].mxu1 }
 0x64c   : > { %v15556_v4 = vpop.f32.mrb[12].mxu1 }
 0x64d   : > { %16790 = vst [vmem:[#allocation19_spill] sm:$0xff] %v15556_v4  ;;  %v8730_v45 = vpop.f32.mrb[13].mxu1 }
 0x64e   : > { %v15558_v19 = vpop.f32.mrb[14].mxu1 }
 0x64f   : > { %v8733_v57 = vpop.f32.mrb[15].mxu1 }
 0x654   : > { %v15560_v20 = vpop.f32.mrb[16].mxu1 }
 0x655   : > { %v8738_v44 = vpop.f32.mrb[17].mxu1 }
 0x656   : > { %v15562_v25 = vpop.f32.mrb[18].mxu1 }
 0x657   : > { %v8741_v24 = vpop.f32.mrb[19].mxu1 }
 0x65c   : > { %v10999_v7 = vpop.f32.mrb[20].mxu1 }
 0x65d   : > { %v8786_v32 = vadd.f32 %v10999_v7, %v15496_v36  ;;  %v8777_v5 = vpop.f32.mrb[21].mxu1 }
 0x65e   : > { %v8778_v53 = vadd.f32 %v8777_v5, %v15492_v48  ;;  %v11000_v27 = vpop.f32.mrb[22].mxu1 }
 0x65f   : > { %v8789_v6 = vadd.f32 %v11000_v27, %v15498_v17  ;;  %v8780_v4 = vpop.f32.mrb[23].mxu1  ;;  %v15568_v45 = vadd.f32 %v8786_v32, %v15330_v11 }
 0x660   : > { %v8781_v57 = vadd.f32 %v8780_v4, %v15494_v23  ;;  %v15572_v44 = vadd.f32 %v8778_v53, %v15335_v56 }
 0x661   : > { %9032 = vmax.xlane.f32.xlu1 %v15568_v45  ;;  %v15576_v24 = vadd.f32 %v8789_v6, %v15339_v52 }
 0x662   : > { %9028 = vmax.xlane.f32.xlu0 %v15572_v44  ;;  %v15580_v5 = vadd.f32 %v8781_v57, %v15343_v35 }
 0x664   : > { %v11003_v27 = vpop.f32.mrb[24].mxu1 }
 0x665   : > { %v8802_v7 = vadd.f32 %v11003_v27, %v15504_v54  ;;  %9034 = vmax.xlane.f32.xlu1 %v15576_v24  ;;  %v8793_v11 = vpop.f32.mrb[25].mxu1 }
 0x666   : > { %v8794_v4 = vadd.f32 %v8793_v11, %v15500_v47  ;;  %v11004_v56 = vpop.f32.mrb[26].mxu1  ;;  %9030 = vmax.xlane.f32.xlu0 %v15580_v5 }
 0x667   : > { %v8805_v48 = vadd.f32 %v11004_v56, %v15506_v42  ;;  %v8796_v52 = vpop.f32.mrb[27].mxu1  ;;  %v15588_v23 = vadd.f32 %v8802_v7, %v15348_v9 }
 0x668   : > { %v8797_v35 = vadd.f32 %v8796_v52, %v15502_v38  ;;  %v15592_v36 = vadd.f32 %v8794_v4, %v15353_v37 }
 0x669   : > { %v15595_v17 = vadd.f32 %v8805_v48, %v15357_v60 }
 0x66a   : > { %9040 = vmax.xlane.f32.xlu0 %v15588_v23  ;;  %v15599_v47 = vadd.f32 %v8797_v35, %v15361_v59 }
 0x66b   : > { %9042 = vmax.xlane.f32.xlu1 %v15595_v17 }
 0x66c   : > { %v11007_v54 = vpop.f32.mrb[28].mxu1 }
 0x66d   : > { %v8818_v42 = vadd.f32 %v11007_v54, %v15512_v13  ;;  %v8809_v9 = vpop.f32.mrb[29].mxu1 }
 0x66e   : > { %v8810_v32 = vadd.f32 %v8809_v9, %v15508_v2  ;;  %v11008_v38 = vpop.f32.mrb[30].mxu1  ;;  %9036 = vmax.xlane.f32.xlu0 %v15592_v36 }
 0x66f   : > { %v8821_v37 = vadd.f32 %v11008_v38, %v15514_v0  ;;  %v8812_v60 = vpop.f32.mrb[31].mxu1  ;;  %9038 = vmax.xlane.f32.xlu1 %v15599_v47  ;;  %v15608_v53 = vadd.f32 %v8818_v42, %v15366_v22 }
 0x670   : > { %v8813_v59 = vadd.f32 %v8812_v60, %v15510_v14  ;;  %v15612_v6 = vadd.f32 %v8810_v32, %v15371_v21  ;;  %v16792_v60 = vld [vmem:[#allocation7_spill] sm:$0xff] }
 0x671   : > { %v15615_v13 = vadd.f32 %v8821_v37, %v15375_v50 }
 0x672   : > { %9048 = vmax.xlane.f32.xlu0 %v15608_v53  ;;  %v15619_v2 = vadd.f32 %v8813_v59, %v15379_v18 }
 0x673   : > { %9050 = vmax.xlane.f32.xlu1 %v15615_v13 }
 0x674   : > { %v11011_v0 = vpop.f32.mrb[32].mxu1 }
 0x675   : > { %v8834_v57 = vadd.f32 %v11011_v0, %v15520_v58  ;;  %v8825_v22 = vpop.f32.mrb[33].mxu1 }
 0x676   : > { %v8826_v27 = vadd.f32 %v8825_v22, %v15516_v41  ;;  %v11012_v14 = vpop.f32.mrb[34].mxu1  ;;  %9044 = vmax.xlane.f32.xlu0 %v15612_v6 }
 0x677   : > { %v8837_v21 = vadd.f32 %v11012_v14, %v15522_v26  ;;  %v8828_v50 = vpop.f32.mrb[35].mxu1  ;;  %9046 = vmax.xlane.f32.xlu1 %v15619_v2  ;;  %v15628_v7 = vadd.f32 %v8834_v57, %v15384_v51  ;;  %v16794_v57 = vld [vmem:[#allocation13_spill] sm:$0xff] }
 0x678   : > { %v8829_v18 = vadd.f32 %v8828_v50, %v15518_v62  ;;  %v15632_v11 = vadd.f32 %v8826_v27, %v15389_v3  ;;  %v16797_v50 = vld [vmem:[#allocation34_spill] sm:$0xff] }
 0x679   : > { %v15635_v58 = vadd.f32 %v8837_v21, %v15393_v12 }
 0x67a   : > { %9056 = vmax.xlane.f32.xlu0 %v15628_v7  ;;  %v15639_v41 = vadd.f32 %v8829_v18, %v15399_v15 }
 0x67b   : > { %9058 = vmax.xlane.f32.xlu1 %v15635_v58 }
 0x67c   : > { %v11015_v26 = vpop.f32.mrb[36].mxu1 }
 0x67d   : > { %v8850_v4 = vadd.f32 %v11015_v26, %v15528_v40  ;;  %v8841_v51 = vpop.f32.mrb[37].mxu1 }
 0x67e   : > { %v8842_v56 = vadd.f32 %v8841_v51, %v15524_v16  ;;  %v11016_v62 = vpop.f32.mrb[38].mxu1  ;;  %9052 = vmax.xlane.f32.xlu0 %v15632_v11 }
 0x67f   : > { %v8853_v3 = vadd.f32 %v11016_v62, %v15530_v31  ;;  %v8844_v12 = vpop.f32.mrb[39].mxu1  ;;  %9054 = vmax.xlane.f32.xlu1 %v15639_v41  ;;  %v15648_v48 = vadd.f32 %v8850_v4, %v15404_v39  ;;  %v16798_v4 = vld [vmem:[#allocation32_spill] sm:$0xff]  ;;  %v16799_v62 = vld [vmem:[#allocation23_spill] sm:$0xff] }
 0x680   : > { %v8845_v15 = vadd.f32 %v8844_v12, %v15526_v43  ;;  %v15652_v52 = vadd.f32 %v8842_v56, %v15408_v1 }
 0x681   : > { %v15655_v40 = vadd.f32 %v8853_v3, %v15412_v55 }
 0x682   : > { %9064 = vmax.xlane.f32.xlu0 %v15648_v48  ;;  %v15659_v16 = vadd.f32 %v8845_v15, %v15416_v33  ;;  %v16800_v15 = vld [vmem:[#allocation17_spill] sm:$0xff] }
 0x683   : > { %9066 = vmax.xlane.f32.xlu1 %v15655_v40 }
 0x684   : > { %v11019_v31 = vpop.f32.mrb[40].mxu1 }
 0x685   : > { %v8866_v35 = vadd.f32 %v11019_v31, %v15536_v61  ;;  %v8857_v39 = vpop.f32.mrb[41].mxu1 }
 0x686   : > { %v8858_v54 = vadd.f32 %v8857_v39, %v15532_v29  ;;  %v11020_v43 = vpop.f32.mrb[42].mxu1  ;;  %9060 = vmax.xlane.f32.xlu0 %v15652_v52 }
 0x687   : > { %v8869_v1 = vadd.f32 %v11020_v43, %v15538_v30  ;;  %v8860_v55 = vpop.f32.mrb[43].mxu1  ;;  %9062 = vmax.xlane.f32.xlu1 %v15659_v16  ;;  %v15668_v42 = vadd.f32 %v8866_v35, %v15422_v49  ;;  %v16801_v35 = vld [vmem:[#allocation18_spill] sm:$0xff] }
 0x688   : > { %v8861_v33 = vadd.f32 %v8860_v55, %v15534_v10  ;;  %v15672_v9 = vadd.f32 %v8858_v54, %v15426_v28  ;;  %v16791_v28 = vld [vmem:[#allocation24_spill] sm:$0xff]  ;;  %v16802_v54 = vld [vmem:[#allocation15_spill] sm:$0xff] }
 0x689   : > { %v15675_v61 = vadd.f32 %v8869_v1, %v15430_v34  ;;  %v16803_v1 = vld [vmem:[#allocation39_spill] sm:$0xff] }
 0x68a   : > { %9072 = vmax.xlane.f32.xlu0 %v15668_v42  ;;  %v15679_v29 = vadd.f32 %v8861_v33, %v15434_v46  ;;  %v16793_v46 = vld [vmem:[#allocation20_spill] sm:$0xff]  ;;  %v16804_v33 = vld [vmem:[#allocation37_spill] sm:$0xff] }
 0x68b   : > { %9074 = vmax.xlane.f32.xlu1 %v15675_v61 }
 0x68c   : > { %v11023_v30 = vpop.f32.mrb[44].mxu1 }
 0x68d   : > { %v8882_v32 = vadd.f32 %v11023_v30, %v15544_v63  ;;  %v8873_v49 = vpop.f32.mrb[45].mxu1  ;;  %v16795_v63 = vld [vmem:[#allocation14_spill] sm:$0xff] }
 0x68e   : > { %v8874_v38 = vadd.f32 %v8873_v49, %v15540_v8  ;;  %v11024_v10 = vpop.f32.mrb[46].mxu1  ;;  %9068 = vmax.xlane.f32.xlu0 %v15672_v9  ;;  %v16796_v8 = vld [vmem:[#allocation8_spill] sm:$0xff] }
 0x68f   : > { %v8885_v37 = vadd.f32 %v11024_v10, %v16791_v28  ;;  %v8876_v34 = vpop.f32.mrb[47].mxu1  ;;  %9070 = vmax.xlane.f32.xlu1 %v15679_v29  ;;  %v15688_v59 = vadd.f32 %v8882_v32, %v16792_v60  ;;  %v16805_v10 = vld [vmem:[#allocation19_spill] sm:$0xff] }
 0x690   : > { %v8877_v0 = vadd.f32 %v8876_v34, %v16793_v46  ;;  %v15692_v22 = vadd.f32 %v8874_v38, %v16794_v57  ;;  %v16806_v46 = vld [vmem:[#allocation27_spill] sm:$0xff] }
 0x691   : > { %v15695_v27 = vadd.f32 %v8885_v37, %v16795_v63  ;;  %v16807_v63 = vld [vmem:[#allocation40_spill] sm:$0xff] }
 0x692   : > { %9080 = vmax.xlane.f32.xlu0 %v15688_v59  ;;  %v15699_v14 = vadd.f32 %v8877_v0, %v16796_v8 }
 0x693   : > { %9082 = vmax.xlane.f32.xlu1 %v15695_v27 }
 0x694   : > { %v11027_v21 = vpop.f32.mrb[48].mxu1 }
 0x695   : > { %v8898_v18 = vadd.f32 %v11027_v21, %v16797_v50  ;;  %v8889_v26 = vpop.f32.mrb[49].mxu1  ;;  %v16809_v50 = vld [vmem:[#allocation30_spill] sm:$0xff] }
 0x696   : > { %v8890_v51 = vadd.f32 %v8889_v26, %v16798_v4  ;;  %v11028_v56 = vpop.f32.mrb[50].mxu1  ;;  %9076 = vmax.xlane.f32.xlu0 %v15692_v22 }
 0x697   : > { %v8901_v3 = vadd.f32 %v11028_v56, %v16799_v62  ;;  %v8892_v12 = vpop.f32.mrb[51].mxu1  ;;  %9078 = vmax.xlane.f32.xlu1 %v15699_v14  ;;  %v15708_v31 = vadd.f32 %v8898_v18, %v16800_v15 }
 0x698   : > { %v8893_v39 = vadd.f32 %v8892_v12, %v16801_v35  ;;  %v15712_v43 = vadd.f32 %v8890_v51, %v16802_v54 }
 0x699   : > { %v15715_v55 = vadd.f32 %v8901_v3, %v16803_v1 }
 0x69a   : > { %9088 = vmax.xlane.f32.xlu0 %v15708_v31  ;;  %v15719_v30 = vadd.f32 %v8893_v39, %v16804_v33 }
 0x69b   : > { %9090 = vmax.xlane.f32.xlu1 %v15715_v55 }
 0x69c   : > { %v11031_v32 = vpop.f32.mrb[52].mxu1 }
 0x69d   : > { %v8914_v49 = vadd.f32 %v11031_v32, %v15560_v20  ;;  %v8905_v38 = vpop.f32.mrb[53].mxu1  ;;  %v16808_v20 = vld [vmem:[#allocation9_spill] sm:$0xff] }
 0x69e   : > { %v8906_v28 = vadd.f32 %v8905_v38, %v16805_v10  ;;  %v11032_v37 = vpop.f32.mrb[54].mxu1  ;;  %9084 = vmax.xlane.f32.xlu0 %v15712_v43 }
 0x69f   : > { %v8917_v34 = vadd.f32 %v11032_v37, %v15562_v25  ;;  %v8908_v60 = vpop.f32.mrb[55].mxu1  ;;  %9086 = vmax.xlane.f32.xlu1 %v15719_v30  ;;  %v15728_v0 = vadd.f32 %v8914_v49, %v16806_v46 }
 0x6a0   : > { %v8909_v57 = vadd.f32 %v8908_v60, %v15558_v19  ;;  %v15732_v8 = vadd.f32 %v8906_v28, %v16807_v63 }
 0x6a1   : > { %v15735_v21 = vadd.f32 %v8917_v34, %v16808_v20 }
 0x6a2   : > { %9092 = vmax.xlane.f32.xlu0 %v15732_v8  ;;  %v15739_v18 = vadd.f32 %v8909_v57, %v16809_v50 }
 0x6a4   : > { %9094 = vmax.xlane.f32.xlu1 %v15739_v18 }
 0x6a6   : > { %9096 = vmax.xlane.f32.xlu0 %v15728_v0 }
 0x6a8   : > { %9098 = vmax.xlane.f32.xlu1 %v15735_v21 }
 0x6ee   : > { %v9033_v25 = vpop.xlane.xlu1 %9032 }
 0x6ef   : > { %v9102_v19 = vsub.f32 %v15568_v45, %v9033_v25  ;;  %v9029_v26 = vpop.xlane.xlu0 %9028 }
 0x6f0   : > { %v9100_v4 = vsub.f32 %v15572_v44, %v9029_v26 }
 0x6f1   : > { %v9140_v51 = vmul.f32 1.442695, %v9102_v19 }
 0x6f2   : > { %v9136_v56 = vmul.f32 1.442695, %v9100_v4  ;;  %v9035_v62 = vpop.xlane.xlu1 %9034 }
 0x6f3   : > { %11687 = vpow2.f32 %v9140_v51  ;;  %v9103_v3 = vsub.f32 %v15576_v24, %v9035_v62  ;;  %v9031_v12 = vpop.xlane.xlu0 %9030 }
 0x6f4   : > { %v9101_v15 = vsub.f32 %v15580_v5, %v9031_v12  ;;  %11689 = vpow2.f32 %v9136_v56 }
 0x6f5   : > { %v9142_v35 = vmul.f32 1.442695, %v9103_v3 }
 0x6f6   : > { %v9138_v39 = vmul.f32 1.442695, %v9101_v15 }
 0x6f7   : > { %11691 = vpow2.f32 %v9142_v35  ;;  %v9041_v54 = vpop.xlane.xlu0 %9040 }
 0x6f8   : > { %v9106_v1 = vsub.f32 %v15588_v23, %v9041_v54  ;;  %v9043_v45 = vpop.xlane.xlu1 %9042  ;;  %11693 = vpow2.f32 %v9138_v39 }
 0x6f9   : > { %v9107_v33 = vsub.f32 %v15595_v17, %v9043_v45 }
 0x6fa   : > { %v9148_v44 = vmul.f32 1.442695, %v9106_v1 }
 0x6fb   : > { %v9150_v32 = vmul.f32 1.442695, %v9107_v33  ;;  %v9037_v49 = vpop.xlane.xlu0 %9036 }
 0x6fc   : > { %11695 = vpow2.f32 %v9148_v44  ;;  %v9104_v24 = vsub.f32 %v15592_v36, %v9037_v49  ;;  %v9039_v38 = vpop.xlane.xlu1 %9038 }
 0x6fd   : > { %v15751_v10 = vpop.eup %11687  ;;  %v9105_v5 = vsub.f32 %v15599_v47, %v9039_v38  ;;  %11697 = vpow2.f32 %v9150_v32 }
 0x6fe   : > { %v9144_v28 = vmul.f32 1.442695, %v9104_v24  ;;  %9212 = vadd.xlane.f32.xlu0 %v15751_v10  ;;  %v15755_v34 = vpop.eup %11689 }
 0x6ff   : > { %v9146_v23 = vmul.f32 1.442695, %v9105_v5  ;;  %v9049_v37 = vpop.xlane.xlu0 %9048 }
 0x700   : > { %11699 = vpow2.f32 %v9144_v28  ;;  %v9110_v17 = vsub.f32 %v15608_v53, %v9049_v37  ;;  %v9051_v60 = vpop.xlane.xlu1 %9050 }
 0x701   : > { %v15758_v46 = vpop.eup %11691  ;;  %v9111_v36 = vsub.f32 %v15615_v13, %v9051_v60  ;;  %11701 = vpow2.f32 %v9146_v23 }
 0x702   : > { %v9156_v57 = vmul.f32 1.442695, %v9110_v17  ;;  %9214 = vadd.xlane.f32.xlu1 %v15758_v46  ;;  %9208 = vadd.xlane.f32.xlu0 %v15755_v34  ;;  %v15764_v25 = vpop.eup %11693 }
 0x703   : > { %v9158_v47 = vmul.f32 1.442695, %v9111_v36  ;;  %v9045_v63 = vpop.xlane.xlu0 %9044 }
 0x704   : > { %11703 = vpow2.f32 %v9156_v57  ;;  %v9108_v20 = vsub.f32 %v15612_v6, %v9045_v63  ;;  %v9047_v50 = vpop.xlane.xlu1 %9046 }
 0x705   : > { %v9109_v53 = vsub.f32 %v15619_v2, %v9047_v50  ;;  %11705 = vpow2.f32 %v9158_v47 }
 0x706   : > { %v15767_v19 = vpop.eup %11695  ;;  %v9152_v26 = vmul.f32 1.442695, %v9108_v20  ;;  %9210 = vadd.xlane.f32.xlu1 %v15764_v25 }
 0x707   : > { %v9154_v13 = vmul.f32 1.442695, %v9109_v53  ;;  %v9057_v4 = vpop.xlane.xlu0 %9056  ;;  %9220 = vadd.xlane.f32.xlu0 %v15767_v19  ;;  %v15772_v6 = vpop.eup %11697 }
 0x708   : > { %11707 = vpow2.f32 %v9152_v26  ;;  %v9114_v51 = vsub.f32 %v15628_v7, %v9057_v4  ;;  %v9059_v56 = vpop.xlane.xlu1 %9058 }
 0x709   : > { %v9115_v62 = vsub.f32 %v15635_v58, %v9059_v56  ;;  %11709 = vpow2.f32 %v9154_v13 }
 0x70a   : > { %v15775_v3 = vpop.eup %11699  ;;  %v9164_v2 = vmul.f32 1.442695, %v9114_v51  ;;  %9222 = vadd.xlane.f32.xlu1 %v15772_v6 }
 0x70b   : > { %v9166_v12 = vmul.f32 1.442695, %v9115_v62  ;;  %v9053_v15 = vpop.xlane.xlu0 %9052  ;;  %9216 = vadd.xlane.f32.xlu0 %v15775_v3  ;;  %v15780_v7 = vpop.eup %11701 }
 0x70c   : > { %11711 = vpow2.f32 %v9164_v2  ;;  %v9112_v35 = vsub.f32 %v15632_v11, %v9053_v15  ;;  %v9055_v39 = vpop.xlane.xlu1 %9054 }
 0x70d   : > { %v9113_v54 = vsub.f32 %v15639_v41, %v9055_v39  ;;  %11713 = vpow2.f32 %v9166_v12 }
 0x70e   : > { %v15783_v1 = vpop.eup %11703  ;;  %v9160_v58 = vmul.f32 1.442695, %v9112_v35  ;;  %9218 = vadd.xlane.f32.xlu1 %v15780_v7 }
 0x70f   : > { %v9162_v45 = vmul.f32 1.442695, %v9113_v54  ;;  %v9065_v33 = vpop.xlane.xlu0 %9064  ;;  %9228 = vadd.xlane.f32.xlu0 %v15783_v1  ;;  %v15788_v11 = vpop.eup %11705 }
 0x710   : > { %11715 = vpow2.f32 %v9160_v58  ;;  %v9118_v44 = vsub.f32 %v15648_v48, %v9065_v33  ;;  %v9067_v32 = vpop.xlane.xlu1 %9066 }
 0x711   : > { %v9119_v49 = vsub.f32 %v15655_v40, %v9067_v32  ;;  %11717 = vpow2.f32 %v9162_v45 }
 0x712   : > { %v15791_v24 = vpop.eup %11707  ;;  %v9172_v41 = vmul.f32 1.442695, %v9118_v44  ;;  %9230 = vadd.xlane.f32.xlu1 %v15788_v11 }
 0x713   : > { %v9174_v38 = vmul.f32 1.442695, %v9119_v49  ;;  %v9061_v5 = vpop.xlane.xlu0 %9060  ;;  %9224 = vadd.xlane.f32.xlu0 %v15791_v24  ;;  %v15796_v48 = vpop.eup %11709 }
 0x714   : > { %11719 = vpow2.f32 %v9172_v41  ;;  %v9116_v28 = vsub.f32 %v15652_v52, %v9061_v5  ;;  %v9063_v23 = vpop.xlane.xlu1 %9062 }
 0x715   : > { %v9117_v37 = vsub.f32 %v15659_v16, %v9063_v23  ;;  %11721 = vpow2.f32 %v9174_v38 }
 0x716   : > { %v15799_v17 = vpop.eup %11711  ;;  %v9168_v40 = vmul.f32 1.442695, %v9116_v28  ;;  %9226 = vadd.xlane.f32.xlu1 %v15796_v48 }
 0x717   : > { %v9170_v60 = vmul.f32 1.442695, %v9117_v37  ;;  %v9073_v36 = vpop.xlane.xlu0 %9072  ;;  %9236 = vadd.xlane.f32.xlu0 %v15799_v17  ;;  %v15804_v52 = vpop.eup %11713 }
 0x718   : > { %11723 = vpow2.f32 %v9168_v40  ;;  %v9122_v57 = vsub.f32 %v15668_v42, %v9073_v36  ;;  %v9075_v47 = vpop.xlane.xlu1 %9074 }
 0x719   : > { %v9123_v63 = vsub.f32 %v15675_v61, %v9075_v47  ;;  %11725 = vpow2.f32 %v9170_v60 }
 0x71a   : > { %v15807_v20 = vpop.eup %11715  ;;  %v9180_v16 = vmul.f32 1.442695, %v9122_v57  ;;  %9238 = vadd.xlane.f32.xlu1 %v15804_v52 }
 0x71b   : > { %v9182_v50 = vmul.f32 1.442695, %v9123_v63  ;;  %v9069_v53 = vpop.xlane.xlu0 %9068  ;;  %9232 = vadd.xlane.f32.xlu0 %v15807_v20  ;;  %v15812_v42 = vpop.eup %11717 }
 0x71c   : > { %11727 = vpow2.f32 %v9180_v16  ;;  %v9120_v26 = vsub.f32 %v15672_v9, %v9069_v53  ;;  %v9071_v13 = vpop.xlane.xlu1 %9070 }
 0x71d   : > { %v9121_v4 = vsub.f32 %v15679_v29, %v9071_v13  ;;  %11729 = vpow2.f32 %v9182_v50 }
 0x71e   : > { %v15815_v51 = vpop.eup %11719  ;;  %v9176_v61 = vmul.f32 1.442695, %v9120_v26  ;;  %9234 = vadd.xlane.f32.xlu1 %v15812_v42 }
 0x71f   : > { %v9178_v56 = vmul.f32 1.442695, %v9121_v4  ;;  %v9081_v62 = vpop.xlane.xlu0 %9080  ;;  %9244 = vadd.xlane.f32.xlu0 %v15815_v51  ;;  %v15820_v9 = vpop.eup %11721 }
 0x720   : > { %11731 = vpow2.f32 %v9176_v61  ;;  %v9126_v2 = vsub.f32 %v15688_v59, %v9081_v62  ;;  %v9083_v12 = vpop.xlane.xlu1 %9082 }
 0x721   : > { %v9127_v15 = vsub.f32 %v15695_v27, %v9083_v12  ;;  %11733 = vpow2.f32 %v9178_v56 }
 0x722   : > { %v15823_v35 = vpop.eup %11723  ;;  %v9188_v29 = vmul.f32 1.442695, %v9126_v2  ;;  %9246 = vadd.xlane.f32.xlu1 %v15820_v9 }
 0x723   : > { %v9190_v39 = vmul.f32 1.442695, %v9127_v15  ;;  %v9077_v54 = vpop.xlane.xlu0 %9076  ;;  %9240 = vadd.xlane.f32.xlu0 %v15823_v35  ;;  %v15828_v59 = vpop.eup %11725 }
 0x724   : > { %11735 = vpow2.f32 %v9188_v29  ;;  %v9124_v58 = vsub.f32 %v15692_v22, %v9077_v54  ;;  %v9079_v45 = vpop.xlane.xlu1 %9078 }
 0x725   : > { %v9125_v33 = vsub.f32 %v15699_v14, %v9079_v45  ;;  %11737 = vpow2.f32 %v9190_v39 }
 0x726   : > { %v15831_v44 = vpop.eup %11727  ;;  %v9184_v27 = vmul.f32 1.442695, %v9124_v58  ;;  %9242 = vadd.xlane.f32.xlu1 %v15828_v59 }
 0x727   : > { %v9186_v32 = vmul.f32 1.442695, %v9125_v33  ;;  %v9089_v49 = vpop.xlane.xlu0 %9088  ;;  %9252 = vadd.xlane.f32.xlu0 %v15831_v44  ;;  %v15836_v22 = vpop.eup %11729 }
 0x728   : > { %11739 = vpow2.f32 %v9184_v27  ;;  %v9130_v41 = vsub.f32 %v15708_v31, %v9089_v49  ;;  %v9091_v38 = vpop.xlane.xlu1 %9090 }
 0x729   : > { %v9131_v5 = vsub.f32 %v15715_v55, %v9091_v38  ;;  %11741 = vpow2.f32 %v9186_v32 }
 0x72a   : > { %v15839_v28 = vpop.eup %11731  ;;  %v9196_v14 = vmul.f32 1.442695, %v9130_v41  ;;  %9254 = vadd.xlane.f32.xlu1 %v15836_v22 }
 0x72b   : > { %v9198_v23 = vmul.f32 1.442695, %v9131_v5  ;;  %v9085_v37 = vpop.xlane.xlu0 %9084  ;;  %9248 = vadd.xlane.f32.xlu0 %v15839_v28  ;;  %v15844_v31 = vpop.eup %11733 }
 0x72c   : > { %11743 = vpow2.f32 %v9196_v14  ;;  %v9128_v40 = vsub.f32 %v15712_v43, %v9085_v37  ;;  %v9087_v60 = vpop.xlane.xlu1 %9086 }
 0x72d   : > { %v9129_v36 = vsub.f32 %v15719_v30, %v9087_v60  ;;  %11745 = vpow2.f32 %v9198_v23 }
 0x72e   : > { %v15847_v57 = vpop.eup %11735  ;;  %v9192_v55 = vmul.f32 1.442695, %v9128_v40  ;;  %9250 = vadd.xlane.f32.xlu1 %v15844_v31 }
 0x72f   : > { %v9194_v47 = vmul.f32 1.442695, %v9129_v36  ;;  %v9093_v63 = vpop.xlane.xlu0 %9092  ;;  %9260 = vadd.xlane.f32.xlu0 %v15847_v57  ;;  %v15852_v50 = vpop.eup %11737 }
 0x730   : > { %11747 = vpow2.f32 %v9192_v55  ;;  %v9132_v16 = vsub.f32 %v15732_v8, %v9093_v63 }
 0x731   : > { %v9095_v43 = vpop.xlane.xlu1 %9094  ;;  %11749 = vpow2.f32 %v9194_v47 }
 0x732   : > { %v15854_v53 = vpop.eup %11739  ;;  %v9200_v26 = vmul.f32 1.442695, %v9132_v16  ;;  %v9133_v30 = vsub.f32 %v15739_v18, %v9095_v43  ;;  %9262 = vadd.xlane.f32.xlu1 %v15852_v50 }
 0x733   : > { %9256 = vadd.xlane.f32.xlu0 %v15854_v53  ;;  %v9097_v13 = vpop.xlane.xlu0 %9096  ;;  %v15860_v56 = vpop.eup %11741 }
 0x734   : > { %11751 = vpow2.f32 %v9200_v26  ;;  %v9202_v4 = vmul.f32 1.442695, %v9133_v30  ;;  %v9134_v61 = vsub.f32 %v15728_v0, %v9097_v13 }
 0x735   : > { %v9099_v8 = vpop.xlane.xlu1 %9098 }
 0x736   : > { %v15862_v62 = vpop.eup %11743  ;;  %11753 = vpow2.f32 %v9202_v4  ;;  %v9204_v2 = vmul.f32 1.442695, %v9134_v61  ;;  %v9135_v12 = vsub.f32 %v15735_v21, %v9099_v8  ;;  %9258 = vadd.xlane.f32.xlu1 %v15860_v56 }
 0x737   : > { %9268 = vadd.xlane.f32.xlu0 %v15862_v62  ;;  %v15867_v15 = vpop.eup %11745 }
 0x738   : > { %11755 = vpow2.f32 %v9204_v2  ;;  %v9206_v18 = vmul.f32 1.442695, %v9135_v12 }
 0x73a   : > { %v15869_v29 = vpop.eup %11747  ;;  %11757 = vpow2.f32 %v9206_v18  ;;  %9270 = vadd.xlane.f32.xlu1 %v15867_v15 }
 0x73b   : > { %9264 = vadd.xlane.f32.xlu0 %v15869_v29  ;;  %v15873_v0 = vpop.eup %11749 }
 0x73e   : > { %v15875_v39 = vpop.eup %11751  ;;  %9266 = vadd.xlane.f32.xlu1 %v15873_v0 }
 0x73f   : > { %9272 = vadd.xlane.f32.xlu0 %v15875_v39 }
 0x740   : > { %v15879_v21 = vpop.eup %11753 }
 0x742   : > { %v15881_v54 = vpop.eup %11755  ;;  %9274 = vadd.xlane.f32.xlu1 %v15879_v21 }
 0x743   : > { %9276 = vadd.xlane.f32.xlu0 %v15881_v54 }
 0x744   : > { %v15885_v58 = vpop.eup %11757 }
 0x746   : > { %9278 = vadd.xlane.f32.xlu1 %v15885_v58 }
 0x78b   : > { %v9213_v45 = vpop.xlane.xlu0 %9212 }
 0x78c   : > { %11759 = vrcp.f32 %v9213_v45 }
 0x78f   : > { %v9215_v33 = vpop.xlane.xlu1 %9214  ;;  %v9209_v27 = vpop.xlane.xlu0 %9208 }
 0x790   : > { %11761 = vrcp.f32 %v9215_v33 }
 0x791   : > { %11763 = vrcp.f32 %v9209_v27 }
 0x793   : > { %v9211_v32 = vpop.xlane.xlu1 %9210 }
 0x794   : > { %11765 = vrcp.f32 %v9211_v32  ;;  %v9221_v49 = vpop.xlane.xlu0 %9220 }
 0x795   : > { %11767 = vrcp.f32 %v9221_v49 }
 0x796   : > { %v11760_v38 = vpop.eup %11759 }
 0x797   : > { %v9223_v41 = vpop.xlane.xlu1 %9222  ;;  %v9318_v23 = vmul.f32 %v11760_v38, %v15751_v10 }
 0x798   : > { %11769 = vrcp.f32 %v9223_v41  ;;  %v9217_v5 = vpop.xlane.xlu0 %9216 }
 0x799   : > { %11771 = vrcp.f32 %v9217_v5 }
 0x79a   : > { %v11762_v14 = vpop.eup %11761 }
 0x79b   : > { %v9319_v37 = vmul.f32 %v11762_v14, %v15758_v46  ;;  %v9219_v40 = vpop.xlane.xlu1 %9218  ;;  %v11764_v60 = vpop.eup %11763 }
 0x79c   : > { %11773 = vrcp.f32 %v9219_v40  ;;  %v9229_v36 = vpop.xlane.xlu0 %9228  ;;  %v9316_v63 = vmul.f32 %v11764_v60, %v15755_v34 }
 0x79d   : > { %v10187_v55 = vpack.c.bf16 %v9319_v37, %v9318_v23  ;;  %11775 = vrcp.f32 %v9229_v36 }
 0x79e   : > { %v11766_v47 = vpop.eup %11765 }
 0x79f   : > { %10269 = vst [vmem:[%s15894_s26 + $0x8] sm:$0xff] %v10187_v55   ;;  %v9317_v10 = vmul.f32 %v11766_v47, %v15764_v25  ;;  %v9231_v46 = vpop.xlane.xlu1 %9230  ;;  %v11768_v16 = vpop.eup %11767 }
 0x7a0   : > { %11777 = vrcp.f32 %v9231_v46  ;;  %v9225_v43 = vpop.xlane.xlu0 %9224  ;;  %v9322_v13 = vmul.f32 %v11768_v16, %v15767_v19 }
 0x7a1   : > { %v10182_v26 = vpack.c.bf16 %v9317_v10, %v9316_v63  ;;  %11779 = vrcp.f32 %v9225_v43 }
 0x7a2   : > { %v11770_v30 = vpop.eup %11769 }
 0x7a3   : > { %10183 = vst [vmem:[%s15894_s26] sm:$0xff] %v10182_v26   ;;  %v9323_v4 = vmul.f32 %v11770_v30, %v15772_v6  ;;  %v9227_v61 = vpop.xlane.xlu1 %9226  ;;  %v11772_v8 = vpop.eup %11771 }
 0x7a4   : > { %11781 = vrcp.f32 %v9227_v61  ;;  %v9237_v34 = vpop.xlane.xlu0 %9236  ;;  %v9320_v12 = vmul.f32 %v11772_v8, %v15775_v3 }
 0x7a5   : > { %v10197_v2 = vpack.c.bf16 %v9323_v4, %v9322_v13  ;;  %11783 = vrcp.f32 %v9237_v34 }
 0x7a6   : > { %v11774_v25 = vpop.eup %11773 }
 0x7a7   : > { %10271 = vst [vmem:[%s15894_s26 + $0x18] sm:$0xff] %v10197_v2   ;;  %v9321_v18 = vmul.f32 %v11774_v25, %v15780_v7  ;;  %v9239_v45 = vpop.xlane.xlu1 %9238  ;;  %v11776_v33 = vpop.eup %11775 }
 0x7a8   : > { %11785 = vrcp.f32 %v9239_v45  ;;  %v9233_v19 = vpop.xlane.xlu0 %9232  ;;  %v9326_v32 = vmul.f32 %v11776_v33, %v15783_v1 }
 0x7a9   : > { %v10192_v27 = vpack.c.bf16 %v9321_v18, %v9320_v12  ;;  %11787 = vrcp.f32 %v9233_v19 }
 0x7aa   : > { %v11778_v6 = vpop.eup %11777 }
 0x7ab   : > { %10270 = vst [vmem:[%s15894_s26 + $0x10] sm:$0xff] %v10192_v27   ;;  %v9327_v49 = vmul.f32 %v11778_v6, %v15788_v11  ;;  %v9235_v41 = vpop.xlane.xlu1 %9234  ;;  %v11780_v38 = vpop.eup %11779 }
 0x7ac   : > { %11789 = vrcp.f32 %v9235_v41  ;;  %v9245_v3 = vpop.xlane.xlu0 %9244  ;;  %v9324_v14 = vmul.f32 %v11780_v38, %v15791_v24 }
 0x7ad   : > { %v10207_v5 = vpack.c.bf16 %v9327_v49, %v9326_v32  ;;  %11791 = vrcp.f32 %v9245_v3 }
 0x7ae   : > { %v11782_v7 = vpop.eup %11781 }
 0x7af   : > { %10273 = vst [vmem:[%s15894_s26 + $0x28] sm:$0xff] %v10207_v5   ;;  %v9325_v23 = vmul.f32 %v11782_v7, %v15796_v48  ;;  %v9247_v37 = vpop.xlane.xlu1 %9246  ;;  %v11784_v40 = vpop.eup %11783 }
 0x7b0   : > { %11793 = vrcp.f32 %v9247_v37  ;;  %v9241_v1 = vpop.xlane.xlu0 %9240  ;;  %v9330_v36 = vmul.f32 %v11784_v40, %v15799_v17 }
 0x7b1   : > { %v10202_v60 = vpack.c.bf16 %v9325_v23, %v9324_v14  ;;  %11795 = vrcp.f32 %v9241_v1 }
 0x7b2   : > { %v11786_v11 = vpop.eup %11785 }
 0x7b3   : > { %10272 = vst [vmem:[%s15894_s26 + $0x20] sm:$0xff] %v10202_v60   ;;  %v9331_v55 = vmul.f32 %v11786_v11, %v15804_v52  ;;  %v9243_v47 = vpop.xlane.xlu1 %9242  ;;  %v11788_v63 = vpop.eup %11787 }
 0x7b4   : > { %11797 = vrcp.f32 %v9243_v47  ;;  %v9253_v24 = vpop.xlane.xlu0 %9252  ;;  %v9328_v46 = vmul.f32 %v11788_v63, %v15807_v20 }
 0x7b5   : > { %v10217_v10 = vpack.c.bf16 %v9331_v55, %v9330_v36  ;;  %11799 = vrcp.f32 %v9253_v24 }
 0x7b6   : > { %v11790_v48 = vpop.eup %11789 }
 0x7b7   : > { %10275 = vst [vmem:[%s15894_s26 + $0x38] sm:$0xff] %v10217_v10   ;;  %v9329_v16 = vmul.f32 %v11790_v48, %v15812_v42  ;;  %v9255_v43 = vpop.xlane.xlu1 %9254  ;;  %v11792_v26 = vpop.eup %11791 }
 0x7b8   : > { %11801 = vrcp.f32 %v9255_v43  ;;  %v9249_v17 = vpop.xlane.xlu0 %9248  ;;  %v9334_v13 = vmul.f32 %v11792_v26, %v15815_v51 }
 0x7b9   : > { %v10212_v30 = vpack.c.bf16 %v9329_v16, %v9328_v46  ;;  %11803 = vrcp.f32 %v9249_v17 }
 0x7ba   : > { %v11794_v52 = vpop.eup %11793 }
 0x7bb   : > { %10274 = vst [vmem:[%s15894_s26 + $0x30] sm:$0xff] %v10212_v30   ;;  %v9335_v4 = vmul.f32 %v11794_v52, %v15820_v9  ;;  %v9251_v61 = vpop.xlane.xlu1 %9250  ;;  %v11796_v8 = vpop.eup %11795 }
 0x7bc   : > { %11805 = vrcp.f32 %v9251_v61  ;;  %v9261_v20 = vpop.xlane.xlu0 %9260  ;;  %v9332_v2 = vmul.f32 %v11796_v8, %v15823_v35 }
 0x7bd   : > { %v10227_v34 = vpack.c.bf16 %v9335_v4, %v9334_v13  ;;  %11807 = vrcp.f32 %v9261_v20 }
 0x7be   : > { %v11798_v42 = vpop.eup %11797 }
 0x7bf   : > { %10277 = vst [vmem:[%s15894_s26 + $0x48] sm:$0xff] %v10227_v34   ;;  %v9333_v25 = vmul.f32 %v11798_v42, %v15828_v59  ;;  %v9263_v12 = vpop.xlane.xlu1 %9262  ;;  %v11800_v18 = vpop.eup %11799 }
 0x7c0   : > { %11809 = vrcp.f32 %v9263_v12  ;;  %v9257_v51 = vpop.xlane.xlu0 %9256  ;;  %v9338_v33 = vmul.f32 %v11800_v18, %v15831_v44 }
 0x7c1   : > { %v10222_v45 = vpack.c.bf16 %v9333_v25, %v9332_v2  ;;  %11811 = vrcp.f32 %v9257_v51 }
 0x7c2   : > { %v11802_v9 = vpop.eup %11801 }
 0x7c3   : > { %10276 = vst [vmem:[%s15894_s26 + $0x40] sm:$0xff] %v10222_v45   ;;  %v9339_v19 = vmul.f32 %v11802_v9, %v15836_v22  ;;  %v9259_v27 = vpop.xlane.xlu1 %9258  ;;  %v11804_v6 = vpop.eup %11803 }
 0x7c4   : > { %11813 = vrcp.f32 %v9259_v27  ;;  %v9269_v35 = vpop.xlane.xlu0 %9268  ;;  %v9336_v49 = vmul.f32 %v11804_v6, %v15839_v28 }
 0x7c5   : > { %v10237_v32 = vpack.c.bf16 %v9339_v19, %v9338_v33  ;;  %11815 = vrcp.f32 %v9269_v35 }
 0x7c6   : > { %v11806_v59 = vpop.eup %11805 }
 0x7c7   : > { %10279 = vst [vmem:[%s15894_s26 + $0x58] sm:$0xff] %v10237_v32   ;;  %v9337_v41 = vmul.f32 %v11806_v59, %v15844_v31  ;;  %v9271_v38 = vpop.xlane.xlu1 %9270  ;;  %v11808_v3 = vpop.eup %11807 }
 0x7c8   : > { %11817 = vrcp.f32 %v9271_v38  ;;  %v9265_v44 = vpop.xlane.xlu0 %9264  ;;  %v9342_v7 = vmul.f32 %v11808_v3, %v15847_v57 }
 0x7c9   : > { %v10232_v5 = vpack.c.bf16 %v9337_v41, %v9336_v49  ;;  %11819 = vrcp.f32 %v9265_v44 }
 0x7ca   : > { %v11810_v22 = vpop.eup %11809 }
 0x7cb   : > { %10278 = vst [vmem:[%s15894_s26 + $0x50] sm:$0xff] %v10232_v5   ;;  %v9343_v14 = vmul.f32 %v11810_v22, %v15852_v50  ;;  %v9267_v23 = vpop.xlane.xlu1 %9266  ;;  %v11812_v37 = vpop.eup %11811 }
 0x7cc   : > { %11821 = vrcp.f32 %v9267_v23  ;;  %v9273_v28 = vpop.xlane.xlu0 %9272  ;;  %v9340_v1 = vmul.f32 %v11812_v37, %v15854_v53 }
 0x7cd   : > { %v10247_v40 = vpack.c.bf16 %v9343_v14, %v9342_v7  ;;  %11823 = vrcp.f32 %v9273_v28 }
 0x7ce   : > { %v11814_v31 = vpop.eup %11813 }
 0x7cf   : > { %10281 = vst [vmem:[%s15894_s26 + $0x68] sm:$0xff] %v10247_v40   ;;  %v9341_v60 = vmul.f32 %v11814_v31, %v15860_v56  ;;  %v9275_v11 = vpop.xlane.xlu1 %9274  ;;  %v11816_v36 = vpop.eup %11815 }
 0x7d0   : > { %11825 = vrcp.f32 %v9275_v11  ;;  %v9277_v57 = vpop.xlane.xlu0 %9276  ;;  %v9346_v47 = vmul.f32 %v11816_v36, %v15862_v62 }
 0x7d1   : > { %v10242_v55 = vpack.c.bf16 %v9341_v60, %v9340_v1  ;;  %11827 = vrcp.f32 %v9277_v57 }
 0x7d2   : > { %v11818_v50 = vpop.eup %11817 }
 0x7d3   : > { %10280 = vst [vmem:[%s15894_s26 + $0x60] sm:$0xff] %v10242_v55   ;;  %v9347_v63 = vmul.f32 %v11818_v50, %v15867_v15  ;;  %v9279_v24 = vpop.xlane.xlu1 %9278  ;;  %v11820_v10 = vpop.eup %11819 }
 0x7d4   : > { %11829 = vrcp.f32 %v9279_v24  ;;  %v9344_v48 = vmul.f32 %v11820_v10, %v15869_v29 }
 0x7d5   : > { %v10257_v53 = vpack.c.bf16 %v9347_v63, %v9346_v47 }
 0x7d6   : > { %v11822_v56 = vpop.eup %11821 }
 0x7d7   : > { %10283 = vst [vmem:[%s15894_s26 + $0x78] sm:$0xff] %v10257_v53   ;;  %v9345_v46 = vmul.f32 %v11822_v56, %v15873_v0  ;;  %v11824_v16 = vpop.eup %11823 }
 0x7d8   : > { %v9348_v62 = vmul.f32 %v11824_v16, %v15875_v39 }
 0x7d9   : > { %v10252_v43 = vpack.c.bf16 %v9345_v46, %v9344_v48 }
 0x7da   : > { %v11826_v26 = vpop.eup %11825 }
 0x7db   : > { %10282 = vst [vmem:[%s15894_s26 + $0x70] sm:$0xff] %v10252_v43   ;;  %v9349_v15 = vmul.f32 %v11826_v26, %v15879_v21  ;;  %v11828_v17 = vpop.eup %11827 }
 0x7dc   : > { %v9350_v13 = vmul.f32 %v11828_v17, %v15881_v54 }
 0x7dd   : > { %v10262_v30 = vpack.c.bf16 %v9349_v15, %v9348_v62 }
 0x7de   : > { %v11830_v52 = vpop.eup %11829 }
 0x7df   : > { %10284 = vst [vmem:[%s15894_s26 + $0x80] sm:$0xff] %v10262_v30   ;;  %v9351_v4 = vmul.f32 %v11830_v52, %v15885_v58 }
 0x7e1   : > { %v10267_v61 = vpack.c.bf16 %v9351_v4, %v9350_v13 }
 0x7e3   : > { %10285 = vst [vmem:[%s15894_s26 + $0x88] sm:$0xff] %v10267_v61  }
 0x7e4 PF: > { %s16_s21 = sadd.s32 1, %s11841_s21  }
 0x7e5   : > { %p13_p4 = scmp.ge.s32.totalorder %s16_s21, 4  }
 0x7e7   :  { %15 = sbr.rel (!%p13_p4) target bundleno = 1 (0x1), region = 84 }

</bundles_post_ra>
